<compile_context>
chip_gen: v7x
topology: tpu7x:2x2x1
jax: 0.10.0
libtpu: 0.0.40
codegen_flags: <defaults>
</compile_context>

<pallas_src>
import functools
import math

import jax
import jax.numpy as jnp
from jax.experimental import pallas as pl
from jax.experimental.pallas import tpu as pltpu

_LN_EPS = 1e-6                   # timm ViT LayerNorm eps


def _round_up(x, m):
    return ((x + m - 1) // m) * m


def _layernorm_f32(x, g, b, eps):
    mean = jnp.mean(x, axis=-1, keepdims=True)
    xc = x - mean
    var = jnp.mean(xc * xc, axis=-1, keepdims=True)
    return xc * jax.lax.rsqrt(var + eps) * g + b


# ------------------------ hardware-aware configuration ----------------------

_VMEM_BUDGET = None


def _vmem_budget_bytes():
    """~3/4 of physical VMEM, capped at 100 MiB (48 MiB on v7x, 96 on v5e/v6e)."""
    global _VMEM_BUDGET
    if _VMEM_BUDGET is not None:
        return _VMEM_BUDGET
    cap = None
    try:
        cap = int(pltpu.get_tpu_info().vmem_capacity_bytes)
    except Exception:
        cap = None
    if cap is None:
        try:
            kind = jax.devices()[0].device_kind.lower()
        except Exception:
            kind = ""
        cap = (64 if "v7" in kind else 128) * 1024 * 1024
    _VMEM_BUDGET = min(int(cap * 3 // 4), 100 * 1024 * 1024)
    return _VMEM_BUDGET


_SINGLE_BUF_OK = None


def _probe_single_buffer():
    """Eagerly check (outside jit) that pipeline_mode=pl.Buffered(1) lowers and
    runs; grid-invariant weights are single-buffered only if this passes."""
    global _SINGLE_BUF_OK
    if _SINGLE_BUF_OK is not None:
        return _SINGLE_BUF_OK
    ok = False
    if hasattr(pl, "Buffered"):
        try:
            spec = pl.BlockSpec((8, 128), lambda i: (0, 0),
                                pipeline_mode=pl.Buffered(1))

            def _k(x_ref, o_ref):
                o_ref[...] = x_ref[...] + 1.0

            y = pl.pallas_call(
                _k, grid=(2,), in_specs=[spec],
                out_specs=pl.BlockSpec((8, 128), lambda i: (0, 0)),
                out_shape=jax.ShapeDtypeStruct((8, 128), jnp.float32),
            )(jnp.zeros((8, 128), jnp.float32))
            jax.block_until_ready(y)
            ok = True
        except Exception:
            ok = False
    _SINGLE_BUF_OK = ok
    return ok


def _wspec(shape, imap):
    """BlockSpec for a grid-invariant operand: single-buffer it when supported
    (the block is never re-fetched, so the second pipeline buffer is pure
    VMEM waste -- matters for ViT-L/H weights on v7x's 64 MiB VMEM)."""
    if _SINGLE_BUF_OK:
        return pl.BlockSpec(shape, imap, pipeline_mode=pl.Buffered(1))
    return pl.BlockSpec(shape, imap)


# ------------------------- patch embed (+cls/pos) ---------------------------

def _patch_embed_kernel(p_ref, w_ref, pos_ref, o_ref):
    # p_ref: (1, Tp, K) padded patches (row 0 and pad rows are zeros)
    # pos_ref: (Tp, D) fp32 = [cls+pos0 ; pos_patch + conv_bias ; zeros]
    tok = jnp.dot(p_ref[0], w_ref[...], preferred_element_type=jnp.float32)
    o_ref[0] = (tok + pos_ref[...]).astype(o_ref.dtype)


def patch_embed(patches_padded, w, pos_full):
    B, Tp, K = patches_padded.shape
    D = w.shape[1]
    return pl.pallas_call(
        _patch_embed_kernel,
        grid=(B,),
        in_specs=[
            pl.BlockSpec((1, Tp, K), lambda i: (i, 0, 0)),
            _wspec((K, D), lambda i: (0, 0)),
            _wspec((Tp, D), lambda i: (0, 0)),
        ],
        out_specs=pl.BlockSpec((1, Tp, D), lambda i: (i, 0, 0)),
        out_shape=jax.ShapeDtypeStruct((B, Tp, D), jnp.bfloat16),
        compiler_params=pltpu.CompilerParams(
            dimension_semantics=("parallel",),
            vmem_limit_bytes=_vmem_budget_bytes()),
    )(patches_padded, w, pos_full)


# --------------- fused LN1 + QKV + attention + proj + residual --------------

def _attn_block_kernel(h_ref, g_ref, b_ref, wqkv_ref, bqkv_ref, wproj_ref,
                       bproj_ref, o_ref, qkv_scr, acc_scr, *,
                       heads, dh, t_real, eps):
    x = h_ref[0].astype(jnp.float32)                               # (Tp, D)
    Tp, D = x.shape
    y = _layernorm_f32(x, g_ref[...].astype(jnp.float32),
                       b_ref[...].astype(jnp.float32), eps)

    # QKV projection: one dense (Tp,D)x(D,3D) MXU matmul, bf16 in / fp32 acc.
    # The fp32 result is immediately stored to a bf16 VMEM scratch so nothing
    # (Tp,3D)-sized stays live across the head loop (q pre-scaled by 1/sqrt(dh)
    # at prep time).
    qkv = jnp.dot(y.astype(jnp.bfloat16), wqkv_ref[...],
                  preferred_element_type=jnp.float32)
    qkv_scr[...] = (qkv + bqkv_ref[...].astype(jnp.float32)).astype(jnp.bfloat16)

    # Residual + output-projection bias folded into the accumulator init.
    acc_scr[...] = x + bproj_ref[...].astype(jnp.float32)

    # Key-padding mask: padded tokens (>= t_real) never receive attention.
    col = jax.lax.broadcasted_iota(jnp.int32, (Tp, Tp), 1)
    key_valid = col < t_real

    # Static head loop: every per-head intermediate is consumed by the
    # accumulator store below, so live ranges stay bounded per iteration.
    # TODO(synk): if heads >= 16 ever blows up instruction count, switch to a
    # lax.fori_loop with a (heads, Tp, 3*dh)-shaped scratch.
    for hh in range(heads):
        q0 = hh * dh
        qh = qkv_scr[:, q0:q0 + dh]                                # bf16 (Tp, dh)
        kh = qkv_scr[:, D + q0:D + q0 + dh]
        vh = qkv_scr[:, 2 * D + q0:2 * D + q0 + dh]
        s = jax.lax.dot_general(qh, kh, (((1,), (1,)), ((), ())),
                                preferred_element_type=jnp.float32)  # (Tp, Tp)
        s = jnp.where(key_valid, s, jnp.float32(-1e30))
        m = jnp.max(s, axis=-1, keepdims=True)
        p = jnp.exp(s - m)
        denom = jnp.sum(p, axis=-1, keepdims=True)
        o = jnp.dot(p.astype(jnp.bfloat16), vh,
                    preferred_element_type=jnp.float32)              # (Tp, dh)
        # normalize after PV (dh-wide) with the EUP reciprocal (free slot),
        # then fold this head straight into the output projection: the store
        # is a full-width lane-dense (Tp, D) accumulate, never a 64-lane vst.
        o = o * pl.reciprocal(denom, approx=True)
        acc_scr[...] += jnp.dot(o.astype(jnp.bfloat16), wproj_ref[hh],
                                preferred_element_type=jnp.float32)  # (Tp, D)

    o_ref[0] = acc_scr[...].astype(o_ref.dtype)


def attention_block(h, ln_g, ln_b, wqkv, bqkv, wproj_h, bproj, *, heads, t_real):
    B, Tp, D = h.shape
    dh = D // heads
    kernel = functools.partial(_attn_block_kernel, heads=heads, dh=dh,
                               t_real=t_real, eps=_LN_EPS)
    flops = int(B * (2 * Tp * D * 3 * D
                     + heads * (4 * Tp * Tp * dh + 2 * Tp * dh * D)))
    cost = pl.CostEstimate(flops=flops,
                           transcendentals=int(B * heads * Tp * Tp),
                           bytes_accessed=int(2 * 2 * B * Tp * D
                                              + 2 * 4 * D * D + 4 * 8 * D))
    # TODO(synk): for v7x with B == 1 (or odd B), add a second parallel grid
    # axis (e.g. query-row tiles) so both TensorCores have work.
    return pl.pallas_call(
        kernel,
        grid=(B,),
        in_specs=[
            pl.BlockSpec((1, Tp, D), lambda i: (i, 0, 0)),
            _wspec((1, D), lambda i: (0, 0)),
            _wspec((1, D), lambda i: (0, 0)),
            _wspec((D, 3 * D), lambda i: (0, 0)),
            _wspec((1, 3 * D), lambda i: (0, 0)),
            _wspec((heads, dh, D), lambda i: (0, 0, 0)),
            _wspec((1, D), lambda i: (0, 0)),
        ],
        out_specs=pl.BlockSpec((1, Tp, D), lambda i: (i, 0, 0)),
        out_shape=jax.ShapeDtypeStruct((B, Tp, D), jnp.bfloat16),
        scratch_shapes=[pltpu.VMEM((Tp, 3 * D), jnp.bfloat16),
                        pltpu.VMEM((Tp, D), jnp.float32)],
        compiler_params=pltpu.CompilerParams(
            dimension_semantics=("parallel",),
            vmem_limit_bytes=_vmem_budget_bytes()),
        cost_estimate=cost,
    )(h, ln_g, ln_b, wqkv, bqkv, wproj_h, bproj)


# ---------------- fused LN2 + FC1 + GELU + FC2 + residual -------------------
# Grid: (row tiles [parallel], hidden-dim tiles [arbitrary]).  Only a (D, tk)
# slice of FC1 and a (tk, D) slice of FC2 are resident per step; LN output is
# cached in a bf16 scratch and partial FC2 products accumulate in fp32.

def _mlp_block_kernel(h_ref, g_ref, b_ref, w1_ref, b1_ref, w2_ref, b2_ref,
                      o_ref, y_scr, acc_scr, *, eps):
    k = pl.program_id(1)
    nk = pl.num_programs(1)

    @pl.when(k == 0)
    def _():
        x = h_ref[...].astype(jnp.float32)                          # (tm, D)
        y = _layernorm_f32(x, g_ref[...].astype(jnp.float32),
                           b_ref[...].astype(jnp.float32), eps)
        y_scr[...] = y.astype(jnp.bfloat16)
        # residual + FC2 bias folded into the accumulator init
        acc_scr[...] = x + b2_ref[...].astype(jnp.float32)

    u = jnp.dot(y_scr[...], w1_ref[...], preferred_element_type=jnp.float32)
    u = u + b1_ref[...].astype(jnp.float32)
    # tanh-approx GELU  # TODO(synk): timm ViT default is exact (erf) GELU
    c = math.sqrt(2.0 / math.pi)
    u = 0.5 * u * (1.0 + jnp.tanh(c * (u + 0.044715 * u * u * u)))
    acc_scr[...] += jnp.dot(u.astype(jnp.bfloat16), w2_ref[...],
                            preferred_element_type=jnp.float32)

    @pl.when(k == nk - 1)
    def _():
        o_ref[...] = acc_scr[...].astype(o_ref.dtype)


def _pick_row_tile(M):
    for tm in (512, 256, 128, 64, 32, 16, 8):
        if tm <= M and M % tm == 0:
            return tm
    return M


def _pick_hidden_tile(Dh, max_tk=1024):
    if Dh <= max_tk:
        return Dh
    for tk in range(max_tk, 0, -128):
        if tk % 128 == 0 and Dh % tk == 0:
            return tk
    return Dh


def mlp_block(h_flat, ln_g, ln_b, w1, b1, w2, b2):
    M, D = h_flat.shape
    Dh = w1.shape[1]
    tm = _pick_row_tile(M)
    tk = _pick_hidden_tile(Dh)
    kernel = functools.partial(_mlp_block_kernel, eps=_LN_EPS)
    cost = pl.CostEstimate(flops=int(4 * M * D * Dh), transcendentals=int(M * Dh),
                           bytes_accessed=int(2 * 2 * M * D + 2 * 2 * D * Dh
                                              + 4 * (Dh + 3 * D)))
    return pl.pallas_call(
        kernel,
        grid=(M // tm, Dh // tk),
        in_specs=[
            pl.BlockSpec((tm, D), lambda i, k: (i, 0)),
            _wspec((1, D), lambda i, k: (0, 0)),
            _wspec((1, D), lambda i, k: (0, 0)),
            pl.BlockSpec((D, tk), lambda i, k: (0, k)),
            pl.BlockSpec((1, tk), lambda i, k: (0, k)),
            pl.BlockSpec((tk, D), lambda i, k: (k, 0)),
            _wspec((1, D), lambda i, k: (0, 0)),
        ],
        out_specs=pl.BlockSpec((tm, D), lambda i, k: (i, 0)),
        out_shape=jax.ShapeDtypeStruct((M, D), jnp.bfloat16),
        scratch_shapes=[pltpu.VMEM((tm, D), jnp.bfloat16),
                        pltpu.VMEM((tm, D), jnp.float32)],
        compiler_params=pltpu.CompilerParams(
            dimension_semantics=("parallel", "arbitrary"),
            vmem_limit_bytes=_vmem_budget_bytes()),
        cost_estimate=cost,
    )(h_flat, ln_g, ln_b, w1, b1, w2, b2)


# ----------------- fused final LN + head + L2 normalize ---------------------

def _head_kernel(x_ref, g_ref, b_ref, w_ref, hb_ref, o_ref, *, eps, l2_eps):
    x = x_ref[...].astype(jnp.float32)                              # (B, D)
    y = _layernorm_f32(x, g_ref[...].astype(jnp.float32),
                       b_ref[...].astype(jnp.float32), eps)
    logits = jnp.dot(y.astype(jnp.bfloat16), w_ref[...],
                     preferred_element_type=jnp.float32)
    logits = logits + hb_ref[...].astype(jnp.float32)
    # Padded classifier columns are exactly zero -> they do not affect the norm.
    nrm = jnp.sqrt(jnp.sum(logits * logits, axis=-1, keepdims=True))
    nrm = jnp.maximum(nrm, l2_eps)                  # F.normalize clamp_min(eps)
    o_ref[...] = (logits / nrm).astype(o_ref.dtype)


def head_l2norm(cls_h, norm_g, norm_b, head_w, head_b, *, l2_eps=1e-12):
    Bn, D = cls_h.shape
    NCp = head_w.shape[1]                           # padded to a multiple of 128
    kernel = functools.partial(_head_kernel, eps=_LN_EPS, l2_eps=l2_eps)
    return pl.pallas_call(
        kernel,
        grid=(1,),
        in_specs=[
            pl.BlockSpec((Bn, D), lambda i: (0, 0)),
            pl.BlockSpec((1, D), lambda i: (0, 0)),
            pl.BlockSpec((1, D), lambda i: (0, 0)),
            pl.BlockSpec((D, NCp), lambda i: (0, 0)),
            pl.BlockSpec((1, NCp), lambda i: (0, 0)),
        ],
        out_specs=pl.BlockSpec((Bn, NCp), lambda i: (0, 0)),
        out_shape=jax.ShapeDtypeStruct((Bn, NCp), jnp.float32),
        compiler_params=pltpu.CompilerParams(
            dimension_semantics=("arbitrary",),
            vmem_limit_bytes=_vmem_budget_bytes()),
    )(cls_h, norm_g, norm_b, head_w, head_b)


# ------------------------------ parameters ----------------------------------

def init_params(key, *, in_chans, patch, dim, depth, heads, mlp_dim,
                num_classes, num_tokens):
    def nrm(k, shape, std=0.02):
        return (std * jax.random.normal(k, shape)).astype(jnp.float32)

    keys = jax.random.split(key, 6 + depth)
    params = {
        "patch_w": nrm(keys[0], (in_chans * patch * patch, dim)),
        "patch_b": jnp.zeros((dim,), jnp.float32),
        "cls_token": nrm(keys[1], (1, 1, dim)),
        "pos_embed": nrm(keys[2], (1, num_tokens, dim)),
        "norm_g": jnp.ones((dim,), jnp.float32),
        "norm_b": jnp.zeros((dim,), jnp.float32),
        "head_w": nrm(keys[3], (dim, num_classes)),
        "head_b": jnp.zeros((num_classes,), jnp.float32),
        "blocks": [],
    }
    for d in range(depth):
        bk = jax.random.split(keys[6 + d], 4)
        params["blocks"].append({
            "ln1_g": jnp.ones((dim,), jnp.float32),
            "ln1_b": jnp.zeros((dim,), jnp.float32),
            "qkv_w": nrm(bk[0], (dim, 3 * dim)),
            "qkv_b": jnp.zeros((3 * dim,), jnp.float32),
            "proj_w": nrm(bk[1], (dim, dim)),
            "proj_b": jnp.zeros((dim,), jnp.float32),
            "ln2_g": jnp.ones((dim,), jnp.float32),
            "ln2_b": jnp.zeros((dim,), jnp.float32),
            "fc1_w": nrm(bk[2], (dim, mlp_dim)),
            "fc1_b": jnp.zeros((mlp_dim,), jnp.float32),
            "fc2_w": nrm(bk[3], (dim, mlp_dim)).T.copy() if False else
                     nrm(bk[3], (mlp_dim, dim)),
            "fc2_b": jnp.zeros((dim,), jnp.float32),
        })
    return params


def prepare_params(params, *, dim, heads, n_patch, t_pad):
    """One-time prep: bf16 weights, fold attention scale into q, reshape the
    output projection to (heads, dh, D), fold cls-token/pos-embed/conv-bias
    into one fp32 (T_pad, D) table, zero-pad the classifier to 128 lanes."""
    _probe_single_buffer()          # must run eagerly (outside jit)
    _vmem_budget_bytes()

    dh = dim // heads
    scale = 1.0 / math.sqrt(dh)
    pos = params["pos_embed"][0]                        # (1+n_patch, D)
    cls = params["cls_token"][0, 0]                     # (D,)
    pos_full = jnp.zeros((t_pad, dim), jnp.float32)
    pos_full = pos_full.at[0].set(cls + pos[0])
    pos_full = pos_full.at[1:1 + n_patch].set(pos[1:] + params["patch_b"][None, :])

    nc = params["head_w"].shape[1]
    nc_pad = _round_up(nc, 128)
    head_w = jnp.zeros((dim, nc_pad), jnp.float32).at[:, :nc].set(params["head_w"])
    head_b = jnp.zeros((nc_pad,), jnp.float32).at[:nc].set(params["head_b"])

    prep = {
        "patch_w": params["patch_w"].astype(jnp.bfloat16),
        "pos_full": pos_full,
        "norm_g": params["norm_g"].reshape(1, dim),
        "norm_b": params["norm_b"].reshape(1, dim),
        "head_w": head_w.astype(jnp.bfloat16),
        "head_b": head_b.reshape(1, nc_pad),
        "blocks": [],
    }
    for blk in params["blocks"]:
        qkv_w = blk["qkv_w"].at[:, :dim].multiply(scale)   # fold 1/sqrt(dh) into q
        qkv_b = blk["qkv_b"].at[:dim].multiply(scale)
        prep["blocks"].append({
            "ln1_g": blk["ln1_g"].reshape(1, dim),
            "ln1_b": blk["ln1_b"].reshape(1, dim),
            "qkv_w": qkv_w.astype(jnp.bfloat16),
            "qkv_b": qkv_b.reshape(1, 3 * dim),
            "proj_w": blk["proj_w"].reshape(heads, dh, dim).astype(jnp.bfloat16),
            "proj_b": blk["proj_b"].reshape(1, dim),
            "ln2_g": blk["ln2_g"].reshape(1, dim),
            "ln2_b": blk["ln2_b"].reshape(1, dim),
            "fc1_w": blk["fc1_w"].astype(jnp.bfloat16),
            "fc1_b": blk["fc1_b"].reshape(1, -1),
            "fc2_w": blk["fc2_w"].astype(jnp.bfloat16),
            "fc2_b": blk["fc2_b"].reshape(1, dim),
        })
    return prep


# ------------------------------ forward pass --------------------------------

def supvit_forward(prep, x, *, patch, dim, heads, num_classes):
    B, C, H, W = x.shape
    gh, gw = H // patch, W // patch
    n_patch = gh * gw
    t_real = 1 + n_patch
    t_pad = _round_up(t_real, 128)     # lane-dense token axis (review item #1)

    # patchify: Conv2d(k=patch, stride=patch) == matmul over flattened patches.
    # TODO(synk): fold this 6-D transpose into the patch-embed kernel's
    # index_map to overlap the gather with the matmul DMA pipeline.
    patches = (x.reshape(B, C, gh, patch, gw, patch)
                 .transpose(0, 2, 4, 1, 3, 5)
                 .reshape(B, n_patch, C * patch * patch))
    patches = jnp.pad(patches, ((0, 0), (1, t_pad - t_real), (0, 0)))
    patches = patches.astype(jnp.bfloat16)

    h = patch_embed(patches, prep["patch_w"], prep["pos_full"])   # (B,Tp,D) bf16

    # TODO(synk): on v5e/v6e (128 MiB VMEM) the attention and MLP of one block
    # could be fused into a single per-batch pallas_call to skip one HBM
    # round-trip of the (B, Tp, D) activation per layer.
    for blk in prep["blocks"]:
        h = attention_block(h, blk["ln1_g"], blk["ln1_b"],
                            blk["qkv_w"], blk["qkv_b"],
                            blk["proj_w"], blk["proj_b"],
                            heads=heads, t_real=t_real)
        hf = mlp_block(h.reshape(B * t_pad, dim),
                       blk["ln2_g"], blk["ln2_b"],
                       blk["fc1_w"], blk["fc1_b"],
                       blk["fc2_w"], blk["fc2_b"])
        h = hf.reshape(B, t_pad, dim)

    cls_h = h[:, 0, :]                                            # (B, D)
    feat = head_l2norm(cls_h, prep["norm_g"], prep["norm_b"],
                       prep["head_w"], prep["head_b"])            # F.normalize
    return feat[:, :num_classes]


# --------------------------------- main --------------------------------------

if __name__ == "__main__":
    B, C, H, W = 2, 3, 16, 16
    PATCH, DIM, DEPTH, HEADS = 4, 32, 2, 2
    MLP_DIM, NUM_CLASSES = 4 * DIM, 16
    N_PATCH = (H // PATCH) * (W // PATCH)
    NUM_TOKENS = 1 + N_PATCH
    T_PAD = _round_up(NUM_TOKENS, 128)

    key = jax.random.PRNGKey(0)
    k_x, k_p = jax.random.split(key)
    x = jax.random.normal(k_x, (B, C, H, W), dtype=jnp.float32)
    params = init_params(k_p, in_chans=C, patch=PATCH, dim=DIM, depth=DEPTH,
                         heads=HEADS, mlp_dim=MLP_DIM, num_classes=NUM_CLASSES,
                         num_tokens=NUM_TOKENS)
    prep = prepare_params(params, dim=DIM, heads=HEADS,
                          n_patch=N_PATCH, t_pad=T_PAD)

    fwd = jax.jit(functools.partial(supvit_forward, patch=PATCH, dim=DIM,
                                    heads=HEADS, num_classes=NUM_CLASSES))
    feat = jax.block_until_ready(fwd(prep, x))

    assert feat.shape == (B, NUM_CLASSES)
    assert bool(jnp.all(jnp.abs(jnp.sum(feat * feat, axis=1) - 1.0) < 1e-4))
    print("KERNEL_OK")
</pallas_src>

<mosaic_0001>
module attributes {stable_mosaic.version = 11 : i64} {
  func.func @_k(%arg0: i32, %arg1: memref<8x128xf32, #tpu.memory_space<vmem>>, %arg2: memref<8x128xf32, #tpu.memory_space<vmem>>) attributes {dimension_semantics = [#tpu.dimension_semantics<arbitrary>], iteration_bounds = array<i64: 2>, scalar_prefetch = 0 : i64, scratch_operands = 0 : i64, tpu.core_type = #tpu.core_type<tc>, window_params = [{pipeline_mode = #tpu.pipeline_mode<synchronous>, transform_indices = @transform_0, window_bounds = array<i64: 8, 128>}, {pipeline_mode = #tpu.pipeline_mode<synchronous>, transform_indices = @transform_1, window_bounds = array<i64: 8, 128>}]} {
    %c0 = arith.constant 0 : index
    %c0_0 = arith.constant 0 : index
    %0 = vector.load %arg1[%c0, %c0_0] : memref<8x128xf32, #tpu.memory_space<vmem>>, vector<8x128xf32>
    %cst = arith.constant 1.000000e+00 : f32
    %1 = vector.broadcast %cst : f32 to vector<8x128xf32>
    %2 = arith.addf %0, %1 : vector<8x128xf32>
    %c0_1 = arith.constant 0 : index
    %c0_2 = arith.constant 0 : index
    %3 = vector.load %arg2[%c0_1, %c0_2] : memref<8x128xf32, #tpu.memory_space<vmem>>, vector<8x128xf32>
    tpu.vector_store %arg2[%c0_1, %c0_2], %2 {strides = array<i32>} : memref<8x128xf32, #tpu.memory_space<vmem>>, vector<8x128xf32>,
    return
  }
  func.func @transform_0(%arg0: i32) -> (i32, i32) {
    %c0_i32 = arith.constant 0 : i32
    %c0_i32_0 = arith.constant 0 : i32
    %c0_i32_1 = arith.constant 0 : i32
    return %c0_i32, %c0_i32_0 : i32, i32
  }
  func.func @transform_1(%arg0: i32) -> (i32, i32) {
    %c0_i32 = arith.constant 0 : i32
    %c0_i32_0 = arith.constant 0 : i32
    %c0_i32_1 = arith.constant 0 : i32
    return %c0_i32, %c0_i32_0 : i32, i32
  }
}

module attributes {stable_mosaic.version = 11 : i64} {
  func.func @_patch_embed_kernel(%arg0: i32, %arg1: memref<1x128x48xbf16, #tpu.memory_space<vmem>>, %arg2: memref<48x32xbf16, #tpu.memory_space<vmem>>, %arg3: memref<128x32xf32, #tpu.memory_space<vmem>>, %arg4: memref<1x128x32xbf16, #tpu.memory_space<vmem>>) attributes {dimension_semantics = [#tpu.dimension_semantics<parallel>], iteration_bounds = array<i64: 2>, scalar_prefetch = 0 : i64, scratch_operands = 0 : i64, tpu.core_type = #tpu.core_type<tc>, window_params = [{transform_indices = @transform_0, window_bounds = array<i64: 1, 128, 48>}, {pipeline_mode = #tpu.pipeline_mode<synchronous>, transform_indices = @transform_1, window_bounds = array<i64: 48, 32>}, {pipeline_mode = #tpu.pipeline_mode<synchronous>, transform_indices = @transform_2, window_bounds = array<i64: 128, 32>}, {transform_indices = @transform_3, window_bounds = array<i64: 1, 128, 32>}]} {
    %c0 = arith.constant 0 : index
    %c0_0 = arith.constant 0 : index
    %c0_1 = arith.constant 0 : index
    %0 = vector.load %arg1[%c0, %c0_0, %c0_1] : memref<1x128x48xbf16, #tpu.memory_space<vmem>>, vector<1x128x48xbf16>
    %1 = vector.shape_cast %0 : vector<1x128x48xbf16> to vector<128x48xbf16>
    %c0_2 = arith.constant 0 : index
    %c0_3 = arith.constant 0 : index
    %2 = vector.load %arg2[%c0_2, %c0_3] : memref<48x32xbf16, #tpu.memory_space<vmem>>, vector<48x32xbf16>
    %cst = arith.constant dense<0.000000e+00> : vector<128x32xf32>
    %3 = tpu.matmul %1, %2, %cst {dimension_numbers = #tpu.dot_dimension_numbers<[1], [0], [0], [1], [0, 0, 1, 1], [], []>} : vector<128x48xbf16>, vector<48x32xbf16>, vector<128x32xf32> -> vector<128x32xf32>
    %c0_4 = arith.constant 0 : index
    %c0_5 = arith.constant 0 : index
    %4 = vector.load %arg3[%c0_4, %c0_5] : memref<128x32xf32, #tpu.memory_space<vmem>>, vector<128x32xf32>
    %5 = arith.addf %3, %4 : vector<128x32xf32>
    %6 = arith.truncf %5 : vector<128x32xf32> to vector<128x32xbf16>
    %c0_6 = arith.constant 0 : index
    %c0_7 = arith.constant 0 : index
    %c0_8 = arith.constant 0 : index
    %7 = vector.load %arg4[%c0_6, %c0_7, %c0_8] : memref<1x128x32xbf16, #tpu.memory_space<vmem>>, vector<1x128x32xbf16>
    %8 = vector.shape_cast %7 : vector<1x128x32xbf16> to vector<128x32xbf16>
    %9 = vector.shape_cast %6 : vector<128x32xbf16> to vector<1x128x32xbf16>
    tpu.vector_store %arg4[%c0_6, %c0_7, %c0_8], %9 {strides = array<i32>} : memref<1x128x32xbf16, #tpu.memory_space<vmem>>, vector<1x128x32xbf16>,
    return
  }
  func.func @transform_0(%arg0: i32) -> (i32, i32, i32) {
    %c0_i32 = arith.constant 0 : i32
    %c0_i32_0 = arith.constant 0 : i32
    %c0_i32_1 = arith.constant 0 : i32
    return %arg0, %c0_i32, %c0_i32_0 : i32, i32, i32
  }
  func.func @transform_1(%arg0: i32) -> (i32, i32) {
    %c0_i32 = arith.constant 0 : i32
    %c0_i32_0 = arith.constant 0 : i32
    %c0_i32_1 = arith.constant 0 : i32
    return %c0_i32, %c0_i32_0 : i32, i32
  }
  func.func @transform_2(%arg0: i32) -> (i32, i32) {
    %c0_i32 = arith.constant 0 : i32
    %c0_i32_0 = arith.constant 0 : i32
    %c0_i32_1 = arith.constant 0 : i32
    return %c0_i32, %c0_i32_0 : i32, i32
  }
  func.func @transform_3(%arg0: i32) -> (i32, i32, i32) {
    %c0_i32 = arith.constant 0 : i32
    %c0_i32_0 = arith.constant 0 : i32
    %c0_i32_1 = arith.constant 0 : i32
    return %arg0, %c0_i32, %c0_i32_0 : i32, i32, i32
  }
}

module attributes {stable_mosaic.version = 11 : i64} {
  func.func @_attn_block_kernel(%arg0: i32, %arg1: memref<1x128x32xbf16, #tpu.memory_space<vmem>>, %arg2: memref<1x32xf32, #tpu.memory_space<vmem>>, %arg3: memref<1x32xf32, #tpu.memory_space<vmem>>, %arg4: memref<32x96xbf16, #tpu.memory_space<vmem>>, %arg5: memref<1x96xf32, #tpu.memory_space<vmem>>, %arg6: memref<2x16x32xbf16, #tpu.memory_space<vmem>>, %arg7: memref<1x32xf32, #tpu.memory_space<vmem>>, %arg8: memref<1x128x32xbf16, #tpu.memory_space<vmem>>, %arg9: memref<128x96xbf16, #tpu.memory_space<vmem>>, %arg10: memref<128x32xf32, #tpu.memory_space<vmem>>) attributes {dimension_semantics = [#tpu.dimension_semantics<parallel>], iteration_bounds = array<i64: 2>, scalar_prefetch = 0 : i64, scratch_operands = 2 : i64, tpu.core_type = #tpu.core_type<tc>, window_params = [{transform_indices = @transform_0, window_bounds = array<i64: 1, 128, 32>}, {pipeline_mode = #tpu.pipeline_mode<synchronous>, transform_indices = @transform_1, window_bounds = array<i64: 1, 32>}, {pipeline_mode = #tpu.pipeline_mode<synchronous>, transform_indices = @transform_2, window_bounds = array<i64: 1, 32>}, {pipeline_mode = #tpu.pipeline_mode<synchronous>, transform_indices = @transform_3, window_bounds = array<i64: 32, 96>}, {pipeline_mode = #tpu.pipeline_mode<synchronous>, transform_indices = @transform_4, window_bounds = array<i64: 1, 96>}, {pipeline_mode = #tpu.pipeline_mode<synchronous>, transform_indices = @transform_5, window_bounds = array<i64: 2, 16, 32>}, {pipeline_mode = #tpu.pipeline_mode<synchronous>, transform_indices = @transform_6, window_bounds = array<i64: 1, 32>}, {transform_indices = @transform_7, window_bounds = array<i64: 1, 128, 32>}]} {
    %c0 = arith.constant 0 : index
    %c0_0 = arith.constant 0 : index
    %c0_1 = arith.constant 0 : index
    %0 = vector.load %arg1[%c0, %c0_0, %c0_1] : memref<1x128x32xbf16, #tpu.memory_space<vmem>>, vector<1x128x32xbf16>
    %1 = vector.shape_cast %0 : vector<1x128x32xbf16> to vector<128x32xbf16>
    %2 = arith.extf %1 : vector<128x32xbf16> to vector<128x32xf32>
    %c0_2 = arith.constant 0 : index
    %c0_3 = arith.constant 0 : index
    %3 = vector.load %arg2[%c0_2, %c0_3] : memref<1x32xf32, #tpu.memory_space<vmem>>, vector<1x32xf32>
    %c0_4 = arith.constant 0 : index
    %c0_5 = arith.constant 0 : index
    %4 = vector.load %arg3[%c0_4, %c0_5] : memref<1x32xf32, #tpu.memory_space<vmem>>, vector<1x32xf32>
    %cst = arith.constant dense<0.000000e+00> : vector<128xf32>
    %5 = vector.multi_reduction <add>, %2, %cst [1] : vector<128x32xf32> to vector<128xf32>
    %6 = vector.shape_cast %5 : vector<128xf32> to vector<128x1xf32>
    %cst_6 = arith.constant 3.200000e+01 : f32
    %7 = vector.broadcast %cst_6 : f32 to vector<128x1xf32>
    %8 = arith.divf %6, %7 : vector<128x1xf32>
    %9 = vector.broadcast %8 : vector<128x1xf32> to vector<128x32xf32>
    %10 = arith.subf %2, %9 : vector<128x32xf32>
    %11 = arith.mulf %10, %10 : vector<128x32xf32>
    %cst_7 = arith.constant dense<0.000000e+00> : vector<128xf32>
    %12 = vector.multi_reduction <add>, %11, %cst_7 [1] : vector<128x32xf32> to vector<128xf32>
    %13 = vector.shape_cast %12 : vector<128xf32> to vector<128x1xf32>
    %cst_8 = arith.constant 3.200000e+01 : f32
    %14 = vector.broadcast %cst_8 : f32 to vector<128x1xf32>
    %15 = arith.divf %13, %14 : vector<128x1xf32>
    %cst_9 = arith.constant 9.99999997E-7 : f32
    %16 = vector.broadcast %cst_9 : f32 to vector<128x1xf32>
    %17 = arith.addf %15, %16 : vector<128x1xf32>
    %18 = math.rsqrt %17 : vector<128x1xf32>
    %19 = vector.broadcast %18 : vector<128x1xf32> to vector<128x32xf32>
    %20 = arith.mulf %10, %19 : vector<128x32xf32>
    %21 = vector.broadcast %3 : vector<1x32xf32> to vector<128x32xf32>
    %22 = arith.mulf %20, %21 : vector<128x32xf32>
    %23 = vector.broadcast %4 : vector<1x32xf32> to vector<128x32xf32>
    %24 = arith.addf %22, %23 : vector<128x32xf32>
    %25 = arith.truncf %24 : vector<128x32xf32> to vector<128x32xbf16>
    %c0_10 = arith.constant 0 : index
    %c0_11 = arith.constant 0 : index
    %26 = vector.load %arg4[%c0_10, %c0_11] : memref<32x96xbf16, #tpu.memory_space<vmem>>, vector<32x96xbf16>
    %cst_12 = arith.constant dense<0.000000e+00> : vector<128x96xf32>
    %27 = tpu.matmul %25, %26, %cst_12 {dimension_numbers = #tpu.dot_dimension_numbers<[1], [0], [0], [1], [0, 0, 1, 1], [], []>} : vector<128x32xbf16>, vector<32x96xbf16>, vector<128x96xf32> -> vector<128x96xf32>
    %c0_13 = arith.constant 0 : index
    %c0_14 = arith.constant 0 : index
    %28 = vector.load %arg5[%c0_13, %c0_14] : memref<1x96xf32, #tpu.memory_space<vmem>>, vector<1x96xf32>
    %29 = vector.broadcast %28 : vector<1x96xf32> to vector<128x96xf32>
    %30 = arith.addf %27, %29 : vector<128x96xf32>
    %31 = arith.truncf %30 : vector<128x96xf32> to vector<128x96xbf16>
    %c0_15 = arith.constant 0 : index
    %c0_16 = arith.constant 0 : index
    %32 = vector.load %arg9[%c0_15, %c0_16] : memref<128x96xbf16, #tpu.memory_space<vmem>>, vector<128x96xbf16>
    tpu.vector_store %arg9[%c0_15, %c0_16], %31 {strides = array<i32>} : memref<128x96xbf16, #tpu.memory_space<vmem>>, vector<128x96xbf16>,
    %c0_17 = arith.constant 0 : index
    %c0_18 = arith.constant 0 : index
    %33 = vector.load %arg7[%c0_17, %c0_18] : memref<1x32xf32, #tpu.memory_space<vmem>>, vector<1x32xf32>
    %34 = vector.broadcast %33 : vector<1x32xf32> to vector<128x32xf32>
    %35 = arith.addf %2, %34 : vector<128x32xf32>
    %c0_19 = arith.constant 0 : index
    %c0_20 = arith.constant 0 : index
    %36 = vector.load %arg10[%c0_19, %c0_20] : memref<128x32xf32, #tpu.memory_space<vmem>>, vector<128x32xf32>
    tpu.vector_store %arg10[%c0_19, %c0_20], %35 {strides = array<i32>} : memref<128x32xf32, #tpu.memory_space<vmem>>, vector<128x32xf32>,
    %37 = tpu.iota {dimensions = array<i32: 1>} : vector<128x128xi32>
    %c17_i32 = arith.constant 17 : i32
    %38 = vector.broadcast %c17_i32 : i32 to vector<128x128xi32>
    %39 = arith.cmpi slt, %37, %38 : vector<128x128xi32>
    %c0_21 = arith.constant 0 : index
    %c0_22 = arith.constant 0 : index
    %40 = vector.load %arg9[%c0_21, %c0_22] : memref<128x96xbf16, #tpu.memory_space<vmem>>, vector<128x16xbf16>
    %c0_23 = arith.constant 0 : index
    %c32 = arith.constant 32 : index
    %41 = vector.load %arg9[%c0_23, %c32] : memref<128x96xbf16, #tpu.memory_space<vmem>>, vector<128x16xbf16>
    %c0_24 = arith.constant 0 : index
    %c64 = arith.constant 64 : index
    %42 = vector.load %arg9[%c0_24, %c64] : memref<128x96xbf16, #tpu.memory_space<vmem>>, vector<128x16xbf16>
    %cst_25 = arith.constant dense<0.000000e+00> : vector<128x128xf32>
    %43 = tpu.matmul %40, %41, %cst_25 {dimension_numbers = #tpu.dot_dimension_numbers<[1], [1], [0], [0], [0, 0, 1, 0], [], []>} : vector<128x16xbf16>, vector<128x16xbf16>, vector<128x128xf32> -> vector<128x128xf32>
    %cst_26 = arith.constant -1.000000e+30 : f32
    %44 = vector.broadcast %cst_26 : f32 to vector<128x128xf32>
    %45 = arith.select %39, %43, %44 : vector<128x128xi1>, vector<128x128xf32>
    %cst_27 = arith.constant dense<0xFF800000> : vector<128xf32>
    %46 = vector.multi_reduction <maximumf>, %45, %cst_27 [1] : vector<128x128xf32> to vector<128xf32>
    %47 = vector.shape_cast %46 : vector<128xf32> to vector<128x1xf32>
    %48 = vector.broadcast %47 : vector<128x1xf32> to vector<128x128xf32>
    %49 = arith.subf %45, %48 : vector<128x128xf32>
    %50 = math.exp %49 : vector<128x128xf32>
    %cst_28 = arith.constant dense<0.000000e+00> : vector<128xf32>
    %51 = vector.multi_reduction <add>, %50, %cst_28 [1] : vector<128x128xf32> to vector<128xf32>
    %52 = vector.shape_cast %51 : vector<128xf32> to vector<128x1xf32>
    %53 = arith.truncf %50 : vector<128x128xf32> to vector<128x128xbf16>
    %cst_29 = arith.constant dense<0.000000e+00> : vector<128x16xf32>
    %54 = tpu.matmul %53, %42, %cst_29 {dimension_numbers = #tpu.dot_dimension_numbers<[1], [0], [0], [1], [0, 0, 1, 1], [], []>} : vector<128x128xbf16>, vector<128x16xbf16>, vector<128x16xf32> -> vector<128x16xf32>
    %55 = tpu.reciprocal %52 {approx = true} : vector<128x1xf32> -> vector<128x1xf32>
    %56 = vector.broadcast %55 : vector<128x1xf32> to vector<128x16xf32>
    %57 = arith.mulf %54, %56 : vector<128x16xf32>
    %c0_30 = arith.constant 0 : index
    %c0_31 = arith.constant 0 : index
    %58 = vector.load %arg10[%c0_30, %c0_31] : memref<128x32xf32, #tpu.memory_space<vmem>>, vector<128x32xf32>
    %59 = arith.truncf %57 : vector<128x16xf32> to vector<128x16xbf16>
    %c0_32 = arith.constant 0 : index
    %c0_33 = arith.constant 0 : index
    %c0_34 = arith.constant 0 : index
    %60 = vector.load %arg6[%c0_32, %c0_33, %c0_34] : memref<2x16x32xbf16, #tpu.memory_space<vmem>>, vector<1x16x32xbf16>
    %61 = vector.shape_cast %60 : vector<1x16x32xbf16> to vector<16x32xbf16>
    %cst_35 = arith.constant dense<0.000000e+00> : vector<128x32xf32>
    %62 = tpu.matmul %59, %61, %cst_35 {dimension_numbers = #tpu.dot_dimension_numbers<[1], [0], [0], [1], [0, 0, 1, 1], [], []>} : vector<128x16xbf16>, vector<16x32xbf16>, vector<128x32xf32> -> vector<128x32xf32>
    %63 = arith.addf %58, %62 : vector<128x32xf32>
    %c0_36 = arith.constant 0 : index
    %c0_37 = arith.constant 0 : index
    %64 = vector.load %arg10[%c0_36, %c0_37] : memref<128x32xf32, #tpu.memory_space<vmem>>, vector<128x32xf32>
    tpu.vector_store %arg10[%c0_36, %c0_37], %63 {strides = array<i32>} : memref<128x32xf32, #tpu.memory_space<vmem>>, vector<128x32xf32>,
    %c0_38 = arith.constant 0 : index
    %c16 = arith.constant 16 : index
    %65 = vector.load %arg9[%c0_38, %c16] : memref<128x96xbf16, #tpu.memory_space<vmem>>, vector<128x16xbf16>
    %c0_39 = arith.constant 0 : index
    %c48 = arith.constant 48 : index
    %66 = vector.load %arg9[%c0_39, %c48] : memref<128x96xbf16, #tpu.memory_space<vmem>>, vector<128x16xbf16>
    %c0_40 = arith.constant 0 : index
    %c80 = arith.constant 80 : index
    %67 = vector.load %arg9[%c0_40, %c80] : memref<128x96xbf16, #tpu.memory_space<vmem>>, vector<128x16xbf16>
    %cst_41 = arith.constant dense<0.000000e+00> : vector<128x128xf32>
    %68 = tpu.matmul %65, %66, %cst_41 {dimension_numbers = #tpu.dot_dimension_numbers<[1], [1], [0], [0], [0, 0, 1, 0], [], []>} : vector<128x16xbf16>, vector<128x16xbf16>, vector<128x128xf32> -> vector<128x128xf32>
    %cst_42 = arith.constant -1.000000e+30 : f32
    %69 = vector.broadcast %cst_42 : f32 to vector<128x128xf32>
    %70 = arith.select %39, %68, %69 : vector<128x128xi1>, vector<128x128xf32>
    %cst_43 = arith.constant dense<0xFF800000> : vector<128xf32>
    %71 = vector.multi_reduction <maximumf>, %70, %cst_43 [1] : vector<128x128xf32> to vector<128xf32>
    %72 = vector.shape_cast %71 : vector<128xf32> to vector<128x1xf32>
    %73 = vector.broadcast %72 : vector<128x1xf32> to vector<128x128xf32>
    %74 = arith.subf %70, %73 : vector<128x128xf32>
    %75 = math.exp %74 : vector<128x128xf32>
    %cst_44 = arith.constant dense<0.000000e+00> : vector<128xf32>
    %76 = vector.multi_reduction <add>, %75, %cst_44 [1] : vector<128x128xf32> to vector<128xf32>
    %77 = vector.shape_cast %76 : vector<128xf32> to vector<128x1xf32>
    %78 = arith.truncf %75 : vector<128x128xf32> to vector<128x128xbf16>
    %cst_45 = arith.constant dense<0.000000e+00> : vector<128x16xf32>
    %79 = tpu.matmul %78, %67, %cst_45 {dimension_numbers = #tpu.dot_dimension_numbers<[1], [0], [0], [1], [0, 0, 1, 1], [], []>} : vector<128x128xbf16>, vector<128x16xbf16>, vector<128x16xf32> -> vector<128x16xf32>
    %80 = tpu.reciprocal %77 {approx = true} : vector<128x1xf32> -> vector<128x1xf32>
    %81 = vector.broadcast %80 : vector<128x1xf32> to vector<128x16xf32>
    %82 = arith.mulf %79, %81 : vector<128x16xf32>
    %c0_46 = arith.constant 0 : index
    %c0_47 = arith.constant 0 : index
    %83 = vector.load %arg10[%c0_46, %c0_47] : memref<128x32xf32, #tpu.memory_space<vmem>>, vector<128x32xf32>
    %84 = arith.truncf %82 : vector<128x16xf32> to vector<128x16xbf16>
    %c1 = arith.constant 1 : index
    %c0_48 = arith.constant 0 : index
    %c0_49 = arith.constant 0 : index
    %85 = vector.load %arg6[%c1, %c0_48, %c0_49] : memref<2x16x32xbf16, #tpu.memory_space<vmem>>, vector<1x16x32xbf16>
    %86 = vector.shape_cast %85 : vector<1x16x32xbf16> to vector<16x32xbf16>
    %cst_50 = arith.constant dense<0.000000e+00> : vector<128x32xf32>
    %87 = tpu.matmul %84, %86, %cst_50 {dimension_numbers = #tpu.dot_dimension_numbers<[1], [0], [0], [1], [0, 0, 1, 1], [], []>} : vector<128x16xbf16>, vector<16x32xbf16>, vector<128x32xf32> -> vector<128x32xf32>
    %88 = arith.addf %83, %87 : vector<128x32xf32>
    %c0_51 = arith.constant 0 : index
    %c0_52 = arith.constant 0 : index
    %89 = vector.load %arg10[%c0_51, %c0_52] : memref<128x32xf32, #tpu.memory_space<vmem>>, vector<128x32xf32>
    tpu.vector_store %arg10[%c0_51, %c0_52], %88 {strides = array<i32>} : memref<128x32xf32, #tpu.memory_space<vmem>>, vector<128x32xf32>,
    %c0_53 = arith.constant 0 : index
    %c0_54 = arith.constant 0 : index
    %90 = vector.load %arg10[%c0_53, %c0_54] : memref<128x32xf32, #tpu.memory_space<vmem>>, vector<128x32xf32>
    %91 = arith.truncf %90 : vector<128x32xf32> to vector<128x32xbf16>
    %c0_55 = arith.constant 0 : index
    %c0_56 = arith.constant 0 : index
    %c0_57 = arith.constant 0 : index
    %92 = vector.load %arg8[%c0_55, %c0_56, %c0_57] : memref<1x128x32xbf16, #tpu.memory_space<vmem>>, vector<1x128x32xbf16>
    %93 = vector.shape_cast %92 : vector<1x128x32xbf16> to vector<128x32xbf16>
    %94 = vector.shape_cast %91 : vector<128x32xbf16> to vector<1x128x32xbf16>
    tpu.vector_store %arg8[%c0_55, %c0_56, %c0_57], %94 {strides = array<i32>} : memref<1x128x32xbf16, #tpu.memory_space<vmem>>, vector<1x128x32xbf16>,
    return
  }
  func.func @transform_0(%arg0: i32) -> (i32, i32, i32) {
    %c0_i32 = arith.constant 0 : i32
    %c0_i32_0 = arith.constant 0 : i32
    %c0_i32_1 = arith.constant 0 : i32
    return %arg0, %c0_i32, %c0_i32_0 : i32, i32, i32
  }
  func.func @transform_1(%arg0: i32) -> (i32, i32) {
    %c0_i32 = arith.constant 0 : i32
    %c0_i32_0 = arith.constant 0 : i32
    %c0_i32_1 = arith.constant 0 : i32
    return %c0_i32, %c0_i32_0 : i32, i32
  }
  func.func @transform_2(%arg0: i32) -> (i32, i32) {
    %c0_i32 = arith.constant 0 : i32
    %c0_i32_0 = arith.constant 0 : i32
    %c0_i32_1 = arith.constant 0 : i32
    return %c0_i32, %c0_i32_0 : i32, i32
  }
  func.func @transform_3(%arg0: i32) -> (i32, i32) {
    %c0_i32 = arith.constant 0 : i32
    %c0_i32_0 = arith.constant 0 : i32
    %c0_i32_1 = arith.constant 0 : i32
    return %c0_i32, %c0_i32_0 : i32, i32
  }
  func.func @transform_4(%arg0: i32) -> (i32, i32) {
    %c0_i32 = arith.constant 0 : i32
    %c0_i32_0 = arith.constant 0 : i32
    %c0_i32_1 = arith.constant 0 : i32
    return %c0_i32, %c0_i32_0 : i32, i32
  }
  func.func @transform_5(%arg0: i32) -> (i32, i32, i32) {
    %c0_i32 = arith.constant 0 : i32
    %c0_i32_0 = arith.constant 0 : i32
    %c0_i32_1 = arith.constant 0 : i32
    %c0_i32_2 = arith.constant 0 : i32
    return %c0_i32, %c0_i32_0, %c0_i32_1 : i32, i32, i32
  }
  func.func @transform_6(%arg0: i32) -> (i32, i32) {
    %c0_i32 = arith.constant 0 : i32
    %c0_i32_0 = arith.constant 0 : i32
    %c0_i32_1 = arith.constant 0 : i32
    return %c0_i32, %c0_i32_0 : i32, i32
  }
  func.func @transform_7(%arg0: i32) -> (i32, i32, i32) {
    %c0_i32 = arith.constant 0 : i32
    %c0_i32_0 = arith.constant 0 : i32
    %c0_i32_1 = arith.constant 0 : i32
    return %arg0, %c0_i32, %c0_i32_0 : i32, i32, i32
  }
}

module attributes {stable_mosaic.version = 11 : i64} {
  func.func @_mlp_block_kernel(%arg0: i32, %arg1: i32, %arg2: memref<256x32xbf16, #tpu.memory_space<vmem>>, %arg3: memref<1x32xf32, #tpu.memory_space<vmem>>, %arg4: memref<1x32xf32, #tpu.memory_space<vmem>>, %arg5: memref<32x128xbf16, #tpu.memory_space<vmem>>, %arg6: memref<1x128xf32, #tpu.memory_space<vmem>>, %arg7: memref<128x32xbf16, #tpu.memory_space<vmem>>, %arg8: memref<1x32xf32, #tpu.memory_space<vmem>>, %arg9: memref<256x32xbf16, #tpu.memory_space<vmem>>, %arg10: memref<256x32xbf16, #tpu.memory_space<vmem>>, %arg11: memref<256x32xf32, #tpu.memory_space<vmem>>) attributes {dimension_semantics = [#tpu.dimension_semantics<parallel>, #tpu.dimension_semantics<arbitrary>], iteration_bounds = array<i64: 1, 1>, scalar_prefetch = 0 : i64, scratch_operands = 2 : i64, tpu.core_type = #tpu.core_type<tc>, window_params = [{transform_indices = @transform_0, window_bounds = array<i64: 256, 32>}, {pipeline_mode = #tpu.pipeline_mode<synchronous>, transform_indices = @transform_1, window_bounds = array<i64: 1, 32>}, {pipeline_mode = #tpu.pipeline_mode<synchronous>, transform_indices = @transform_2, window_bounds = array<i64: 1, 32>}, {transform_indices = @transform_3, window_bounds = array<i64: 32, 128>}, {transform_indices = @transform_4, window_bounds = array<i64: 1, 128>}, {transform_indices = @transform_5, window_bounds = array<i64: 128, 32>}, {pipeline_mode = #tpu.pipeline_mode<synchronous>, transform_indices = @transform_6, window_bounds = array<i64: 1, 32>}, {transform_indices = @transform_7, window_bounds = array<i64: 256, 32>}]} {
    %c0_i32 = arith.constant 0 : i32
    %0 = arith.cmpi eq, %arg1, %c0_i32 : i32
    %1 = arith.extui %0 : i1 to i32
    %c0_i32_0 = arith.constant 0 : i32
    %2 = arith.cmpi ne, %1, %c0_i32_0 : i32
    scf.if %2 {
      %c0_19 = arith.constant 0 : index
      %c0_20 = arith.constant 0 : index
      %31 = vector.load %arg2[%c0_19, %c0_20] : memref<256x32xbf16, #tpu.memory_space<vmem>>, vector<256x32xbf16>
      %32 = arith.extf %31 : vector<256x32xbf16> to vector<256x32xf32>
      %c0_21 = arith.constant 0 : index
      %c0_22 = arith.constant 0 : index
      %33 = vector.load %arg3[%c0_21, %c0_22] : memref<1x32xf32, #tpu.memory_space<vmem>>, vector<1x32xf32>
      %c0_23 = arith.constant 0 : index
      %c0_24 = arith.constant 0 : index
      %34 = vector.load %arg4[%c0_23, %c0_24] : memref<1x32xf32, #tpu.memory_space<vmem>>, vector<1x32xf32>
      %cst_25 = arith.constant dense<0.000000e+00> : vector<256xf32>
      %35 = vector.multi_reduction <add>, %32, %cst_25 [1] : vector<256x32xf32> to vector<256xf32>
      %36 = vector.shape_cast %35 : vector<256xf32> to vector<256x1xf32>
      %cst_26 = arith.constant 3.200000e+01 : f32
      %37 = vector.broadcast %cst_26 : f32 to vector<256x1xf32>
      %38 = arith.divf %36, %37 : vector<256x1xf32>
      %39 = vector.broadcast %38 : vector<256x1xf32> to vector<256x32xf32>
      %40 = arith.subf %32, %39 : vector<256x32xf32>
      %41 = arith.mulf %40, %40 : vector<256x32xf32>
      %cst_27 = arith.constant dense<0.000000e+00> : vector<256xf32>
      %42 = vector.multi_reduction <add>, %41, %cst_27 [1] : vector<256x32xf32> to vector<256xf32>
      %43 = vector.shape_cast %42 : vector<256xf32> to vector<256x1xf32>
      %cst_28 = arith.constant 3.200000e+01 : f32
      %44 = vector.broadcast %cst_28 : f32 to vector<256x1xf32>
      %45 = arith.divf %43, %44 : vector<256x1xf32>
      %cst_29 = arith.constant 9.99999997E-7 : f32
      %46 = vector.broadcast %cst_29 : f32 to vector<256x1xf32>
      %47 = arith.addf %45, %46 : vector<256x1xf32>
      %48 = math.rsqrt %47 : vector<256x1xf32>
      %49 = vector.broadcast %48 : vector<256x1xf32> to vector<256x32xf32>
      %50 = arith.mulf %40, %49 : vector<256x32xf32>
      %51 = vector.broadcast %33 : vector<1x32xf32> to vector<256x32xf32>
      %52 = arith.mulf %50, %51 : vector<256x32xf32>
      %53 = vector.broadcast %34 : vector<1x32xf32> to vector<256x32xf32>
      %54 = arith.addf %52, %53 : vector<256x32xf32>
      %55 = arith.truncf %54 : vector<256x32xf32> to vector<256x32xbf16>
      %c0_30 = arith.constant 0 : index
      %c0_31 = arith.constant 0 : index
      %56 = vector.load %arg10[%c0_30, %c0_31] : memref<256x32xbf16, #tpu.memory_space<vmem>>, vector<256x32xbf16>
      tpu.vector_store %arg10[%c0_30, %c0_31], %55 {strides = array<i32>} : memref<256x32xbf16, #tpu.memory_space<vmem>>, vector<256x32xbf16>,
      %c0_32 = arith.constant 0 : index
      %c0_33 = arith.constant 0 : index
      %57 = vector.load %arg8[%c0_32, %c0_33] : memref<1x32xf32, #tpu.memory_space<vmem>>, vector<1x32xf32>
      %58 = vector.broadcast %57 : vector<1x32xf32> to vector<256x32xf32>
      %59 = arith.addf %32, %58 : vector<256x32xf32>
      %c0_34 = arith.constant 0 : index
      %c0_35 = arith.constant 0 : index
      %60 = vector.load %arg11[%c0_34, %c0_35] : memref<256x32xf32, #tpu.memory_space<vmem>>, vector<256x32xf32>
      tpu.vector_store %arg11[%c0_34, %c0_35], %59 {strides = array<i32>} : memref<256x32xf32, #tpu.memory_space<vmem>>, vector<256x32xf32>,
    } else {
    }
    %c0 = arith.constant 0 : index
    %c0_1 = arith.constant 0 : index
    %3 = vector.load %arg10[%c0, %c0_1] : memref<256x32xbf16, #tpu.memory_space<vmem>>, vector<256x32xbf16>
    %c0_2 = arith.constant 0 : index
    %c0_3 = arith.constant 0 : index
    %4 = vector.load %arg5[%c0_2, %c0_3] : memref<32x128xbf16, #tpu.memory_space<vmem>>, vector<32x128xbf16>
    %cst = arith.constant dense<0.000000e+00> : vector<256x128xf32>
    %5 = tpu.matmul %3, %4, %cst {dimension_numbers = #tpu.dot_dimension_numbers<[1], [0], [0], [1], [0, 0, 1, 1], [], []>} : vector<256x32xbf16>, vector<32x128xbf16>, vector<256x128xf32> -> vector<256x128xf32>
    %c0_4 = arith.constant 0 : index
    %c0_5 = arith.constant 0 : index
    %6 = vector.load %arg6[%c0_4, %c0_5] : memref<1x128xf32, #tpu.memory_space<vmem>>, vector<1x128xf32>
    %7 = vector.broadcast %6 : vector<1x128xf32> to vector<256x128xf32>
    %8 = arith.addf %5, %7 : vector<256x128xf32>
    %cst_6 = arith.constant 5.000000e-01 : f32
    %9 = vector.broadcast %cst_6 : f32 to vector<256x128xf32>
    %10 = arith.mulf %9, %8 : vector<256x128xf32>
    %cst_7 = arith.constant 4.471500e-02 : f32
    %11 = vector.broadcast %cst_7 : f32 to vector<256x128xf32>
    %12 = arith.mulf %11, %8 : vector<256x128xf32>
    %13 = arith.mulf %12, %8 : vector<256x128xf32>
    %14 = arith.mulf %13, %8 : vector<256x128xf32>
    %15 = arith.addf %8, %14 : vector<256x128xf32>
    %cst_8 = arith.constant 0.797884583 : f32
    %16 = vector.broadcast %cst_8 : f32 to vector<256x128xf32>
    %17 = arith.mulf %16, %15 : vector<256x128xf32>
    %18 = math.tanh %17 : vector<256x128xf32>
    %cst_9 = arith.constant 1.000000e+00 : f32
    %19 = vector.broadcast %cst_9 : f32 to vector<256x128xf32>
    %20 = arith.addf %19, %18 : vector<256x128xf32>
    %21 = arith.mulf %10, %20 : vector<256x128xf32>
    %c0_10 = arith.constant 0 : index
    %c0_11 = arith.constant 0 : index
    %22 = vector.load %arg11[%c0_10, %c0_11] : memref<256x32xf32, #tpu.memory_space<vmem>>, vector<256x32xf32>
    %23 = arith.truncf %21 : vector<256x128xf32> to vector<256x128xbf16>
    %c0_12 = arith.constant 0 : index
    %c0_13 = arith.constant 0 : index
    %24 = vector.load %arg7[%c0_12, %c0_13] : memref<128x32xbf16, #tpu.memory_space<vmem>>, vector<128x32xbf16>
    %cst_14 = arith.constant dense<0.000000e+00> : vector<256x32xf32>
    %25 = tpu.matmul %23, %24, %cst_14 {dimension_numbers = #tpu.dot_dimension_numbers<[1], [0], [0], [1], [0, 0, 1, 1], [], []>} : vector<256x128xbf16>, vector<128x32xbf16>, vector<256x32xf32> -> vector<256x32xf32>
    %26 = arith.addf %22, %25 : vector<256x32xf32>
    %c0_15 = arith.constant 0 : index
    %c0_16 = arith.constant 0 : index
    %27 = vector.load %arg11[%c0_15, %c0_16] : memref<256x32xf32, #tpu.memory_space<vmem>>, vector<256x32xf32>
    tpu.vector_store %arg11[%c0_15, %c0_16], %26 {strides = array<i32>} : memref<256x32xf32, #tpu.memory_space<vmem>>, vector<256x32xf32>,
    %c0_i32_17 = arith.constant 0 : i32
    %28 = arith.cmpi eq, %arg1, %c0_i32_17 : i32
    %29 = arith.extui %28 : i1 to i32
    %c0_i32_18 = arith.constant 0 : i32
    %30 = arith.cmpi ne, %29, %c0_i32_18 : i32
    scf.if %30 {
      %c0_19 = arith.constant 0 : index
      %c0_20 = arith.constant 0 : index
      %31 = vector.load %arg11[%c0_19, %c0_20] : memref<256x32xf32, #tpu.memory_space<vmem>>, vector<256x32xf32>
      %32 = arith.truncf %31 : vector<256x32xf32> to vector<256x32xbf16>
      %c0_21 = arith.constant 0 : index
      %c0_22 = arith.constant 0 : index
      %33 = vector.load %arg9[%c0_21, %c0_22] : memref<256x32xbf16, #tpu.memory_space<vmem>>, vector<256x32xbf16>
      tpu.vector_store %arg9[%c0_21, %c0_22], %32 {strides = array<i32>} : memref<256x32xbf16, #tpu.memory_space<vmem>>, vector<256x32xbf16>,
    } else {
    }
    return
  }
  func.func @transform_0(%arg0: i32, %arg1: i32) -> (i32, i32) {
    %c0_i32 = arith.constant 0 : i32
    %c0_i32_0 = arith.constant 0 : i32
    return %arg0, %c0_i32 : i32, i32
  }
  func.func @transform_1(%arg0: i32, %arg1: i32) -> (i32, i32) {
    %c0_i32 = arith.constant 0 : i32
    %c0_i32_0 = arith.constant 0 : i32
    %c0_i32_1 = arith.constant 0 : i32
    return %c0_i32, %c0_i32_0 : i32, i32
  }
  func.func @transform_2(%arg0: i32, %arg1: i32) -> (i32, i32) {
    %c0_i32 = arith.constant 0 : i32
    %c0_i32_0 = arith.constant 0 : i32
    %c0_i32_1 = arith.constant 0 : i32
    return %c0_i32, %c0_i32_0 : i32, i32
  }
  func.func @transform_3(%arg0: i32, %arg1: i32) -> (i32, i32) {
    %c0_i32 = arith.constant 0 : i32
    %c0_i32_0 = arith.constant 0 : i32
    return %c0_i32, %arg1 : i32, i32
  }
  func.func @transform_4(%arg0: i32, %arg1: i32) -> (i32, i32) {
    %c0_i32 = arith.constant 0 : i32
    %c0_i32_0 = arith.constant 0 : i32
    return %c0_i32, %arg1 : i32, i32
  }
  func.func @transform_5(%arg0: i32, %arg1: i32) -> (i32, i32) {
    %c0_i32 = arith.constant 0 : i32
    %c0_i32_0 = arith.constant 0 : i32
    return %arg1, %c0_i32 : i32, i32
  }
  func.func @transform_6(%arg0: i32, %arg1: i32) -> (i32, i32) {
    %c0_i32 = arith.constant 0 : i32
    %c0_i32_0 = arith.constant 0 : i32
    %c0_i32_1 = arith.constant 0 : i32
    return %c0_i32, %c0_i32_0 : i32, i32
  }
  func.func @transform_7(%arg0: i32, %arg1: i32) -> (i32, i32) {
    %c0_i32 = arith.constant 0 : i32
    %c0_i32_0 = arith.constant 0 : i32
    return %arg0, %c0_i32 : i32, i32
  }
}

module attributes {stable_mosaic.version = 11 : i64} {
  func.func @_head_kernel(%arg0: i32, %arg1: memref<2x32xbf16, #tpu.memory_space<vmem>>, %arg2: memref<1x32xf32, #tpu.memory_space<vmem>>, %arg3: memref<1x32xf32, #tpu.memory_space<vmem>>, %arg4: memref<32x128xbf16, #tpu.memory_space<vmem>>, %arg5: memref<1x128xf32, #tpu.memory_space<vmem>>, %arg6: memref<2x128xf32, #tpu.memory_space<vmem>>) attributes {dimension_semantics = [#tpu.dimension_semantics<arbitrary>], iteration_bounds = array<i64: 1>, scalar_prefetch = 0 : i64, scratch_operands = 0 : i64, tpu.core_type = #tpu.core_type<tc>, window_params = [{pipeline_mode = #tpu.pipeline_mode<synchronous>, transform_indices = @transform_0, window_bounds = array<i64: 2, 32>}, {pipeline_mode = #tpu.pipeline_mode<synchronous>, transform_indices = @transform_1, window_bounds = array<i64: 1, 32>}, {pipeline_mode = #tpu.pipeline_mode<synchronous>, transform_indices = @transform_2, window_bounds = array<i64: 1, 32>}, {pipeline_mode = #tpu.pipeline_mode<synchronous>, transform_indices = @transform_3, window_bounds = array<i64: 32, 128>}, {pipeline_mode = #tpu.pipeline_mode<synchronous>, transform_indices = @transform_4, window_bounds = array<i64: 1, 128>}, {pipeline_mode = #tpu.pipeline_mode<synchronous>, transform_indices = @transform_5, window_bounds = array<i64: 2, 128>}]} {
    %c0 = arith.constant 0 : index
    %c0_0 = arith.constant 0 : index
    %0 = vector.load %arg1[%c0, %c0_0] : memref<2x32xbf16, #tpu.memory_space<vmem>>, vector<2x32xbf16>
    %1 = arith.extf %0 : vector<2x32xbf16> to vector<2x32xf32>
    %c0_1 = arith.constant 0 : index
    %c0_2 = arith.constant 0 : index
    %2 = vector.load %arg2[%c0_1, %c0_2] : memref<1x32xf32, #tpu.memory_space<vmem>>, vector<1x32xf32>
    %c0_3 = arith.constant 0 : index
    %c0_4 = arith.constant 0 : index
    %3 = vector.load %arg3[%c0_3, %c0_4] : memref<1x32xf32, #tpu.memory_space<vmem>>, vector<1x32xf32>
    %cst = arith.constant dense<0.000000e+00> : vector<2xf32>
    %4 = vector.multi_reduction <add>, %1, %cst [1] : vector<2x32xf32> to vector<2xf32>
    %5 = vector.shape_cast %4 : vector<2xf32> to vector<2x1xf32>
    %cst_5 = arith.constant 3.200000e+01 : f32
    %6 = vector.broadcast %cst_5 : f32 to vector<2x1xf32>
    %7 = arith.divf %5, %6 : vector<2x1xf32>
    %8 = vector.broadcast %7 : vector<2x1xf32> to vector<2x32xf32>
    %9 = arith.subf %1, %8 : vector<2x32xf32>
    %10 = arith.mulf %9, %9 : vector<2x32xf32>
    %cst_6 = arith.constant dense<0.000000e+00> : vector<2xf32>
    %11 = vector.multi_reduction <add>, %10, %cst_6 [1] : vector<2x32xf32> to vector<2xf32>
    %12 = vector.shape_cast %11 : vector<2xf32> to vector<2x1xf32>
    %cst_7 = arith.constant 3.200000e+01 : f32
    %13 = vector.broadcast %cst_7 : f32 to vector<2x1xf32>
    %14 = arith.divf %12, %13 : vector<2x1xf32>
    %cst_8 = arith.constant 9.99999997E-7 : f32
    %15 = vector.broadcast %cst_8 : f32 to vector<2x1xf32>
    %16 = arith.addf %14, %15 : vector<2x1xf32>
    %17 = math.rsqrt %16 : vector<2x1xf32>
    %18 = vector.broadcast %17 : vector<2x1xf32> to vector<2x32xf32>
    %19 = arith.mulf %9, %18 : vector<2x32xf32>
    %20 = vector.broadcast %2 : vector<1x32xf32> to vector<2x32xf32>
    %21 = arith.mulf %19, %20 : vector<2x32xf32>
    %22 = vector.broadcast %3 : vector<1x32xf32> to vector<2x32xf32>
    %23 = arith.addf %21, %22 : vector<2x32xf32>
    %24 = arith.truncf %23 : vector<2x32xf32> to vector<2x32xbf16>
    %c0_9 = arith.constant 0 : index
    %c0_10 = arith.constant 0 : index
    %25 = vector.load %arg4[%c0_9, %c0_10] : memref<32x128xbf16, #tpu.memory_space<vmem>>, vector<32x128xbf16>
    %cst_11 = arith.constant dense<0.000000e+00> : vector<2x128xf32>
    %26 = tpu.matmul %24, %25, %cst_11 {dimension_numbers = #tpu.dot_dimension_numbers<[1], [0], [0], [1], [0, 0, 1, 1], [], []>} : vector<2x32xbf16>, vector<32x128xbf16>, vector<2x128xf32> -> vector<2x128xf32>
    %c0_12 = arith.constant 0 : index
    %c0_13 = arith.constant 0 : index
    %27 = vector.load %arg5[%c0_12, %c0_13] : memref<1x128xf32, #tpu.memory_space<vmem>>, vector<1x128xf32>
    %28 = vector.broadcast %27 : vector<1x128xf32> to vector<2x128xf32>
    %29 = arith.addf %26, %28 : vector<2x128xf32>
    %30 = arith.mulf %29, %29 : vector<2x128xf32>
    %cst_14 = arith.constant dense<0.000000e+00> : vector<2xf32>
    %31 = vector.multi_reduction <add>, %30, %cst_14 [1] : vector<2x128xf32> to vector<2xf32>
    %32 = vector.shape_cast %31 : vector<2xf32> to vector<2x1xf32>
    %33 = math.sqrt %32 : vector<2x1xf32>
    %cst_15 = arith.constant 9.99999996E-13 : f32
    %34 = vector.broadcast %cst_15 : f32 to vector<2x1xf32>
    %35 = arith.maximumf %33, %34 : vector<2x1xf32>
    %36 = vector.broadcast %35 : vector<2x1xf32> to vector<2x128xf32>
    %37 = arith.divf %29, %36 : vector<2x128xf32>
    %c0_16 = arith.constant 0 : index
    %c0_17 = arith.constant 0 : index
    %38 = vector.load %arg6[%c0_16, %c0_17] : memref<2x128xf32, #tpu.memory_space<vmem>>, vector<2x128xf32>
    tpu.vector_store %arg6[%c0_16, %c0_17], %37 {strides = array<i32>} : memref<2x128xf32, #tpu.memory_space<vmem>>, vector<2x128xf32>,
    return
  }
  func.func @transform_0(%arg0: i32) -> (i32, i32) {
    %c0_i32 = arith.constant 0 : i32
    %c0_i32_0 = arith.constant 0 : i32
    %c0_i32_1 = arith.constant 0 : i32
    return %c0_i32, %c0_i32_0 : i32, i32
  }
  func.func @transform_1(%arg0: i32) -> (i32, i32) {
    %c0_i32 = arith.constant 0 : i32
    %c0_i32_0 = arith.constant 0 : i32
    %c0_i32_1 = arith.constant 0 : i32
    return %c0_i32, %c0_i32_0 : i32, i32
  }
  func.func @transform_2(%arg0: i32) -> (i32, i32) {
    %c0_i32 = arith.constant 0 : i32
    %c0_i32_0 = arith.constant 0 : i32
    %c0_i32_1 = arith.constant 0 : i32
    return %c0_i32, %c0_i32_0 : i32, i32
  }
  func.func @transform_3(%arg0: i32) -> (i32, i32) {
    %c0_i32 = arith.constant 0 : i32
    %c0_i32_0 = arith.constant 0 : i32
    %c0_i32_1 = arith.constant 0 : i32
    return %c0_i32, %c0_i32_0 : i32, i32
  }
  func.func @transform_4(%arg0: i32) -> (i32, i32) {
    %c0_i32 = arith.constant 0 : i32
    %c0_i32_0 = arith.constant 0 : i32
    %c0_i32_1 = arith.constant 0 : i32
    return %c0_i32, %c0_i32_0 : i32, i32
  }
  func.func @transform_5(%arg0: i32) -> (i32, i32) {
    %c0_i32 = arith.constant 0 : i32
    %c0_i32_0 = arith.constant 0 : i32
    %c0_i32_1 = arith.constant 0 : i32
    return %c0_i32, %c0_i32_0 : i32, i32
  }
}

</mosaic_0001>

<bundles_post_ra>
// kernel: tpu_custom_call.1
= control target key start
LH: loop header
LB: loop body
LE: loop exit
PB: predicated region body
PF: predicated region fallthrough
CT: control target
= control target key end

     0   :  { %6 = vsyncpa [#allocation3], 0  ;;  %s341_s0 = inlined_call_operand.hbm [shape: f32[8,128], index: 0, kind: input, shape index: {}]   ;;  %s342_s1 = inlined_call_operand.hbm [shape: f32[8,128], index: 1, kind: output, shape index: {}]  }
   0x1   :  { %7 = vsyncpa [#allocation4], 0  ;;  %s262_s6 = smov 0  }
   0x2 LB: > { %s145_s7 = sadd.s32 4294967295, %s248_s6   ;;  %p146_p0 = scmp.ge.s32.totalorder %s248_s6, 1  ;;  %s248_s6 = sphi %s262_s6, %s13_s6  }
   0x3   : > { %p60_p1 = scmp.lt.s32.totalorder %s248_s6, 3  ;;  %p276_p3 = scmp.eq.s32.totalorder %s145_s7, 0 }
   0x4   : > { %s250_s10 = smov [#allocation2]   ;;  %s180_s15 = scalar_lea.hbm %s341_s0, 128 }
   0x5   : > { %p270_p2 = pnand %p146_p0, %p60_p1  ;;  %s73_s11 = sshll.u32 %s250_s10, 4  ;;  %s74_s11 = int_to_ptr.vmem [resolvable:$true] %s73_s11 }
   0x6   : > { %s347_s9 = scalar_select %p276_p3, 1, 0 }
   0x7   : > { %s346_s8 = scalar_select %p270_p2, 1, 0 }
   0x8   : > { %p162_p4 = pneg %p270_p2  ;;  %p181_p6 = scmp.ne.s32.totalorder %s341_s0, %s180_s15 }
   0x9   : > { %p187_p10 = scmp.lt.u32.totalorder %s180_s15, %s341_s0 }
   0xa   : > { %p284_p5 = pnand %p276_p3, %p162_p4 }
   0xc   : > { %p182_p7 = pneg %p284_p5 }
   0xe   : > { %p183_p8 = pnand %p182_p7, %p181_p6 }
  0x10   : > { %p184_p9 = pneg %p183_p8 }
  0x12   : > { %p189_p11 = pnand %p187_p10, %p184_p9 }
  0x14   : > { %192 = shalt.err (!%p189_p11)
}
  0x15   : > { %s193_s20 = scalar_lea.vmem %s74_s11, 128  ;;  %p201_p1 = scmp.lt.s32.totalorder %s74_s11, %s74_s11 }
  0x16   : > { %p194_p12 = scmp.ne.s32.totalorder %s74_s11, %s193_s20  ;;  %p202_p4 = scmp.lt.s32.totalorder %s193_s20, %s193_s20 }
  0x18   : > { %p196_p13 = pnand %p194_p12, %p182_p7  ;;  %p203_p3 = por %p202_p4, %p201_p1 }
  0x1a   : > { %p197_p0 = pneg %p196_p13 }
  0x1c   : > { %p204_p2 = pnand %p203_p3, %p197_p0 }
  0x1e   : > { %207 = shalt.err (!%p204_p2)
}
  0x1f   : > { %165 = dma.hbm_to_vmem [thread:$0]  (!%p284_p5), %s341_s0, 128, %s74_s11, [#allocation3]  }
  0x20   : > { %p349_p6 = scmp.ne.s32.totalorder %s346_s8, 0 }
  0x21   : > { %p350_p8 = scmp.ne.s32.totalorder (!%p349_p6), %s347_s9, 0 }
  0x22   : > { %86 = sbr.rel (%p349_p6) target bundleno = 67 (0x43), region = 24 }
  0x29   : > { %239 = dma.done.wait (%p350_p8), [#allocation3], 128  }
  0x2a   : > { %241 = vsyncadd (%p350_p8), [#allocation3], 4294967168  ;;  %s251_s23 = smov [#allocation5]   ;;  %v96_v0 = vld [vmem:[#allocation2] sm:$0xff]  ;;  %p312_p2 = scmp.eq.s32.totalorder %s145_s7, 1 }
  0x2b   : > { %s106_s24 = sshll.u32 %s251_s23, 4  ;;  %v97_v1 = vadd.f32 1.0, %v96_v0  ;;  %s107_s24 = int_to_ptr.vmem [resolvable:$true] %s106_s24 }
  0x2c   : > { %s208_s26 = scalar_lea.vmem %s107_s24, 128  ;;  %p215_p9 = scmp.lt.s32.totalorder %s107_s24, %s107_s24 }
  0x2d   : > { %98 = vst [vmem:[#allocation5] sm:$0xff] %v97_v1  ;;  %p209_p3 = scmp.ne.s32.totalorder %s107_s24, %s208_s26  ;;  %p216_p10 = scmp.lt.s32.totalorder %s208_s26, %s208_s26 }
  0x2f   : > { %p210_p5 = pnand %p209_p3, %p312_p2  ;;  %p217_p11 = por %p216_p10, %p215_p9 }
  0x31   : > { %p211_p7 = pneg %p210_p5 }
  0x33   : > { %p218_p12 = pnand %p217_p11, %p211_p7 }
  0x35   : > { %221 = shalt.err (!%p218_p12)
}
  0x36   : > { %s222_s29 = scalar_lea.hbm %s342_s1, 128 }
  0x37   : > { %p223_p13 = scmp.ne.s32.totalorder %s342_s1, %s222_s29  ;;  %p228_p4 = scmp.lt.u32.totalorder %s222_s29, %s342_s1 }
  0x39   : > { %p224_p0 = pnand %p223_p13, %p312_p2 }
  0x3b   : > { %p225_p1 = pneg %p224_p0 }
  0x3d   : > { %p230_p6 = pnand %p228_p4, %p225_p1 }
  0x3f   : > { %233 = shalt.err (!%p230_p6)
}
  0x40   : > { %159 = dma.vmem_to_hbm [thread:$0]  (%p312_p2), %s107_s24, 128, %s342_s1, [#allocation4]  }
  0x41   : > { %243 = dma.done.wait (%p312_p2), [#allocation4], 128  }
  0x42   : > { %245 = vsyncadd (%p312_p2), [#allocation4], 4294967168 }
  0x43 PF: > { %s13_s6 = sadd.s32 1, %s248_s6  }
  0x44   : > { %p10_p8 = scmp.ge.s32.totalorder %s13_s6, 4  }
  0x46   :  { %12 = sbr.rel (!%p10_p8) target bundleno = 2 (0x2), region = 53 }
  0x4d   :  { %119 = vsyncpa [#allocation3], 1 }
  0x4e   :  { %121 = vsyncpa [#allocation3 + $0x1], 1 }
  0x4f   :  { %122 = vsyncpa [#allocation4], 1 }
  0x50   :  { %124 = vsyncpa [#allocation4 + $0x1], 1 }

// kernel: supvit_forward.6
= control target key start
LH: loop header
LB: loop body
LE: loop exit
PB: predicated region body
PF: predicated region fallthrough
CT: control target
= control target key end

     0   :  { %8 = vsyncpa [#allocation3], 0  ;;  %s1303_s0 = inlined_call_operand.hbm [shape: bf16[2,128,48], index: 0, kind: input, shape index: {}]   ;;  %s1304_s1 = inlined_call_operand.hbm [shape: bf16[48,32], index: 1, kind: input, shape index: {}]   ;;  %s1305_s2 = inlined_call_operand.hbm [shape: f32[128,32], index: 2, kind: input, shape index: {}]   ;;  %s1306_s3 = inlined_call_operand.hbm [shape: bf16[2,128,32], index: 3, kind: output, shape index: {}]  }
   0x1   :  { %10 = vsyncpa [#allocation3 + $0x1], 0 }
   0x2   :  { %11 = vsyncpa [#allocation6], 0 }
   0x3   :  { %12 = vsyncpa [#allocation4], 0 }
   0x4   :  { %14 = vsyncpa [#allocation4 + $0x1], 0  ;;  %s1006_s12 = smov 0   ;;  %s1008_s13 = smov 0  }
   0x5   :  { %s1010_s14 = smov 0   ;;  %s1012_s15 = smov 0  }
   0x6 LB: > { %s1027_s16 = sadd.s32 4294967295, %s974_s15   ;;  %s624_s17 = sadd.s32 4294967294, %s974_s15   ;;  %s974_s15 = sphi %s1012_s15, %s1326_s15   ;;  %s970_s14 = sphi %s1010_s14, %s1325_s14   ;;  %s966_s13 = sphi %s1008_s13, %s1324_s13   ;;  %s962_s12 = sphi %s1006_s12, %s1323_s12  }
   0x7   : > { %p40_p0 = scmp.ne.s32.totalorder %s966_s13, %s962_s12  ;;  %p1307_p1 = scmp.eq.s32.totalorder %s1027_s16, 0 }
   0x8   : > { %p112_p3 = scmp.eq.s32.totalorder %s624_s17, 1  ;;  %p625_p5 = scmp.ge.s32.totalorder %s974_s15, 1 }
   0x9   : > { %p1036_p4 = por %p1307_p1, %p40_p0  ;;  %p119_p7 = scmp.lt.s32.totalorder %s974_s15, 3 }
   0xa   : > { %p1041_p6 = por %p112_p3, %p40_p0  ;;  %s976_s21 = smov [#allocation5]  }
   0xb   : > { %s1310_s18 = scalar_select %p1036_p4, 1, 0 }
   0xc   : > { %s1311_s19 = scalar_select %p1041_p6, 1, 0 }
   0xd   : > { %p1046_p8 = pnand %p625_p5, %p119_p7  ;;  %s131_s22 = sshll.u32 %s976_s21, 4  ;;  %s1050_s22 = int_to_ptr.vmem [resolvable:$true] %s131_s22 }
   0xe   : > { %s977_s24 = smov [#allocation7]   ;;  %s818_s28 = scalar_lea.hbm %s1304_s1, 384 }
   0xf   : > { %p746_p9 = pneg %p1046_p8  ;;  %s144_s25 = sshll.u32 %s977_s24, 4  ;;  %s1061_s25 = int_to_ptr.vmem [resolvable:$true] %s144_s25 }
  0x10   : > { %p819_p12 = scmp.ne.s32.totalorder %s1304_s1, %s818_s28  ;;  %p825_p5 = scmp.lt.u32.totalorder %s818_s28, %s1304_s1 }
  0x11   : > { %p1057_p11 = pnand %p746_p9, %p1307_p1 }
  0x13   : > { %p820_p13 = pneg %p1057_p11 }
  0x15   : > { %p821_p0 = pnand %p820_p13, %p819_p12 }
  0x17   : > { %p822_p3 = pneg %p821_p0 }
  0x19   : > { %p827_p7 = pnand %p825_p5, %p822_p3 }
  0x1b   : > { %830 = shalt.err (!%p827_p7)
}
  0x1c   : > { %s831_s6 = scalar_lea.vmem %s1050_s22, 384  ;;  %p839_p2 = scmp.lt.s32.totalorder %s1050_s22, %s1050_s22 }
  0x1d   : > { %p832_p9 = scmp.ne.s32.totalorder %s1050_s22, %s831_s6  ;;  %p840_p12 = scmp.lt.s32.totalorder %s831_s6, %s831_s6 }
  0x1f   : > { %p834_p10 = pnand %p832_p9, %p820_p13  ;;  %p841_p0 = por %p840_p12, %p839_p2 }
  0x21   : > { %p835_p1 = pneg %p834_p10 }
  0x23   : > { %p842_p6 = pnand %p841_p0, %p835_p1 }
  0x25   : > { %845 = shalt.err (!%p842_p6)
}
  0x26   : > { %s978_s7 = smov 64   ;;  %s979_s8 = smov 4  }
  0x27   : > { %749 = dma.hbm_to_vmem [thread:$0]  (!%p1057_p11), %s1304_s1, 384, %s1050_s22, [#allocation6], %s978_s7, %s978_s7, %s979_s8  }
  0x28   : > { %s846_s21 = scalar_lea.hbm %s1305_s2, 2048 }
  0x29   : > { %p847_p1 = scmp.ne.s32.totalorder %s1305_s2, %s846_s21  ;;  %p853_p10 = scmp.lt.u32.totalorder %s846_s21, %s1305_s2 }
  0x2b   : > { %p849_p2 = pnand %p847_p1, %p820_p13 }
  0x2d   : > { %p850_p6 = pneg %p849_p2 }
  0x2f   : > { %p855_p3 = pnand %p853_p10, %p850_p6 }
  0x31   : > { %858 = shalt.err (!%p855_p3)
}
  0x32   : > { %s859_s22 = scalar_lea.vmem %s1061_s25, 2048  ;;  %p867_p12 = scmp.lt.s32.totalorder %s1061_s25, %s1061_s25 }
  0x33   : > { %p860_p5 = scmp.ne.s32.totalorder %s1061_s25, %s859_s22  ;;  %p868_p0 = scmp.lt.s32.totalorder %s859_s22, %s859_s22 }
  0x35   : > { %p862_p7 = pnand %p860_p5, %p820_p13  ;;  %p869_p1 = por %p868_p0, %p867_p12 }
  0x37   : > { %p863_p9 = pneg %p862_p7 }
  0x39   : > { %p870_p2 = pnand %p869_p1, %p863_p9 }
  0x3b   : > { %873 = shalt.err (!%p870_p2)
}
  0x3c   : > { %s980_s29 = smov 128   ;;  %s981_s30 = smov 8  }
  0x3d   : > { %752 = dma.hbm_to_vmem [thread:$0]  (!%p1057_p11), %s1305_s2, 2048, %s1061_s25, [#allocation6], %s980_s29, %s980_s29, %s981_s30  }
  0x3e   : > { %s1119_s6 = sadd.s32 1, %s974_s15   ;;  %s27_s10 = sadd.s32 1, %s970_s14 }
  0x3f   : > { %s24_s9 = ssub.s32 %s974_s15, %s1119_s6  ;;  %p34_p6 = scmp.ne.s32.totalorder %s970_s14, %s966_s13 }
  0x40   : > { %p25_p13 = scmp.eq.s32.totalorder %s24_s9, 0  ;;  %p35_p10 = scmp.eq.s32.totalorder %s974_s15, 0 }
  0x41   : > { %p1314_p5 = scmp.eq.s32.totalorder %s1027_s16, 1  ;;  %p763_p9 = scmp.lt.s32.totalorder %s974_s15, 2 }
  0x42   : > { %s1128_s11 = scalar_select %p25_p13, %s970_s14, %s27_s10  }
  0x43   : > { %p36_p3 = por %p35_p10, %p34_p6  ;;  %p1132_p7 = por %p1314_p5, %p34_p6 }
  0x44   : > { %s158_s23 = sand.u32 1, %s970_s14   ;;  %s677_s25 = sshll.u32 %s974_s15, 10 }
  0x45   : > { %s1315_s17 = scalar_select %p1132_p7, 1, 0 }
  0x46   : > { %s629_s21 = sshll.u32 %s158_s23, 6  ;;  %s1142_s27 = scalar_lea.hbm %s1303_s0, %s677_s25 }
  0x47   : > { %s162_s28 = scalar_lea.vmem [#allocation2], %s629_s21  ;;  %p1146_p11 = pnand %p763_p9, %p36_p3 }
  0x48   : > { %s169_s22 = sshll.u32 %s162_s28, 4  ;;  %s1150_s30 = scalar_lea.sflag [#allocation3], %s158_s23  ;;  %s1144_s22 = int_to_ptr.vmem [resolvable:$true] %s169_s22 }
  0x49   : > { %s874_s4 = scalar_lea.hbm %s1142_s27, 1024  ;;  %p876_p0 = pneg %p1146_p11 }
  0x4a   : > { %p875_p12 = scmp.ne.s32.totalorder %s1142_s27, %s874_s4  ;;  %s879_s10 = scalar_lea.hbm %s1303_s0, 2048 }
  0x4b   : > { %p880_p13 = scmp.lt.u32.totalorder %s1142_s27, %s1303_s0  ;;  %p881_p6 = scmp.lt.u32.totalorder %s879_s10, %s874_s4 }
  0x4c   : > { %p877_p1 = pnand %p876_p0, %p875_p12  ;;  %p883_p3 = scmp.lt.u32.totalorder %s874_s4, %s1142_s27 }
  0x4d   : > { %p882_p10 = por %p881_p6, %p880_p13 }
  0x4e   : > { %p878_p2 = pneg %p877_p1 }
  0x4f   : > { %p884_p5 = por %p883_p3, %p882_p10 }
  0x51   : > { %p885_p9 = pnand %p884_p5, %p878_p2 }
  0x53   : > { %888 = shalt.err (!%p885_p9)
}
  0x54   : > { %s889_s23 = scalar_lea.vmem %s1144_s22, 1024  ;;  %s982_s24 = smov [#allocation2]  }
  0x55   : > { %p890_p12 = scmp.ne.s32.totalorder %s1144_s22, %s889_s23  ;;  %s894_s26 = sshll.u32 %s982_s24, 4  ;;  %s895_s26 = int_to_ptr.vmem [resolvable:$false] %s894_s26 }
  0x56   : > { %s896_s28 = scalar_lea.vmem %s895_s26, 2048  ;;  %p897_p4 = scmp.lt.s32.totalorder %s1144_s22, %s895_s26 }
  0x57   : > { %p892_p1 = pnand %p890_p12, %p876_p0  ;;  %p898_p13 = scmp.lt.s32.totalorder %s896_s28, %s889_s23 }
  0x59   : > { %p893_p7 = pneg %p892_p1  ;;  %p899_p6 = por %p898_p13, %p897_p4 }
  0x5b   : > { %p900_p10 = pnand %p899_p6, %p893_p7 }
  0x5d   : > { %903 = shalt.err (!%p900_p10)
}
  0x5e   : > { %756 = dma.hbm_to_vmem [thread:$0]  (!%p1146_p11), %s1142_s27, 1024, %s1144_s22, %s1150_s30, %s978_s7, %s978_s7, %s979_s8  }
  0x5f   : > { %181 = sbr.rel (%p1046_p8) target bundleno = 361 (0x169), region = 32  ;;  %s1184_s4 = sand.u32 (!%p1046_p8), 1, %s966_s13  }
  0x60   : > { %s633_s5 = sshll.u32 (!%p1046_p8), %s1184_s4, 6  ;;  %s184_s9 = scalar_lea.sflag (!%p1046_p8), [#allocation3], %s1184_s4 }
  0x61   : > { %s1190_s29 = scalar_lea.vmem (!%p1046_p8), [#allocation2], %s633_s5  ;;  %p1317_p4 = scmp.ne.s32.totalorder (!%p1046_p8), %s1310_s18, 0 }
  0x66   : > { %949 = dma.done.wait (%p1317_p4), %s184_s9, 1024  }
  0x67   : > { %951 = vsyncadd (%p1317_p4), %s184_s9, 4294966272  ;;  %p1318_p7 = scmp.eq.s32.totalorder %s1027_s16, 0 }
  0x69   : > { %953 = dma.done.wait (%p1318_p7), [#allocation6], 2432   ;;  %p1319_p8 = pmov %p1318_p7 }
  0x6a   : > { %v807_v0 = vld [vmem:[#allocation5] sm:$0xff]   ;;  %v808_v1 = vld [vmem:[#allocation5 + $0x8] sm:$0xff]   ;;  %v809_v2 = vld [vmem:[#allocation5 + $0x10] sm:$0xff]   ;;  %vm315_vm0 = vcmask 392192   ;;  %vm501_vm1 = vcmask 257024   ;;  %s1218_s18 = scalar_lea.vmem [#allocation8], %s633_s5 }
  0x6b   : > { %955 = vsyncadd (%p1319_p8), [#allocation6], 4294964864  ;;  %706 = vmatprep.subr.bf16.mxu0 %v807_v0  ;;  %728 = vmatprep.subr.bf16.mxu1 %v807_v0  ;;  %v810_v3 = vld [vmem:[%s1190_s29] sm:$0xff]   ;;  %v812_v5 = vld [vmem:[%s1190_s29 + $0x8] sm:$0xff]   ;;  %s694_s20 = sshll.u32 %s1027_s16, 10  ;;  %s532_s7 = sshll.u32 %s1218_s18, 4  ;;  %s1247_s7 = int_to_ptr.vmem [resolvable:$true] %s532_s7 }
  0x6c   : > { %707 = vmatpush3.bf16.msra.mxu0 %v807_v0  ;;  %731 = vmatpush3.bf16.msra.mxu1 %v807_v0  ;;  %v811_v4 = vld [vmem:[%s1190_s29 + $0x20] sm:$0xff]   ;;  %v813_v6 = vld [vmem:[%s1190_s29 + $0x28] sm:$0xff]   ;;  %v814_v7 = vld [vmem:[%s1190_s29 + $0x10] sm:$0xff]   ;;  %s1245_s27 = scalar_lea.hbm %s1306_s3, %s694_s20  ;;  %s519_s22 = scalar_lea.sflag [#allocation4], %s1184_s4 }
  0x6d   : > { %708 = vmatprep.subr.bf16.mxu0 %v808_v1  ;;  %729 = vmatprep.subr.bf16.mxu1 %v808_v1  ;;  %v815_v8 = vld [vmem:[%s1190_s29 + $0x30] sm:$0xff]   ;;  %v816_v9 = vld [vmem:[%s1190_s29 + $0x18] sm:$0xff]   ;;  %v243_v11 = vld [vmem:[#allocation7 + $0x10] sm:$0xff]  ;;  %s904_s30 = scalar_lea.vmem %s1247_s7, 1024  ;;  %p1320_p0 = scmp.ne.s32.totalorder %s1315_s17, 0 }
  0x6e   : > { %712 = vmatprep.mubr.msk.bf16.mxu0 %vm315_vm0, %v810_v3  ;;  %720 = vmatprep.mubr.msk.bf16.mxu1 %vm315_vm0, %v811_v4  ;;  %v817_v10 = vld [vmem:[%s1190_s29 + $0x38] sm:$0xff]   ;;  %v251_v12 = vld [vmem:[#allocation7 + $0x50] sm:$0xff]  ;;  %v244_v17 = vld [vmem:[#allocation7 + $0x18] sm:$0xff]  ;;  %p905_p11 = scmp.ne.s32.totalorder %s1247_s7, %s904_s30  ;;  %s983_s10 = smov [#allocation8]  }
  0x6f   : > { %v241_v13 = vld [vmem:[#allocation7] sm:$0xff]  ;;  %v252_v18 = vld [vmem:[#allocation7 + $0x58] sm:$0xff]  ;;  %v242_v23 = vld [vmem:[#allocation7 + $0x8] sm:$0xff]  ;;  %s908_s21 = sshll.u32 %s983_s10, 4  ;;  %s909_s21 = int_to_ptr.vmem [resolvable:$false] %s908_s21 }
  0x70   : > { %709 = vmatpush3.bf16.msra.mxu0 %v808_v1  ;;  %732 = vmatpush3.bf16.msra.mxu1 %v808_v1  ;;  %v249_v14 = vld [vmem:[#allocation7 + $0x40] sm:$0xff]  ;;  %v250_v24 = vld [vmem:[#allocation7 + $0x48] sm:$0xff]  ;;  %v247_v43 = vld [vmem:[#allocation7 + $0x30] sm:$0xff]  ;;  %p906_p2 = pnand %p905_p11, %p1320_p0  ;;  %s910_s25 = scalar_lea.vmem %s909_s21, 2048 }
  0x71   : > { %710 = vmatprep.subr.bf16.mxu0 %v809_v2  ;;  %730 = vmatprep.subr.bf16.mxu1 %v809_v2  ;;  %v255_v44 = vld [vmem:[#allocation7 + $0x70] sm:$0xff]  ;;  %v245_v45 = vld [vmem:[#allocation7 + $0x20] sm:$0xff]  ;;  %v248_v49 = vld [vmem:[#allocation7 + $0x38] sm:$0xff]  ;;  %p911_p5 = scmp.lt.s32.totalorder %s1247_s7, %s909_s21  ;;  %p912_p9 = scmp.lt.s32.totalorder %s910_s25, %s904_s30 }
  0x72   : > { %v253_v46 = vld [vmem:[#allocation7 + $0x60] sm:$0xff]  ;;  %v256_v50 = vld [vmem:[#allocation7 + $0x78] sm:$0xff]  ;;  %v246_v55 = vld [vmem:[#allocation7 + $0x28] sm:$0xff]  ;;  %p907_p3 = pneg %p906_p2 }
  0x73   : > { %v254_v56 = vld [vmem:[#allocation7 + $0x68] sm:$0xff]  ;;  %p913_p12 = por %p912_p9, %p911_p5 }
  0x74   : > { %711 = vmatpush3.bf16.msra.mxu0 %v809_v2  ;;  %733 = vmatpush3.bf16.msra.mxu1 %v809_v2 }
  0x75   : > { %p914_p1 = pnand %p913_p12, %p907_p3 }
  0x77   : > { %713 = vmatmul.mubr.msk.bf16.vlgmr.msra.gmra.mrb[0].mxu0 %vm315_vm0, %v812_v5  ;;  %721 = vmatmul.mubr.msk.bf16.vlgmr.msra.gmra.mrb[0].mxu1 %vm315_vm0, %v813_v6 }
  0x78   : > { %716 = vmatprep.mubr.msk.bf16.mxu0 %vm315_vm0, %v814_v7  ;;  %724 = vmatprep.mubr.msk.bf16.mxu1 %vm315_vm0, %v815_v8 }
  0x7f   : > { %717 = vmatmul.mubr.msk.bf16.gmra.mrb[4].mxu0 %vm315_vm0, %v816_v9  ;;  %725 = vmatmul.mubr.msk.bf16.gmra.mrb[4].mxu1 %vm315_vm0, %v817_v10 }
 0x14a   : > { %v714_v15 = vpop.f32.mrb[0].mxu0  ;;  %v722_v16 = vpop.f32.mrb[0].mxu1 }
 0x14b   : > { %v383_v19 = vadd.f32 %v714_v15, %v243_v11  ;;  %v415_v20 = vadd.f32 %v722_v16, %v251_v12  ;;  %v374_v21 = vpop.f32.mrb[1].mxu0  ;;  %v406_v22 = vpop.f32.mrb[1].mxu1 }
 0x14c   : > { %v375_v25 = vadd.f32 %v374_v21, %v241_v13  ;;  %v407_v26 = vadd.f32 %v406_v22, %v249_v14  ;;  %v715_v27 = vpop.f32.mrb[2].mxu0  ;;  %v723_v28 = vpop.f32.mrb[2].mxu1 }
 0x14d   : > { %v680_v29 = vpack.c.bf16 %v383_v19, %v383_v19  ;;  %v688_v30 = vpack.c.bf16 %v415_v20, %v415_v20  ;;  %v386_v31 = vadd.f32 %v715_v27, %v244_v17  ;;  %v418_v32 = vadd.f32 %v723_v28, %v252_v18  ;;  %v377_v33 = vpop.f32.mrb[3].mxu0  ;;  %v409_v34 = vpop.f32.mrb[3].mxu1 }
 0x14e   : > { %v678_v35 = vpack.c.bf16 %v375_v25, %v375_v25  ;;  %v686_v36 = vpack.c.bf16 %v407_v26, %v407_v26  ;;  %v378_v37 = vadd.f32 %v377_v33, %v242_v23  ;;  %v410_v38 = vadd.f32 %v409_v34, %v250_v24 }
 0x14f   : > { %504 = vst.msk [vmem:[%s1218_s18 + $0x8] sm:$0xf] %vm501_vm1, %v680_v29  ;;  %512 = vst.msk [vmem:[%s1218_s18 + $0x28] sm:$0xf] %vm501_vm1, %v688_v30  ;;  %v681_v39 = vpack.c.bf16 %v386_v31, %v386_v31  ;;  %v689_v40 = vpack.c.bf16 %v418_v32, %v418_v32 }
 0x150   : > { %502 = vst.msk [vmem:[%s1218_s18] sm:$0xf] %vm501_vm1, %v678_v35  ;;  %510 = vst.msk [vmem:[%s1218_s18 + $0x20] sm:$0xf] %vm501_vm1, %v686_v36  ;;  %v679_v41 = vpack.c.bf16 %v378_v37, %v378_v37  ;;  %v687_v42 = vpack.c.bf16 %v410_v38, %v410_v38 }
 0x151   : > { %505 = vst.msk [vmem:[%s1218_s18 + $0xc] sm:$0xf] %vm501_vm1, %v681_v39  ;;  %513 = vst.msk [vmem:[%s1218_s18 + $0x2c] sm:$0xf] %vm501_vm1, %v689_v40 }
 0x152   : > { %503 = vst.msk [vmem:[%s1218_s18 + $0x4] sm:$0xf] %vm501_vm1, %v679_v41  ;;  %511 = vst.msk [vmem:[%s1218_s18 + $0x24] sm:$0xf] %vm501_vm1, %v687_v42  ;;  %v718_v47 = vpop.f32.mrb[4].mxu0  ;;  %v726_v48 = vpop.f32.mrb[4].mxu1 }
 0x153   : > { %v399_v51 = vadd.f32 %v718_v47, %v247_v43  ;;  %v431_v52 = vadd.f32 %v726_v48, %v255_v44  ;;  %v390_v53 = vpop.f32.mrb[5].mxu0  ;;  %v422_v54 = vpop.f32.mrb[5].mxu1 }
 0x154   : > { %v391_v57 = vadd.f32 %v390_v53, %v245_v45  ;;  %v423_v58 = vadd.f32 %v422_v54, %v253_v46  ;;  %v719_v59 = vpop.f32.mrb[6].mxu0  ;;  %v727_v60 = vpop.f32.mrb[6].mxu1 }
 0x155   : > { %v684_v61 = vpack.c.bf16 %v399_v51, %v399_v51  ;;  %v692_v62 = vpack.c.bf16 %v431_v52, %v431_v52  ;;  %v402_v63 = vadd.f32 %v719_v59, %v248_v49  ;;  %v434_v0 = vadd.f32 %v727_v60, %v256_v50  ;;  %v393_v1 = vpop.f32.mrb[7].mxu0  ;;  %v425_v2 = vpop.f32.mrb[7].mxu1 }
 0x156   : > { %v682_v3 = vpack.c.bf16 %v391_v57, %v391_v57  ;;  %v690_v4 = vpack.c.bf16 %v423_v58, %v423_v58  ;;  %v394_v5 = vadd.f32 %v393_v1, %v246_v55  ;;  %v426_v6 = vadd.f32 %v425_v2, %v254_v56 }
 0x157   : > { %508 = vst.msk [vmem:[%s1218_s18 + $0x18] sm:$0xf] %vm501_vm1, %v684_v61  ;;  %516 = vst.msk [vmem:[%s1218_s18 + $0x38] sm:$0xf] %vm501_vm1, %v692_v62  ;;  %v685_v7 = vpack.c.bf16 %v402_v63, %v402_v63  ;;  %v693_v8 = vpack.c.bf16 %v434_v0, %v434_v0 }
 0x158   : > { %506 = vst.msk [vmem:[%s1218_s18 + $0x10] sm:$0xf] %vm501_vm1, %v682_v3  ;;  %514 = vst.msk [vmem:[%s1218_s18 + $0x30] sm:$0xf] %vm501_vm1, %v690_v4  ;;  %v683_v9 = vpack.c.bf16 %v394_v5, %v394_v5  ;;  %v691_v10 = vpack.c.bf16 %v426_v6, %v426_v6 }
 0x159   : > { %509 = vst.msk [vmem:[%s1218_s18 + $0x1c] sm:$0xf] %vm501_vm1, %v685_v7  ;;  %517 = vst.msk [vmem:[%s1218_s18 + $0x3c] sm:$0xf] %vm501_vm1, %v693_v8 }
 0x15a   : > { %507 = vst.msk [vmem:[%s1218_s18 + $0x14] sm:$0xf] %vm501_vm1, %v683_v9  ;;  %515 = vst.msk [vmem:[%s1218_s18 + $0x34] sm:$0xf] %vm501_vm1, %v691_v10 }
 0x15b   : > { %917 = shalt.err (!%p914_p1)
}
 0x15c   : > { %s918_s23 = scalar_lea.hbm %s1245_s27, 1024  ;;  %s922_s28 = scalar_lea.hbm %s1306_s3, 2048 }
 0x15d   : > { %p919_p13 = scmp.ne.s32.totalorder %s1245_s27, %s918_s23  ;;  %p923_p4 = scmp.lt.u32.totalorder %s1245_s27, %s1306_s3 }
 0x15e   : > { %p924_p7 = scmp.lt.u32.totalorder %s922_s28, %s918_s23  ;;  %p926_p11 = scmp.lt.u32.totalorder %s918_s23, %s1245_s27 }
 0x15f   : > { %p920_p6 = pnand %p919_p13, %p1320_p0 }
 0x160   : > { %p925_p8 = por %p924_p7, %p923_p4 }
 0x161   : > { %p921_p10 = pneg %p920_p6 }
 0x162   : > { %p927_p2 = por %p926_p11, %p925_p8 }
 0x164   : > { %p928_p3 = pnand %p927_p2, %p921_p10 }
 0x166   : > { %931 = shalt.err (!%p928_p3)
}
 0x167   : > { %s984_s29 = smov 64   ;;  %s985_s18 = smov 4  }
 0x168   : > { %744 = dma.vmem_to_hbm [thread:$0]  (%p1320_p0), %s1247_s7, 1024, %s1245_s27, %s519_s22, %s984_s29, %s984_s29, %s985_s18  }
 0x169 PF: > { %s547_s20 = sand.u32 1, %s962_s12   ;;  %p1321_p5 = scmp.ne.s32.totalorder %s1311_s19, 0 }
 0x16a   : > { %p1322_p9 = scmp.ge.s32.totalorder %s974_s15, 2  ;;  %s548_s16 = scalar_lea.sflag [#allocation4], %s547_s20 }
 0x16c   : > { %p758_p12 = pnand %p1322_p9, %p1321_p5 }
 0x16e   : > { %957 = dma.done.wait (!%p758_p12), %s548_s16, 1024  }
 0x16f   : > { %959 = vsyncadd (!%p758_p12), %s548_s16, 4294966272  ;;  %p17_p1 = scmp.ge.s32.totalorder %s1119_s6, 4   ;;  %s1323_s12 = smov %s966_s13 }
 0x170   : > { %s1324_s13 = smov %s970_s14  ;;  %s1325_s14 = smov %s1128_s11 }
 0x171   : > { %s1326_s15 = smov %s1119_s6  ;;  %19 = sbr.rel (!%p17_p1) target bundleno = 6 (0x6), region = 85 }
 0x178   :  { %553 = vsyncpa [#allocation3], 1 }
 0x179   :  { %555 = vsyncpa [#allocation3 + $0x1], 1 }
 0x17a   :  { %556 = vsyncpa [#allocation6], 1 }
 0x17b   :  { %557 = vsyncpa [#allocation4], 1 }
 0x17c   :  { %559 = vsyncpa [#allocation4 + $0x1], 1 }

// kernel: supvit_forward.11
= control target key start
LH: loop header
LB: loop body
LE: loop exit
PB: predicated region body
PF: predicated region fallthrough
CT: control target
= control target key end

     0   :  { %10 = vsyncpa [#allocation3], 0  ;;  %s510_s0 = inlined_call_operand.hbm [shape: bf16[2,32], index: 0, kind: input, shape index: {}]   ;;  %s511_s1 = inlined_call_operand.hbm [shape: f32[1,32], index: 1, kind: input, shape index: {}]   ;;  %s512_s2 = inlined_call_operand.hbm [shape: f32[1,32], index: 2, kind: input, shape index: {}]   ;;  %s513_s3 = inlined_call_operand.hbm [shape: bf16[32,128], index: 3, kind: input, shape index: {}]   ;;  %s514_s4 = inlined_call_operand.hbm [shape: f32[1,128], index: 4, kind: input, shape index: {}]   ;;  %s515_s5 = inlined_call_operand.hbm [shape: f32[2,128], index: 5, kind: output, shape index: {}]  }
   0x1   :  { %11 = vsyncpa [#allocation6], 0 }
   0x2   :  { %12 = vsyncpa [#allocation9], 0 }
   0x3   :  { %13 = vsyncpa [#allocation4], 0  ;;  %s391_s18 = smov [#allocation5]   ;;  %s392_s20 = smov [#allocation8]  }
   0x4   :  { %s30_s19 = sshll.u32 %s391_s18, 4  ;;  %s49_s21 = sshll.u32 %s392_s20, 4  ;;  %s31_s19 = int_to_ptr.vmem [resolvable:$true] %s30_s19  ;;  %s431_s21 = int_to_ptr.vmem [resolvable:$true] %s49_s21 }
   0x5   :  { %s251_s24 = scalar_lea.hbm %s511_s1, 16 }
   0x6   :  { %p252_p0 = scmp.ne.s32.totalorder %s511_s1, %s251_s24  ;;  %p255_p1 = scmp.lt.u32.totalorder %s251_s24, %s511_s1 }
   0x8   :  { %p257_p2 = pnand %p255_p1, %p252_p0 }
   0xa   :  { %260 = shalt.err (!%p257_p2)
}
   0xb   :  { %s261_s29 = scalar_lea.vmem %s31_s19, 16  ;;  %s265_s30 = scalar_lea.vmem %s31_s19, 32 }
   0xc   :  { %p262_p3 = scmp.ne.s32.totalorder %s31_s19, %s261_s29  ;;  %p266_p4 = scmp.lt.s32.totalorder %s31_s19, %s31_s19 }
   0xd   :  { %p267_p5 = scmp.lt.s32.totalorder %s265_s30, %s261_s29 }
   0xf   :  { %p268_p6 = por %p267_p5, %p266_p4 }
  0x11   :  { %p269_p7 = pnand %p268_p6, %p262_p3 }
  0x13   :  { %272 = shalt.err (!%p269_p7)
}
  0x14   :  { %33 = dma.hbm_to_vmem [thread:$0]  %s511_s1, 16, %s31_s19, [#allocation6]  }
  0x15   :  { %s273_s10 = scalar_lea.hbm %s513_s3, 256 }
  0x16   :  { %p274_p8 = scmp.ne.s32.totalorder %s513_s3, %s273_s10  ;;  %p277_p9 = scmp.lt.u32.totalorder %s273_s10, %s513_s3 }
  0x18   :  { %p279_p10 = pnand %p277_p9, %p274_p8 }
  0x1a   :  { %282 = shalt.err (!%p279_p10)
}
  0x1b   :  { %s283_s15 = scalar_lea.vmem %s431_s21, 256  ;;  %p288_p12 = scmp.lt.s32.totalorder %s431_s21, %s431_s21 }
  0x1c   :  { %p284_p11 = scmp.ne.s32.totalorder %s431_s21, %s283_s15  ;;  %p289_p13 = scmp.lt.s32.totalorder %s283_s15, %s283_s15 }
  0x1e   :  { %p290_p0 = por %p289_p13, %p288_p12 }
  0x20   :  { %p291_p1 = pnand %p290_p0, %p284_p11 }
  0x22   :  { %294 = shalt.err (!%p291_p1)
}
  0x23   :  { %s393_s1 = smov 64   ;;  %s394_s16 = smov 4  }
  0x24   :  { %55 = dma.hbm_to_vmem [thread:$0]  %s513_s3, 256, %s431_s21, [#allocation9], %s393_s1, %s393_s1, %s394_s16  }
  0x25   :  { %s395_s19 = smov [#allocation2]   ;;  %s396_s22 = smov [#allocation7]  }
  0x26   :  { %s20_s20 = sshll.u32 %s395_s19, 4  ;;  %s40_s23 = sshll.u32 %s396_s22, 4  ;;  %s21_s20 = int_to_ptr.vmem [resolvable:$true] %s20_s20  ;;  %s41_s23 = int_to_ptr.vmem [resolvable:$true] %s40_s23 }
  0x27   :  { %s295_s26 = scalar_lea.hbm %s510_s0, 16 }
  0x28   :  { %p296_p2 = scmp.ne.s32.totalorder %s510_s0, %s295_s26  ;;  %p299_p3 = scmp.lt.u32.totalorder %s295_s26, %s510_s0 }
  0x2a   :  { %p301_p4 = pnand %p299_p3, %p296_p2 }
  0x2c   :  { %304 = shalt.err (!%p301_p4)
}
  0x2d   :  { %s305_s3 = scalar_lea.vmem %s21_s20, 16  ;;  %s309_s21 = scalar_lea.vmem %s21_s20, 32 }
  0x2e   :  { %p306_p5 = scmp.ne.s32.totalorder %s21_s20, %s305_s3  ;;  %p310_p6 = scmp.lt.s32.totalorder %s21_s20, %s21_s20 }
  0x2f   :  { %p311_p7 = scmp.lt.s32.totalorder %s309_s21, %s305_s3 }
  0x31   :  { %p312_p8 = por %p311_p7, %p310_p6 }
  0x33   :  { %p313_p9 = pnand %p312_p8, %p306_p5 }
  0x35   :  { %316 = shalt.err (!%p313_p9)
}
  0x36   :  { %23 = dma.hbm_to_vmem [thread:$0]  %s510_s0, 16, %s21_s20, [#allocation3]  }
  0x37   :  { %s317_s10 = scalar_lea.hbm %s512_s2, 16 }
  0x38   :  { %p318_p10 = scmp.ne.s32.totalorder %s512_s2, %s317_s10  ;;  %p321_p11 = scmp.lt.u32.totalorder %s317_s10, %s512_s2 }
  0x3a   :  { %p323_p12 = pnand %p321_p11, %p318_p10 }
  0x3c   :  { %326 = shalt.err (!%p323_p12)
}
  0x3d   :  { %s327_s15 = scalar_lea.vmem %s41_s23, 16  ;;  %s331_s1 = scalar_lea.vmem %s41_s23, 32 }
  0x3e   :  { %p328_p13 = scmp.ne.s32.totalorder %s41_s23, %s327_s15  ;;  %p332_p0 = scmp.lt.s32.totalorder %s41_s23, %s41_s23 }
  0x3f   :  { %p333_p1 = scmp.lt.s32.totalorder %s331_s1, %s327_s15 }
  0x41   :  { %p334_p2 = por %p333_p1, %p332_p0 }
  0x43   :  { %p335_p3 = pnand %p334_p2, %p328_p13 }
  0x45   :  { %338 = shalt.err (!%p335_p3)
}
  0x46   :  { %43 = dma.hbm_to_vmem [thread:$0]  %s512_s2, 16, %s41_s23, [#allocation6]  }
  0x47   :  { %s397_s17 = smov [#allocation10]   ;;  %s339_s22 = scalar_lea.hbm %s514_s4, 16 }
  0x48   :  { %s62_s18 = sshll.u32 %s397_s17, 4  ;;  %p340_p4 = scmp.ne.s32.totalorder %s514_s4, %s339_s22  ;;  %s63_s18 = int_to_ptr.vmem [resolvable:$true] %s62_s18 }
  0x49   :  { %p343_p5 = scmp.lt.u32.totalorder %s339_s22, %s514_s4 }
  0x4b   :  { %p345_p6 = pnand %p343_p5, %p340_p4 }
  0x4d   :  { %348 = shalt.err (!%p345_p6)
}
  0x4e   :  { %s349_s28 = scalar_lea.vmem %s63_s18, 16  ;;  %s353_s2 = scalar_lea.vmem %s63_s18, 32 }
  0x4f   :  { %p350_p7 = scmp.ne.s32.totalorder %s63_s18, %s349_s28  ;;  %p354_p8 = scmp.lt.s32.totalorder %s63_s18, %s63_s18 }
  0x50   :  { %p355_p9 = scmp.lt.s32.totalorder %s353_s2, %s349_s28 }
  0x52   :  { %p356_p10 = por %p355_p9, %p354_p8 }
  0x54   :  { %p357_p11 = pnand %p356_p10, %p350_p7 }
  0x56   :  { %360 = shalt.err (!%p357_p11)
}
  0x57   :  { %65 = dma.hbm_to_vmem [thread:$0]  %s514_s4, 16, %s63_s18, [#allocation9]  }
  0x58   :  { %383 = dma.done.wait [#allocation3], 16  }
  0x59   :  { %384 = vsyncadd [#allocation3], 4294967280 }
  0x5a   :  { %385 = dma.done.wait [#allocation6], 32  }
  0x5b   :  { %386 = vsyncadd [#allocation6], 4294967264 }
  0x5c   :  { %387 = dma.done.wait [#allocation9], 272  }
  0x5d   :  { %388 = vsyncadd [#allocation9], 4294967024  ;;  %vm86_vm0 = vcmask 254976   ;;  %v82_v0 = vld [vmem:[#allocation2] sm:$0x1]  ;;  %v243_v8 = vld [vmem:[#allocation8] sm:$0xff]  }
  0x5e   :  { %v83_v1 = vunpack.c.l.bf16 %v82_v0  ;;  %v398_v9 = vmov 0.0   ;;  %v244_v10 = vld [vmem:[#allocation8 + $0x8] sm:$0xff]   ;;  %vm399_vm1 = vmmov 0   ;;  %v216_v15 = vld [vmem:[#allocation5] ss:$0 sm:$0xff]  ;;  %vm139_vm2 = vcmask 261120  }
  0x5f   :  { %225 = vmatprep.subr.bf16.mxu0 %v398_v9  ;;  %229 = vmatprep.mubr.msk.bf16.mxu0 %vm399_vm1, %v398_v9  ;;  %v217_v17 = vld [vmem:[#allocation7] ss:$0 sm:$0xff]  ;;  %v218_v21 = vld [vmem:[#allocation10] ss:$0 sm:$0xff]  ;;  %vm184_vm3 = vcmask 1041408   ;;  %s400_s4 = smov [#allocation11]  }
  0x60   :  { %v87_v2 = vsel %vm86_vm0, %v83_v1, 0.0  ;;  %226 = vmatpush3.bf16.msra.mxu0 %v243_v8  ;;  %s205_s30 = sshll.u32 %s400_s4, 4  ;;  %s206_s30 = int_to_ptr.vmem [resolvable:$true] %s205_s30 }
  0x61   :  { %88 = vadd.xlane.f32.xlu0 %v87_v2  ;;  %227 = vmatprep.subr.bf16.mxu0 %v398_v9  ;;  %s361_s3 = scalar_lea.vmem %s206_s30, 32  ;;  %p366_p13 = scmp.lt.s32.totalorder %s206_s30, %s206_s30 }
  0x62   :  { %p362_p12 = scmp.ne.s32.totalorder %s206_s30, %s361_s3  ;;  %p367_p0 = scmp.lt.s32.totalorder %s361_s3, %s361_s3 }
  0x64   :  { %228 = vmatpush3.bf16.msra.mxu0 %v244_v10  ;;  %p368_p1 = por %p367_p0, %p366_p13 }
  0x66   :  { %p369_p2 = pnand %p368_p1, %p362_p12 }
  0xee   :  { %v89_v3 = vpop.xlane.xlu0 %88 }
  0xef   :  { %v91_v4 = vmul.f32 0.03125, %v89_v3 }
  0xf1   :  { %v92_v5 = vsub.f32 %v83_v1, %v91_v4 }
  0xf3   :  { %v93_v6 = vmul.f32 %v92_v5, %v92_v5 }
  0xf5   :  { %v94_v7 = vsel %vm86_vm0, %v93_v6, 0.0 }
  0xf6   :  { %95 = vadd.xlane.f32.xlu0 %v94_v7 }
 0x183   :  { %v96_v11 = vpop.xlane.xlu0 %95 }
 0x184   :  { %v97_v12 = vmul.f32 0.03125, %v96_v11 }
 0x186   :  { %v98_v13 = vadd.f32 1e-06, %v97_v12 }
 0x188   :  { %245 = vrsqrt.f32 %v98_v13 }
 0x192   :  { %v246_v14 = vpop.eup %245 }
 0x193   :  { %v100_v16 = vmul.f32 %v246_v14, %v92_v5 }
 0x195   :  { %v107_v18 = vmul.f32 %v216_v15, %v100_v16 }
 0x197   :  { %v114_v19 = vadd.f32 %v217_v17, %v107_v18 }
 0x199   :  { %v115_v20 = vpack.c.bf16 %v114_v19, %v114_v19 }
 0x19b   :  { %230 = vmatmul.mubr.msk.bf16.vlgmr.msra.gmra.mrb[0].mxu0 %vm139_vm2, %v115_v20 }
 0x26e   :  { %v177_v22 = vpop.f32.mrb[0].mxu0 }
 0x26f   :  { %v178_v23 = vadd.f32 %v218_v21, %v177_v22  ;;  %v231_v24 = vpop.f32.mrb[1].mxu0 }
 0x270   :  { %v180_v25 = vpop.f32.mrb[2].mxu0 }
 0x271   :  { %v232_v26 = vpop.f32.mrb[3].mxu0  ;;  %v183_v27 = vmul.f32 %v178_v23, %v178_v23 }
 0x273   :  { %v185_v28 = vsel %vm184_vm3, %v183_v27, 0.0 }
 0x274   :  { %186 = vadd.xlane.f32.xlu1 %v185_v28 }
 0x301   :  { %v187_v29 = vpop.xlane.xlu1 %186 }
 0x302   :  { %247 = vrsqrt.f32 %v187_v29  ;;  %vm190_vm4 = vcmp.eq.f32.partialorder %v187_v29, inf  ;;  %v193_v32 = vand.u32 2147483648, %v187_v29  ;;  %vm192_vm5 = vcmp.eq.f32.partialorder %v187_v29, 0.0 }
 0x30c   :  { %v248_v30 = vpop.eup %247 }
 0x30d   :  { %v189_v31 = vmul.f32 %v248_v30, %v187_v29 }
 0x30f   :  { %v191_v33 = vsel %vm190_vm4, %v187_v29, %v189_v31 }
 0x310   :  { %v194_v34 = vsel %vm192_vm5, %v193_v32, %v191_v33 }
 0x311   :  { %v195_v35 = vmax.f32 %v194_v34, 1e-12 }
 0x313   :  { %249 = vrcp.f32 %v195_v35 }
 0x31d   :  { %v250_v36 = vpop.eup %249 }
 0x31e   :  { %v197_v37 = vmul.f32 %v250_v36, %v178_v23 }
 0x320   :  { %198 = vst [vmem:[#allocation11] sm:$0x3] %v197_v37 }
 0x321   :  { %372 = shalt.err (!%p369_p2)
}
 0x322   :  { %s373_s7 = scalar_lea.hbm %s515_s5, 32 }
 0x323   :  { %p374_p3 = scmp.ne.s32.totalorder %s515_s5, %s373_s7  ;;  %p377_p4 = scmp.lt.u32.totalorder %s373_s7, %s515_s5 }
 0x325   :  { %p379_p5 = pnand %p377_p4, %p374_p3 }
 0x327   :  { %382 = shalt.err (!%p379_p5)
}
 0x328   :  { %208 = dma.vmem_to_hbm [thread:$0]  %s206_s30, 32, %s515_s5, [#allocation4]  }
 0x329   :  { %389 = dma.done.wait [#allocation4], 32  }
 0x32a   :  { %390 = vsyncadd [#allocation4], 4294967264 }
 0x32b   :  { %212 = vsyncpa [#allocation3], 1 }
 0x32c   :  { %213 = vsyncpa [#allocation6], 1 }
 0x32d   :  { %214 = vsyncpa [#allocation9], 1 }
 0x32e   :  { %215 = vsyncpa [#allocation4], 1 }

// kernel: supvit_forward.7
= control target key start
LH: loop header
LB: loop body
LE: loop exit
PB: predicated region body
PF: predicated region fallthrough
CT: control target
= control target key end

     0   :  { %12 = vsyncpa [#allocation5], 0  ;;  %s4675_s0 = inlined_call_operand.hbm [shape: bf16[2,128,32], index: 0, kind: input, shape index: {}]   ;;  %s4676_s1 = inlined_call_operand.hbm [shape: f32[1,32], index: 1, kind: input, shape index: {}]   ;;  %s4677_s2 = inlined_call_operand.hbm [shape: f32[1,32], index: 2, kind: input, shape index: {}]   ;;  %s4678_s3 = inlined_call_operand.hbm [shape: bf16[32,96], index: 3, kind: input, shape index: {}]   ;;  %s4679_s4 = inlined_call_operand.hbm [shape: f32[1,96], index: 4, kind: input, shape index: {}]   ;;  %s4680_s5 = inlined_call_operand.hbm [shape: bf16[2,16,32], index: 5, kind: input, shape index: {}]   ;;  %s4681_s6 = inlined_call_operand.hbm [shape: f32[1,32], index: 6, kind: input, shape index: {}]   ;;  %s4682_s7 = inlined_call_operand.hbm [shape: bf16[2,128,32], index: 7, kind: output, shape index: {}]  }
   0x1   :  { %14 = vsyncpa [#allocation5 + $0x1], 0 }
   0x2   :  { %15 = vsyncpa [#allocation8], 0 }
   0x3   :  { %16 = vsyncpa [#allocation11], 0 }
   0x4   :  { %17 = vsyncpa [#allocation14], 0 }
   0x5   :  { %18 = vsyncpa [#allocation6], 0 }
   0x6   :  { %20 = vsyncpa [#allocation6 + $0x1], 0  ;;  %s3489_s24 = smov 0   ;;  %s3491_s25 = smov 0  }
   0x7   :  { %s3493_s26 = smov 0   ;;  %s3495_s27 = smov 0  }
   0x8 LB: > { %s3433_s28 = smov [#allocation7]   ;;  %s3510_s30 = sadd.s32 4294967295, %s3431_s27   ;;  %s3431_s27 = sphi %s3495_s27, %s4710_s27   ;;  %s3427_s26 = sphi %s3493_s26, %s4709_s26   ;;  %s3423_s25 = sphi %s3491_s25, %s4708_s25   ;;  %s3419_s24 = sphi %s3489_s24, %s4707_s24  }
   0x9   : > { %s222_s29 = sshll.u32 %s3433_s28, 4  ;;  %p2438_p0 = scmp.ge.s32.totalorder %s3431_s27, 1  ;;  %s3515_s29 = int_to_ptr.vmem [resolvable:$true] %s222_s29 }
   0xa   : > { %p4683_p1 = scmp.eq.s32.totalorder %s3510_s30, 0  ;;  %p209_p2 = scmp.lt.s32.totalorder %s3431_s27, 3 }
   0xb   : > { %s3434_s9 = smov [#allocation10]   ;;  %s3435_s12 = smov [#allocation13]  }
   0xc   : > { %p3517_p3 = pnand %p2438_p0, %p209_p2  ;;  %s243_s10 = sshll.u32 %s3434_s9, 4  ;;  %s3524_s10 = int_to_ptr.vmem [resolvable:$true] %s243_s10 }
   0xd   : > { %s267_s13 = sshll.u32 %s3435_s12, 4  ;;  %s3155_s16 = scalar_lea.hbm %s4676_s1, 16  ;;  %s3532_s13 = int_to_ptr.vmem [resolvable:$true] %s267_s13 }
   0xe   : > { %s4687_s8 = scalar_select %p3517_p3, 1, 0 }
   0xf   : > { %p2904_p5 = pneg %p3517_p3  ;;  %p3156_p7 = scmp.ne.s32.totalorder %s4676_s1, %s3155_s16 }
  0x10   : > { %p3162_p11 = scmp.lt.u32.totalorder %s3155_s16, %s4676_s1 }
  0x11   : > { %p3528_p6 = pnand %p2904_p5, %p4683_p1 }
  0x13   : > { %p3542_p8 = pneg %p3528_p6 }
  0x15   : > { %p3158_p9 = pnand %p3542_p8, %p3156_p7 }
  0x17   : > { %p3159_p10 = pneg %p3158_p9 }
  0x19   : > { %p3164_p12 = pnand %p3162_p11, %p3159_p10 }
  0x1b   : > { %3167 = shalt.err (!%p3164_p12)
}
  0x1c   : > { %s3168_s22 = scalar_lea.vmem %s3515_s29, 16  ;;  %s3175_s23 = scalar_lea.vmem %s3515_s29, 32 }
  0x1d   : > { %p3169_p13 = scmp.ne.s32.totalorder %s3515_s29, %s3168_s22  ;;  %p3176_p5 = scmp.lt.s32.totalorder %s3515_s29, %s3515_s29 }
  0x1e   : > { %p3177_p7 = scmp.lt.s32.totalorder %s3175_s23, %s3168_s22 }
  0x1f   : > { %p3171_p0 = pnand %p3169_p13, %p3542_p8 }
  0x20   : > { %p3178_p9 = por %p3177_p7, %p3176_p5 }
  0x21   : > { %p3172_p2 = pneg %p3171_p0 }
  0x23   : > { %p3179_p4 = pnand %p3178_p9, %p3172_p2 }
  0x25   : > { %3182 = shalt.err (!%p3179_p4)
}
  0x26   : > { %2907 = dma.hbm_to_vmem [thread:$0]  (!%p3528_p6), %s4676_s1, 16, %s3515_s29, [#allocation8]  }
  0x27   : > { %s3183_s15 = scalar_lea.hbm %s4678_s3, 256 }
  0x28   : > { %p3184_p10 = scmp.ne.s32.totalorder %s4678_s3, %s3183_s15  ;;  %p3190_p4 = scmp.lt.u32.totalorder %s3183_s15, %s4678_s3 }
  0x2a   : > { %p3186_p11 = pnand %p3184_p10, %p3542_p8 }
  0x2c   : > { %p3187_p12 = pneg %p3186_p11 }
  0x2e   : > { %p3192_p13 = pnand %p3190_p4, %p3187_p12 }
  0x30   : > { %3195 = shalt.err (!%p3192_p13)
}
  0x31   : > { %s3196_s29 = scalar_lea.vmem %s3524_s10, 256  ;;  %p3204_p7 = scmp.lt.s32.totalorder %s3524_s10, %s3524_s10 }
  0x32   : > { %p3197_p0 = scmp.ne.s32.totalorder %s3524_s10, %s3196_s29  ;;  %p3205_p9 = scmp.lt.s32.totalorder %s3196_s29, %s3196_s29 }
  0x34   : > { %p3199_p2 = pnand %p3197_p0, %p3542_p8  ;;  %p3206_p10 = por %p3205_p9, %p3204_p7 }
  0x36   : > { %p3200_p5 = pneg %p3199_p2 }
  0x38   : > { %p3207_p11 = pnand %p3206_p10, %p3200_p5 }
  0x3a   : > { %3210 = shalt.err (!%p3207_p11)
}
  0x3b   : > { %s4685_s21 = smov 64   ;;  %s3437_s22 = smov 4  }
  0x3c   : > { %2913 = dma.hbm_to_vmem [thread:$0]  (!%p3528_p6), %s4678_s3, 256, %s3524_s10, [#allocation11], %s4685_s21, %s4685_s21, %s3437_s22  }
  0x3d   : > { %s3211_s14 = scalar_lea.hbm %s4680_s5, 256 }
  0x3e   : > { %p3212_p12 = scmp.ne.s32.totalorder %s4680_s5, %s3211_s14  ;;  %p3218_p0 = scmp.lt.u32.totalorder %s3211_s14, %s4680_s5 }
  0x40   : > { %p3214_p4 = pnand %p3212_p12, %p3542_p8 }
  0x42   : > { %p3215_p13 = pneg %p3214_p4 }
  0x44   : > { %p3220_p2 = pnand %p3218_p0, %p3215_p13 }
  0x46   : > { %3223 = shalt.err (!%p3220_p2)
}
  0x47   : > { %s3224_s10 = scalar_lea.vmem %s3532_s13, 256  ;;  %p3232_p10 = scmp.lt.s32.totalorder %s3532_s13, %s3532_s13 }
  0x48   : > { %p3225_p5 = scmp.ne.s32.totalorder %s3532_s13, %s3224_s10  ;;  %p3233_p11 = scmp.lt.s32.totalorder %s3224_s10, %s3224_s10 }
  0x4a   : > { %p3227_p7 = pnand %p3225_p5, %p3542_p8  ;;  %p3234_p12 = por %p3233_p11, %p3232_p10 }
  0x4c   : > { %p3228_p9 = pneg %p3227_p7 }
  0x4e   : > { %p3235_p4 = pnand %p3234_p12, %p3228_p9 }
  0x50   : > { %3238 = shalt.err (!%p3235_p4)
}
  0x51   : > { %2919 = dma.hbm_to_vmem [thread:$0]  (!%p3528_p6), %s4680_s5, 256, %s3532_s13, [#allocation14], %s4685_s21, %s4685_s21, %s3437_s22  }
  0x52   : > { %s3438_s23 = smov [#allocation9]   ;;  %s3439_s9 = smov [#allocation12]  }
  0x53   : > { %s233_s28 = sshll.u32 %s3438_s23, 4  ;;  %s257_s12 = sshll.u32 %s3439_s9, 4  ;;  %s234_s28 = int_to_ptr.vmem [resolvable:$true] %s233_s28  ;;  %s258_s12 = int_to_ptr.vmem [resolvable:$true] %s257_s12 }
  0x54   : > { %s3239_s16 = scalar_lea.hbm %s4677_s2, 16 }
  0x55   : > { %p3240_p13 = scmp.ne.s32.totalorder %s4677_s2, %s3239_s16  ;;  %p3246_p5 = scmp.lt.u32.totalorder %s3239_s16, %s4677_s2 }
  0x57   : > { %p3242_p0 = pnand %p3240_p13, %p3542_p8 }
  0x59   : > { %p3243_p2 = pneg %p3242_p0 }
  0x5b   : > { %p3248_p7 = pnand %p3246_p5, %p3243_p2 }
  0x5d   : > { %3251 = shalt.err (!%p3248_p7)
}
  0x5e   : > { %s3252_s13 = scalar_lea.vmem %s234_s28, 16  ;;  %s3259_s29 = scalar_lea.vmem %s234_s28, 32 }
  0x5f   : > { %p3253_p9 = scmp.ne.s32.totalorder %s234_s28, %s3252_s13  ;;  %p3260_p12 = scmp.lt.s32.totalorder %s234_s28, %s234_s28 }
  0x60   : > { %p3261_p4 = scmp.lt.s32.totalorder %s3259_s29, %s3252_s13 }
  0x61   : > { %p3255_p10 = pnand %p3253_p9, %p3542_p8 }
  0x62   : > { %p3262_p1 = por %p3261_p4, %p3260_p12 }
  0x63   : > { %p3256_p11 = pneg %p3255_p10 }
  0x65   : > { %p3263_p3 = pnand %p3262_p1, %p3256_p11 }
  0x67   : > { %3266 = shalt.err (!%p3263_p3)
}
  0x68   : > { %2910 = dma.hbm_to_vmem [thread:$0]  (!%p3528_p6), %s4677_s2, 16, %s234_s28, [#allocation8]  }
  0x69   : > { %s3267_s16 = scalar_lea.hbm %s4679_s4, 16 }
  0x6a   : > { %p3268_p13 = scmp.ne.s32.totalorder %s4679_s4, %s3267_s16  ;;  %p3274_p3 = scmp.lt.u32.totalorder %s3267_s16, %s4679_s4 }
  0x6c   : > { %p3270_p0 = pnand %p3268_p13, %p3542_p8 }
  0x6e   : > { %p3271_p1 = pneg %p3270_p0 }
  0x70   : > { %p3276_p2 = pnand %p3274_p3, %p3271_p1 }
  0x72   : > { %3279 = shalt.err (!%p3276_p2)
}
  0x73   : > { %s3280_s13 = scalar_lea.vmem %s258_s12, 16  ;;  %s3287_s28 = scalar_lea.vmem %s258_s12, 32 }
  0x74   : > { %p3281_p5 = scmp.ne.s32.totalorder %s258_s12, %s3280_s13  ;;  %p3288_p10 = scmp.lt.s32.totalorder %s258_s12, %s258_s12 }
  0x75   : > { %p3289_p11 = scmp.lt.s32.totalorder %s3287_s28, %s3280_s13 }
  0x76   : > { %p3283_p7 = pnand %p3281_p5, %p3542_p8 }
  0x77   : > { %p3290_p12 = por %p3289_p11, %p3288_p10 }
  0x78   : > { %p3284_p9 = pneg %p3283_p7 }
  0x7a   : > { %p3291_p4 = pnand %p3290_p12, %p3284_p9 }
  0x7c   : > { %3294 = shalt.err (!%p3291_p4)
}
  0x7d   : > { %2916 = dma.hbm_to_vmem [thread:$0]  (!%p3528_p6), %s4679_s4, 16, %s258_s12, [#allocation11]  }
  0x7e   : > { %s3440_s9 = smov [#allocation15]   ;;  %s3295_s17 = scalar_lea.hbm %s4681_s6, 16 }
  0x7f   : > { %s281_s14 = sshll.u32 %s3440_s9, 4  ;;  %p3296_p13 = scmp.ne.s32.totalorder %s4681_s6, %s3295_s17  ;;  %s282_s14 = int_to_ptr.vmem [resolvable:$true] %s281_s14 }
  0x80   : > { %p3302_p3 = scmp.lt.u32.totalorder %s3295_s17, %s4681_s6 }
  0x81   : > { %p3298_p0 = pnand %p3296_p13, %p3542_p8 }
  0x83   : > { %p3299_p1 = pneg %p3298_p0 }
  0x85   : > { %p3304_p2 = pnand %p3302_p3, %p3299_p1 }
  0x87   : > { %3307 = shalt.err (!%p3304_p2)
}
  0x88   : > { %s3308_s12 = scalar_lea.vmem %s282_s14, 16  ;;  %s3315_s28 = scalar_lea.vmem %s282_s14, 32 }
  0x89   : > { %p3309_p5 = scmp.ne.s32.totalorder %s282_s14, %s3308_s12  ;;  %p3316_p10 = scmp.lt.s32.totalorder %s282_s14, %s282_s14 }
  0x8a   : > { %p3317_p11 = scmp.lt.s32.totalorder %s3315_s28, %s3308_s12 }
  0x8b   : > { %p3311_p7 = pnand %p3309_p5, %p3542_p8 }
  0x8c   : > { %p3318_p12 = por %p3317_p11, %p3316_p10 }
  0x8d   : > { %p3312_p9 = pneg %p3311_p7 }
  0x8f   : > { %p3319_p4 = pnand %p3318_p12, %p3312_p9 }
  0x91   : > { %3322 = shalt.err (!%p3319_p4)
}
  0x92   : > { %2922 = dma.hbm_to_vmem [thread:$0]  (!%p3528_p6), %s4681_s6, 16, %s282_s14, [#allocation14]  }
  0x93   : > { %s2437_s19 = sadd.s32 4294967294, %s3431_s27   ;;  %s3672_s11 = sadd.s32 1, %s3431_s27  }
  0x94   : > { %s30_s9 = ssub.s32 %s3431_s27, %s3672_s11  ;;  %s33_s15 = sadd.s32 1, %s3427_s26 }
  0x95   : > { %p31_p8 = scmp.eq.s32.totalorder %s30_s9, 0  ;;  %p40_p13 = scmp.ne.s32.totalorder %s3427_s26, %s3423_s25 }
  0x96   : > { %p41_p0 = scmp.eq.s32.totalorder %s3431_s27, 0  ;;  %p46_p1 = scmp.ne.s32.totalorder %s3423_s25, %s3419_s24 }
  0x97   : > { %s3683_s16 = scalar_select %p31_p8, %s3427_s26, %s33_s15  }
  0x98   : > { %p3685_p3 = por %p41_p0, %p40_p13  ;;  %p4691_p2 = scmp.eq.s32.totalorder %s3510_s30, 0 }
  0x99   : > { %p196_p5 = scmp.eq.s32.totalorder %s3510_s30, 1  ;;  %p202_p7 = scmp.eq.s32.totalorder %s2437_s19, 1 }
  0x9a   : > { %p3691_p6 = por %p4691_p2, %p46_p1  ;;  %p2937_p9 = scmp.lt.s32.totalorder %s3431_s27, 2 }
  0x9b   : > { %s292_s18 = sand.u32 1, %s3427_s26   ;;  %p3698_p10 = por %p196_p5, %p40_p13 }
  0x9c   : > { %p3702_p11 = por %p202_p7, %p46_p1  ;;  %s2446_s13 = sshll.u32 %s292_s18, 6 }
  0x9d   : > { %s4693_s10 = scalar_select %p3698_p10, 1, 0 }
  0x9e   : > { %s4694_s20 = scalar_select %p3702_p11, 1, 0 }
  0x9f   : > { %s2527_s12 = sshll.u32 %s3431_s27, 10  ;;  %s296_s19 = scalar_lea.vmem [#allocation4], %s2446_s13 }
  0xa0   : > { %s3710_s23 = scalar_lea.hbm %s4675_s0, %s2527_s12  ;;  %s303_s9 = sshll.u32 %s296_s19, 4  ;;  %s3712_s9 = int_to_ptr.vmem [resolvable:$true] %s303_s9 }
  0xa1   : > { %p3716_p12 = pnand %p2937_p9, %p3685_p3  ;;  %s3720_s21 = scalar_lea.sflag [#allocation5], %s292_s18 }
  0xa2   : > { %s3323_s28 = scalar_lea.hbm %s3710_s23, 1024  ;;  %s3328_s17 = scalar_lea.hbm %s4675_s0, 2048 }
  0xa3   : > { %p3324_p4 = scmp.ne.s32.totalorder %s3710_s23, %s3323_s28  ;;  %p3325_p8 = pneg %p3716_p12 }
  0xa4   : > { %p3329_p1 = scmp.lt.u32.totalorder %s3710_s23, %s4675_s0  ;;  %p3330_p3 = scmp.lt.u32.totalorder %s3328_s17, %s3323_s28 }
  0xa5   : > { %p3326_p13 = pnand %p3325_p8, %p3324_p4  ;;  %p3332_p5 = scmp.lt.u32.totalorder %s3323_s28, %s3710_s23 }
  0xa6   : > { %p3331_p2 = por %p3330_p3, %p3329_p1 }
  0xa7   : > { %p3327_p0 = pneg %p3326_p13 }
  0xa8   : > { %p3333_p7 = por %p3332_p5, %p3331_p2 }
  0xaa   : > { %p3334_p9 = pnand %p3333_p7, %p3327_p0 }
  0xac   : > { %3337 = shalt.err (!%p3334_p9)
}
  0xad   : > { %s3338_s18 = scalar_lea.vmem %s3712_s9, 1024  ;;  %s3441_s13 = smov [#allocation4]  }
  0xae   : > { %p3339_p4 = scmp.ne.s32.totalorder %s3712_s9, %s3338_s18  ;;  %s3343_s12 = sshll.u32 %s3441_s13, 4  ;;  %s3344_s12 = int_to_ptr.vmem [resolvable:$false] %s3343_s12 }
  0xaf   : > { %s3345_s29 = scalar_lea.vmem %s3344_s12, 2048  ;;  %p3346_p10 = scmp.lt.s32.totalorder %s3712_s9, %s3344_s12 }
  0xb0   : > { %p3341_p13 = pnand %p3339_p4, %p3325_p8  ;;  %p3347_p1 = scmp.lt.s32.totalorder %s3345_s29, %s3338_s18 }
  0xb2   : > { %p3342_p11 = pneg %p3341_p13  ;;  %p3348_p3 = por %p3347_p1, %p3346_p10 }
  0xb4   : > { %p3349_p2 = pnand %p3348_p3, %p3342_p11 }
  0xb6   : > { %3352 = shalt.err (!%p3349_p2)
}
  0xb7   : > { %s4696_s28 = smov 64   ;;  %p4697_p8 = scmp.ne.s32.totalorder %s4687_s8, 0 }
  0xb8   : > { %2926 = dma.hbm_to_vmem [thread:$0]  (!%p3716_p12), %s3710_s23, 1024, %s3712_s9, %s3720_s21, %s4696_s28, %s4696_s28, %s3437_s22  }
  0xb9   : > { %315 = sbr.rel (%p4697_p8) target bundleno = 2110 (0x83e), region = 48  ;;  %s3754_s17 = sand.u32 (!%p4697_p8), 1, %s3423_s25  }
  0xba   : > { %s2450_s19 = sshll.u32 (!%p4697_p8), %s3754_s17, 6  ;;  %s318_s18 = scalar_lea.sflag (!%p4697_p8), [#allocation5], %s3754_s17 }
  0xbb   : > { %s3760_s15 = scalar_lea.vmem (!%p4697_p8), [#allocation4], %s2450_s19 }
  0xc0   : > { %3398 = dma.done.wait (%p3691_p6), %s318_s18, 1024  }
  0xc1   : > { %3400 = vsyncadd (%p3691_p6), %s318_s18, 4294966272  ;;  %p4698_p10 = scmp.eq.s32.totalorder %s3510_s30, 0 }
  0xc3   : > { %3402 = dma.done.wait (%p4698_p10), [#allocation8], 32   ;;  %p4699_p11 = pmov %p4698_p10 }
  0xc4   : > { %p4700_p12 = pmov %p4698_p10 }
  0xc5   : > { %3404 = vsyncadd (%p4699_p11), [#allocation8], 4294967264 }
  0xc6   : > { %3406 = dma.done.wait (%p4700_p12), [#allocation11], 272   ;;  %p4701_p0 = pmov %p4698_p10 }
  0xc8   : > { %3408 = vsyncadd (%p4701_p0), [#allocation11], 4294967024  ;;  %p4702_p5 = pmov %p4701_p0 }
  0xc9   : > { %p4703_p7 = pmov %p4701_p0 }
  0xca   : > { %3410 = dma.done.wait (%p4702_p5), [#allocation14], 272  }
  0xcb   : > { %3412 = vsyncadd (%p4703_p7), [#allocation14], 4294967024  ;;  %v2546_v0 = vld [vmem:[%s3760_s15] sm:$0xff]   ;;  %vm411_vm0 = vcmask 261120   ;;  %v2577_v2 = vld [vmem:[%s3760_s15 + $0x8] sm:$0xff]   ;;  %vm825_vm1 = vcmask 785408  }
  0xcc   : > { %v3779_v1 = vld [vmem:[#allocation15] ss:$0 sm:$0xff]  ;;  %v3782_v3 = vunpack.c.l.bf16 %v2546_v0  ;;  %v3784_v4 = vunpack.c.l.bf16 %v2577_v2  ;;  %v3786_v5 = vunpack.c.h.bf16 %v2546_v0  ;;  %v3788_v6 = vunpack.c.h.bf16 %v2577_v2  ;;  %v2578_v7 = vld [vmem:[%s3760_s15 + $0x10] sm:$0xff]   ;;  %v2579_v8 = vld [vmem:[%s3760_s15 + $0x18] sm:$0xff]   ;;  %s3442_s8 = smov 96   ;;  %s3443_s21 = smov 80  }
  0xcd   : > { %v3792_v9 = vunpack.c.l.bf16 %v2578_v7  ;;  %v3794_v10 = vunpack.c.h.bf16 %v2578_v7  ;;  %v2580_v11 = vld [vmem:[%s3760_s15 + $0x20] sm:$0xff]   ;;  %v3809_v18 = vunpack.c.l.bf16 %v2579_v8  ;;  %v3811_v19 = vunpack.c.h.bf16 %v2579_v8  ;;  %v2581_v20 = vld [vmem:[%s3760_s15 + $0x28] sm:$0xff]   ;;  %v2582_v27 = vld [vmem:[%s3760_s15 + $0x30] sm:$0xff]   ;;  %s3444_s22 = smov 112   ;;  %s3445_s14 = smov 64  }
  0xce   : > { %v412_v12 = vsel %vm411_vm0, %v3782_v3, 0.0  ;;  %v841_v13 = vadd.f32 %v3782_v3, %v3779_v1  ;;  %v418_v14 = vsel %vm411_vm0, %v3784_v4, 0.0  ;;  %v843_v15 = vadd.f32 %v3784_v4, %v3779_v1  ;;  %v2583_v30 = vld [vmem:[%s3760_s15 + $0x38] sm:$0xff]   ;;  %s3446_s23 = smov 48   ;;  %s4578_s9 = scalar_lea.vmem [#allocation16], %s2450_s19 }
  0xcf   : > { %413 = vadd.xlane.f32.xlu0 %v412_v12  ;;  %419 = vadd.xlane.f32.xlu1 %v418_v14  ;;  %v842_v16 = vadd.f32 %v3786_v5, %v3779_v1  ;;  %v844_v17 = vadd.f32 %v3788_v6, %v3779_v1  ;;  %v415_v21 = vsel %vm411_vm0, %v3786_v5, 0.0  ;;  %v421_v22 = vsel %vm411_vm0, %v3788_v6, 0.0  ;;  %s2544_s13 = sshll.u32 %s3510_s30, 10  ;;  %s2307_s12 = sshll.u32 %s4578_s9, 4  ;;  %s4625_s12 = int_to_ptr.vmem [resolvable:$true] %s2307_s12 }
  0xd0   : > { %857 = vst.msk [vmem:[#allocation3] sm:$0xff] %vm411_vm0, %v841_v13  ;;  %859 = vst.msk [vmem:[#allocation3 + $0x10] sm:$0xff] %vm411_vm0, %v843_v15  ;;  %v845_v23 = vadd.f32 %v3792_v9, %v3779_v1  ;;  %v846_v24 = vadd.f32 %v3794_v10, %v3779_v1  ;;  %v847_v25 = vadd.f32 %v3809_v18, %v3779_v1  ;;  %v3833_v28 = vunpack.c.l.bf16 %v2580_v11  ;;  %s4621_s19 = scalar_lea.hbm %s4682_s7, %s2544_s13  ;;  %s2294_s30 = scalar_lea.sflag [#allocation6], %s3754_s17 }
  0xd1   : > { %858 = vst.msk [vmem:[#allocation3 + $0x8] sm:$0xff] %vm411_vm0, %v842_v16  ;;  %860 = vst.msk [vmem:[#allocation3 + $0x18] sm:$0xff] %vm411_vm0, %v844_v17  ;;  %v848_v26 = vadd.f32 %v3811_v19, %v3779_v1  ;;  %v3835_v29 = vunpack.c.h.bf16 %v2580_v11  ;;  %v424_v31 = vsel %vm411_vm0, %v3792_v9, 0.0  ;;  %v427_v32 = vsel %vm411_vm0, %v3794_v10, 0.0  ;;  %s3353_s18 = scalar_lea.vmem %s4625_s12, 1024  ;;  %p4704_p9 = scmp.ne.s32.totalorder %s4693_s10, 0 }
  0xd2   : > { %861 = vst.msk [vmem:[#allocation3 + $0x20] sm:$0xff] %vm411_vm0, %v845_v23  ;;  %862 = vst.msk [vmem:[#allocation3 + $0x28] sm:$0xff] %vm411_vm0, %v846_v24  ;;  %v3844_v33 = vunpack.c.l.bf16 %v2581_v20  ;;  %v3846_v34 = vunpack.c.h.bf16 %v2581_v20  ;;  %v849_v35 = vadd.f32 %v3833_v28, %v3779_v1  ;;  %v3852_v37 = vunpack.c.l.bf16 %v2582_v27  ;;  %p3354_p6 = scmp.ne.s32.totalorder %s4625_s12, %s3353_s18  ;;  %s3447_s15 = smov [#allocation16]  }
  0xd3   : > { %416 = vadd.xlane.f32.xlu0 %v415_v21  ;;  %422 = vadd.xlane.f32.xlu1 %v421_v22  ;;  %863 = vst.msk [vmem:[#allocation3 + $0x30] sm:$0xff] %vm411_vm0, %v847_v25  ;;  %864 = vst.msk [vmem:[#allocation3 + $0x38] sm:$0xff] %vm411_vm0, %v848_v26  ;;  %v850_v36 = vadd.f32 %v3835_v29, %v3779_v1  ;;  %v3854_v38 = vunpack.c.h.bf16 %v2582_v27  ;;  %v3860_v41 = vunpack.c.l.bf16 %v2583_v30  ;;  %v3862_v42 = vunpack.c.h.bf16 %v2583_v30 }
  0xd4   : > { %v851_v39 = vadd.f32 %v3844_v33, %v3779_v1  ;;  %v852_v40 = vadd.f32 %v3846_v34, %v3779_v1  ;;  %865 = vst.msk [vmem:[#allocation3 + $0x40] sm:$0xff] %vm411_vm0, %v849_v35  ;;  %v853_v43 = vadd.f32 %v3852_v37, %v3779_v1  ;;  %v430_v47 = vsel %vm411_vm0, %v3809_v18, 0.0  ;;  %p3355_p4 = pnand %p3354_p6, %p4704_p9 }
  0xd5   : > { %866 = vst.msk [vmem:[#allocation3 + $0x48] sm:$0xff] %vm411_vm0, %v850_v36  ;;  %v854_v44 = vadd.f32 %v3854_v38, %v3779_v1  ;;  %v855_v45 = vadd.f32 %v3860_v41, %v3779_v1  ;;  %v856_v46 = vadd.f32 %v3862_v42, %v3779_v1  ;;  %v433_v48 = vsel %vm411_vm0, %v3811_v19, 0.0 }
  0xd6   : > { %867 = vst.msk [vmem:[#allocation3 + $0x50] sm:$0xff] %vm411_vm0, %v851_v39  ;;  %868 = vst.msk [vmem:[#allocation3 + $0x58] sm:$0xff] %vm411_vm0, %v852_v40  ;;  %v436_v49 = vsel %vm411_vm0, %v3833_v28, 0.0  ;;  %v439_v50 = vsel %vm411_vm0, %v3835_v29, 0.0  ;;  %v442_v51 = vsel %vm411_vm0, %v3844_v33, 0.0  ;;  %v445_v52 = vsel %vm411_vm0, %v3846_v34, 0.0  ;;  %p3356_p13 = pneg %p3355_p4 }
  0xd7   : > { %425 = vadd.xlane.f32.xlu0 %v424_v31  ;;  %428 = vadd.xlane.f32.xlu1 %v427_v32  ;;  %869 = vst.msk [vmem:[#allocation3 + $0x60] sm:$0xff] %vm411_vm0, %v853_v43  ;;  %870 = vst.msk [vmem:[#allocation3 + $0x68] sm:$0xff] %vm411_vm0, %v854_v44  ;;  %v448_v53 = vsel %vm411_vm0, %v3852_v37, 0.0  ;;  %v451_v54 = vsel %vm411_vm0, %v3854_v38, 0.0  ;;  %v454_v55 = vsel %vm411_vm0, %v3860_v41, 0.0  ;;  %v457_v56 = vsel %vm411_vm0, %v3862_v42, 0.0 }
  0xd8   : > { %871 = vst.msk [vmem:[#allocation3 + $0x70] sm:$0xff] %vm411_vm0, %v855_v45  ;;  %872 = vst.msk [vmem:[#allocation3 + $0x78] sm:$0xff] %vm411_vm0, %v856_v46  ;;  %vm908_vm2 = vcmask 130048   ;;  %vm2276_vm4 = vcmask 257024  }
  0xdb   : > { %431 = vadd.xlane.f32.xlu0 %v430_v47  ;;  %434 = vadd.xlane.f32.xlu1 %v433_v48 }
  0xdf   : > { %437 = vadd.xlane.f32.xlu0 %v436_v49  ;;  %440 = vadd.xlane.f32.xlu1 %v439_v50 }
  0xe3   : > { %443 = vadd.xlane.f32.xlu0 %v442_v51  ;;  %446 = vadd.xlane.f32.xlu1 %v445_v52 }
  0xe7   : > { %449 = vadd.xlane.f32.xlu0 %v448_v53  ;;  %452 = vadd.xlane.f32.xlu1 %v451_v54 }
  0xeb   : > { %455 = vadd.xlane.f32.xlu0 %v454_v55  ;;  %458 = vadd.xlane.f32.xlu1 %v457_v56 }
 0x15c   : > { %v414_v57 = vpop.xlane.xlu0 %413  ;;  %v420_v58 = vpop.xlane.xlu1 %419 }
 0x15d   : > { %v461_v59 = vmul.f32 0.03125, %v414_v57  ;;  %v463_v60 = vmul.f32 0.03125, %v420_v58 }
 0x15f   : > { %v3901_v61 = vsub.f32 %v3782_v3, %v461_v59  ;;  %v3904_v62 = vsub.f32 %v3784_v4, %v463_v60 }
 0x160   : > { %v417_v63 = vpop.xlane.xlu0 %416  ;;  %v423_v0 = vpop.xlane.xlu1 %422 }
 0x161   : > { %v462_v1 = vmul.f32 0.03125, %v417_v63  ;;  %v464_v2 = vmul.f32 0.03125, %v423_v0  ;;  %v493_v7 = vmul.f32 %v3901_v61, %v3901_v61  ;;  %v495_v8 = vmul.f32 %v3904_v62, %v3904_v62 }
 0x163   : > { %v3911_v11 = vsub.f32 %v3786_v5, %v462_v1  ;;  %v3914_v12 = vsub.f32 %v3788_v6, %v464_v2  ;;  %v509_v3 = vsel %vm411_vm0, %v493_v7, 0.0  ;;  %v515_v14 = vsel %vm411_vm0, %v495_v8, 0.0 }
 0x164   : > { %510 = vadd.xlane.f32.xlu0 %v509_v3  ;;  %v426_v4 = vpop.xlane.xlu0 %425  ;;  %v429_v13 = vpop.xlane.xlu1 %428 }
 0x165   : > { %v465_v15 = vmul.f32 0.03125, %v426_v4  ;;  %v466_v16 = vmul.f32 0.03125, %v429_v13  ;;  %v494_v17 = vmul.f32 %v3911_v11, %v3911_v11  ;;  %v496_v20 = vmul.f32 %v3914_v12, %v3914_v12 }
 0x167   : > { %v3923_v5 = vsub.f32 %v3792_v9, %v465_v15  ;;  %v3926_v6 = vsub.f32 %v3794_v10, %v466_v16  ;;  %v512_v21 = vsel %vm411_vm0, %v494_v17, 0.0  ;;  %v518_v24 = vsel %vm411_vm0, %v496_v20, 0.0  ;;  %v2992_v20 = vld [vmem:[#allocation10 + $0x8] sm:$0xff]  }
 0x168   : > { %516 = vadd.xlane.f32.xlu0 %v515_v14  ;;  %513 = vadd.xlane.f32.xlu1 %v512_v21  ;;  %v432_v22 = vpop.xlane.xlu0 %431  ;;  %v435_v23 = vpop.xlane.xlu1 %434 }
 0x169   : > { %v467_v25 = vmul.f32 0.03125, %v432_v22  ;;  %v468_v26 = vmul.f32 0.03125, %v435_v23  ;;  %v497_v27 = vmul.f32 %v3923_v5, %v3923_v5  ;;  %v498_v9 = vmul.f32 %v3926_v6, %v3926_v6 }
 0x16b   : > { %v3935_v30 = vsub.f32 %v3809_v18, %v467_v25  ;;  %v3938_v10 = vsub.f32 %v3811_v19, %v468_v26  ;;  %v521_v31 = vsel %vm411_vm0, %v497_v27, 0.0  ;;  %v524_v36 = vsel %vm411_vm0, %v498_v9, 0.0 }
 0x16c   : > { %519 = vadd.xlane.f32.xlu1 %v518_v24  ;;  %522 = vadd.xlane.f32.xlu0 %v521_v31  ;;  %v438_v32 = vpop.xlane.xlu0 %437  ;;  %v441_v35 = vpop.xlane.xlu1 %440 }
 0x16d   : > { %v469_v39 = vmul.f32 0.03125, %v438_v32  ;;  %v470_v40 = vmul.f32 0.03125, %v441_v35  ;;  %v499_v43 = vmul.f32 %v3935_v30, %v3935_v30  ;;  %v500_v18 = vmul.f32 %v3938_v10, %v3938_v10 }
 0x16f   : > { %v3947_v44 = vsub.f32 %v3833_v28, %v469_v39  ;;  %v3950_v19 = vsub.f32 %v3835_v29, %v470_v40  ;;  %v527_v45 = vsel %vm411_vm0, %v499_v43, 0.0  ;;  %v530_v48 = vsel %vm411_vm0, %v500_v18, 0.0 }
 0x170   : > { %525 = vadd.xlane.f32.xlu1 %v524_v36  ;;  %528 = vadd.xlane.f32.xlu0 %v527_v45  ;;  %v444_v46 = vpop.xlane.xlu0 %443  ;;  %v447_v47 = vpop.xlane.xlu1 %446 }
 0x171   : > { %v471_v49 = vmul.f32 0.03125, %v444_v46  ;;  %v472_v50 = vmul.f32 0.03125, %v447_v47  ;;  %v501_v51 = vmul.f32 %v3947_v44, %v3947_v44  ;;  %v502_v28 = vmul.f32 %v3950_v19, %v3950_v19 }
 0x173   : > { %v3959_v52 = vsub.f32 %v3844_v33, %v471_v49  ;;  %v3962_v29 = vsub.f32 %v3846_v34, %v472_v50  ;;  %v533_v53 = vsel %vm411_vm0, %v501_v51, 0.0  ;;  %v536_v56 = vsel %vm411_vm0, %v502_v28, 0.0 }
 0x174   : > { %531 = vadd.xlane.f32.xlu1 %v530_v48  ;;  %534 = vadd.xlane.f32.xlu0 %v533_v53  ;;  %v450_v54 = vpop.xlane.xlu0 %449  ;;  %v453_v55 = vpop.xlane.xlu1 %452 }
 0x175   : > { %v473_v57 = vmul.f32 0.03125, %v450_v54  ;;  %v474_v58 = vmul.f32 0.03125, %v453_v55  ;;  %v503_v59 = vmul.f32 %v3959_v52, %v3959_v52  ;;  %v504_v33 = vmul.f32 %v3962_v29, %v3962_v29 }
 0x177   : > { %v3971_v60 = vsub.f32 %v3852_v37, %v473_v57  ;;  %v3974_v34 = vsub.f32 %v3854_v38, %v474_v58  ;;  %v539_v63 = vsel %vm411_vm0, %v503_v59, 0.0  ;;  %v542_v2 = vsel %vm411_vm0, %v504_v33, 0.0 }
 0x178   : > { %537 = vadd.xlane.f32.xlu1 %v536_v56  ;;  %540 = vadd.xlane.f32.xlu0 %v539_v63  ;;  %v456_v0 = vpop.xlane.xlu0 %455  ;;  %v459_v1 = vpop.xlane.xlu1 %458  ;;  %v3997_v56 = vld [vmem:[#allocation7] ss:$0 sm:$0xff] }
 0x179   : > { %v475_v7 = vmul.f32 0.03125, %v456_v0  ;;  %v476_v8 = vmul.f32 0.03125, %v459_v1  ;;  %v505_v3 = vmul.f32 %v3971_v60, %v3971_v60  ;;  %v506_v37 = vmul.f32 %v3974_v34, %v3974_v34 }
 0x17b   : > { %v3983_v4 = vsub.f32 %v3860_v41, %v475_v7  ;;  %v3986_v38 = vsub.f32 %v3862_v42, %v476_v8  ;;  %v545_v13 = vsel %vm411_vm0, %v505_v3, 0.0  ;;  %v548_v14 = vsel %vm411_vm0, %v506_v37, 0.0  ;;  %v2991_v42 = vld [vmem:[#allocation10] sm:$0xff]  }
 0x17c   : > { %543 = vadd.xlane.f32.xlu1 %v542_v2  ;;  %546 = vadd.xlane.f32.xlu0 %v545_v13 }
 0x17d   : > { %v507_v15 = vmul.f32 %v3983_v4, %v3983_v4  ;;  %v508_v16 = vmul.f32 %v3986_v38, %v3986_v38  ;;  %2676 = vmatprep.subr.bf16.mxu0 %v2991_v42 }
 0x17e   : > { %2677 = vmatpush3.bf16.msra.mxu0 %v2991_v42 }
 0x17f   : > { %v551_v17 = vsel %vm411_vm0, %v507_v15, 0.0  ;;  %v554_v41 = vsel %vm411_vm0, %v508_v16, 0.0  ;;  %2678 = vmatprep.subr.bf16.mxu0 %v2992_v20 }
 0x180   : > { %549 = vadd.xlane.f32.xlu1 %v548_v14  ;;  %552 = vadd.xlane.f32.xlu0 %v551_v17 }
 0x182   : > { %2679 = vmatpush3.bf16.msra.mxu0 %v2992_v20 }
 0x184   : > { %555 = vadd.xlane.f32.xlu1 %v554_v41 }
 0x1f1   : > { %v511_v21 = vpop.xlane.xlu0 %510 }
 0x1f2   : > { %v557_v22 = vmul.f32 0.03125, %v511_v21 }
 0x1f4   : > { %v573_v23 = vadd.f32 1e-06, %v557_v22 }
 0x1f5   : > { %v514_v24 = vpop.xlane.xlu1 %513  ;;  %v517_v25 = vpop.xlane.xlu0 %516 }
 0x1f6   : > { %2995 = vrsqrt.f32 %v573_v23  ;;  %v558_v26 = vmul.f32 0.03125, %v514_v24  ;;  %v559_v27 = vmul.f32 0.03125, %v517_v25 }
 0x1f8   : > { %v574_v9 = vadd.f32 1e-06, %v558_v26  ;;  %v575_v31 = vadd.f32 1e-06, %v559_v27 }
 0x1f9   : > { %v520_v32 = vpop.xlane.xlu1 %519  ;;  %v523_v35 = vpop.xlane.xlu0 %522 }
 0x1fa   : > { %2997 = vrsqrt.f32 %v574_v9  ;;  %v560_v36 = vmul.f32 0.03125, %v520_v32  ;;  %v561_v39 = vmul.f32 0.03125, %v523_v35 }
 0x1fb   : > { %2999 = vrsqrt.f32 %v575_v31 }
 0x1fc   : > { %v576_v40 = vadd.f32 1e-06, %v560_v36  ;;  %v577_v43 = vadd.f32 1e-06, %v561_v39 }
 0x1fd   : > { %v526_v18 = vpop.xlane.xlu1 %525  ;;  %v529_v45 = vpop.xlane.xlu0 %528 }
 0x1fe   : > { %3001 = vrsqrt.f32 %v576_v40  ;;  %v562_v46 = vmul.f32 0.03125, %v526_v18  ;;  %v563_v47 = vmul.f32 0.03125, %v529_v45 }
 0x1ff   : > { %3003 = vrsqrt.f32 %v577_v43 }
 0x200   : > { %v2996_v48 = vpop.eup %2995  ;;  %v578_v49 = vadd.f32 1e-06, %v562_v46  ;;  %v579_v50 = vadd.f32 1e-06, %v563_v47 }
 0x201   : > { %v532_v51 = vpop.xlane.xlu1 %531  ;;  %v535_v28 = vpop.xlane.xlu0 %534  ;;  %v605_v53 = vmul.f32 %v2996_v48, %v3901_v61  ;;  %v4001_v61 = vld [vmem:[#allocation9] ss:$0 sm:$0xff] }
 0x202   : > { %3005 = vrsqrt.f32 %v578_v49  ;;  %v564_v54 = vmul.f32 0.03125, %v532_v51  ;;  %v565_v55 = vmul.f32 0.03125, %v535_v28 }
 0x203   : > { %3007 = vrsqrt.f32 %v579_v50  ;;  %v627_v2 = vmul.f32 %v3997_v56, %v605_v53 }
 0x204   : > { %v2998_v57 = vpop.eup %2997  ;;  %v580_v58 = vadd.f32 1e-06, %v564_v54  ;;  %v581_v59 = vadd.f32 1e-06, %v565_v55 }
 0x205   : > { %v3000_v33 = vpop.eup %2999  ;;  %v538_v63 = vpop.xlane.xlu1 %537  ;;  %v606_v1 = vmul.f32 %v2998_v57, %v3911_v11  ;;  %v649_v11 = vadd.f32 %v4001_v61, %v627_v2 }
 0x206   : > { %v541_v0 = vpop.xlane.xlu0 %540  ;;  %3009 = vrsqrt.f32 %v580_v58  ;;  %v566_v7 = vmul.f32 0.03125, %v538_v63  ;;  %v607_v3 = vmul.f32 %v3000_v33, %v3904_v62 }
 0x207   : > { %v567_v8 = vmul.f32 0.03125, %v541_v0  ;;  %3011 = vrsqrt.f32 %v581_v59  ;;  %v628_v37 = vmul.f32 %v3997_v56, %v606_v1 }
 0x208   : > { %v3002_v13 = vpop.eup %3001  ;;  %v582_v14 = vadd.f32 1e-06, %v566_v7  ;;  %v629_v21 = vmul.f32 %v3997_v56, %v607_v3 }
 0x209   : > { %v583_v15 = vadd.f32 1e-06, %v567_v8  ;;  %v3004_v16 = vpop.eup %3003  ;;  %v544_v17 = vpop.xlane.xlu1 %543  ;;  %v650_v42 = vadd.f32 %v4001_v61, %v628_v37  ;;  %v608_v20 = vmul.f32 %v3002_v13, %v3914_v12 }
 0x20a   : > { %v547_v41 = vpop.xlane.xlu0 %546  ;;  %3013 = vrsqrt.f32 %v582_v14  ;;  %v568_v22 = vmul.f32 0.03125, %v544_v17  ;;  %v609_v25 = vmul.f32 %v3004_v16, %v3923_v5  ;;  %v651_v12 = vadd.f32 %v4001_v61, %v629_v21 }
 0x20b   : > { %v569_v62 = vmul.f32 0.03125, %v547_v41  ;;  %3015 = vrsqrt.f32 %v583_v15  ;;  %v665_v23 = vpack.c.bf16 %v650_v42, %v649_v11  ;;  %v630_v24 = vmul.f32 %v3997_v56, %v608_v20 }
 0x20c   : > { %v3006_v26 = vpop.eup %3005  ;;  %v584_v27 = vadd.f32 1e-06, %v568_v22  ;;  %v631_v40 = vmul.f32 %v3997_v56, %v609_v25 }
 0x20d   : > { %v585_v9 = vadd.f32 1e-06, %v569_v62  ;;  %v3008_v31 = vpop.eup %3007  ;;  %v550_v32 = vpop.xlane.xlu1 %549  ;;  %2680 = vmatprep.mubr.msk.bf16.mxu0 %vm411_vm0, %v665_v23  ;;  %v652_v36 = vadd.f32 %v4001_v61, %v630_v24  ;;  %v610_v39 = vmul.f32 %v3006_v26, %v3926_v6 }
 0x20e   : > { %v553_v35 = vpop.xlane.xlu0 %552  ;;  %3017 = vrsqrt.f32 %v584_v27  ;;  %v570_v43 = vmul.f32 0.03125, %v550_v32  ;;  %v611_v5 = vmul.f32 %v3008_v31, %v3935_v30  ;;  %v653_v6 = vadd.f32 %v4001_v61, %v631_v40 }
 0x20f   : > { %v571_v18 = vmul.f32 0.03125, %v553_v35  ;;  %3019 = vrsqrt.f32 %v585_v9  ;;  %v666_v45 = vpack.c.bf16 %v652_v36, %v651_v12  ;;  %v632_v46 = vmul.f32 %v3997_v56, %v610_v39  ;;  %v2460_v12 = vld [vmem:[#allocation12] ss:$0 sm:$0xff] }
 0x210   : > { %v3010_v47 = vpop.eup %3009  ;;  %v586_v48 = vadd.f32 1e-06, %v570_v43  ;;  %v633_v54 = vmul.f32 %v3997_v56, %v611_v5 }
 0x211   : > { %v587_v49 = vadd.f32 1e-06, %v571_v18  ;;  %v3012_v50 = vpop.eup %3011  ;;  %v556_v51 = vpop.xlane.xlu1 %555  ;;  %2681 = vmatmul.mubr.msk.bf16.vlgmr.msra.gmra.mrb[0].mxu0 %vm411_vm0, %v666_v45  ;;  %v654_v28 = vadd.f32 %v4001_v61, %v632_v46  ;;  %v612_v53 = vmul.f32 %v3010_v47, %v3938_v10 }
 0x212   : > { %3021 = vrsqrt.f32 %v586_v48  ;;  %v572_v30 = vmul.f32 0.03125, %v556_v51  ;;  %v613_v55 = vmul.f32 %v3012_v50, %v3947_v44  ;;  %v655_v0 = vadd.f32 %v4001_v61, %v633_v54 }
 0x213   : > { %3023 = vrsqrt.f32 %v587_v49  ;;  %v667_v57 = vpack.c.bf16 %v654_v28, %v653_v6  ;;  %v634_v58 = vmul.f32 %v3997_v56, %v612_v53 }
 0x214   : > { %v3014_v59 = vpop.eup %3013  ;;  %v588_v33 = vadd.f32 1e-06, %v572_v30  ;;  %v635_v2 = vmul.f32 %v3997_v56, %v613_v55 }
 0x215   : > { %v3016_v63 = vpop.eup %3015  ;;  %2684 = vmatprep.mubr.msk.bf16.mxu0 %vm411_vm0, %v667_v57  ;;  %v656_v1 = vadd.f32 %v4001_v61, %v634_v58  ;;  %v614_v10 = vmul.f32 %v3014_v59, %v3950_v19 }
 0x216   : > { %v615_v7 = vmul.f32 %v3016_v63, %v3959_v52  ;;  %3025 = vrsqrt.f32 %v588_v33  ;;  %v657_v13 = vadd.f32 %v4001_v61, %v635_v2 }
 0x217   : > { %v668_v44 = vpack.c.bf16 %v656_v1, %v655_v0  ;;  %v636_v8 = vmul.f32 %v3997_v56, %v614_v10 }
 0x218   : > { %v3018_v3 = vpop.eup %3017  ;;  %v637_v19 = vmul.f32 %v3997_v56, %v615_v7 }
 0x219   : > { %v3020_v37 = vpop.eup %3019  ;;  %2685 = vmatmul.mubr.msk.bf16.gmra.mrb[4].mxu0 %vm411_vm0, %v668_v44  ;;  %v658_v14 = vadd.f32 %v4001_v61, %v636_v8  ;;  %v616_v15 = vmul.f32 %v3018_v3, %v3962_v29 }
 0x21a   : > { %v617_v16 = vmul.f32 %v3020_v37, %v3971_v60  ;;  %v659_v42 = vadd.f32 %v4001_v61, %v637_v19 }
 0x21b   : > { %v669_v17 = vpack.c.bf16 %v658_v14, %v657_v13  ;;  %v638_v52 = vmul.f32 %v3997_v56, %v616_v15 }
 0x21c   : > { %v3022_v41 = vpop.eup %3021  ;;  %v639_v22 = vmul.f32 %v3997_v56, %v617_v16 }
 0x21d   : > { %v3024_v11 = vpop.eup %3023  ;;  %2688 = vmatprep.mubr.msk.bf16.mxu0 %vm411_vm0, %v669_v17  ;;  %v660_v20 = vadd.f32 %v4001_v61, %v638_v52  ;;  %v618_v21 = vmul.f32 %v3022_v41, %v3974_v34 }
 0x21e   : > { %v619_v29 = vmul.f32 %v3024_v11, %v3983_v4  ;;  %v661_v24 = vadd.f32 %v4001_v61, %v639_v22 }
 0x21f   : > { %v670_v62 = vpack.c.bf16 %v660_v20, %v659_v42  ;;  %v640_v60 = vmul.f32 %v3997_v56, %v618_v21 }
 0x220   : > { %v3026_v23 = vpop.eup %3025  ;;  %v641_v27 = vmul.f32 %v3997_v56, %v619_v29 }
 0x221   : > { %2689 = vmatmul.mubr.msk.bf16.gmra.mrb[8].mxu0 %vm411_vm0, %v670_v62  ;;  %v662_v25 = vadd.f32 %v4001_v61, %v640_v60  ;;  %v620_v26 = vmul.f32 %v3026_v23, %v3986_v38 }
 0x222   : > { %v663_v4 = vadd.f32 %v4001_v61, %v641_v27 }
 0x223   : > { %v671_v9 = vpack.c.bf16 %v662_v25, %v661_v24  ;;  %v642_v34 = vmul.f32 %v3997_v56, %v620_v26 }
 0x225   : > { %2692 = vmatprep.mubr.msk.bf16.mxu0 %vm411_vm0, %v671_v9  ;;  %v664_v31 = vadd.f32 %v4001_v61, %v642_v34 }
 0x227   : > { %v672_v32 = vpack.c.bf16 %v664_v31, %v663_v4 }
 0x229   : > { %2693 = vmatmul.mubr.msk.bf16.gmra.mrb[12].mxu0 %vm411_vm0, %v672_v32 }
 0x2e4   : > { %v2682_v35 = vpop.f32.mrb[0].mxu0 }
 0x2e5   : > { %v754_v36 = vpop.f32.mrb[1].mxu0  ;;  %v763_v40 = vadd.f32 %v2682_v35, %v2460_v12 }
 0x2e6   : > { %v2683_v39 = vpop.f32.mrb[2].mxu0  ;;  %v755_v18 = vadd.f32 %v2460_v12, %v754_v36 }
 0x2e7   : > { %v766_v38 = vadd.f32 %v2683_v39, %v2460_v12  ;;  %v757_v43 = vpop.f32.mrb[3].mxu0 }
 0x2e8   : > { %v758_v5 = vadd.f32 %v2460_v12, %v757_v43 }
 0x2e9   : > { %v818_v56 = vpack.c.bf16 %v766_v38, %v763_v40 }
 0x2ea   : > { %v817_v45 = vpack.c.bf16 %v758_v5, %v755_v18 }
 0x2eb   : > { %827 = vst.msk [vmem:[#allocation2 + $0x8] sm:$0xff] %vm825_vm1, %v818_v56 }
 0x2ec   : > { %826 = vst.msk [vmem:[#allocation2] sm:$0xff] %vm825_vm1, %v817_v45  ;;  %v2686_v61 = vpop.f32.mrb[4].mxu0 }
 0x2ed   : > { %v770_v46 = vpop.f32.mrb[5].mxu0  ;;  %v779_v48 = vadd.f32 %v2686_v61, %v2460_v12 }
 0x2ee   : > { %v2687_v47 = vpop.f32.mrb[6].mxu0  ;;  %v771_v51 = vadd.f32 %v2460_v12, %v770_v46 }
 0x2ef   : > { %v782_v49 = vadd.f32 %v2687_v47, %v2460_v12  ;;  %v773_v50 = vpop.f32.mrb[7].mxu0 }
 0x2f0   : > { %v774_v6 = vadd.f32 %v2460_v12, %v773_v50 }
 0x2f1   : > { %v820_v28 = vpack.c.bf16 %v782_v49, %v779_v48 }
 0x2f2   : > { %v819_v53 = vpack.c.bf16 %v774_v6, %v771_v51  ;;  %v4058_v54 = vld [vmem:[#allocation2 + $0x8] sm:$0xff] }
 0x2f3   : > { %829 = vst.msk [vmem:[#allocation2 + $0x18] sm:$0xff] %vm825_vm1, %v820_v28  ;;  %894 = vrot.lane.b32.xlu1 %v4058_v54, %s3442_s8  ;;  %v4063_v30 = vld [vmem:[#allocation2] sm:$0xff] }
 0x2f4   : > { %828 = vst.msk [vmem:[#allocation2 + $0x10] sm:$0xff] %vm825_vm1, %v819_v53  ;;  %892 = vrot.lane.b32.xlu0 %v4063_v30, %s3442_s8  ;;  %v2690_v55 = vpop.f32.mrb[8].mxu0  ;;  %2712 = vmatprep.mubr.msk.bf16.mxu1 %vm908_vm2, %v4063_v30 }
 0x2f5   : > { %v786_v57 = vpop.f32.mrb[9].mxu0  ;;  %v795_v59 = vadd.f32 %v2690_v55, %v2460_v12 }
 0x2f6   : > { %v2691_v58 = vpop.f32.mrb[10].mxu0  ;;  %v787_v0 = vadd.f32 %v2460_v12, %v786_v57 }
 0x2f7   : > { %v798_v33 = vadd.f32 %v2691_v58, %v2460_v12  ;;  %v789_v63 = vpop.f32.mrb[11].mxu0 }
 0x2f8   : > { %v790_v1 = vadd.f32 %v2460_v12, %v789_v63 }
 0x2f9   : > { %v822_v10 = vpack.c.bf16 %v798_v33, %v795_v59 }
 0x2fa   : > { %v821_v2 = vpack.c.bf16 %v790_v1, %v787_v0  ;;  %v4076_v15 = vld [vmem:[#allocation2 + $0x18] sm:$0xff] }
 0x2fb   : > { %831 = vst.msk [vmem:[#allocation2 + $0x28] sm:$0xff] %vm825_vm1, %v822_v10  ;;  %v4071_v7 = vld [vmem:[#allocation2 + $0x10] sm:$0xff] }
 0x2fc   : > { %830 = vst.msk [vmem:[#allocation2 + $0x20] sm:$0xff] %vm825_vm1, %v821_v2  ;;  %896 = vrot.lane.b32.xlu1 %v4071_v7, %s3442_s8  ;;  %v2694_v44 = vpop.f32.mrb[12].mxu0 }
 0x2fd   : > { %v802_v8 = vpop.f32.mrb[13].mxu0  ;;  %v811_v37 = vadd.f32 %v2694_v44, %v2460_v12  ;;  %v873_v44 = vlaneseq }
 0x2fe   : > { %v2695_v3 = vpop.f32.mrb[14].mxu0  ;;  %v803_v19 = vadd.f32 %v2460_v12, %v802_v8 }
 0x2ff   : > { %v814_v13 = vadd.f32 %v2695_v3, %v2460_v12  ;;  %v805_v14 = vpop.f32.mrb[15].mxu0  ;;  %v4190_v8 = vand.u32 127, %v873_v44 }
 0x300   : > { %v806_v16 = vadd.f32 %v2460_v12, %v805_v14  ;;  %898 = vrot.lane.b32.xlu1 %v4076_v15, %s3442_s8 }
 0x301   : > { %v824_v17 = vpack.c.bf16 %v814_v13, %v811_v37  ;;  %vm875_vm3 = vcmp.lt.s32.totalorder %v4190_v8, 17 }
 0x302   : > { %v823_v52 = vpack.c.bf16 %v806_v16, %v803_v19  ;;  %v4080_v41 = vld [vmem:[#allocation2 + $0x28] sm:$0xff] }
 0x303   : > { %833 = vst.msk [vmem:[#allocation2 + $0x38] sm:$0xff] %vm825_vm1, %v824_v17  ;;  %v4083_v11 = vld [vmem:[#allocation2 + $0x20] sm:$0xff] }
 0x304   : > { %832 = vst.msk [vmem:[#allocation2 + $0x30] sm:$0xff] %vm825_vm1, %v823_v52  ;;  %902 = vrot.lane.b32.xlu1 %v4080_v41, %s3442_s8  ;;  %900 = vrot.lane.b32.xlu0 %v4083_v11, %s3442_s8 }
 0x30a   : > { %v4090_v42 = vld [vmem:[#allocation2 + $0x38] sm:$0xff] }
 0x30b   : > { %906 = vrot.lane.b32.xlu1 %v4090_v42, %s3442_s8  ;;  %v4094_v20 = vld [vmem:[#allocation2 + $0x30] sm:$0xff] }
 0x30c   : > { %904 = vrot.lane.b32.xlu0 %v4094_v20, %s3442_s8  ;;  %s3357_s8 = sshll.u32 %s3447_s15, 4  ;;  %s3358_s8 = int_to_ptr.vmem [resolvable:$false] %s3357_s8 }
 0x30d   : > { %p3360_p1 = scmp.lt.s32.totalorder %s4625_s12, %s3358_s8 }
 0x30f   : > { %1562 = vrot.lane.b32.xlu1 %v4058_v54, %s3443_s21 }
 0x310   : > { %1560 = vrot.lane.b32.xlu0 %v4063_v30, %s3443_s21 }
 0x313   : > { %1566 = vrot.lane.b32.xlu1 %v4076_v15, %s3443_s21 }
 0x314   : > { %1564 = vrot.lane.b32.xlu0 %v4071_v7, %s3443_s21 }
 0x317   : > { %1570 = vrot.lane.b32.xlu1 %v4080_v41, %s3443_s21 }
 0x318   : > { %1568 = vrot.lane.b32.xlu0 %v4083_v11, %s3443_s21 }
 0x31b   : > { %1574 = vrot.lane.b32.xlu1 %v4090_v42, %s3443_s21 }
 0x31c   : > { %1544 = vrot.lane.b32.xlu0 %v4063_v30, %s3444_s22 }
 0x31f   : > { %1546 = vrot.lane.b32.xlu1 %v4058_v54, %s3444_s22 }
 0x320   : > { %1548 = vrot.lane.b32.xlu0 %v4071_v7, %s3444_s22 }
 0x323   : > { %1550 = vrot.lane.b32.xlu1 %v4076_v15, %s3444_s22 }
 0x324   : > { %1552 = vrot.lane.b32.xlu0 %v4083_v11, %s3444_s22 }
 0x327   : > { %1554 = vrot.lane.b32.xlu1 %v4080_v41, %s3444_s22 }
 0x328   : > { %1190 = vrot.lane.b32.xlu0 %v4063_v30, %s3445_s14 }
 0x32b   : > { %1196 = vrot.lane.b32.xlu1 %v4076_v15, %s3445_s14 }
 0x32c   : > { %1558 = vrot.lane.b32.xlu0 %v4090_v42, %s3444_s22 }
 0x32f   : > { %1556 = vrot.lane.b32.xlu1 %v4094_v20, %s3444_s22 }
 0x330   : > { %1192 = vrot.lane.b32.xlu0 %v4058_v54, %s3445_s14 }
 0x334   : > { %1194 = vrot.lane.b32.xlu0 %v4071_v7, %s3445_s14 }
 0x338   : > { %1198 = vrot.lane.b32.xlu0 %v4083_v11, %s3445_s14 }
 0x33c   : > { %1200 = vrot.lane.b32.xlu0 %v4080_v41, %s3445_s14 }
 0x340   : > { %1572 = vrot.lane.b32.xlu0 %v4094_v20, %s3443_s21  ;;  %s3359_s21 = scalar_lea.vmem %s3358_s8, 2048 }
 0x341   : > { %p3361_p3 = scmp.lt.s32.totalorder %s3359_s21, %s3353_s18 }
 0x343   : > { %p3362_p2 = por %p3361_p3, %p3360_p1 }
 0x345   : > { %p3363_p8 = pnand %p3362_p2, %p3356_p13 }
 0x365   : > { %v895_v29 = vpop.permute.xlu1 %894 }
 0x366   : > { %v893_v21 = vpop.permute.xlu0 %892  ;;  %v937_v60 = vsel %vm908_vm2, %v895_v29, 0 }
 0x367   : > { %2860 = vmatprep.subr.msk.bf16.mxu1 %vm908_vm2, %v893_v21  ;;  %v934_v22 = vsel %vm908_vm2, %v893_v21, 0 }
 0x368   : > { %2697 = vmatpush3.bf16.xpose.msra.mxu1 %v934_v22 }
 0x369   : > { %2861 = vmatprep.subr.msk.bf16.mxu1 %vm908_vm2, %v895_v29 }
 0x36e   : > { %v897_v62 = vpop.permute.xlu1 %896 }
 0x36f   : > { %v940_v24 = vsel %vm908_vm2, %v897_v62, 0 }
 0x370   : > { %2699 = vmatpush3.bf16.xpose.msra.mxu1 %v937_v60 }
 0x371   : > { %2862 = vmatprep.subr.msk.bf16.mxu1 %vm908_vm2, %v897_v62 }
 0x372   : > { %v899_v23 = vpop.permute.xlu1 %898 }
 0x373   : > { %v943_v34 = vsel %vm908_vm2, %v899_v23, 0 }
 0x376   : > { %v903_v25 = vpop.permute.xlu1 %902  ;;  %v901_v26 = vpop.permute.xlu0 %900 }
 0x377   : > { %v946_v12 = vsel %vm908_vm2, %v901_v26, 0  ;;  %v949_v38 = vsel %vm908_vm2, %v903_v25, 0 }
 0x378   : > { %2701 = vmatpush3.bf16.xpose.msra.mxu1 %v940_v24 }
 0x379   : > { %2863 = vmatprep.subr.msk.bf16.mxu1 %vm908_vm2, %v899_v23 }
 0x37d   : > { %v907_v27 = vpop.permute.xlu1 %906 }
 0x37e   : > { %v905_v9 = vpop.permute.xlu0 %904  ;;  %v955_v48 = vsel %vm908_vm2, %v907_v27, 0 }
 0x37f   : > { %v952_v45 = vsel %vm908_vm2, %v905_v9, 0 }
 0x380   : > { %2703 = vmatpush3.bf16.xpose.msra.mxu1 %v943_v34 }
 0x381   : > { %v1563_v4 = vpop.permute.xlu1 %1562  ;;  %2864 = vmatprep.subr.msk.bf16.mxu1 %vm908_vm2, %v901_v26 }
 0x382   : > { %v1561_v31 = vpop.permute.xlu0 %1560  ;;  %v1604_v57 = vsel %vm908_vm2, %v1563_v4, 0 }
 0x383   : > { %v1601_v6 = vsel %vm908_vm2, %v1561_v31, 0 }
 0x385   : > { %v1567_v32 = vpop.permute.xlu1 %1566 }
 0x386   : > { %v1565_v35 = vpop.permute.xlu0 %1564  ;;  %v1610_v59 = vsel %vm908_vm2, %v1567_v32, 0 }
 0x387   : > { %v1607_v58 = vsel %vm908_vm2, %v1565_v35, 0 }
 0x388   : > { %2705 = vmatpush3.bf16.xpose.msra.mxu1 %v946_v12 }
 0x389   : > { %2865 = vmatprep.subr.msk.bf16.mxu1 %vm908_vm2, %v903_v25  ;;  %v1571_v36 = vpop.permute.xlu1 %1570 }
 0x38a   : > { %v1569_v39 = vpop.permute.xlu0 %1568  ;;  %v1616_v63 = vsel %vm908_vm2, %v1571_v36, 0 }
 0x38b   : > { %v1613_v33 = vsel %vm908_vm2, %v1569_v39, 0 }
 0x38d   : > { %v4138_v43 = vpop.permute.xlu1 %1574 }
 0x38e   : > { %v1545_v40 = vpop.permute.xlu0 %1544  ;;  %v1622_v10 = vsel %vm908_vm2, %v4138_v43, 0 }
 0x390   : > { %2707 = vmatpush3.bf16.xpose.msra.mxu1 %v949_v38 }
 0x391   : > { %2866 = vmatprep.subr.msk.bf16.mxu1 %vm908_vm2, %v905_v9  ;;  %v1547_v5 = vpop.permute.xlu1 %1546 }
 0x392   : > { %v4141_v18 = vpop.permute.xlu0 %1548 }
 0x395   : > { %v1551_v46 = vpop.permute.xlu1 %1550 }
 0x396   : > { %v4143_v56 = vpop.permute.xlu0 %1552 }
 0x398   : > { %2709 = vmatpush3.bf16.xpose.msra.mxu1 %v952_v45 }
 0x399   : > { %2867 = vmatprep.subr.msk.bf16.mxu1 %vm908_vm2, %v907_v27  ;;  %v1555_v49 = vpop.permute.xlu1 %1554 }
 0x39a   : > { %v1191_v61 = vpop.permute.xlu0 %1190 }
 0x39b   : > { %2728 = vmatprep.subr.bf16.mxu0 %v1191_v61 }
 0x39c   : > { %2729 = vmatpush3.bf16.msra.mxu0 %v1191_v61 }
 0x39d   : > { %v1197_v28 = vpop.permute.xlu1 %1196 }
 0x39e   : > { %v1559_v47 = vpop.permute.xlu0 %1558 }
 0x3a0   : > { %2711 = vmatpush3.bf16.xpose.msra.mxu1 %v955_v48 }
 0x3a1   : > { %2868 = vmatprep.subr.msk.bf16.mxu1 %vm908_vm2, %v1561_v31  ;;  %v1557_v2 = vpop.permute.xlu1 %1556 }
 0x3a2   : > { %v1193_v50 = vpop.permute.xlu0 %1192 }
 0x3a3   : > { %2730 = vmatprep.subr.bf16.mxu0 %v1193_v50 }
 0x3a4   : > { %2731 = vmatpush3.bf16.msra.mxu0 %v1193_v50 }
 0x3a6   : > { %v1195_v51 = vpop.permute.xlu0 %1194 }
 0x3a7   : > { %2713 = vmatmul.mubr.msk.bf16.vlgmr.msra.gmra.mrb[0].mxu1 %vm908_vm2, %v4058_v54  ;;  %2732 = vmatprep.subr.bf16.mxu0 %v1195_v51 }
 0x3a8   : > { %2716 = vmatprep.mubr.msk.bf16.mxu1 %vm908_vm2, %v4071_v7  ;;  %2733 = vmatpush3.bf16.msra.mxu0 %v1195_v51 }
 0x3a9   : > { %2779 = vmatpush3.bf16.xpose.msra.mxu1 %v1601_v6  ;;  %2734 = vmatprep.subr.bf16.mxu0 %v1197_v28 }
 0x3aa   : > { %2869 = vmatprep.subr.msk.bf16.mxu1 %vm908_vm2, %v1563_v4  ;;  %v1199_v53 = vpop.permute.xlu0 %1198 }
 0x3ac   : > { %2735 = vmatpush3.bf16.msra.mxu0 %v1197_v28 }
 0x3ad   : > { %2736 = vmatprep.subr.bf16.mxu0 %v1199_v53 }
 0x3ae   : > { %v1201_v55 = vpop.permute.xlu0 %1200 }
 0x3af   : > { %2717 = vmatmul.mubr.msk.bf16.gmra.mrb[4].mxu1 %vm908_vm2, %v4076_v15 }
 0x3b0   : > { %2720 = vmatprep.mubr.msk.bf16.mxu1 %vm908_vm2, %v4083_v11  ;;  %2737 = vmatpush3.bf16.msra.mxu0 %v1199_v53 }
 0x3b1   : > { %2781 = vmatpush3.bf16.xpose.msra.mxu1 %v1604_v57  ;;  %2738 = vmatprep.subr.bf16.mxu0 %v1201_v55 }
 0x3b2   : > { %2870 = vmatprep.subr.msk.bf16.mxu1 %vm908_vm2, %v1565_v35  ;;  %v1573_v0 = vpop.permute.xlu0 %1572 }
 0x3b3   : > { %v1619_v1 = vsel %vm908_vm2, %v1573_v0, 0 }
 0x3b4   : > { %2739 = vmatpush3.bf16.msra.mxu0 %v1201_v55 }
 0x3b7   : > { %2721 = vmatmul.mubr.msk.bf16.gmra.mrb[8].mxu1 %vm908_vm2, %v4080_v41 }
 0x3b8   : > { %2724 = vmatprep.mubr.msk.bf16.mxu1 %vm908_vm2, %v4094_v20 }
 0x3b9   : > { %2783 = vmatpush3.bf16.xpose.msra.mxu1 %v1607_v58 }
 0x3ba   : > { %2871 = vmatprep.subr.msk.bf16.mxu1 %vm908_vm2, %v1567_v32 }
 0x3bf   : > { %2725 = vmatmul.mubr.msk.bf16.gmra.mrb[12].mxu1 %vm908_vm2, %v4090_v42 }
 0x3c0   : > { %2794 = vmatprep.mubr.msk.bf16.mxu1 %vm908_vm2, %v1545_v40 }
 0x3c1   : > { %2785 = vmatpush3.bf16.xpose.msra.mxu1 %v1610_v59 }
 0x3c2   : > { %2872 = vmatprep.subr.msk.bf16.mxu1 %vm908_vm2, %v1569_v39 }
 0x3c9   : > { %2787 = vmatpush3.bf16.xpose.msra.mxu1 %v1613_v33 }
 0x3ca   : > { %2873 = vmatprep.subr.msk.bf16.mxu1 %vm908_vm2, %v1571_v36 }
 0x3d1   : > { %2789 = vmatpush3.bf16.xpose.msra.mxu1 %v1616_v63 }
 0x3d2   : > { %2874 = vmatprep.subr.msk.bf16.mxu1 %vm908_vm2, %v1573_v0 }
 0x3d9   : > { %2791 = vmatpush3.bf16.xpose.msra.mxu1 %v1619_v1 }
 0x3da   : > { %2875 = vmatprep.subr.msk.bf16.mxu1 %vm908_vm2, %v4138_v43 }
 0x3e1   : > { %2793 = vmatpush3.bf16.xpose.msra.mxu1 %v1622_v10 }
 0x3e8   : > { %2795 = vmatmul.mubr.msk.bf16.vlgmr.msra.gmra.mrb[16].mxu1 %vm908_vm2, %v1547_v5 }
 0x3e9   : > { %2798 = vmatprep.mubr.msk.bf16.mxu1 %vm908_vm2, %v4141_v18 }
 0x3f0   : > { %2799 = vmatmul.mubr.msk.bf16.gmra.mrb[20].mxu1 %vm908_vm2, %v1551_v46 }
 0x3f1   : > { %2802 = vmatprep.mubr.msk.bf16.mxu1 %vm908_vm2, %v4143_v56 }
 0x3f8   : > { %2803 = vmatmul.mubr.msk.bf16.gmra.mrb[24].mxu1 %vm908_vm2, %v1555_v49 }
 0x3f9   : > { %2806 = vmatprep.mubr.msk.bf16.mxu1 %vm908_vm2, %v1557_v2 }
 0x400   : > { %2807 = vmatmul.mubr.msk.bf16.gmra.mrb[28].mxu1 %vm908_vm2, %v1559_v47 }
 0x47a   : > { %v2714_v3 = vpop.f32.mrb[0].mxu1 }
 0x47b   : > { %v991_v37 = vpop.f32.mrb[1].mxu1  ;;  %v4195_v13 = vsel %vm875_vm3, %v2714_v3, -1e+30 }
 0x47c   : > { %1074 = vmax.xlane.f32.xlu1 %v4195_v13  ;;  %v2715_v14 = vpop.f32.mrb[2].mxu1  ;;  %v4200_v19 = vsel %vm875_vm3, %v991_v37, -1e+30 }
 0x47d   : > { %1070 = vmax.xlane.f32.xlu0 %v4200_v19  ;;  %v994_v16 = vpop.f32.mrb[3].mxu1  ;;  %v4205_v17 = vsel %vm875_vm3, %v2715_v14, -1e+30 }
 0x47e   : > { %v4210_v22 = vsel %vm875_vm3, %v994_v16, -1e+30 }
 0x480   : > { %1076 = vmax.xlane.f32.xlu1 %v4205_v17 }
 0x482   : > { %v2718_v52 = vpop.f32.mrb[4].mxu1 }
 0x483   : > { %v1007_v21 = vpop.f32.mrb[5].mxu1  ;;  %v4220_v23 = vsel %vm875_vm3, %v2718_v52, -1e+30 }
 0x484   : > { %1072 = vmax.xlane.f32.xlu1 %v4210_v22  ;;  %v2719_v29 = vpop.f32.mrb[6].mxu1  ;;  %v4215_v62 = vsel %vm875_vm3, %v1007_v21, -1e+30 }
 0x485   : > { %1078 = vmax.xlane.f32.xlu0 %v4215_v62  ;;  %v1010_v60 = vpop.f32.mrb[7].mxu1  ;;  %v4225_v26 = vsel %vm875_vm3, %v2719_v29, -1e+30 }
 0x486   : > { %v4235_v4 = vsel %vm875_vm3, %v1010_v60, -1e+30 }
 0x488   : > { %1082 = vmax.xlane.f32.xlu1 %v4220_v23 }
 0x48a   : > { %v2722_v24 = vpop.f32.mrb[8].mxu1 }
 0x48b   : > { %v1023_v25 = vpop.f32.mrb[9].mxu1  ;;  %v4240_v35 = vsel %vm875_vm3, %v2722_v24, -1e+30 }
 0x48c   : > { %1084 = vmax.xlane.f32.xlu1 %v4225_v26  ;;  %v2723_v27 = vpop.f32.mrb[10].mxu1  ;;  %v4230_v9 = vsel %vm875_vm3, %v1023_v25, -1e+30 }
 0x48d   : > { %1086 = vmax.xlane.f32.xlu0 %v4230_v9  ;;  %v1026_v34 = vpop.f32.mrb[11].mxu1  ;;  %v4250_v40 = vsel %vm875_vm3, %v2723_v27, -1e+30 }
 0x48e   : > { %v4260_v43 = vsel %vm875_vm3, %v1026_v34, -1e+30 }
 0x490   : > { %1080 = vmax.xlane.f32.xlu1 %v4235_v4 }
 0x492   : > { %v2726_v31 = vpop.f32.mrb[12].mxu1 }
 0x493   : > { %v1039_v32 = vpop.f32.mrb[13].mxu1  ;;  %v4290_v28 = vsel %vm875_vm3, %v2726_v31, -1e+30 }
 0x494   : > { %1090 = vmax.xlane.f32.xlu1 %v4240_v35  ;;  %v2727_v12 = vpop.f32.mrb[14].mxu1 }
 0x495   : > { %v1042_v36 = vpop.f32.mrb[15].mxu1  ;;  %v4245_v39 = vsel %vm875_vm3, %v2727_v12, -1e+30 }
 0x496   : > { %1100 = vmax.xlane.f32.xlu0 %v4245_v39  ;;  %v4255_v38 = vsel %vm875_vm3, %v1042_v36, -1e+30 }
 0x498   : > { %1092 = vmax.xlane.f32.xlu1 %v4250_v40 }
 0x49a   : > { %1096 = vmax.xlane.f32.xlu0 %v4255_v38 }
 0x49c   : > { %1088 = vmax.xlane.f32.xlu1 %v4260_v43 }
 0x4ad   : > { %1202 = vrot.lane.b32.xlu1 %v4094_v20, %s3445_s14 }
 0x4b0   : > { %1204 = vrot.lane.b32.xlu0 %v4090_v42, %s3445_s14 }
 0x4b4   : > { %1857 = vrot.lane.b32.xlu0 %v4063_v30, %s3446_s23 }
 0x4b8   : > { %1861 = vrot.lane.b32.xlu0 %v4071_v7, %s3446_s23  ;;  %v4281_v7 = vsel %vm875_vm3, %v1039_v32, -1e+30 }
 0x4bb   : > { %v2796_v18 = vpop.f32.mrb[16].mxu1 }
 0x4bc   : > { %v1658_v5 = vpop.f32.mrb[17].mxu1  ;;  %1865 = vrot.lane.b32.xlu0 %v4083_v11, %s3446_s23  ;;  %v4329_v3 = vsel %vm875_vm3, %v2796_v18, -1e+30 }
 0x4bd   : > { %v2797_v56 = vpop.f32.mrb[18].mxu1  ;;  %v4297_v57 = vsel %vm875_vm3, %v1658_v5, -1e+30 }
 0x4be   : > { %v1661_v45 = vpop.f32.mrb[19].mxu1 }
 0x4bf   : > { %v4340_v16 = vsel %vm875_vm3, %v1661_v45, -1e+30 }
 0x4c3   : > { %v2800_v61 = vpop.f32.mrb[20].mxu1 }
 0x4c4   : > { %v1674_v46 = vpop.f32.mrb[21].mxu1 }
 0x4c5   : > { %v2801_v47 = vpop.f32.mrb[22].mxu1  ;;  %v4302_v58 = vsel %vm875_vm3, %v1674_v46, -1e+30 }
 0x4c6   : > { %v4273_v48 = vpop.f32.mrb[23].mxu1  ;;  %v4354_v34 = vsel %vm875_vm3, %v2801_v47, -1e+30 }
 0x4cb   : > { %v4275_v49 = vpop.f32.mrb[24].mxu1 }
 0x4cc   : > { %v1690_v50 = vpop.f32.mrb[25].mxu1 }
 0x4cd   : > { %v2805_v51 = vpop.f32.mrb[26].mxu1  ;;  %v4307_v59 = vsel %vm875_vm3, %v1690_v50, -1e+30 }
 0x4ce   : > { %v4277_v30 = vpop.f32.mrb[27].mxu1  ;;  %v4314_v33 = vsel %vm875_vm3, %v2805_v51, -1e+30 }
 0x4d1   : > { %1094 = vmax.xlane.f32.xlu1 %v4281_v7 }
 0x4d3   : > { %v4284_v11 = vpop.f32.mrb[28].mxu1 }
 0x4d4   : > { %v4286_v6 = vpop.f32.mrb[29].mxu1 }
 0x4d5   : > { %v4292_v53 = vpop.f32.mrb[30].mxu1  ;;  %1098 = vmax.xlane.f32.xlu1 %v4290_v28 }
 0x4d6   : > { %v1709_v55 = vpop.f32.mrb[31].mxu1 }
 0x4d7   : > { %v4321_v63 = vsel %vm875_vm3, %v1709_v55, -1e+30 }
 0x4db   : > { %1737 = vmax.xlane.f32.xlu0 %v4297_v57 }
 0x4df   : > { %1745 = vmax.xlane.f32.xlu0 %v4302_v58 }
 0x4e3   : > { %1753 = vmax.xlane.f32.xlu0 %v4307_v59 }
 0x4e6   : > { %1859 = vrot.lane.b32.xlu1 %v4058_v54, %s3446_s23 }
 0x4e7   : > { %1759 = vmax.xlane.f32.xlu0 %v4314_v33 }
 0x4ea   : > { %1863 = vrot.lane.b32.xlu1 %v4076_v15, %s3446_s23 }
 0x4eb   : > { %1763 = vmax.xlane.f32.xlu0 %v4321_v63 }
 0x4ee   : > { %1867 = vrot.lane.b32.xlu1 %v4080_v41, %s3446_s23  ;;  %v4335_v41 = vsel %vm875_vm3, %v2797_v56, -1e+30 }
 0x509   : > { %v1075_v0 = vpop.xlane.xlu1 %1074 }
 0x50a   : > { %v1071_v54 = vpop.xlane.xlu0 %1070  ;;  %v1104_v31 = vsub.f32 %v4195_v13, %v1075_v0  ;;  %v4366_v13 = vsel %vm875_vm3, %v4273_v48, -1e+30 }
 0x50b   : > { %v1102_v1 = vsub.f32 %v4200_v19, %v1071_v54 }
 0x50c   : > { %v1122_v45 = vmul.f32 1.442695, %v1104_v31 }
 0x50d   : > { %v1077_v10 = vpop.xlane.xlu1 %1076  ;;  %v1118_v2 = vmul.f32 1.442695, %v1102_v1 }
 0x50e   : > { %v1105_v60 = vsub.f32 %v4205_v17, %v1077_v10 }
 0x50f   : > { %3027 = vpow2.f32 %v1118_v2  ;;  %v2993_v2 = vld [vmem:[#allocation13] sm:$0xff]  }
 0x510   : > { %v1124_v17 = vmul.f32 1.442695, %v1105_v60 }
 0x511   : > { %v1073_v44 = vpop.xlane.xlu1 %1072 }
 0x512   : > { %v1103_v15 = vsub.f32 %v4210_v22, %v1073_v44  ;;  %1741 = vmax.xlane.f32.xlu1 %v4329_v3  ;;  %v1079_v52 = vpop.xlane.xlu0 %1078  ;;  %v4345_v22 = vsel %vm875_vm3, %v2800_v61, -1e+30 }
 0x513   : > { %v1106_v36 = vsub.f32 %v4215_v62, %v1079_v52 }
 0x514   : > { %v1120_v37 = vmul.f32 1.442695, %v1103_v15 }
 0x515   : > { %v1083_v14 = vpop.xlane.xlu1 %1082  ;;  %v1126_v46 = vmul.f32 1.442695, %v1106_v36 }
 0x516   : > { %3029 = vpow2.f32 %v1120_v37  ;;  %1743 = vmax.xlane.f32.xlu1 %v4335_v41  ;;  %v1108_v47 = vsub.f32 %v4220_v23, %v1083_v14 }
 0x518   : > { %v1130_v54 = vmul.f32 1.442695, %v1108_v47 }
 0x519   : > { %v1085_v19 = vpop.xlane.xlu1 %1084  ;;  %v4348_v29 = vpop.eup %3027 }
 0x51a   : > { %1739 = vmax.xlane.f32.xlu1 %v4340_v16  ;;  %v1087_v24 = vpop.xlane.xlu0 %1086  ;;  %v1109_v62 = vsub.f32 %v4225_v26, %v1085_v19 }
 0x51b   : > { %v1110_v51 = vsub.f32 %v4230_v9, %v1087_v24 }
 0x51c   : > { %v1132_v26 = vmul.f32 1.442695, %v1109_v62 }
 0x51d   : > { %v1081_v21 = vpop.xlane.xlu1 %1080  ;;  %v1134_v23 = vmul.f32 1.442695, %v1110_v51 }
 0x51e   : > { %1749 = vmax.xlane.f32.xlu1 %v4345_v22  ;;  %v1107_v27 = vsub.f32 %v4235_v4, %v1081_v21 }
 0x520   : > { %v3030_v25 = vpop.eup %3029  ;;  %v1128_v4 = vmul.f32 1.442695, %v1107_v27 }
 0x521   : > { %v1091_v32 = vpop.xlane.xlu1 %1090  ;;  %1152 = vadd.xlane.f32.xlu0 %v3030_v25  ;;  %v1182_v12 = vpack.c.bf16 %v3030_v25, %v4348_v29 }
 0x522   : > { %v1112_v18 = vsub.f32 %v4240_v35, %v1091_v32  ;;  %1751 = vmax.xlane.f32.xlu1 %v4354_v34  ;;  %v4373_v35 = vsel %vm875_vm3, %v4275_v49, -1e+30  ;;  %v4384_v49 = vsel %vm875_vm3, %v4277_v30, -1e+30  ;;  %v4391_v30 = vsel %vm875_vm3, %v4286_v6, -1e+30 }
 0x523   : > { %2744 = vmatprep.mubr.bf16.mxu0 %v1182_v12  ;;  %v4361_v5 = vpop.xlane.xlu0 %1100 }
 0x524   : > { %v1138_v56 = vmul.f32 1.442695, %v1112_v18  ;;  %v1117_v36 = vsub.f32 %v4245_v39, %v4361_v5 }
 0x525   : > { %v1093_v61 = vpop.xlane.xlu1 %1092 }
 0x526   : > { %3031 = vpow2.f32 %v1138_v56  ;;  %1747 = vmax.xlane.f32.xlu1 %v4366_v13  ;;  %v1113_v9 = vsub.f32 %v4250_v40, %v1093_v61  ;;  %v1148_v18 = vmul.f32 1.442695, %v1117_v36 }
 0x527   : > { %3033 = vpow2.f32 %v1124_v17  ;;  %v4376_v48 = vpop.xlane.xlu0 %1096 }
 0x528   : > { %3035 = vpow2.f32 %v1128_v4  ;;  %v1140_v40 = vmul.f32 1.442695, %v1113_v9  ;;  %v4405_v4 = vsel %vm875_vm3, %v4284_v11, -1e+30 }
 0x529   : > { %3037 = vpow2.f32 %v1122_v45  ;;  %v1089_v50 = vpop.xlane.xlu1 %1088 }
 0x52a   : > { %3039 = vpow2.f32 %v1126_v46  ;;  %v1111_v55 = vsub.f32 %v4260_v43, %v1089_v50  ;;  %1757 = vmax.xlane.f32.xlu1 %v4373_v35 }
 0x52b   : > { %3041 = vpow2.f32 %v1132_v26  ;;  %v1205_v10 = vpop.permute.xlu0 %1204 }
 0x52c   : > { %v1136_v0 = vmul.f32 1.442695, %v1111_v55 }
 0x52d   : > { %v1203_v1 = vpop.permute.xlu1 %1202 }
 0x52e   : > { %2740 = vmatprep.subr.bf16.mxu0 %v1203_v1  ;;  %1755 = vmax.xlane.f32.xlu1 %v4384_v49  ;;  %3043 = vpow2.f32 %v1136_v0 }
 0x52f   : > { %2741 = vmatpush3.bf16.msra.mxu0 %v1203_v1  ;;  %3045 = vpow2.f32 %v1130_v54  ;;  %v4394_v21 = vpop.permute.xlu0 %1857 }
 0x530   : > { %v3032_v43 = vpop.eup %3031  ;;  %2742 = vmatprep.subr.bf16.mxu0 %v1205_v10  ;;  %3047 = vpow2.f32 %v1134_v23 }
 0x531   : > { %v3034_v44 = vpop.eup %3033  ;;  %1170 = vadd.xlane.f32.xlu0 %v3032_v43  ;;  %3049 = vpow2.f32 %v1140_v40  ;;  %v4435_v40 = vsel %vm875_vm3, %v4292_v53, -1e+30 }
 0x532   : > { %v3036_v15 = vpop.eup %3035  ;;  %1761 = vmax.xlane.f32.xlu1 %v4391_v30  ;;  %3051 = vpow2.f32 %v1148_v18 }
 0x533   : > { %v3038_v37 = vpop.eup %3037  ;;  %2743 = vmatpush3.bf16.msra.mxu0 %v1205_v10 }
 0x534   : > { %v3040_v14 = vpop.eup %3039  ;;  %v1183_v19 = vpack.c.bf16 %v3034_v44, %v3038_v37  ;;  %2760 = vmatprep.subr.bf16.mxu0 %v2993_v2 }
 0x535   : > { %v1184_v52 = vpack.c.bf16 %v3036_v15, %v3040_v14  ;;  %v3042_v6 = vpop.eup %3041 }
 0x536   : > { %1154 = vadd.xlane.f32.xlu1 %v3038_v37  ;;  %2745 = vmatmul.mubr.bf16.vlgmr.msra.gmra.mrb[16].mxu0 %v1183_v19 }
 0x537   : > { %2748 = vmatprep.mubr.bf16.mxu0 %v1184_v52  ;;  %2761 = vmatpush3.bf16.msra.mxu0 %v2993_v2 }
 0x538   : > { %2810 = vmatprep.subr.bf16.mxu0 %v4394_v21  ;;  %v3044_v60 = vpop.eup %3043 }
 0x539   : > { %v3046_v24 = vpop.eup %3045 }
 0x53a   : > { %1150 = vadd.xlane.f32.xlu1 %v4348_v29  ;;  %v3048_v25 = vpop.eup %3047  ;;  %v1185_v27 = vpack.c.bf16 %v3042_v6, %v3046_v24  ;;  %v1115_v29 = vsub.f32 %v4255_v38, %v4376_v48 }
 0x53b   : > { %v1186_v31 = vpack.c.bf16 %v3044_v60, %v3048_v25  ;;  %v3050_v32 = vpop.eup %3049 }
 0x53c   : > { %v1187_v12 = vpack.c.bf16 %v3050_v32, %v3032_v43  ;;  %v1144_v17 = vmul.f32 1.442695, %v1115_v29  ;;  %v3052_v5 = vpop.eup %3051 }
 0x53e   : > { %1156 = vadd.xlane.f32.xlu1 %v3034_v44  ;;  %2749 = vmatmul.mubr.bf16.gmra.mrb[20].mxu0 %v1185_v27  ;;  %3053 = vpow2.f32 %v1144_v17 }
 0x53f   : > { %2752 = vmatprep.mubr.bf16.mxu0 %v1186_v31 }
 0x542   : > { %1162 = vadd.xlane.f32.xlu1 %v3046_v24 }
 0x546   : > { %1158 = vadd.xlane.f32.xlu1 %v3040_v14  ;;  %2753 = vmatmul.mubr.bf16.gmra.mrb[24].mxu0 %v1187_v12 }
 0x548   : > { %v3054_v46 = vpop.eup %3053 }
 0x54a   : > { %1164 = vadd.xlane.f32.xlu1 %v3042_v6 }
 0x54e   : > { %1160 = vadd.xlane.f32.xlu1 %v3036_v15 }
 0x552   : > { %1166 = vadd.xlane.f32.xlu1 %v3048_v25 }
 0x556   : > { %1172 = vadd.xlane.f32.xlu1 %v3050_v32 }
 0x55a   : > { %1168 = vadd.xlane.f32.xlu1 %v3044_v60 }
 0x55e   : > { %v1095_v56 = vpop.xlane.xlu1 %1094  ;;  %1765 = vmax.xlane.f32.xlu1 %v4405_v4 }
 0x55f   : > { %v1114_v39 = vsub.f32 %v4281_v7, %v1095_v56  ;;  %v4412_v7 = vpop.permute.xlu0 %1861 }
 0x561   : > { %v1142_v45 = vmul.f32 1.442695, %v1114_v39 }
 0x562   : > { %v1099_v61 = vpop.xlane.xlu1 %1098  ;;  %1180 = vadd.xlane.f32.xlu1 %v3052_v5 }
 0x563   : > { %3055 = vpow2.f32 %v1142_v45  ;;  %v1116_v38 = vsub.f32 %v4290_v28, %v1099_v61  ;;  %v4414_v51 = vpop.permute.xlu0 %1865 }
 0x565   : > { %v1146_v62 = vmul.f32 1.442695, %v1116_v38 }
 0x566   : > { %1176 = vadd.xlane.f32.xlu1 %v3054_v46  ;;  %v4419_v0 = vpop.permute.xlu1 %1859 }
 0x567   : > { %3057 = vpow2.f32 %v1146_v62 }
 0x568   : > { %v1738_v28 = vpop.xlane.xlu0 %1737 }
 0x569   : > { %v1769_v55 = vsub.f32 %v4297_v57, %v1738_v28 }
 0x56a   : > { %v4421_v54 = vpop.permute.xlu1 %1863 }
 0x56b   : > { %v1785_v26 = vmul.f32 1.442695, %v1769_v55 }
 0x56c   : > { %v1746_v43 = vpop.xlane.xlu0 %1745 }
 0x56d   : > { %v3056_v47 = vpop.eup %3055  ;;  %3059 = vpow2.f32 %v1785_v26  ;;  %v1773_v15 = vsub.f32 %v4302_v58, %v1746_v43 }
 0x56e   : > { %v1188_v48 = vpack.c.bf16 %v3054_v46, %v3056_v47  ;;  %v4425_v23 = vpop.permute.xlu1 %1867 }
 0x56f   : > { %v1793_v52 = vmul.f32 1.442695, %v1773_v15 }
 0x570   : > { %2756 = vmatprep.mubr.bf16.mxu0 %v1188_v48  ;;  %v1754_v14 = vpop.xlane.xlu0 %1753 }
 0x571   : > { %v3058_v11 = vpop.eup %3057 }
 0x572   : > { %1178 = vadd.xlane.f32.xlu0 %v3058_v11  ;;  %v1189_v50 = vpack.c.bf16 %v3052_v5, %v3058_v11 }
 0x574   : > { %2757 = vmatmul.mubr.bf16.gmra.mrb[28].mxu0 %v1189_v50 }
 0x576   : > { %1174 = vadd.xlane.f32.xlu0 %v3056_v47 }
 0x577   : > { %1871 = vrot.lane.b32.xlu1 %v4090_v42, %s3446_s23  ;;  %v4423_v1 = vpop.eup %3059 }
 0x58c   : > { %1869 = vrot.lane.b32.xlu0 %v4094_v20, %s3446_s23 }
 0x59b   : > { %1817 = vadd.xlane.f32.xlu1 %v4423_v1 }
 0x59f   : > { %v1742_v42 = vpop.xlane.xlu1 %1741 }
 0x5a0   : > { %v1771_v9 = vsub.f32 %v4329_v3, %v1742_v42 }
 0x5a2   : > { %v1789_v10 = vmul.f32 1.442695, %v1771_v9 }
 0x5a3   : > { %v1744_v57 = vpop.xlane.xlu1 %1743 }
 0x5a4   : > { %3061 = vpow2.f32 %v1789_v10  ;;  %v1772_v20 = vsub.f32 %v4335_v41, %v1744_v57 }
 0x5a6   : > { %v1791_v2 = vmul.f32 1.442695, %v1772_v20 }
 0x5a7   : > { %v1740_v44 = vpop.xlane.xlu1 %1739 }
 0x5a8   : > { %3063 = vpow2.f32 %v1791_v2  ;;  %v1770_v37 = vsub.f32 %v4340_v16, %v1740_v44  ;;  %v1760_v16 = vpop.xlane.xlu0 %1759 }
 0x5a9   : > { %v1780_v25 = vsub.f32 %v4314_v33, %v1760_v16 }
 0x5aa   : > { %v1787_v3 = vmul.f32 1.442695, %v1770_v37 }
 0x5ab   : > { %v1750_v19 = vpop.xlane.xlu1 %1749  ;;  %1767 = vmax.xlane.f32.xlu0 %v4435_v40  ;;  %v1807_v36 = vmul.f32 1.442695, %v1780_v25 }
 0x5ac   : > { %3065 = vpow2.f32 %v1787_v3  ;;  %v1775_v41 = vsub.f32 %v4345_v22, %v1750_v19  ;;  %v1764_v29 = vpop.xlane.xlu0 %1763 }
 0x5ad   : > { %3067 = vpow2.f32 %v1793_v52  ;;  %v1782_v5 = vsub.f32 %v4321_v63, %v1764_v29 }
 0x5ae   : > { %v4439_v6 = vpop.eup %3061  ;;  %v1797_v58 = vmul.f32 1.442695, %v1775_v41 }
 0x5af   : > { %v1752_v60 = vpop.xlane.xlu1 %1751  ;;  %1821 = vadd.xlane.f32.xlu0 %v4439_v6 }
 0x5b0   : > { %v1776_v8 = vsub.f32 %v4354_v34, %v1752_v60  ;;  %3069 = vpow2.f32 %v1797_v58  ;;  %v1777_v34 = vsub.f32 %v4307_v59, %v1754_v14 }
 0x5b2   : > { %v4443_v53 = vpop.eup %3063  ;;  %v1799_v24 = vmul.f32 1.442695, %v1776_v8  ;;  %v1153_v8 = vpop.xlane.xlu0 %1152 }
 0x5b3   : > { %v1748_v27 = vpop.xlane.xlu1 %1747  ;;  %1823 = vadd.xlane.f32.xlu0 %v4443_v53  ;;  %v1850_v22 = vpack.c.bf16 %v4443_v53, %v4439_v6  ;;  %v2994_v6 = vld [vmem:[#allocation13 + $0x8] sm:$0xff]   ;;  %v1345_v53 = vld [vmem:[#allocation3 + $0x10] sm:$0xff] }
 0x5b4   : > { %3071 = vpow2.f32 %v1799_v24  ;;  %v1774_v31 = vsub.f32 %v4366_v13, %v1748_v27  ;;  %v1801_v13 = vmul.f32 1.442695, %v1777_v34 }
 0x5b6   : > { %v4450_v32 = vpop.eup %3065  ;;  %v1795_v12 = vmul.f32 1.442695, %v1774_v31 }
 0x5b7   : > { %v1758_v18 = vpop.xlane.xlu1 %1757  ;;  %1819 = vadd.xlane.f32.xlu0 %v4450_v32  ;;  %v1849_v33 = vpack.c.bf16 %v4450_v32, %v4423_v1  ;;  %v4457_v56 = vpop.eup %3067 }
 0x5b8   : > { %3073 = vpow2.f32 %v1795_v12  ;;  %v1779_v17 = vsub.f32 %v4373_v35, %v1758_v18  ;;  %v1811_v35 = vmul.f32 1.442695, %v1782_v5 }
 0x5b9   : > { %3075 = vpow2.f32 %v1807_v36 }
 0x5ba   : > { %v1805_v39 = vmul.f32 1.442695, %v1779_v17  ;;  %v4462_v61 = vpop.eup %3069 }
 0x5bb   : > { %v1756_v45 = vpop.xlane.xlu1 %1755  ;;  %1825 = vadd.xlane.f32.xlu0 %v4457_v56 }
 0x5bc   : > { %3077 = vpow2.f32 %v1805_v39  ;;  %v1778_v59 = vsub.f32 %v4384_v49, %v1756_v45 }
 0x5bd   : > { %3079 = vpow2.f32 %v1801_v13 }
 0x5be   : > { %v4464_v38 = vpop.eup %3071  ;;  %v1803_v46 = vmul.f32 1.442695, %v1778_v59  ;;  %v1171_v36 = vpop.xlane.xlu0 %1170 }
 0x5bf   : > { %v1762_v62 = vpop.xlane.xlu1 %1761  ;;  %1831 = vadd.xlane.f32.xlu1 %v4464_v38  ;;  %v1852_v47 = vpack.c.bf16 %v4464_v38, %v4462_v61  ;;  %v1344_v38 = vld [vmem:[#allocation3 + $0x8] sm:$0xff] }
 0x5c0   : > { %3081 = vpow2.f32 %v1803_v46  ;;  %v1781_v63 = vsub.f32 %v4391_v30, %v1762_v62 }
 0x5c1   : > { %3083 = vpow2.f32 %v1811_v35 }
 0x5c2   : > { %v4470_v48 = vpop.eup %3073  ;;  %v1809_v11 = vmul.f32 1.442695, %v1781_v63 }
 0x5c3   : > { %v1155_v49 = vpop.xlane.xlu1 %1154  ;;  %1827 = vadd.xlane.f32.xlu0 %v4470_v48  ;;  %v1851_v50 = vpack.c.bf16 %v4470_v48, %v4457_v56  ;;  %v4475_v28 = vpop.eup %3075 }
 0x5c4   : > { %3085 = vpow2.f32 %v1809_v11 }
 0x5c6   : > { %v4477_v55 = vpop.eup %3077 }
 0x5c7   : > { %v1151_v26 = vpop.xlane.xlu1 %1150  ;;  %1829 = vadd.xlane.f32.xlu0 %v4462_v61  ;;  %v1854_v30 = vpack.c.bf16 %v4475_v28, %v4477_v55  ;;  %v4482_v42 = vpop.eup %3079 }
 0x5ca   : > { %v4484_v9 = vpop.eup %3081 }
 0x5cb   : > { %v1157_v10 = vpop.xlane.xlu1 %1156  ;;  %1835 = vadd.xlane.f32.xlu1 %v4484_v9  ;;  %1833 = vadd.xlane.f32.xlu0 %v4482_v42  ;;  %v1853_v57 = vpack.c.bf16 %v4484_v9, %v4482_v42  ;;  %v4490_v43 = vpop.eup %3083  ;;  %v1347_v42 = vld [vmem:[#allocation3 + $0x20] sm:$0xff] }
 0x5ce   : > { %v4492_v20 = vpop.eup %3085 }
 0x5cf   : > { %v1163_v2 = vpop.xlane.xlu1 %1162  ;;  %1837 = vadd.xlane.f32.xlu0 %v4477_v55  ;;  %1839 = vadd.xlane.f32.xlu1 %v4475_v28  ;;  %v1855_v44 = vpack.c.bf16 %v4490_v43, %v4492_v20 }
 0x5d3   : > { %v1159_v15 = vpop.xlane.xlu1 %1158  ;;  %1841 = vadd.xlane.f32.xlu0 %v4492_v20  ;;  %1843 = vadd.xlane.f32.xlu1 %v4490_v43 }
 0x5d7   : > { %v1165_v37 = vpop.xlane.xlu1 %1164 }
 0x5db   : > { %v1161_v14 = vpop.xlane.xlu1 %1160 }
 0x5df   : > { %v1167_v3 = vpop.xlane.xlu1 %1166 }
 0x5e3   : > { %v1173_v19 = vpop.xlane.xlu1 %1172 }
 0x5e7   : > { %v1169_v52 = vpop.xlane.xlu1 %1168 }
 0x5eb   : > { %v1766_v41 = vpop.xlane.xlu1 %1765 }
 0x5ec   : > { %v1783_v58 = vsub.f32 %v4405_v4, %v1766_v41 }
 0x5ee   : > { %v1813_v60 = vmul.f32 1.442695, %v1783_v58 }
 0x5f0   : > { %3087 = vpow2.f32 %v1813_v60 }
 0x5f1   : > { %3089 = vrcp.f32 %v1153_v8 }
 0x5f2   : > { %3091 = vrcp.f32 %v1155_v49 }
 0x5f3   : > { %3093 = vrcp.f32 %v1157_v10 }
 0x5f4   : > { %3095 = vrcp.f32 %v1151_v26 }
 0x5f5   : > { %3097 = vrcp.f32 %v1163_v2 }
 0x5f6   : > { %3099 = vrcp.f32 %v1159_v15 }
 0x5f7   : > { %3101 = vrcp.f32 %v1165_v37 }
 0x5f8   : > { %3103 = vrcp.f32 %v1161_v14 }
 0x5f9   : > { %3105 = vrcp.f32 %v1171_v36 }
 0x5fa   : > { %v4501_v16 = vpop.eup %3087  ;;  %3107 = vrcp.f32 %v1167_v3 }
 0x5fb   : > { %1845 = vadd.xlane.f32.xlu0 %v4501_v16  ;;  %v3090_v24 = vpop.eup %3089  ;;  %3109 = vrcp.f32 %v1173_v19 }
 0x5fc   : > { %v3092_v27 = vpop.eup %3091  ;;  %3111 = vrcp.f32 %v1169_v52 }
 0x5fd   : > { %v3094_v4 = vpop.eup %3093 }
 0x5fe   : > { %v3096_v34 = vpop.eup %3095 }
 0x5ff   : > { %v3098_v59 = vpop.eup %3097  ;;  %v1179_v60 = vpop.xlane.xlu0 %1178 }
 0x600   : > { %v3100_v35 = vpop.eup %3099 }
 0x601   : > { %v3102_v63 = vpop.eup %3101 }
 0x602   : > { %v3104_v49 = vpop.eup %3103 }
 0x603   : > { %v3106_v19 = vpop.eup %3105 }
 0x609   : > { %v2746_v25 = vpop.f32.mrb[16].mxu0 }
 0x60a   : > { %v1248_v31 = vpop.f32.mrb[17].mxu0  ;;  %v1329_v18 = vmul.f32 %v3092_v27, %v2746_v25 }
 0x60b   : > { %v2747_v12 = vpop.f32.mrb[18].mxu0  ;;  %v1327_v39 = vmul.f32 %v3096_v34, %v1248_v31  ;;  %v1181_v34 = vpop.xlane.xlu1 %1180 }
 0x60c   : > { %v1330_v29 = vmul.f32 %v3094_v4, %v2747_v12  ;;  %v1251_v17 = vpop.f32.mrb[19].mxu0  ;;  %3113 = vrcp.f32 %v1181_v34 }
 0x60d   : > { %v1328_v13 = vmul.f32 %v3090_v24, %v1251_v17 }
 0x60e   : > { %v1360_v5 = vpack.c.bf16 %v1330_v29, %v1329_v18  ;;  %v1175_v18 = vpop.xlane.xlu0 %1174 }
 0x60f   : > { %v1359_v45 = vpack.c.bf16 %v1328_v13, %v1327_v39 }
 0x611   : > { %v2750_v46 = vpop.f32.mrb[20].mxu0  ;;  %2762 = vmatprep.mubr.msk.bf16.mxu0 %vm908_vm2, %v1359_v45 }
 0x612   : > { %v1264_v62 = vpop.f32.mrb[21].mxu0  ;;  %2763 = vmatmul.mubr.msk.bf16.vlgmr.msra.gmra.mrb[32].mxu0 %vm908_vm2, %v1360_v5  ;;  %v1333_v26 = vmul.f32 %v3098_v59, %v2750_v46  ;;  %v1870_v29 = vpop.permute.xlu0 %1869 }
 0x613   : > { %2811 = vmatpush3.bf16.msra.mxu0 %v4394_v21  ;;  %v2751_v11 = vpop.f32.mrb[22].mxu0  ;;  %v1331_v15 = vmul.f32 %v3100_v35, %v1264_v62  ;;  %v3108_v21 = vpop.eup %3107 }
 0x614   : > { %v1334_v10 = vmul.f32 %v3102_v63, %v2751_v11  ;;  %2812 = vmatprep.subr.bf16.mxu0 %v4419_v0  ;;  %v1267_v2 = vpop.f32.mrb[23].mxu0  ;;  %v3110_v58 = vpop.eup %3109 }
 0x615   : > { %v1332_v37 = vmul.f32 %v3104_v49, %v1267_v2  ;;  %v3112_v24 = vpop.eup %3111 }
 0x616   : > { %v1362_v14 = vpack.c.bf16 %v1334_v10, %v1333_v26 }
 0x617   : > { %v1361_v3 = vpack.c.bf16 %v1332_v37, %v1331_v15  ;;  %2813 = vmatpush3.bf16.msra.mxu0 %v4419_v0 }
 0x618   : > { %2814 = vmatprep.subr.bf16.mxu0 %v4412_v7 }
 0x619   : > { %v2754_v52 = vpop.f32.mrb[24].mxu0  ;;  %2766 = vmatprep.mubr.msk.bf16.mxu0 %vm908_vm2, %v1361_v3 }
 0x61a   : > { %v1280_v41 = vpop.f32.mrb[25].mxu0  ;;  %2767 = vmatmul.mubr.msk.bf16.gmra.mrb[36].mxu0 %vm908_vm2, %v1362_v14  ;;  %v1337_v25 = vmul.f32 %v3106_v19, %v2754_v52  ;;  %v1353_v19 = vld [vmem:[#allocation3 + $0x50] sm:$0xff]  ;;  %v1351_v52 = vld [vmem:[#allocation3 + $0x40] sm:$0xff] }
 0x61b   : > { %2815 = vmatpush3.bf16.msra.mxu0 %v4412_v7  ;;  %v2755_v8 = vpop.f32.mrb[26].mxu0  ;;  %v1335_v31 = vmul.f32 %v3108_v21, %v1280_v41  ;;  %v1177_v7 = vpop.xlane.xlu1 %1176  ;;  %v1354_v41 = vld [vmem:[#allocation3 + $0x58] sm:$0xff] }
 0x61c   : > { %v1338_v27 = vmul.f32 %v3110_v58, %v2755_v8  ;;  %2816 = vmatprep.subr.bf16.mxu0 %v4421_v54  ;;  %v1283_v0 = vpop.f32.mrb[27].mxu0  ;;  %v1352_v8 = vld [vmem:[#allocation3 + $0x48] sm:$0xff] }
 0x61d   : > { %v1336_v4 = vmul.f32 %v3112_v24, %v1283_v0 }
 0x61e   : > { %v1364_v12 = vpack.c.bf16 %v1338_v27, %v1337_v25 }
 0x61f   : > { %v1363_v36 = vpack.c.bf16 %v1336_v4, %v1335_v31  ;;  %2817 = vmatpush3.bf16.msra.mxu0 %v4421_v54  ;;  %v1872_v17 = vpop.permute.xlu1 %1871 }
 0x620   : > { %2818 = vmatprep.subr.bf16.mxu0 %v4414_v51 }
 0x621   : > { %2770 = vmatprep.mubr.msk.bf16.mxu0 %vm908_vm2, %v1363_v36 }
 0x622   : > { %2771 = vmatmul.mubr.msk.bf16.gmra.mrb[40].mxu0 %vm908_vm2, %v1364_v12 }
 0x623   : > { %2819 = vmatpush3.bf16.msra.mxu0 %v4414_v51  ;;  %v3114_v51 = vpop.eup %3113 }
 0x624   : > { %2820 = vmatprep.subr.bf16.mxu0 %v4425_v23 }
 0x627   : > { %2821 = vmatpush3.bf16.msra.mxu0 %v4425_v23 }
 0x628   : > { %2822 = vmatprep.subr.bf16.mxu0 %v1870_v29 }
 0x62b   : > { %2823 = vmatpush3.bf16.msra.mxu0 %v1870_v29 }
 0x62c   : > { %2824 = vmatprep.subr.bf16.mxu0 %v1872_v17 }
 0x62f   : > { %2825 = vmatpush3.bf16.msra.mxu0 %v1872_v17  ;;  %v1357_v17 = vld [vmem:[#allocation3 + $0x70] sm:$0xff] }
 0x630   : > { %2842 = vmatprep.subr.bf16.mxu0 %v2994_v6 }
 0x638   : > { %v1768_v54 = vpop.xlane.xlu0 %1767 }
 0x639   : > { %v1784_v39 = vsub.f32 %v4435_v40, %v1768_v54  ;;  %v1355_v54 = vld [vmem:[#allocation3 + $0x60] sm:$0xff] }
 0x63b   : > { %v1815_v13 = vmul.f32 1.442695, %v1784_v39 }
 0x63c   : > { %v1822_v4 = vpop.xlane.xlu0 %1821 }
 0x63d   : > { %3115 = vpow2.f32 %v1815_v13  ;;  %v1358_v13 = vld [vmem:[#allocation3 + $0x78] sm:$0xff] }
 0x63e   : > { %3117 = vrcp.f32 %v1177_v7  ;;  %v1818_v7 = vpop.xlane.xlu1 %1817 }
 0x63f   : > { %3119 = vrcp.f32 %v1179_v60 }
 0x640   : > { %3121 = vrcp.f32 %v1175_v18  ;;  %v1824_v12 = vpop.xlane.xlu0 %1823 }
 0x641   : > { %3123 = vrcp.f32 %v1818_v7 }
 0x642   : > { %3125 = vrcp.f32 %v1822_v4 }
 0x643   : > { %3127 = vrcp.f32 %v1824_v12 }
 0x644   : > { %v1820_v34 = vpop.xlane.xlu0 %1819 }
 0x645   : > { %3129 = vrcp.f32 %v1820_v34 }
 0x647   : > { %v3116_v5 = vpop.eup %3115  ;;  %v2758_v45 = vpop.f32.mrb[28].mxu0 }
 0x648   : > { %v3118_v59 = vpop.eup %3117  ;;  %v1296_v46 = vpop.f32.mrb[29].mxu0  ;;  %1847 = vadd.xlane.f32.xlu1 %v3116_v5  ;;  %v1856_v1 = vpack.c.bf16 %v3116_v5, %v4501_v16 }
 0x649   : > { %v3120_v23 = vpop.eup %3119  ;;  %v2759_v35 = vpop.f32.mrb[30].mxu0 }
 0x64a   : > { %v3122_v62 = vpop.eup %3121  ;;  %v1341_v63 = vmul.f32 %v3120_v23, %v2758_v45  ;;  %v1342_v11 = vmul.f32 %v3114_v51, %v2759_v35  ;;  %v1299_v49 = vpop.f32.mrb[31].mxu0 }
 0x64b   : > { %v1339_v26 = vmul.f32 %v3122_v62, %v1296_v46  ;;  %v1340_v40 = vmul.f32 %v3118_v59, %v1299_v49  ;;  %v1826_v36 = vpop.xlane.xlu0 %1825  ;;  %v1356_v59 = vld [vmem:[#allocation3 + $0x68] sm:$0xff] }
 0x64c   : > { %v1366_v10 = vpack.c.bf16 %v1342_v11, %v1341_v63  ;;  %v1832_v51 = vpop.xlane.xlu1 %1831  ;;  %3131 = vrcp.f32 %v1826_v36 }
 0x64d   : > { %v1365_v2 = vpack.c.bf16 %v1340_v40, %v1339_v26  ;;  %3133 = vrcp.f32 %v1832_v51  ;;  %v3124_v26 = vpop.eup %3123 }
 0x64f   : > { %2774 = vmatprep.mubr.msk.bf16.mxu0 %vm908_vm2, %v1365_v2 }
 0x650   : > { %2775 = vmatmul.mubr.msk.bf16.gmra.mrb[44].mxu0 %vm908_vm2, %v1366_v10  ;;  %v1828_v18 = vpop.xlane.xlu0 %1827  ;;  %v3126_v10 = vpop.eup %3125 }
 0x651   : > { %2826 = vmatprep.mubr.bf16.mxu0 %v1849_v33  ;;  %v1346_v33 = vld [vmem:[#allocation3 + $0x18] sm:$0xff] }
 0x654   : > { %v1830_v29 = vpop.xlane.xlu0 %1829 }
 0x655   : > { %3135 = vrcp.f32 %v1830_v29 }
 0x656   : > { %3137 = vrcp.f32 %v1828_v18 }
 0x658   : > { %2827 = vmatmul.mubr.bf16.vlgmr.msra.gmra.mrb[48].mxu0 %v1850_v22  ;;  %v1343_v22 = vld [vmem:[#allocation3] sm:$0xff]  ;;  %v1834_v63 = vpop.xlane.xlu0 %1833  ;;  %v1836_v49 = vpop.xlane.xlu1 %1835 }
 0x659   : > { %2830 = vmatprep.mubr.bf16.mxu0 %v1851_v50  ;;  %2843 = vmatpush3.bf16.msra.mxu0 %v2994_v6  ;;  %3139 = vrcp.f32 %v1836_v49 }
 0x65c   : > { %v1838_v6 = vpop.xlane.xlu0 %1837 }
 0x660   : > { %2831 = vmatmul.mubr.bf16.gmra.mrb[52].mxu0 %v1852_v47 }
 0x661   : > { %2834 = vmatprep.mubr.bf16.mxu0 %v1853_v57  ;;  %v1350_v57 = vld [vmem:[#allocation3 + $0x38] sm:$0xff] }
 0x668   : > { %2835 = vmatmul.mubr.bf16.gmra.mrb[56].mxu0 %v1854_v30  ;;  %v1349_v30 = vld [vmem:[#allocation3 + $0x30] sm:$0xff] }
 0x669   : > { %2838 = vmatprep.mubr.bf16.mxu0 %v1855_v44  ;;  %v1348_v44 = vld [vmem:[#allocation3 + $0x28] sm:$0xff] }
 0x670   : > { %2839 = vmatmul.mubr.bf16.gmra.mrb[60].mxu0 %v1856_v1  ;;  %v3128_v1 = vpop.eup %3127 }
 0x6e5   : > { %v2764_v32 = vpop.f32.mrb[32].mxu0 }
 0x6e6   : > { %v1498_v56 = vadd.f32 %v2764_v32, %v1345_v53  ;;  %v1433_v61 = vpop.f32.mrb[33].mxu0  ;;  %v1840_v32 = vpop.xlane.xlu1 %1839 }
 0x6e7   : > { %v1496_v47 = vadd.f32 %v1433_v61, %v1343_v22  ;;  %v2765_v48 = vpop.f32.mrb[34].mxu0  ;;  %v3130_v22 = vpop.eup %3129  ;;  %3141 = vrcp.f32 %v1840_v32 }
 0x6e8   : > { %1514 = vst.msk [vmem:[#allocation3 + $0x10] sm:$0xff] %vm411_vm0, %v1498_v56  ;;  %v1499_v50 = vadd.f32 %v2765_v48, %v1346_v33  ;;  %v1436_v28 = vpop.f32.mrb[35].mxu0  ;;  %3143 = vrcp.f32 %v1838_v6 }
 0x6e9   : > { %1512 = vst.msk [vmem:[#allocation3] sm:$0xff] %vm411_vm0, %v1496_v47  ;;  %v1497_v55 = vadd.f32 %v1436_v28, %v1344_v38  ;;  %v3132_v28 = vpop.eup %3131  ;;  %3145 = vrcp.f32 %v1834_v63 }
 0x6ea   : > { %1515 = vst.msk [vmem:[#allocation3 + $0x18] sm:$0xff] %vm411_vm0, %v1499_v50 }
 0x6eb   : > { %1513 = vst.msk [vmem:[#allocation3 + $0x8] sm:$0xff] %vm411_vm0, %v1497_v55  ;;  %v1842_v55 = vpop.xlane.xlu0 %1841 }
 0x6ed   : > { %v2768_v9 = vpop.f32.mrb[36].mxu0 }
 0x6ee   : > { %v1502_v43 = vadd.f32 %v2768_v9, %v1349_v30  ;;  %v1449_v20 = vpop.f32.mrb[37].mxu0  ;;  %v1844_v9 = vpop.xlane.xlu1 %1843 }
 0x6ef   : > { %v1500_v16 = vadd.f32 %v1449_v20, %v1347_v42  ;;  %v2769_v15 = vpop.f32.mrb[38].mxu0  ;;  %v3134_v42 = vpop.eup %3133  ;;  %3147 = vrcp.f32 %v1844_v9 }
 0x6f0   : > { %1518 = vst.msk [vmem:[#allocation3 + $0x30] sm:$0xff] %vm411_vm0, %v1502_v43  ;;  %v1503_v37 = vadd.f32 %v2769_v15, %v1350_v57  ;;  %v1452_v14 = vpop.f32.mrb[39].mxu0  ;;  %v3136_v43 = vpop.eup %3135 }
 0x6f1   : > { %1516 = vst.msk [vmem:[#allocation3 + $0x20] sm:$0xff] %vm411_vm0, %v1500_v16  ;;  %v1501_v3 = vadd.f32 %v1452_v14, %v1348_v44  ;;  %v3138_v44 = vpop.eup %3137  ;;  %v1846_v14 = vpop.xlane.xlu0 %1845 }
 0x6f2   : > { %1519 = vst.msk [vmem:[#allocation3 + $0x38] sm:$0xff] %vm411_vm0, %v1503_v37  ;;  %3149 = vrcp.f32 %v1846_v14 }
 0x6f3   : > { %1517 = vst.msk [vmem:[#allocation3 + $0x28] sm:$0xff] %vm411_vm0, %v1501_v3 }
 0x6f5   : > { %v2772_v21 = vpop.f32.mrb[40].mxu0 }
 0x6f6   : > { %v1506_v58 = vadd.f32 %v2772_v21, %v1353_v19  ;;  %v1465_v60 = vpop.f32.mrb[41].mxu0 }
 0x6f7   : > { %v1504_v24 = vadd.f32 %v1465_v60, %v1351_v52  ;;  %v2773_v25 = vpop.f32.mrb[42].mxu0  ;;  %v1848_v52 = vpop.xlane.xlu1 %1847 }
 0x6f8   : > { %1522 = vst.msk [vmem:[#allocation3 + $0x50] sm:$0xff] %vm411_vm0, %v1506_v58  ;;  %v1507_v27 = vadd.f32 %v2773_v25, %v1354_v41  ;;  %v1468_v0 = vpop.f32.mrb[43].mxu0  ;;  %v3140_v58 = vpop.eup %3139  ;;  %3151 = vrcp.f32 %v1848_v52 }
 0x6f9   : > { %1520 = vst.msk [vmem:[#allocation3 + $0x40] sm:$0xff] %vm411_vm0, %v1504_v24  ;;  %v1505_v31 = vadd.f32 %v1468_v0, %v1352_v8  ;;  %v3142_v8 = vpop.eup %3141  ;;  %3153 = vrcp.f32 %v1842_v55  ;;  %v2017_v55 = vld [vmem:[#allocation3 + $0x38] sm:$0xff] }
 0x6fa   : > { %1523 = vst.msk [vmem:[#allocation3 + $0x58] sm:$0xff] %vm411_vm0, %v1507_v27  ;;  %v3144_v25 = vpop.eup %3143 }
 0x6fb   : > { %1521 = vst.msk [vmem:[#allocation3 + $0x48] sm:$0xff] %vm411_vm0, %v1505_v31  ;;  %v3146_v0 = vpop.eup %3145 }
 0x6fc   : > { %v3148_v29 = vpop.eup %3147 }
 0x723   : > { %v2776_v39 = vpop.f32.mrb[44].mxu0 }
 0x724   : > { %v1510_v5 = vadd.f32 %v2776_v39, %v1357_v17  ;;  %v1481_v45 = vpop.f32.mrb[45].mxu0 }
 0x725   : > { %v1508_v46 = vadd.f32 %v1481_v45, %v1355_v54  ;;  %v2777_v23 = vpop.f32.mrb[46].mxu0  ;;  %v3150_v54 = vpop.eup %3149 }
 0x726   : > { %1526 = vst.msk [vmem:[#allocation3 + $0x70] sm:$0xff] %vm411_vm0, %v1510_v5  ;;  %v1511_v35 = vadd.f32 %v2777_v23, %v1358_v13  ;;  %v1484_v62 = vpop.f32.mrb[47].mxu0  ;;  %v3152_v13 = vpop.eup %3151 }
 0x727   : > { %1524 = vst.msk [vmem:[#allocation3 + $0x60] sm:$0xff] %vm411_vm0, %v1508_v46  ;;  %v1509_v11 = vadd.f32 %v1484_v62, %v1356_v59  ;;  %v3154_v5 = vpop.eup %3153 }
 0x728   : > { %1527 = vst.msk [vmem:[#allocation3 + $0x78] sm:$0xff] %vm411_vm0, %v1511_v35 }
 0x729   : > { %1525 = vst.msk [vmem:[#allocation3 + $0x68] sm:$0xff] %vm411_vm0, %v1509_v11  ;;  %v2012_v11 = vld [vmem:[#allocation3 + $0x10] sm:$0xff] }
 0x72b   : > { %v2828_v40 = vpop.f32.mrb[48].mxu0 }
 0x72c   : > { %v1915_v2 = vpop.f32.mrb[49].mxu0  ;;  %v1996_v33 = vmul.f32 %v3126_v10, %v2828_v40  ;;  %v2010_v40 = vld [vmem:[#allocation3] sm:$0xff] }
 0x72d   : > { %v2829_v53 = vpop.f32.mrb[50].mxu0  ;;  %v1994_v38 = vmul.f32 %v3124_v26, %v1915_v2 }
 0x72e   : > { %v1997_v56 = vmul.f32 %v3128_v1, %v2829_v53  ;;  %v1918_v61 = vpop.f32.mrb[51].mxu0  ;;  %v2013_v1 = vld [vmem:[#allocation3 + $0x18] sm:$0xff] }
 0x72f   : > { %v1995_v47 = vmul.f32 %v3130_v22, %v1918_v61  ;;  %v2011_v22 = vld [vmem:[#allocation3 + $0x8] sm:$0xff] }
 0x730   : > { %v2027_v48 = vpack.c.bf16 %v1997_v56, %v1996_v33  ;;  %v2016_v56 = vld [vmem:[#allocation3 + $0x30] sm:$0xff] }
 0x731   : > { %v2026_v50 = vpack.c.bf16 %v1995_v47, %v1994_v38  ;;  %v2014_v47 = vld [vmem:[#allocation3 + $0x20] sm:$0xff] }
 0x733   : > { %v2832_v30 = vpop.f32.mrb[52].mxu0  ;;  %2844 = vmatprep.mubr.msk.bf16.mxu0 %vm908_vm2, %v2026_v50 }
 0x734   : > { %v1931_v57 = vpop.f32.mrb[53].mxu0  ;;  %2845 = vmatmul.mubr.msk.bf16.vlgmr.msra.gmra.mrb[64].mxu0 %vm908_vm2, %v2027_v48  ;;  %v2000_v16 = vmul.f32 %v3136_v43, %v2832_v30  ;;  %v2015_v43 = vld [vmem:[#allocation3 + $0x28] sm:$0xff] }
 0x735   : > { %v2833_v20 = vpop.f32.mrb[54].mxu0  ;;  %v1998_v3 = vmul.f32 %v3132_v28, %v1931_v57 }
 0x736   : > { %v2001_v15 = vmul.f32 %v3134_v42, %v2833_v20  ;;  %v1934_v37 = vpop.f32.mrb[55].mxu0 }
 0x737   : > { %v1999_v19 = vmul.f32 %v3138_v44, %v1934_v37 }
 0x738   : > { %v2029_v21 = vpack.c.bf16 %v2001_v15, %v2000_v16 }
 0x739   : > { %v2028_v41 = vpack.c.bf16 %v1999_v19, %v1998_v3  ;;  %v2020_v19 = vld [vmem:[#allocation3 + $0x50] sm:$0xff] }
 0x73b   : > { %v2836_v60 = vpop.f32.mrb[56].mxu0  ;;  %2848 = vmatprep.mubr.msk.bf16.mxu0 %vm908_vm2, %v2028_v41  ;;  %v2018_v41 = vld [vmem:[#allocation3 + $0x40] sm:$0xff] }
 0x73c   : > { %v1947_v24 = vpop.f32.mrb[57].mxu0  ;;  %2849 = vmatmul.mubr.msk.bf16.gmra.mrb[68].mxu0 %vm908_vm2, %v2029_v21  ;;  %v2004_v31 = vmul.f32 %v3144_v25, %v2836_v60 }
 0x73d   : > { %v2837_v27 = vpop.f32.mrb[58].mxu0  ;;  %v2002_v34 = vmul.f32 %v3146_v0, %v1947_v24  ;;  %v2021_v24 = vld [vmem:[#allocation3 + $0x58] sm:$0xff] }
 0x73e   : > { %v2005_v4 = vmul.f32 %v3142_v8, %v2837_v27  ;;  %v1950_v12 = vpop.f32.mrb[59].mxu0 }
 0x73f   : > { %v2003_v36 = vmul.f32 %v3140_v58, %v1950_v12 }
 0x740   : > { %v2031_v18 = vpack.c.bf16 %v2005_v4, %v2004_v31  ;;  %v2019_v4 = vld [vmem:[#allocation3 + $0x48] sm:$0xff] }
 0x741   : > { %v2030_v7 = vpack.c.bf16 %v2003_v36, %v2002_v34 }
 0x743   : > { %v2840_v17 = vpop.f32.mrb[60].mxu0  ;;  %2852 = vmatprep.mubr.msk.bf16.mxu0 %vm908_vm2, %v2030_v7 }
 0x744   : > { %v1963_v39 = vpop.f32.mrb[61].mxu0  ;;  %2853 = vmatmul.mubr.msk.bf16.gmra.mrb[72].mxu0 %vm908_vm2, %v2031_v18  ;;  %v2008_v45 = vmul.f32 %v3150_v54, %v2840_v17  ;;  %v2024_v54 = vld [vmem:[#allocation3 + $0x70] sm:$0xff] }
 0x745   : > { %v2841_v51 = vpop.f32.mrb[62].mxu0  ;;  %v2006_v23 = vmul.f32 %v3154_v5, %v1963_v39 }
 0x746   : > { %v2009_v59 = vmul.f32 %v3152_v13, %v2841_v51  ;;  %v1966_v46 = vpop.f32.mrb[63].mxu0  ;;  %v2022_v51 = vld [vmem:[#allocation3 + $0x60] sm:$0xff] }
 0x747   : > { %v2007_v35 = vmul.f32 %v3148_v29, %v1966_v46  ;;  %v2025_v46 = vld [vmem:[#allocation3 + $0x78] sm:$0xff] }
 0x748   : > { %v2033_v62 = vpack.c.bf16 %v2009_v59, %v2008_v45 }
 0x749   : > { %v2032_v63 = vpack.c.bf16 %v2007_v35, %v2006_v23 }
 0x74b   : > { %2856 = vmatprep.mubr.msk.bf16.mxu0 %vm908_vm2, %v2032_v63 }
 0x74c   : > { %2857 = vmatmul.mubr.msk.bf16.gmra.mrb[76].mxu0 %vm908_vm2, %v2033_v62 }
 0x807   : > { %v2846_v49 = vpop.f32.mrb[64].mxu0 }
 0x808   : > { %v2166_v26 = vadd.f32 %v2846_v49, %v2012_v11  ;;  %v2101_v10 = vpop.f32.mrb[65].mxu0  ;;  %v2023_v11 = vld [vmem:[#allocation3 + $0x68] sm:$0xff] }
 0x809   : > { %v2164_v2 = vadd.f32 %v2101_v10, %v2010_v40  ;;  %v2847_v6 = vpop.f32.mrb[66].mxu0 }
 0x80a   : > { %2182 = vst.msk [vmem:[#allocation3 + $0x10] sm:$0xff] %vm411_vm0, %v2166_v26  ;;  %v2167_v53 = vadd.f32 %v2847_v6, %v2013_v1  ;;  %v2104_v32 = vpop.f32.mrb[67].mxu0 }
 0x80b   : > { %2180 = vst.msk [vmem:[#allocation3] sm:$0xff] %vm411_vm0, %v2164_v2  ;;  %v2165_v33 = vadd.f32 %v2104_v32, %v2011_v22 }
 0x80c   : > { %2183 = vst.msk [vmem:[#allocation3 + $0x18] sm:$0xff] %vm411_vm0, %v2167_v53 }
 0x80d   : > { %2181 = vst.msk [vmem:[#allocation3 + $0x8] sm:$0xff] %vm411_vm0, %v2165_v33 }
 0x80f   : > { %v2850_v61 = vpop.f32.mrb[68].mxu0 }
 0x810   : > { %v2170_v38 = vadd.f32 %v2850_v61, %v2016_v56  ;;  %v2117_v48 = vpop.f32.mrb[69].mxu0 }
 0x811   : > { %v2198_v50 = vld [vmem:[#allocation3 + $0x10] sm:$0xff]  ;;  %v2168_v28 = vadd.f32 %v2117_v48, %v2014_v47  ;;  %v2851_v30 = vpop.f32.mrb[70].mxu0 }
 0x812   : > { %v2530_v42 = vpack.c.bf16 %v2198_v50, %v2198_v50  ;;  %v2196_v9 = vld [vmem:[#allocation3] sm:$0xff]  ;;  %2186 = vst.msk [vmem:[#allocation3 + $0x30] sm:$0xff] %vm411_vm0, %v2170_v38  ;;  %v2171_v57 = vadd.f32 %v2851_v30, %v2017_v55  ;;  %v2120_v20 = vpop.f32.mrb[71].mxu0 }
 0x813   : > { %v2528_v44 = vpack.c.bf16 %v2196_v9, %v2196_v9  ;;  %v2199_v16 = vld [vmem:[#allocation3 + $0x18] sm:$0xff]  ;;  %2184 = vst.msk [vmem:[#allocation3 + $0x20] sm:$0xff] %vm411_vm0, %v2168_v28  ;;  %v2169_v15 = vadd.f32 %v2120_v20, %v2015_v43 }
 0x814   : > { %2279 = vst.msk [vmem:[%s4578_s9 + $0x8] sm:$0xf] %vm2276_vm4, %v2530_v42  ;;  %v2531_v37 = vpack.c.bf16 %v2199_v16, %v2199_v16  ;;  %v2197_v14 = vld [vmem:[#allocation3 + $0x8] sm:$0xff] }
 0x815   : > { %2187 = vst.msk [vmem:[#allocation3 + $0x38] sm:$0xff] %vm411_vm0, %v2171_v57  ;;  %v2529_v3 = vpack.c.bf16 %v2197_v14, %v2197_v14  ;;  %2185 = vst.msk [vmem:[#allocation3 + $0x28] sm:$0xff] %vm411_vm0, %v2169_v15 }
 0x816   : > { %2277 = vst.msk [vmem:[%s4578_s9] sm:$0xf] %vm2276_vm4, %v2528_v44  ;;  %2280 = vst.msk [vmem:[%s4578_s9 + $0xc] sm:$0xf] %vm2276_vm4, %v2531_v37 }
 0x817   : > { %2278 = vst.msk [vmem:[%s4578_s9 + $0x4] sm:$0xf] %vm2276_vm4, %v2529_v3  ;;  %v2854_v52 = vpop.f32.mrb[72].mxu0 }
 0x818   : > { %v2174_v21 = vadd.f32 %v2854_v52, %v2020_v19  ;;  %v2133_v58 = vpop.f32.mrb[73].mxu0 }
 0x819   : > { %v2202_v60 = vld [vmem:[#allocation3 + $0x30] sm:$0xff]  ;;  %v2172_v8 = vadd.f32 %v2133_v58, %v2018_v41  ;;  %v2855_v25 = vpop.f32.mrb[74].mxu0 }
 0x81a   : > { %v2534_v27 = vpack.c.bf16 %v2202_v60, %v2202_v60  ;;  %v2200_v0 = vld [vmem:[#allocation3 + $0x20] sm:$0xff]  ;;  %2190 = vst.msk [vmem:[#allocation3 + $0x50] sm:$0xff] %vm411_vm0, %v2174_v21  ;;  %v2175_v31 = vadd.f32 %v2855_v25, %v2021_v24  ;;  %v2136_v12 = vpop.f32.mrb[75].mxu0 }
 0x81b   : > { %v2532_v34 = vpack.c.bf16 %v2200_v0, %v2200_v0  ;;  %2188 = vst.msk [vmem:[#allocation3 + $0x40] sm:$0xff] %vm411_vm0, %v2172_v8  ;;  %v2173_v18 = vadd.f32 %v2136_v12, %v2019_v4 }
 0x81c   : > { %v2203_v36 = vld [vmem:[#allocation3 + $0x38] sm:$0xff]  ;;  %2283 = vst.msk [vmem:[%s4578_s9 + $0x18] sm:$0xf] %vm2276_vm4, %v2534_v27  ;;  %v2201_v29 = vld [vmem:[#allocation3 + $0x28] sm:$0xff] }
 0x81d   : > { %v2535_v7 = vpack.c.bf16 %v2203_v36, %v2203_v36  ;;  %2191 = vst.msk [vmem:[#allocation3 + $0x58] sm:$0xff] %vm411_vm0, %v2175_v31  ;;  %v2533_v17 = vpack.c.bf16 %v2201_v29, %v2201_v29  ;;  %2189 = vst.msk [vmem:[#allocation3 + $0x48] sm:$0xff] %vm411_vm0, %v2173_v18 }
 0x81e   : > { %2281 = vst.msk [vmem:[%s4578_s9 + $0x10] sm:$0xf] %vm2276_vm4, %v2532_v34 }
 0x81f   : > { %2284 = vst.msk [vmem:[%s4578_s9 + $0x1c] sm:$0xf] %vm2276_vm4, %v2535_v7  ;;  %2282 = vst.msk [vmem:[%s4578_s9 + $0x14] sm:$0xf] %vm2276_vm4, %v2533_v17  ;;  %v2858_v39 = vpop.f32.mrb[76].mxu0 }
 0x820   : > { %v2178_v13 = vadd.f32 %v2858_v39, %v2024_v54  ;;  %v2149_v5 = vpop.f32.mrb[77].mxu0 }
 0x821   : > { %v2206_v45 = vld [vmem:[#allocation3 + $0x50] sm:$0xff]  ;;  %v2176_v59 = vadd.f32 %v2149_v5, %v2022_v51  ;;  %v2859_v23 = vpop.f32.mrb[78].mxu0 }
 0x822   : > { %v2538_v35 = vpack.c.bf16 %v2206_v45, %v2206_v45  ;;  %v2204_v62 = vld [vmem:[#allocation3 + $0x40] sm:$0xff]  ;;  %2194 = vst.msk [vmem:[#allocation3 + $0x70] sm:$0xff] %vm411_vm0, %v2178_v13  ;;  %v2179_v63 = vadd.f32 %v2859_v23, %v2025_v46  ;;  %v2152_v49 = vpop.f32.mrb[79].mxu0 }
 0x823   : > { %v2536_v26 = vpack.c.bf16 %v2204_v62, %v2204_v62  ;;  %2192 = vst.msk [vmem:[#allocation3 + $0x60] sm:$0xff] %vm411_vm0, %v2176_v59  ;;  %v2177_v10 = vadd.f32 %v2152_v49, %v2023_v11 }
 0x824   : > { %v2207_v40 = vld [vmem:[#allocation3 + $0x58] sm:$0xff]  ;;  %2287 = vst.msk [vmem:[%s4578_s9 + $0x28] sm:$0xf] %vm2276_vm4, %v2538_v35  ;;  %v2205_v1 = vld [vmem:[#allocation3 + $0x48] sm:$0xff] }
 0x825   : > { %v2539_v2 = vpack.c.bf16 %v2207_v40, %v2207_v40  ;;  %2195 = vst.msk [vmem:[#allocation3 + $0x78] sm:$0xff] %vm411_vm0, %v2179_v63  ;;  %v2537_v6 = vpack.c.bf16 %v2205_v1, %v2205_v1  ;;  %2193 = vst.msk [vmem:[#allocation3 + $0x68] sm:$0xff] %vm411_vm0, %v2177_v10 }
 0x826   : > { %2285 = vst.msk [vmem:[%s4578_s9 + $0x20] sm:$0xf] %vm2276_vm4, %v2536_v26 }
 0x827   : > { %2288 = vst.msk [vmem:[%s4578_s9 + $0x2c] sm:$0xf] %vm2276_vm4, %v2539_v2  ;;  %2286 = vst.msk [vmem:[%s4578_s9 + $0x24] sm:$0xf] %vm2276_vm4, %v2537_v6 }
 0x829   : > { %v2210_v53 = vld [vmem:[#allocation3 + $0x70] sm:$0xff] }
 0x82a   : > { %v2542_v22 = vpack.c.bf16 %v2210_v53, %v2210_v53  ;;  %v2208_v32 = vld [vmem:[#allocation3 + $0x60] sm:$0xff] }
 0x82b   : > { %v2540_v33 = vpack.c.bf16 %v2208_v32, %v2208_v32 }
 0x82c   : > { %v2211_v56 = vld [vmem:[#allocation3 + $0x78] sm:$0xff]  ;;  %2291 = vst.msk [vmem:[%s4578_s9 + $0x38] sm:$0xf] %vm2276_vm4, %v2542_v22  ;;  %v2209_v38 = vld [vmem:[#allocation3 + $0x68] sm:$0xff] }
 0x82d   : > { %v2543_v61 = vpack.c.bf16 %v2211_v56, %v2211_v56  ;;  %2289 = vst.msk [vmem:[%s4578_s9 + $0x30] sm:$0xf] %vm2276_vm4, %v2540_v33  ;;  %v2541_v47 = vpack.c.bf16 %v2209_v38, %v2209_v38 }
 0x82f   : > { %2292 = vst.msk [vmem:[%s4578_s9 + $0x3c] sm:$0xf] %vm2276_vm4, %v2543_v61  ;;  %2290 = vst.msk [vmem:[%s4578_s9 + $0x34] sm:$0xf] %vm2276_vm4, %v2541_v47 }
 0x830   : > { %3366 = shalt.err (!%p3363_p8)
}
 0x831   : > { %s3367_s22 = scalar_lea.hbm %s4621_s19, 1024  ;;  %s3371_s13 = scalar_lea.hbm %s4682_s7, 2048 }
 0x832   : > { %p3368_p10 = scmp.ne.s32.totalorder %s4621_s19, %s3367_s22  ;;  %p3372_p0 = scmp.lt.u32.totalorder %s4621_s19, %s4682_s7 }
 0x833   : > { %p3373_p5 = scmp.lt.u32.totalorder %s3371_s13, %s3367_s22  ;;  %p3375_p6 = scmp.lt.u32.totalorder %s3367_s22, %s4621_s19 }
 0x834   : > { %p3369_p11 = pnand %p3368_p10, %p4704_p9 }
 0x835   : > { %p3374_p7 = por %p3373_p5, %p3372_p0 }
 0x836   : > { %p3370_p12 = pneg %p3369_p11 }
 0x837   : > { %p3376_p4 = por %p3375_p6, %p3374_p7 }
 0x839   : > { %p3377_p13 = pnand %p3376_p4, %p3370_p12 }
 0x83b   : > { %3380 = shalt.err (!%p3377_p13)
}
 0x83c   : > { %s3448_s18 = smov 4  }
 0x83d   : > { %2902 = dma.vmem_to_hbm [thread:$0]  (%p4704_p9), %s4625_s12, 1024, %s4621_s19, %s2294_s30, %s3445_s14, %s3445_s14, %s3448_s18  }
 0x83e PF: > { %s2322_s15 = sand.u32 1, %s3419_s24   ;;  %p4705_p1 = scmp.ne.s32.totalorder %s4694_s20, 0 }
 0x83f   : > { %p4706_p3 = scmp.ge.s32.totalorder %s3431_s27, 2  ;;  %s2323_s8 = scalar_lea.sflag [#allocation6], %s2322_s15 }
 0x841   : > { %p2928_p2 = pnand %p4706_p3, %p4705_p1 }
 0x843   : > { %3414 = dma.done.wait (!%p2928_p2), %s2323_s8, 1024  }
 0x844   : > { %3416 = vsyncadd (!%p2928_p2), %s2323_s8, 4294966272  ;;  %p23_p8 = scmp.ge.s32.totalorder %s3672_s11, 4   ;;  %s4707_s24 = smov %s3423_s25 }
 0x845   : > { %s4708_s25 = smov %s3427_s26  ;;  %s4709_s26 = smov %s3683_s16 }
 0x846   : > { %s4710_s27 = smov %s3672_s11  ;;  %25 = sbr.rel (!%p23_p8) target bundleno = 8 (0x8), region = 118 }
 0x84d   :  { %2328 = vsyncpa [#allocation5], 1 }
 0x84e   :  { %2330 = vsyncpa [#allocation5 + $0x1], 1 }
 0x84f   :  { %2331 = vsyncpa [#allocation8], 1 }
 0x850   :  { %2332 = vsyncpa [#allocation11], 1 }
 0x851   :  { %2333 = vsyncpa [#allocation14], 1 }
 0x852   :  { %2334 = vsyncpa [#allocation6], 1 }
 0x853   :  { %2336 = vsyncpa [#allocation6 + $0x1], 1 }

// kernel: supvit_forward.8
= control target key start
LH: loop header
LB: loop body
LE: loop exit
PB: predicated region body
PF: predicated region fallthrough
CT: control target
= control target key end

     0   :  { %12 = vsyncpa [#allocation5], 0  ;;  %s3566_s0 = inlined_call_operand.hbm [shape: bf16[256,32], index: 0, kind: input, shape index: {}]   ;;  %s3567_s1 = inlined_call_operand.hbm [shape: f32[1,32], index: 1, kind: input, shape index: {}]   ;;  %s3568_s2 = inlined_call_operand.hbm [shape: f32[1,32], index: 2, kind: input, shape index: {}]   ;;  %s3569_s3 = inlined_call_operand.hbm [shape: bf16[32,128], index: 3, kind: input, shape index: {}]   ;;  %s3570_s4 = inlined_call_operand.hbm [shape: f32[1,128], index: 4, kind: input, shape index: {}]   ;;  %s3571_s5 = inlined_call_operand.hbm [shape: bf16[128,32], index: 5, kind: input, shape index: {}]   ;;  %s3572_s6 = inlined_call_operand.hbm [shape: f32[1,32], index: 6, kind: input, shape index: {}]   ;;  %s3573_s7 = inlined_call_operand.hbm [shape: bf16[256,32], index: 7, kind: output, shape index: {}]  }
   0x1   :  { %13 = vsyncpa [#allocation8], 0 }
   0x2   :  { %14 = vsyncpa [#allocation11], 0 }
   0x3   :  { %15 = vsyncpa [#allocation14], 0 }
   0x4   :  { %16 = vsyncpa [#allocation6], 0  ;;  %s2521_s24 = smov [#allocation7]   ;;  %s2335_s28 = scalar_lea.hbm %s3567_s1, 16 }
   0x5   :  { %s35_s25 = sshll.u32 %s2521_s24, 4  ;;  %p2336_p0 = scmp.ne.s32.totalorder %s3567_s1, %s2335_s28  ;;  %s36_s25 = int_to_ptr.vmem [resolvable:$true] %s35_s25 }
   0x6   :  { %p2339_p1 = scmp.lt.u32.totalorder %s2335_s28, %s3567_s1 }
   0x8   :  { %p2341_p2 = pnand %p2339_p1, %p2336_p0 }
   0xa   :  { %2344 = shalt.err (!%p2341_p2)
}
   0xb   :  { %s2345_s10 = scalar_lea.vmem %s36_s25, 16  ;;  %s2349_s11 = scalar_lea.vmem %s36_s25, 32 }
   0xc   :  { %p2346_p3 = scmp.ne.s32.totalorder %s36_s25, %s2345_s10  ;;  %p2350_p4 = scmp.lt.s32.totalorder %s36_s25, %s36_s25 }
   0xd   :  { %p2351_p5 = scmp.lt.s32.totalorder %s2349_s11, %s2345_s10 }
   0xf   :  { %p2352_p6 = por %p2351_p5, %p2350_p4 }
  0x11   :  { %p2353_p7 = pnand %p2352_p6, %p2346_p3 }
  0x13   :  { %2356 = shalt.err (!%p2353_p7)
}
  0x14   :  { %38 = dma.hbm_to_vmem [thread:$0]  %s3567_s1, 16, %s36_s25, [#allocation8]  }
  0x15   :  { %s2522_s14 = smov [#allocation10]   ;;  %s2523_s16 = smov [#allocation13]  }
  0x16   :  { %s54_s15 = sshll.u32 %s2522_s14, 4  ;;  %s76_s17 = sshll.u32 %s2523_s16, 4  ;;  %s55_s15 = int_to_ptr.vmem [resolvable:$true] %s54_s15  ;;  %s77_s17 = int_to_ptr.vmem [resolvable:$true] %s76_s17 }
  0x17   :  { %s2357_s20 = scalar_lea.hbm %s3569_s3, 256 }
  0x18   :  { %p2358_p8 = scmp.ne.s32.totalorder %s3569_s3, %s2357_s20  ;;  %p2361_p9 = scmp.lt.u32.totalorder %s2357_s20, %s3569_s3 }
  0x1a   :  { %p2363_p10 = pnand %p2361_p9, %p2358_p8 }
  0x1c   :  { %2366 = shalt.err (!%p2363_p10)
}
  0x1d   :  { %s2367_s1 = scalar_lea.vmem %s55_s15, 256  ;;  %p2372_p12 = scmp.lt.s32.totalorder %s55_s15, %s55_s15 }
  0x1e   :  { %p2368_p11 = scmp.ne.s32.totalorder %s55_s15, %s2367_s1  ;;  %p2373_p13 = scmp.lt.s32.totalorder %s2367_s1, %s2367_s1 }
  0x20   :  { %p2374_p0 = por %p2373_p13, %p2372_p12 }
  0x22   :  { %p2375_p1 = pnand %p2374_p0, %p2368_p11 }
  0x24   :  { %2378 = shalt.err (!%p2375_p1)
}
  0x25   :  { %s2524_s25 = smov 64   ;;  %s2525_s26 = smov 4  }
  0x26   :  { %60 = dma.hbm_to_vmem [thread:$0]  %s3569_s3, 256, %s55_s15, [#allocation11], %s2524_s25, %s2524_s25, %s2525_s26  }
  0x27   :  { %s2379_s8 = scalar_lea.hbm %s3571_s5, 1024 }
  0x28   :  { %p2380_p2 = scmp.ne.s32.totalorder %s3571_s5, %s2379_s8  ;;  %p2383_p3 = scmp.lt.u32.totalorder %s2379_s8, %s3571_s5 }
  0x2a   :  { %p2385_p4 = pnand %p2383_p3, %p2380_p2 }
  0x2c   :  { %2388 = shalt.err (!%p2385_p4)
}
  0x2d   :  { %s2389_s13 = scalar_lea.vmem %s77_s17, 1024  ;;  %p2394_p6 = scmp.lt.s32.totalorder %s77_s17, %s77_s17 }
  0x2e   :  { %p2390_p5 = scmp.ne.s32.totalorder %s77_s17, %s2389_s13  ;;  %p2395_p7 = scmp.lt.s32.totalorder %s2389_s13, %s2389_s13 }
  0x30   :  { %p2396_p8 = por %p2395_p7, %p2394_p6 }
  0x32   :  { %p2397_p9 = pnand %p2396_p8, %p2390_p5 }
  0x34   :  { %2400 = shalt.err (!%p2397_p9)
}
  0x35   :  { %82 = dma.hbm_to_vmem [thread:$0]  %s3571_s5, 1024, %s77_s17, [#allocation14], %s2524_s25, %s2524_s25, %s2525_s26  }
  0x36   :  { %s2526_s15 = smov [#allocation4]   ;;  %s2527_s18 = smov [#allocation9]  }
  0x37   :  { %s22_s16 = sshll.u32 %s2526_s15, 4  ;;  %s45_s19 = sshll.u32 %s2527_s18, 4  ;;  %s23_s16 = int_to_ptr.vmem [resolvable:$true] %s22_s16  ;;  %s46_s19 = int_to_ptr.vmem [resolvable:$true] %s45_s19 }
  0x38   :  { %s2401_s22 = scalar_lea.hbm %s3566_s0, 2048 }
  0x39   :  { %p2402_p10 = scmp.ne.s32.totalorder %s3566_s0, %s2401_s22  ;;  %p2405_p11 = scmp.lt.u32.totalorder %s2401_s22, %s3566_s0 }
  0x3b   :  { %p2407_p12 = pnand %p2405_p11, %p2402_p10 }
  0x3d   :  { %2410 = shalt.err (!%p2407_p12)
}
  0x3e   :  { %s2411_s5 = scalar_lea.vmem %s23_s16, 2048  ;;  %p2416_p0 = scmp.lt.s32.totalorder %s23_s16, %s23_s16 }
  0x3f   :  { %p2412_p13 = scmp.ne.s32.totalorder %s23_s16, %s2411_s5  ;;  %p2417_p1 = scmp.lt.s32.totalorder %s2411_s5, %s2411_s5 }
  0x41   :  { %p2418_p2 = por %p2417_p1, %p2416_p0 }
  0x43   :  { %p2419_p3 = pnand %p2418_p2, %p2412_p13 }
  0x45   :  { %2422 = shalt.err (!%p2419_p3)
}
  0x46   :  { %28 = dma.hbm_to_vmem [thread:$0]  %s3566_s0, 2048, %s23_s16, [#allocation5], %s2524_s25, %s2524_s25, %s2525_s26  }
  0x47   :  { %s2423_s8 = scalar_lea.hbm %s3568_s2, 16 }
  0x48   :  { %p2424_p4 = scmp.ne.s32.totalorder %s3568_s2, %s2423_s8  ;;  %p2427_p5 = scmp.lt.u32.totalorder %s2423_s8, %s3568_s2 }
  0x4a   :  { %p2429_p6 = pnand %p2427_p5, %p2424_p4 }
  0x4c   :  { %2432 = shalt.err (!%p2429_p6)
}
  0x4d   :  { %s2433_s13 = scalar_lea.vmem %s46_s19, 16  ;;  %s2437_s3 = scalar_lea.vmem %s46_s19, 32 }
  0x4e   :  { %p2434_p7 = scmp.ne.s32.totalorder %s46_s19, %s2433_s13  ;;  %p2438_p8 = scmp.lt.s32.totalorder %s46_s19, %s46_s19 }
  0x4f   :  { %p2439_p9 = scmp.lt.s32.totalorder %s2437_s3, %s2433_s13 }
  0x51   :  { %p2440_p10 = por %p2439_p9, %p2438_p8 }
  0x53   :  { %p2441_p11 = pnand %p2440_p10, %p2434_p7 }
  0x55   :  { %2444 = shalt.err (!%p2441_p11)
}
  0x56   :  { %48 = dma.hbm_to_vmem [thread:$0]  %s3568_s2, 16, %s46_s19, [#allocation8]  }
  0x57   :  { %s2528_s15 = smov [#allocation12]   ;;  %s2529_s18 = smov [#allocation15]  }
  0x58   :  { %s67_s16 = sshll.u32 %s2528_s15, 4  ;;  %s89_s20 = sshll.u32 %s2529_s18, 4  ;;  %s68_s16 = int_to_ptr.vmem [resolvable:$true] %s67_s16  ;;  %s90_s20 = int_to_ptr.vmem [resolvable:$true] %s89_s20 }
  0x59   :  { %s2445_s23 = scalar_lea.hbm %s3570_s4, 16 }
  0x5a   :  { %p2446_p12 = scmp.ne.s32.totalorder %s3570_s4, %s2445_s23  ;;  %p2449_p13 = scmp.lt.u32.totalorder %s2445_s23, %s3570_s4 }
  0x5c   :  { %p2451_p0 = pnand %p2449_p13, %p2446_p12 }
  0x5e   :  { %2454 = shalt.err (!%p2451_p0)
}
  0x5f   :  { %s2455_s2 = scalar_lea.vmem %s68_s16, 16  ;;  %s2459_s19 = scalar_lea.vmem %s68_s16, 32 }
  0x60   :  { %p2456_p1 = scmp.ne.s32.totalorder %s68_s16, %s2455_s2  ;;  %p2460_p2 = scmp.lt.s32.totalorder %s68_s16, %s68_s16 }
  0x61   :  { %p2461_p3 = scmp.lt.s32.totalorder %s2459_s19, %s2455_s2 }
  0x63   :  { %p2462_p4 = por %p2461_p3, %p2460_p2 }
  0x65   :  { %p2463_p5 = pnand %p2462_p4, %p2456_p1 }
  0x67   :  { %2466 = shalt.err (!%p2463_p5)
}
  0x68   :  { %70 = dma.hbm_to_vmem [thread:$0]  %s3570_s4, 16, %s68_s16, [#allocation11]  }
  0x69   :  { %s2467_s8 = scalar_lea.hbm %s3572_s6, 16 }
  0x6a   :  { %p2468_p6 = scmp.ne.s32.totalorder %s3572_s6, %s2467_s8  ;;  %p2471_p7 = scmp.lt.u32.totalorder %s2467_s8, %s3572_s6 }
  0x6c   :  { %p2473_p8 = pnand %p2471_p7, %p2468_p6 }
  0x6e   :  { %2476 = shalt.err (!%p2473_p8)
}
  0x6f   :  { %s2477_s13 = scalar_lea.vmem %s90_s20, 16  ;;  %s2481_s3 = scalar_lea.vmem %s90_s20, 32 }
  0x70   :  { %p2478_p9 = scmp.ne.s32.totalorder %s90_s20, %s2477_s13  ;;  %p2482_p10 = scmp.lt.s32.totalorder %s90_s20, %s90_s20 }
  0x71   :  { %p2483_p11 = scmp.lt.s32.totalorder %s2481_s3, %s2477_s13 }
  0x73   :  { %p2484_p12 = por %p2483_p11, %p2482_p10 }
  0x75   :  { %p2485_p13 = pnand %p2484_p12, %p2478_p9 }
  0x77   :  { %2488 = shalt.err (!%p2485_p13)
}
  0x78   :  { %92 = dma.hbm_to_vmem [thread:$0]  %s3572_s6, 16, %s90_s20, [#allocation14]  }
  0x79   :  { %2511 = dma.done.wait [#allocation5], 2048  }
  0x7a   :  { %2512 = vsyncadd [#allocation5], 4294965248 }
  0x7b   :  { %2513 = dma.done.wait [#allocation8], 32  }
  0x7c   :  { %2514 = vsyncadd [#allocation8], 4294967264 }
  0x7d   :  { %2515 = dma.done.wait [#allocation11], 272  }
  0x7e   :  { %2516 = vsyncadd [#allocation11], 4294967024 }
  0x7f   :  { %2517 = dma.done.wait [#allocation14], 1040  }
  0x80   :  { %2518 = vsyncadd [#allocation14], 4294966256  ;;  %v1967_v0 = vld [vmem:[#allocation4] sm:$0xff]   ;;  %vm185_vm0 = vcmask 261120   ;;  %v2664_v1 = vld [vmem:[#allocation15] ss:$0 sm:$0xff] }
  0x81   :  { %v2030_v2 = vld [vmem:[#allocation4 + $0x8] sm:$0xff]   ;;  %v2666_v3 = vunpack.c.l.bf16 %v1967_v0  ;;  %v2670_v5 = vunpack.c.h.bf16 %v1967_v0  ;;  %v2031_v7 = vld [vmem:[#allocation4 + $0x10] sm:$0xff]   ;;  %v2032_v8 = vld [vmem:[#allocation4 + $0x18] sm:$0xff]   ;;  %vm1819_vm1 = vcmask 257024   ;;  %s2530_s6 = smov [#allocation16]  }
  0x82   :  { %v2668_v4 = vunpack.c.l.bf16 %v2030_v2  ;;  %v2672_v6 = vunpack.c.h.bf16 %v2030_v2  ;;  %v2674_v9 = vunpack.c.l.bf16 %v2031_v7  ;;  %v2676_v10 = vunpack.c.h.bf16 %v2031_v7  ;;  %v2033_v19 = vld [vmem:[#allocation4 + $0x20] sm:$0xff]   ;;  %v2034_v20 = vld [vmem:[#allocation4 + $0x28] sm:$0xff]   ;;  %v2035_v25 = vld [vmem:[#allocation4 + $0x30] sm:$0xff]   ;;  %s1857_s14 = sshll.u32 %s2530_s6, 4  ;;  %s1858_s14 = int_to_ptr.vmem [resolvable:$true] %s1857_s14 }
  0x83   :  { %v186_v11 = vsel %vm185_vm0, %v2666_v3, 0.0  ;;  %v718_v12 = vadd.f32 %v2666_v3, %v2664_v1  ;;  %v719_v15 = vadd.f32 %v2670_v5, %v2664_v1  ;;  %v2690_v17 = vunpack.c.l.bf16 %v2032_v8  ;;  %v2036_v26 = vld [vmem:[#allocation4 + $0x38] sm:$0xff]   ;;  %v2037_v35 = vld [vmem:[#allocation4 + $0x40] sm:$0xff]   ;;  %v2038_v40 = vld [vmem:[#allocation4 + $0x48] sm:$0xff]   ;;  %s2489_s15 = scalar_lea.vmem %s1858_s14, 2048  ;;  %p2494_p1 = scmp.lt.s32.totalorder %s1858_s14, %s1858_s14 }
  0x84   :  { %v192_v13 = vsel %vm185_vm0, %v2668_v4, 0.0  ;;  %v720_v14 = vadd.f32 %v2668_v4, %v2664_v1  ;;  %187 = vadd.xlane.f32.xlu0 %v186_v11  ;;  %v721_v16 = vadd.f32 %v2672_v6, %v2664_v1  ;;  %v2692_v18 = vunpack.c.h.bf16 %v2032_v8  ;;  %v2039_v45 = vld [vmem:[#allocation4 + $0x50] sm:$0xff]   ;;  %v2040_v48 = vld [vmem:[#allocation4 + $0x58] sm:$0xff]   ;;  %v2041_v2 = vld [vmem:[#allocation4 + $0x60] sm:$0xff]   ;;  %p2490_p0 = scmp.ne.s32.totalorder %s1858_s14, %s2489_s15  ;;  %p2495_p2 = scmp.lt.s32.totalorder %s2489_s15, %s2489_s15 }
  0x85   :  { %193 = vadd.xlane.f32.xlu1 %v192_v13  ;;  %750 = vst.msk [vmem:[#allocation3] sm:$0xff] %vm185_vm0, %v718_v12  ;;  %v189_v21 = vsel %vm185_vm0, %v2670_v5, 0.0  ;;  %v195_v22 = vsel %vm185_vm0, %v2672_v6, 0.0  ;;  %v722_v23 = vadd.f32 %v2674_v9, %v2664_v1  ;;  %v723_v24 = vadd.f32 %v2676_v10, %v2664_v1  ;;  %751 = vst.msk [vmem:[#allocation3 + $0x8] sm:$0xff] %vm185_vm0, %v719_v15  ;;  %v2042_v13 = vld [vmem:[#allocation4 + $0x68] sm:$0xff]  }
  0x86   :  { %752 = vst.msk [vmem:[#allocation3 + $0x10] sm:$0xff] %vm185_vm0, %v720_v14  ;;  %753 = vst.msk [vmem:[#allocation3 + $0x18] sm:$0xff] %vm185_vm0, %v721_v16  ;;  %v198_v27 = vsel %vm185_vm0, %v2674_v9, 0.0  ;;  %v201_v28 = vsel %vm185_vm0, %v2676_v10, 0.0  ;;  %v724_v29 = vadd.f32 %v2690_v17, %v2664_v1  ;;  %v725_v30 = vadd.f32 %v2692_v18, %v2664_v1  ;;  %v2043_v16 = vld [vmem:[#allocation4 + $0x70] sm:$0xff]   ;;  %p2496_p3 = por %p2495_p2, %p2494_p1 }
  0x87   :  { %754 = vst.msk [vmem:[#allocation3 + $0x20] sm:$0xff] %vm185_vm0, %v722_v23  ;;  %755 = vst.msk [vmem:[#allocation3 + $0x28] sm:$0xff] %vm185_vm0, %v723_v24  ;;  %v2716_v31 = vunpack.c.l.bf16 %v2033_v19  ;;  %v2718_v32 = vunpack.c.h.bf16 %v2033_v19  ;;  %v2722_v33 = vunpack.c.l.bf16 %v2034_v20  ;;  %v2724_v34 = vunpack.c.h.bf16 %v2034_v20 }
  0x88   :  { %190 = vadd.xlane.f32.xlu0 %v189_v21  ;;  %756 = vst.msk [vmem:[#allocation3 + $0x30] sm:$0xff] %vm185_vm0, %v724_v29  ;;  %757 = vst.msk [vmem:[#allocation3 + $0x38] sm:$0xff] %vm185_vm0, %v725_v30  ;;  %v2730_v38 = vunpack.c.l.bf16 %v2035_v25  ;;  %v2732_v39 = vunpack.c.h.bf16 %v2035_v25  ;;  %v2738_v43 = vunpack.c.l.bf16 %v2036_v26  ;;  %v2740_v44 = vunpack.c.h.bf16 %v2036_v26  ;;  %v2044_v21 = vld [vmem:[#allocation4 + $0x78] sm:$0xff]   ;;  %p2497_p4 = pnand %p2496_p3, %p2490_p0 }
  0x89   :  { %196 = vadd.xlane.f32.xlu1 %v195_v22  ;;  %v726_v36 = vadd.f32 %v2716_v31, %v2664_v1  ;;  %v727_v37 = vadd.f32 %v2718_v32, %v2664_v1  ;;  %v728_v41 = vadd.f32 %v2722_v33, %v2664_v1  ;;  %v729_v42 = vadd.f32 %v2724_v34, %v2664_v1 }
  0x8a   :  { %v730_v46 = vadd.f32 %v2730_v38, %v2664_v1  ;;  %v731_v47 = vadd.f32 %v2732_v39, %v2664_v1  ;;  %v204_v49 = vsel %vm185_vm0, %v2690_v17, 0.0  ;;  %v207_v50 = vsel %vm185_vm0, %v2692_v18, 0.0 }
  0x8b   :  { %758 = vst.msk [vmem:[#allocation3 + $0x40] sm:$0xff] %vm185_vm0, %v726_v36  ;;  %759 = vst.msk [vmem:[#allocation3 + $0x48] sm:$0xff] %vm185_vm0, %v727_v37  ;;  %v732_v51 = vadd.f32 %v2738_v43, %v2664_v1  ;;  %v733_v52 = vadd.f32 %v2740_v44, %v2664_v1  ;;  %v2760_v53 = vunpack.c.l.bf16 %v2037_v35  ;;  %v2762_v54 = vunpack.c.h.bf16 %v2037_v35 }
  0x8c   :  { %199 = vadd.xlane.f32.xlu0 %v198_v27  ;;  %760 = vst.msk [vmem:[#allocation3 + $0x50] sm:$0xff] %vm185_vm0, %v728_v41  ;;  %761 = vst.msk [vmem:[#allocation3 + $0x58] sm:$0xff] %vm185_vm0, %v729_v42  ;;  %v2766_v55 = vunpack.c.l.bf16 %v2038_v40  ;;  %v2768_v56 = vunpack.c.h.bf16 %v2038_v40  ;;  %v2774_v59 = vunpack.c.l.bf16 %v2039_v45  ;;  %v2776_v60 = vunpack.c.h.bf16 %v2039_v45 }
  0x8d   :  { %202 = vadd.xlane.f32.xlu1 %v201_v28  ;;  %762 = vst.msk [vmem:[#allocation3 + $0x60] sm:$0xff] %vm185_vm0, %v730_v46  ;;  %763 = vst.msk [vmem:[#allocation3 + $0x68] sm:$0xff] %vm185_vm0, %v731_v47  ;;  %v734_v57 = vadd.f32 %v2760_v53, %v2664_v1  ;;  %v735_v58 = vadd.f32 %v2762_v54, %v2664_v1  ;;  %v2782_v63 = vunpack.c.l.bf16 %v2040_v48  ;;  %v2784_v0 = vunpack.c.h.bf16 %v2040_v48 }
  0x8e   :  { %764 = vst.msk [vmem:[#allocation3 + $0x70] sm:$0xff] %vm185_vm0, %v732_v51  ;;  %765 = vst.msk [vmem:[#allocation3 + $0x78] sm:$0xff] %vm185_vm0, %v733_v52  ;;  %v736_v61 = vadd.f32 %v2766_v55, %v2664_v1  ;;  %v737_v62 = vadd.f32 %v2768_v56, %v2664_v1  ;;  %v210_v7 = vsel %vm185_vm0, %v2716_v31, 0.0  ;;  %v213_v8 = vsel %vm185_vm0, %v2718_v32, 0.0 }
  0x8f   :  { %766 = vst.msk [vmem:[#allocation3 + $0x80] sm:$0xff] %vm185_vm0, %v734_v57  ;;  %767 = vst.msk [vmem:[#allocation3 + $0x88] sm:$0xff] %vm185_vm0, %v735_v58  ;;  %v738_v11 = vadd.f32 %v2774_v59, %v2664_v1  ;;  %v739_v12 = vadd.f32 %v2776_v60, %v2664_v1  ;;  %v740_v14 = vadd.f32 %v2782_v63, %v2664_v1  ;;  %v2804_v19 = vunpack.c.l.bf16 %v2041_v2 }
  0x90   :  { %205 = vadd.xlane.f32.xlu0 %v204_v49  ;;  %768 = vst.msk [vmem:[#allocation3 + $0x90] sm:$0xff] %vm185_vm0, %v736_v61  ;;  %769 = vst.msk [vmem:[#allocation3 + $0x98] sm:$0xff] %vm185_vm0, %v737_v62  ;;  %v741_v15 = vadd.f32 %v2784_v0, %v2664_v1  ;;  %v2806_v20 = vunpack.c.h.bf16 %v2041_v2  ;;  %v216_v22 = vsel %vm185_vm0, %v2722_v33, 0.0  ;;  %v219_v23 = vsel %vm185_vm0, %v2724_v34, 0.0 }
  0x91   :  { %208 = vadd.xlane.f32.xlu1 %v207_v50  ;;  %770 = vst.msk [vmem:[#allocation3 + $0xa0] sm:$0xff] %vm185_vm0, %v738_v11  ;;  %771 = vst.msk [vmem:[#allocation3 + $0xa8] sm:$0xff] %vm185_vm0, %v739_v12  ;;  %v2814_v24 = vunpack.c.l.bf16 %v2042_v13  ;;  %v2816_v25 = vunpack.c.h.bf16 %v2042_v13  ;;  %v742_v26 = vadd.f32 %v2804_v19, %v2664_v1  ;;  %v2822_v28 = vunpack.c.l.bf16 %v2043_v16 }
  0x92   :  { %772 = vst.msk [vmem:[#allocation3 + $0xb0] sm:$0xff] %vm185_vm0, %v740_v14  ;;  %773 = vst.msk [vmem:[#allocation3 + $0xb8] sm:$0xff] %vm185_vm0, %v741_v15  ;;  %v743_v27 = vadd.f32 %v2806_v20, %v2664_v1  ;;  %v2824_v29 = vunpack.c.h.bf16 %v2043_v16  ;;  %v2830_v36 = vunpack.c.l.bf16 %v2044_v21  ;;  %v2832_v37 = vunpack.c.h.bf16 %v2044_v21 }
  0x93   :  { %v744_v30 = vadd.f32 %v2814_v24, %v2664_v1  ;;  %v745_v35 = vadd.f32 %v2816_v25, %v2664_v1  ;;  %774 = vst.msk [vmem:[#allocation3 + $0xc0] sm:$0xff] %vm185_vm0, %v742_v26  ;;  %v746_v40 = vadd.f32 %v2822_v28, %v2664_v1  ;;  %v222_v46 = vsel %vm185_vm0, %v2730_v38, 0.0 }
  0x94   :  { %211 = vadd.xlane.f32.xlu0 %v210_v7  ;;  %775 = vst.msk [vmem:[#allocation3 + $0xc8] sm:$0xff] %vm185_vm0, %v743_v27  ;;  %v747_v41 = vadd.f32 %v2824_v29, %v2664_v1  ;;  %v748_v42 = vadd.f32 %v2830_v36, %v2664_v1  ;;  %v749_v45 = vadd.f32 %v2832_v37, %v2664_v1  ;;  %v225_v47 = vsel %vm185_vm0, %v2732_v39, 0.0 }
  0x95   :  { %214 = vadd.xlane.f32.xlu1 %v213_v8  ;;  %776 = vst.msk [vmem:[#allocation3 + $0xd0] sm:$0xff] %vm185_vm0, %v744_v30  ;;  %777 = vst.msk [vmem:[#allocation3 + $0xd8] sm:$0xff] %vm185_vm0, %v745_v35  ;;  %v228_v48 = vsel %vm185_vm0, %v2738_v43, 0.0  ;;  %v231_v1 = vsel %vm185_vm0, %v2740_v44, 0.0  ;;  %v234_v49 = vsel %vm185_vm0, %v2760_v53, 0.0  ;;  %v237_v50 = vsel %vm185_vm0, %v2762_v54, 0.0 }
  0x96   :  { %778 = vst.msk [vmem:[#allocation3 + $0xe0] sm:$0xff] %vm185_vm0, %v746_v40  ;;  %779 = vst.msk [vmem:[#allocation3 + $0xe8] sm:$0xff] %vm185_vm0, %v747_v41  ;;  %v240_v51 = vsel %vm185_vm0, %v2766_v55, 0.0  ;;  %v243_v52 = vsel %vm185_vm0, %v2768_v56, 0.0  ;;  %v246_v57 = vsel %vm185_vm0, %v2774_v59, 0.0  ;;  %v249_v58 = vsel %vm185_vm0, %v2776_v60, 0.0 }
  0x97   :  { %780 = vst.msk [vmem:[#allocation3 + $0xf0] sm:$0xff] %vm185_vm0, %v748_v42  ;;  %781 = vst.msk [vmem:[#allocation3 + $0xf8] sm:$0xff] %vm185_vm0, %v749_v45  ;;  %v252_v61 = vsel %vm185_vm0, %v2782_v63, 0.0  ;;  %v255_v62 = vsel %vm185_vm0, %v2784_v0, 0.0  ;;  %v258_v2 = vsel %vm185_vm0, %v2804_v19, 0.0  ;;  %v261_v7 = vsel %vm185_vm0, %v2806_v20, 0.0 }
  0x98   :  { %217 = vadd.xlane.f32.xlu0 %v216_v22  ;;  %v264_v8 = vsel %vm185_vm0, %v2814_v24, 0.0  ;;  %v267_v11 = vsel %vm185_vm0, %v2816_v25, 0.0  ;;  %v270_v12 = vsel %vm185_vm0, %v2822_v28, 0.0  ;;  %v273_v13 = vsel %vm185_vm0, %v2824_v29, 0.0 }
  0x99   :  { %220 = vadd.xlane.f32.xlu1 %v219_v23  ;;  %v276_v14 = vsel %vm185_vm0, %v2830_v36, 0.0  ;;  %v279_v15 = vsel %vm185_vm0, %v2832_v37, 0.0 }
  0x9c   :  { %223 = vadd.xlane.f32.xlu0 %v222_v46 }
  0x9d   :  { %226 = vadd.xlane.f32.xlu1 %v225_v47 }
  0xa0   :  { %229 = vadd.xlane.f32.xlu0 %v228_v48 }
  0xa1   :  { %232 = vadd.xlane.f32.xlu1 %v231_v1 }
  0xa4   :  { %235 = vadd.xlane.f32.xlu0 %v234_v49 }
  0xa5   :  { %238 = vadd.xlane.f32.xlu1 %v237_v50 }
  0xa8   :  { %241 = vadd.xlane.f32.xlu0 %v240_v51 }
  0xa9   :  { %244 = vadd.xlane.f32.xlu1 %v243_v52 }
  0xac   :  { %247 = vadd.xlane.f32.xlu0 %v246_v57 }
  0xad   :  { %250 = vadd.xlane.f32.xlu1 %v249_v58 }
  0xb0   :  { %253 = vadd.xlane.f32.xlu0 %v252_v61 }
  0xb1   :  { %256 = vadd.xlane.f32.xlu1 %v255_v62 }
  0xb4   :  { %259 = vadd.xlane.f32.xlu0 %v258_v2 }
  0xb5   :  { %262 = vadd.xlane.f32.xlu1 %v261_v7 }
  0xb8   :  { %265 = vadd.xlane.f32.xlu0 %v264_v8 }
  0xb9   :  { %268 = vadd.xlane.f32.xlu1 %v267_v11 }
  0xbc   :  { %271 = vadd.xlane.f32.xlu0 %v270_v12 }
  0xbd   :  { %274 = vadd.xlane.f32.xlu1 %v273_v13 }
  0xc0   :  { %277 = vadd.xlane.f32.xlu0 %v276_v14 }
  0xc1   :  { %280 = vadd.xlane.f32.xlu1 %v279_v15 }
 0x111   :  { %v188_v16 = vpop.xlane.xlu0 %187 }
 0x112   :  { %v194_v21 = vpop.xlane.xlu1 %193  ;;  %v283_v22 = vmul.f32 0.03125, %v188_v16 }
 0x113   :  { %v285_v23 = vmul.f32 0.03125, %v194_v21 }
 0x114   :  { %v2891_v26 = vsub.f32 %v2666_v3, %v283_v22 }
 0x115   :  { %v2894_v27 = vsub.f32 %v2668_v4, %v285_v23  ;;  %v191_v30 = vpop.xlane.xlu0 %190 }
 0x116   :  { %v197_v35 = vpop.xlane.xlu1 %196  ;;  %v284_v40 = vmul.f32 0.03125, %v191_v30  ;;  %v347_v42 = vmul.f32 %v2891_v26, %v2891_v26 }
 0x117   :  { %v286_v41 = vmul.f32 0.03125, %v197_v35  ;;  %v349_v45 = vmul.f32 %v2894_v27, %v2894_v27 }
 0x118   :  { %v2901_v46 = vsub.f32 %v2670_v5, %v284_v40  ;;  %v379_v3 = vsel %vm185_vm0, %v347_v42, 0.0 }
 0x119   :  { %v2904_v47 = vsub.f32 %v2672_v6, %v286_v41  ;;  %380 = vadd.xlane.f32.xlu0 %v379_v3  ;;  %v200_v4 = vpop.xlane.xlu0 %199  ;;  %v385_v1 = vsel %vm185_vm0, %v349_v45, 0.0 }
 0x11a   :  { %v203_v48 = vpop.xlane.xlu1 %202  ;;  %v287_v49 = vmul.f32 0.03125, %v200_v4  ;;  %v348_v51 = vmul.f32 %v2901_v46, %v2901_v46 }
 0x11b   :  { %v288_v50 = vmul.f32 0.03125, %v203_v48  ;;  %v350_v52 = vmul.f32 %v2904_v47, %v2904_v47 }
 0x11c   :  { %v2913_v5 = vsub.f32 %v2674_v9, %v287_v49  ;;  %v382_v57 = vsel %vm185_vm0, %v348_v51, 0.0 }
 0x11d   :  { %v2916_v6 = vsub.f32 %v2676_v10, %v288_v50  ;;  %386 = vadd.xlane.f32.xlu0 %v385_v1  ;;  %383 = vadd.xlane.f32.xlu1 %v382_v57  ;;  %v206_v58 = vpop.xlane.xlu0 %205  ;;  %v388_v62 = vsel %vm185_vm0, %v350_v52, 0.0 }
 0x11e   :  { %v209_v61 = vpop.xlane.xlu1 %208  ;;  %v289_v2 = vmul.f32 0.03125, %v206_v58  ;;  %v351_v8 = vmul.f32 %v2913_v5, %v2913_v5 }
 0x11f   :  { %v290_v7 = vmul.f32 0.03125, %v209_v61  ;;  %v352_v9 = vmul.f32 %v2916_v6, %v2916_v6 }
 0x120   :  { %v2925_v11 = vsub.f32 %v2690_v17, %v289_v2  ;;  %v391_v12 = vsel %vm185_vm0, %v351_v8, 0.0 }
 0x121   :  { %v2928_v10 = vsub.f32 %v2692_v18, %v290_v7  ;;  %389 = vadd.xlane.f32.xlu1 %v388_v62  ;;  %392 = vadd.xlane.f32.xlu0 %v391_v12  ;;  %v212_v13 = vpop.xlane.xlu0 %211  ;;  %v394_v15 = vsel %vm185_vm0, %v352_v9, 0.0 }
 0x122   :  { %v215_v14 = vpop.xlane.xlu1 %214  ;;  %v291_v16 = vmul.f32 0.03125, %v212_v13  ;;  %v353_v22 = vmul.f32 %v2925_v11, %v2925_v11 }
 0x123   :  { %v292_v21 = vmul.f32 0.03125, %v215_v14  ;;  %v354_v17 = vmul.f32 %v2928_v10, %v2928_v10 }
 0x124   :  { %v2937_v23 = vsub.f32 %v2716_v31, %v291_v16  ;;  %v397_v30 = vsel %vm185_vm0, %v353_v22, 0.0 }
 0x125   :  { %v2940_v18 = vsub.f32 %v2718_v32, %v292_v21  ;;  %395 = vadd.xlane.f32.xlu1 %v394_v15  ;;  %398 = vadd.xlane.f32.xlu0 %v397_v30  ;;  %v218_v35 = vpop.xlane.xlu0 %217  ;;  %v400_v41 = vsel %vm185_vm0, %v354_v17, 0.0 }
 0x126   :  { %v221_v40 = vpop.xlane.xlu1 %220  ;;  %v293_v42 = vmul.f32 0.03125, %v218_v35  ;;  %v355_v3 = vmul.f32 %v2937_v23, %v2937_v23 }
 0x127   :  { %v294_v45 = vmul.f32 0.03125, %v221_v40  ;;  %v356_v31 = vmul.f32 %v2940_v18, %v2940_v18 }
 0x128   :  { %v2949_v4 = vsub.f32 %v2722_v33, %v293_v42  ;;  %v403_v48 = vsel %vm185_vm0, %v355_v3, 0.0 }
 0x129   :  { %v2952_v32 = vsub.f32 %v2724_v34, %v294_v45  ;;  %401 = vadd.xlane.f32.xlu1 %v400_v41  ;;  %404 = vadd.xlane.f32.xlu0 %v403_v48  ;;  %v224_v1 = vpop.xlane.xlu0 %223  ;;  %v406_v50 = vsel %vm185_vm0, %v356_v31, 0.0 }
 0x12a   :  { %v227_v49 = vpop.xlane.xlu1 %226  ;;  %v295_v51 = vmul.f32 0.03125, %v224_v1  ;;  %v357_v57 = vmul.f32 %v2949_v4, %v2949_v4 }
 0x12b   :  { %v296_v52 = vmul.f32 0.03125, %v227_v49  ;;  %v358_v33 = vmul.f32 %v2952_v32, %v2952_v32 }
 0x12c   :  { %v2961_v58 = vsub.f32 %v2730_v38, %v295_v51  ;;  %v409_v61 = vsel %vm185_vm0, %v357_v57, 0.0 }
 0x12d   :  { %v2964_v34 = vsub.f32 %v2732_v39, %v296_v52  ;;  %407 = vadd.xlane.f32.xlu1 %v406_v50  ;;  %410 = vadd.xlane.f32.xlu0 %v409_v61  ;;  %v230_v62 = vpop.xlane.xlu0 %229  ;;  %v412_v7 = vsel %vm185_vm0, %v358_v33, 0.0 }
 0x12e   :  { %v233_v2 = vpop.xlane.xlu1 %232  ;;  %v297_v8 = vmul.f32 0.03125, %v230_v62  ;;  %v359_v12 = vmul.f32 %v2961_v58, %v2961_v58 }
 0x12f   :  { %v298_v9 = vmul.f32 0.03125, %v233_v2  ;;  %v360_v38 = vmul.f32 %v2964_v34, %v2964_v34 }
 0x130   :  { %v2973_v13 = vsub.f32 %v2738_v43, %v297_v8  ;;  %v415_v14 = vsel %vm185_vm0, %v359_v12, 0.0 }
 0x131   :  { %v2976_v39 = vsub.f32 %v2740_v44, %v298_v9  ;;  %413 = vadd.xlane.f32.xlu1 %v412_v7  ;;  %416 = vadd.xlane.f32.xlu0 %v415_v14  ;;  %v236_v15 = vpop.xlane.xlu0 %235  ;;  %v418_v21 = vsel %vm185_vm0, %v360_v38, 0.0 }
 0x132   :  { %v239_v16 = vpop.xlane.xlu1 %238  ;;  %v299_v22 = vmul.f32 0.03125, %v236_v15  ;;  %v361_v30 = vmul.f32 %v2973_v13, %v2973_v13 }
 0x133   :  { %v300_v17 = vmul.f32 0.03125, %v239_v16  ;;  %v362_v43 = vmul.f32 %v2976_v39, %v2976_v39 }
 0x134   :  { %v2985_v35 = vsub.f32 %v2760_v53, %v299_v22  ;;  %v421_v40 = vsel %vm185_vm0, %v361_v30, 0.0 }
 0x135   :  { %v2988_v44 = vsub.f32 %v2762_v54, %v300_v17  ;;  %419 = vadd.xlane.f32.xlu1 %v418_v21  ;;  %422 = vadd.xlane.f32.xlu0 %v421_v40  ;;  %v242_v41 = vpop.xlane.xlu0 %241  ;;  %v424_v45 = vsel %vm185_vm0, %v362_v43, 0.0 }
 0x136   :  { %v245_v42 = vpop.xlane.xlu1 %244  ;;  %v301_v3 = vmul.f32 0.03125, %v242_v41  ;;  %v363_v48 = vmul.f32 %v2985_v35, %v2985_v35 }
 0x137   :  { %v302_v31 = vmul.f32 0.03125, %v245_v42  ;;  %v364_v53 = vmul.f32 %v2988_v44, %v2988_v44 }
 0x138   :  { %v2997_v1 = vsub.f32 %v2766_v55, %v301_v3  ;;  %v427_v49 = vsel %vm185_vm0, %v363_v48, 0.0  ;;  %v2197_v48 = vld [vmem:[#allocation10] sm:$0xff]  }
 0x139   :  { %v3000_v54 = vsub.f32 %v2768_v56, %v302_v31  ;;  %425 = vadd.xlane.f32.xlu1 %v424_v45  ;;  %428 = vadd.xlane.f32.xlu0 %v427_v49  ;;  %v248_v50 = vpop.xlane.xlu0 %247  ;;  %v430_v52 = vsel %vm185_vm0, %v364_v53, 0.0 }
 0x13a   :  { %v251_v51 = vpop.xlane.xlu1 %250  ;;  %v303_v57 = vmul.f32 0.03125, %v248_v50  ;;  %v365_v61 = vmul.f32 %v2997_v1, %v2997_v1  ;;  %2087 = vmatprep.subr.bf16.mxu0 %v2197_v48 }
 0x13b   :  { %v304_v33 = vmul.f32 0.03125, %v251_v51  ;;  %v366_v55 = vmul.f32 %v3000_v54, %v3000_v54  ;;  %2088 = vmatpush3.bf16.msra.mxu0 %v2197_v48 }
 0x13c   :  { %v3009_v62 = vsub.f32 %v2774_v59, %v303_v57  ;;  %v433_v2 = vsel %vm185_vm0, %v365_v61, 0.0 }
 0x13d   :  { %v3012_v56 = vsub.f32 %v2776_v60, %v304_v33  ;;  %431 = vadd.xlane.f32.xlu1 %v430_v52  ;;  %434 = vadd.xlane.f32.xlu0 %v433_v2  ;;  %v254_v7 = vpop.xlane.xlu0 %253  ;;  %v436_v9 = vsel %vm185_vm0, %v366_v55, 0.0  ;;  %v2198_v55 = vld [vmem:[#allocation10 + $0x8] sm:$0xff]  }
 0x13e   :  { %v257_v8 = vpop.xlane.xlu1 %256  ;;  %v305_v12 = vmul.f32 0.03125, %v254_v7  ;;  %v367_v14 = vmul.f32 %v3009_v62, %v3009_v62  ;;  %2089 = vmatprep.subr.bf16.mxu0 %v2198_v55 }
 0x13f   :  { %v306_v38 = vmul.f32 0.03125, %v257_v8  ;;  %v368_v59 = vmul.f32 %v3012_v56, %v3012_v56  ;;  %2090 = vmatpush3.bf16.msra.mxu0 %v2198_v55 }
 0x140   :  { %v3021_v15 = vsub.f32 %v2782_v63, %v305_v12  ;;  %v439_v16 = vsel %vm185_vm0, %v367_v14, 0.0 }
 0x141   :  { %v3024_v60 = vsub.f32 %v2784_v0, %v306_v38  ;;  %437 = vadd.xlane.f32.xlu1 %v436_v9  ;;  %440 = vadd.xlane.f32.xlu0 %v439_v16  ;;  %v260_v21 = vpop.xlane.xlu0 %259  ;;  %v442_v17 = vsel %vm185_vm0, %v368_v59, 0.0 }
 0x142   :  { %v263_v22 = vpop.xlane.xlu1 %262  ;;  %v307_v30 = vmul.f32 0.03125, %v260_v21  ;;  %v369_v40 = vmul.f32 %v3021_v15, %v3021_v15 }
 0x143   :  { %v308_v43 = vmul.f32 0.03125, %v263_v22  ;;  %v370_v63 = vmul.f32 %v3024_v60, %v3024_v60 }
 0x144   :  { %v3033_v41 = vsub.f32 %v2804_v19, %v307_v30  ;;  %v445_v42 = vsel %vm185_vm0, %v369_v40, 0.0 }
 0x145   :  { %v3036_v0 = vsub.f32 %v2806_v20, %v308_v43  ;;  %443 = vadd.xlane.f32.xlu1 %v442_v17  ;;  %446 = vadd.xlane.f32.xlu0 %v445_v42  ;;  %v266_v45 = vpop.xlane.xlu0 %265  ;;  %v448_v31 = vsel %vm185_vm0, %v370_v63, 0.0 }
 0x146   :  { %v269_v3 = vpop.xlane.xlu1 %268  ;;  %v309_v53 = vmul.f32 0.03125, %v266_v45  ;;  %v371_v50 = vmul.f32 %v3033_v41, %v3033_v41 }
 0x147   :  { %v310_v49 = vmul.f32 0.03125, %v269_v3  ;;  %v372_v19 = vmul.f32 %v3036_v0, %v3036_v0 }
 0x148   :  { %v3045_v20 = vsub.f32 %v2814_v24, %v309_v53  ;;  %v451_v52 = vsel %vm185_vm0, %v371_v50, 0.0 }
 0x149   :  { %v3048_v51 = vsub.f32 %v2816_v25, %v310_v49  ;;  %449 = vadd.xlane.f32.xlu1 %v448_v31  ;;  %452 = vadd.xlane.f32.xlu0 %v451_v52  ;;  %v272_v57 = vpop.xlane.xlu0 %271  ;;  %v454_v61 = vsel %vm185_vm0, %v372_v19, 0.0 }
 0x14a   :  { %v275_v33 = vpop.xlane.xlu1 %274  ;;  %v311_v2 = vmul.f32 0.03125, %v272_v57  ;;  %v373_v8 = vmul.f32 %v3045_v20, %v3045_v20 }
 0x14b   :  { %v312_v7 = vmul.f32 0.03125, %v275_v33  ;;  %v374_v24 = vmul.f32 %v3048_v51, %v3048_v51 }
 0x14c   :  { %v3057_v25 = vsub.f32 %v2822_v28, %v311_v2  ;;  %v457_v12 = vsel %vm185_vm0, %v373_v8, 0.0 }
 0x14d   :  { %v3060_v9 = vsub.f32 %v2824_v29, %v312_v7  ;;  %455 = vadd.xlane.f32.xlu1 %v454_v61  ;;  %458 = vadd.xlane.f32.xlu0 %v457_v12  ;;  %v278_v38 = vpop.xlane.xlu0 %277  ;;  %v460_v59 = vsel %vm185_vm0, %v374_v24, 0.0 }
 0x14e   :  { %v281_v14 = vpop.xlane.xlu1 %280  ;;  %v313_v16 = vmul.f32 0.03125, %v278_v38  ;;  %v375_v22 = vmul.f32 %v3057_v25, %v3057_v25 }
 0x14f   :  { %v314_v21 = vmul.f32 0.03125, %v281_v14  ;;  %v376_v28 = vmul.f32 %v3060_v9, %v3060_v9 }
 0x150   :  { %v3069_v29 = vsub.f32 %v2830_v36, %v313_v16  ;;  %v463_v30 = vsel %vm185_vm0, %v375_v22, 0.0 }
 0x151   :  { %v3072_v17 = vsub.f32 %v2832_v37, %v314_v21  ;;  %461 = vadd.xlane.f32.xlu1 %v460_v59  ;;  %464 = vadd.xlane.f32.xlu0 %v463_v30  ;;  %v466_v43 = vsel %vm185_vm0, %v376_v28, 0.0  ;;  %v3083_v28 = vld [vmem:[#allocation7] ss:$0 sm:$0xff] }
 0x152   :  { %v377_v40 = vmul.f32 %v3069_v29, %v3069_v29 }
 0x153   :  { %v378_v63 = vmul.f32 %v3072_v17, %v3072_v17 }
 0x154   :  { %v469_v42 = vsel %vm185_vm0, %v377_v40, 0.0 }
 0x155   :  { %467 = vadd.xlane.f32.xlu1 %v466_v43  ;;  %470 = vadd.xlane.f32.xlu0 %v469_v42  ;;  %v472_v36 = vsel %vm185_vm0, %v378_v63, 0.0 }
 0x159   :  { %473 = vadd.xlane.f32.xlu1 %v472_v36 }
 0x1a6   :  { %v381_v37 = vpop.xlane.xlu0 %380 }
 0x1a7   :  { %v475_v45 = vmul.f32 0.03125, %v381_v37 }
 0x1a9   :  { %v507_v3 = vadd.f32 1e-06, %v475_v45 }
 0x1aa   :  { %v384_v31 = vpop.xlane.xlu1 %383  ;;  %v387_v48 = vpop.xlane.xlu0 %386 }
 0x1ab   :  { %2207 = vrsqrt.f32 %v507_v3  ;;  %v476_v53 = vmul.f32 0.03125, %v384_v31  ;;  %v477_v49 = vmul.f32 0.03125, %v387_v48  ;;  %v3087_v48 = vld [vmem:[#allocation9] ss:$0 sm:$0xff] }
 0x1ad   :  { %v508_v50 = vadd.f32 1e-06, %v476_v53  ;;  %v509_v19 = vadd.f32 1e-06, %v477_v49 }
 0x1ae   :  { %v390_v52 = vpop.xlane.xlu1 %389  ;;  %v393_v57 = vpop.xlane.xlu0 %392 }
 0x1af   :  { %2209 = vrsqrt.f32 %v508_v50  ;;  %v478_v33 = vmul.f32 0.03125, %v390_v52  ;;  %v479_v61 = vmul.f32 0.03125, %v393_v57 }
 0x1b0   :  { %2211 = vrsqrt.f32 %v509_v19 }
 0x1b1   :  { %v510_v55 = vadd.f32 1e-06, %v478_v33  ;;  %v511_v2 = vadd.f32 1e-06, %v479_v61 }
 0x1b2   :  { %v396_v7 = vpop.xlane.xlu1 %395  ;;  %v399_v8 = vpop.xlane.xlu0 %398 }
 0x1b3   :  { %2213 = vrsqrt.f32 %v510_v55  ;;  %v480_v24 = vmul.f32 0.03125, %v396_v7  ;;  %v481_v12 = vmul.f32 0.03125, %v399_v8 }
 0x1b4   :  { %2215 = vrsqrt.f32 %v511_v2 }
 0x1b5   :  { %v2208_v38 = vpop.eup %2207  ;;  %v512_v14 = vadd.f32 1e-06, %v480_v24  ;;  %v513_v59 = vadd.f32 1e-06, %v481_v12 }
 0x1b6   :  { %v571_v16 = vmul.f32 %v2208_v38, %v2891_v26  ;;  %v402_v21 = vpop.xlane.xlu1 %401  ;;  %v405_v22 = vpop.xlane.xlu0 %404 }
 0x1b7   :  { %2217 = vrsqrt.f32 %v512_v14  ;;  %v482_v30 = vmul.f32 0.03125, %v402_v21  ;;  %v483_v43 = vmul.f32 0.03125, %v405_v22 }
 0x1b8   :  { %2219 = vrsqrt.f32 %v513_v59  ;;  %v609_v37 = vmul.f32 %v3083_v28, %v571_v16 }
 0x1b9   :  { %v2210_v40 = vpop.eup %2209  ;;  %v514_v63 = vadd.f32 1e-06, %v482_v30  ;;  %v515_v42 = vadd.f32 1e-06, %v483_v43 }
 0x1ba   :  { %v2212_v36 = vpop.eup %2211  ;;  %v572_v45 = vmul.f32 %v2210_v40, %v2901_v46  ;;  %v408_v3 = vpop.xlane.xlu1 %407  ;;  %v647_v61 = vadd.f32 %v3087_v48, %v609_v37 }
 0x1bb   :  { %v411_v31 = vpop.xlane.xlu0 %410  ;;  %v573_v26 = vmul.f32 %v2212_v36, %v2894_v27  ;;  %2221 = vrsqrt.f32 %v514_v63  ;;  %v484_v53 = vmul.f32 0.03125, %v408_v3 }
 0x1bc   :  { %v485_v49 = vmul.f32 0.03125, %v411_v31  ;;  %v610_v50 = vmul.f32 %v3083_v28, %v572_v45  ;;  %2223 = vrsqrt.f32 %v515_v42 }
 0x1bd   :  { %v2214_v19 = vpop.eup %2213  ;;  %v516_v52 = vadd.f32 1e-06, %v484_v53  ;;  %v611_v55 = vmul.f32 %v3083_v28, %v573_v26 }
 0x1be   :  { %v517_v57 = vadd.f32 1e-06, %v485_v49  ;;  %v2216_v33 = vpop.eup %2215  ;;  %v648_v46 = vadd.f32 %v3087_v48, %v610_v50  ;;  %v574_v2 = vmul.f32 %v2214_v19, %v2904_v47  ;;  %v414_v7 = vpop.xlane.xlu1 %413 }
 0x1bf   :  { %v417_v27 = vpop.xlane.xlu0 %416  ;;  %v575_v8 = vmul.f32 %v2216_v33, %v2913_v5  ;;  %2225 = vrsqrt.f32 %v516_v52  ;;  %v486_v24 = vmul.f32 0.03125, %v414_v7  ;;  %v649_v47 = vadd.f32 %v3087_v48, %v611_v55 }
 0x1c0   :  { %v679_v12 = vpack.c.bf16 %v648_v46, %v647_v61  ;;  %v612_v38 = vmul.f32 %v3083_v28, %v574_v2  ;;  %2227 = vrsqrt.f32 %v517_v57  ;;  %v487_v14 = vmul.f32 0.03125, %v417_v27 }
 0x1c1   :  { %v2218_v59 = vpop.eup %2217  ;;  %v613_v16 = vmul.f32 %v3083_v28, %v575_v8  ;;  %v518_v21 = vadd.f32 1e-06, %v486_v24 }
 0x1c2   :  { %v2220_v22 = vpop.eup %2219  ;;  %695 = vst.msk [vmem:[#allocation2] sm:$0xff] %vm185_vm0, %v679_v12  ;;  %v650_v30 = vadd.f32 %v3087_v48, %v612_v38  ;;  %v576_v5 = vmul.f32 %v2218_v59, %v2916_v6  ;;  %v519_v43 = vadd.f32 1e-06, %v487_v14  ;;  %v420_v40 = vpop.xlane.xlu1 %419 }
 0x1c3   :  { %v423_v63 = vpop.xlane.xlu0 %422  ;;  %v577_v42 = vmul.f32 %v2220_v22, %v2925_v11  ;;  %2229 = vrsqrt.f32 %v518_v21  ;;  %v488_v36 = vmul.f32 0.03125, %v420_v40  ;;  %v651_v26 = vadd.f32 %v3087_v48, %v613_v16 }
 0x1c4   :  { %v680_v37 = vpack.c.bf16 %v650_v30, %v649_v47  ;;  %v614_v45 = vmul.f32 %v3083_v28, %v576_v5  ;;  %2231 = vrsqrt.f32 %v519_v43  ;;  %v489_v3 = vmul.f32 0.03125, %v423_v63 }
 0x1c5   :  { %v2222_v31 = vpop.eup %2221  ;;  %v520_v53 = vadd.f32 1e-06, %v488_v36  ;;  %v615_v50 = vmul.f32 %v3083_v28, %v577_v42 }
 0x1c6   :  { %v2224_v49 = vpop.eup %2223  ;;  %696 = vst.msk [vmem:[#allocation2 + $0x8] sm:$0xff] %vm185_vm0, %v680_v37  ;;  %v652_v6 = vadd.f32 %v3087_v48, %v614_v45  ;;  %v578_v11 = vmul.f32 %v2222_v31, %v2928_v10  ;;  %v521_v19 = vadd.f32 1e-06, %v489_v3  ;;  %v426_v52 = vpop.xlane.xlu1 %425 }
 0x1c7   :  { %v429_v57 = vpop.xlane.xlu0 %428  ;;  %v579_v33 = vmul.f32 %v2224_v49, %v2937_v23  ;;  %2233 = vrsqrt.f32 %v520_v53  ;;  %v490_v61 = vmul.f32 0.03125, %v426_v52  ;;  %v653_v10 = vadd.f32 %v3087_v48, %v615_v50 }
 0x1c8   :  { %v681_v46 = vpack.c.bf16 %v652_v6, %v651_v26  ;;  %v616_v55 = vmul.f32 %v3083_v28, %v578_v11  ;;  %2235 = vrsqrt.f32 %v521_v19  ;;  %v491_v2 = vmul.f32 0.03125, %v429_v57 }
 0x1c9   :  { %v2226_v7 = vpop.eup %2225  ;;  %v617_v27 = vmul.f32 %v3083_v28, %v579_v33  ;;  %v522_v8 = vadd.f32 1e-06, %v490_v61  ;;  %v782_v24 = vld [vmem:[#allocation2] sm:$0xff] }
 0x1ca   :  { %v2228_v12 = vpop.eup %2227  ;;  %697 = vst.msk [vmem:[#allocation2 + $0x10] sm:$0xff] %vm185_vm0, %v681_v46  ;;  %v654_v38 = vadd.f32 %v3087_v48, %v616_v55  ;;  %v580_v23 = vmul.f32 %v2226_v7, %v2940_v18  ;;  %v523_v14 = vadd.f32 1e-06, %v491_v2  ;;  %v432_v59 = vpop.xlane.xlu1 %431  ;;  %2091 = vmatprep.mubr.msk.bf16.mxu0 %vm185_vm0, %v782_v24 }
 0x1cb   :  { %v435_v16 = vpop.xlane.xlu0 %434  ;;  %v581_v21 = vmul.f32 %v2228_v12, %v2949_v4  ;;  %2237 = vrsqrt.f32 %v522_v8  ;;  %v492_v22 = vmul.f32 0.03125, %v432_v59  ;;  %v655_v40 = vadd.f32 %v3087_v48, %v617_v27 }
 0x1cc   :  { %v682_v47 = vpack.c.bf16 %v654_v38, %v653_v10  ;;  %v618_v30 = vmul.f32 %v3083_v28, %v580_v23  ;;  %2239 = vrsqrt.f32 %v523_v14  ;;  %v493_v5 = vmul.f32 0.03125, %v435_v16 }
 0x1cd   :  { %v2230_v43 = vpop.eup %2229  ;;  %v524_v63 = vadd.f32 1e-06, %v492_v22  ;;  %v783_v42 = vld [vmem:[#allocation2 + $0x8] sm:$0xff]  ;;  %v619_v37 = vmul.f32 %v3083_v28, %v581_v21 }
 0x1ce   :  { %v2232_v18 = vpop.eup %2231  ;;  %698 = vst.msk [vmem:[#allocation2 + $0x18] sm:$0xff] %vm185_vm0, %v682_v47  ;;  %v656_v36 = vadd.f32 %v3087_v48, %v618_v30  ;;  %v582_v4 = vmul.f32 %v2230_v43, %v2952_v32  ;;  %v525_v45 = vadd.f32 1e-06, %v493_v5  ;;  %v438_v3 = vpop.xlane.xlu1 %437  ;;  %2092 = vmatmul.mubr.msk.bf16.vlgmr.msra.gmra.mrb[0].mxu0 %vm185_vm0, %v783_v42 }
 0x1cf   :  { %v441_v31 = vpop.xlane.xlu0 %440  ;;  %v583_v26 = vmul.f32 %v2232_v18, %v2961_v58  ;;  %2241 = vrsqrt.f32 %v524_v63  ;;  %v494_v53 = vmul.f32 0.03125, %v438_v3  ;;  %v657_v33 = vadd.f32 %v3087_v48, %v619_v37 }
 0x1d0   :  { %v683_v49 = vpack.c.bf16 %v656_v36, %v655_v40  ;;  %v620_v6 = vmul.f32 %v3083_v28, %v582_v4  ;;  %2243 = vrsqrt.f32 %v525_v45  ;;  %v495_v50 = vmul.f32 0.03125, %v441_v31 }
 0x1d1   :  { %v2234_v11 = vpop.eup %2233  ;;  %v621_v19 = vmul.f32 %v3083_v28, %v583_v26  ;;  %v526_v52 = vadd.f32 1e-06, %v494_v53  ;;  %v784_v57 = vld [vmem:[#allocation2 + $0x10] sm:$0xff] }
 0x1d2   :  { %v2236_v32 = vpop.eup %2235  ;;  %699 = vst.msk [vmem:[#allocation2 + $0x20] sm:$0xff] %vm185_vm0, %v683_v49  ;;  %v658_v61 = vadd.f32 %v3087_v48, %v620_v6  ;;  %v584_v58 = vmul.f32 %v2234_v11, %v2964_v34  ;;  %v527_v46 = vadd.f32 1e-06, %v495_v50  ;;  %v444_v55 = vpop.xlane.xlu1 %443  ;;  %2095 = vmatprep.mubr.msk.bf16.mxu0 %vm185_vm0, %v784_v57 }
 0x1d3   :  { %v447_v2 = vpop.xlane.xlu0 %446  ;;  %v585_v7 = vmul.f32 %v2236_v32, %v2973_v13  ;;  %2245 = vrsqrt.f32 %v526_v52  ;;  %v496_v27 = vmul.f32 0.03125, %v444_v55  ;;  %v659_v38 = vadd.f32 %v3087_v48, %v621_v19 }
 0x1d4   :  { %v684_v8 = vpack.c.bf16 %v658_v61, %v657_v33  ;;  %v622_v24 = vmul.f32 %v3083_v28, %v584_v58  ;;  %2247 = vrsqrt.f32 %v527_v46  ;;  %v497_v12 = vmul.f32 0.03125, %v447_v2 }
 0x1d5   :  { %v2238_v10 = vpop.eup %2237  ;;  %v528_v23 = vadd.f32 1e-06, %v496_v27  ;;  %v785_v14 = vld [vmem:[#allocation2 + $0x18] sm:$0xff]  ;;  %v623_v16 = vmul.f32 %v3083_v28, %v585_v7 }
 0x1d6   :  { %v2240_v34 = vpop.eup %2239  ;;  %700 = vst.msk [vmem:[#allocation2 + $0x28] sm:$0xff] %vm185_vm0, %v684_v8  ;;  %v660_v59 = vadd.f32 %v3087_v48, %v622_v24  ;;  %v586_v13 = vmul.f32 %v2238_v10, %v2976_v39  ;;  %v529_v21 = vadd.f32 1e-06, %v497_v12  ;;  %v450_v22 = vpop.xlane.xlu1 %449  ;;  %2096 = vmatmul.mubr.msk.bf16.gmra.mrb[4].mxu0 %vm185_vm0, %v785_v14 }
 0x1d7   :  { %v453_v47 = vpop.xlane.xlu0 %452  ;;  %v587_v30 = vmul.f32 %v2240_v34, %v2985_v35  ;;  %2249 = vrsqrt.f32 %v528_v23  ;;  %v498_v5 = vmul.f32 0.03125, %v450_v22  ;;  %v661_v4 = vadd.f32 %v3087_v48, %v623_v16 }
 0x1d8   :  { %v685_v43 = vpack.c.bf16 %v660_v59, %v659_v38  ;;  %v624_v40 = vmul.f32 %v3083_v28, %v586_v13  ;;  %2251 = vrsqrt.f32 %v529_v21  ;;  %v499_v63 = vmul.f32 0.03125, %v453_v47 }
 0x1d9   :  { %v2242_v42 = vpop.eup %2241  ;;  %v625_v18 = vmul.f32 %v3083_v28, %v587_v30  ;;  %v530_v36 = vadd.f32 1e-06, %v498_v5  ;;  %v786_v37 = vld [vmem:[#allocation2 + $0x20] sm:$0xff] }
 0x1da   :  { %v2244_v39 = vpop.eup %2243  ;;  %701 = vst.msk [vmem:[#allocation2 + $0x30] sm:$0xff] %vm185_vm0, %v685_v43  ;;  %v662_v45 = vadd.f32 %v3087_v48, %v624_v40  ;;  %v588_v35 = vmul.f32 %v2242_v42, %v2988_v44  ;;  %v531_v3 = vadd.f32 1e-06, %v499_v63  ;;  %v456_v31 = vpop.xlane.xlu1 %455  ;;  %2099 = vmatprep.mubr.msk.bf16.mxu0 %vm185_vm0, %v786_v37 }
 0x1db   :  { %v459_v26 = vpop.xlane.xlu0 %458  ;;  %v589_v53 = vmul.f32 %v2244_v39, %v2997_v1  ;;  %2253 = vrsqrt.f32 %v530_v36  ;;  %v500_v49 = vmul.f32 0.03125, %v456_v31  ;;  %v663_v52 = vadd.f32 %v3087_v48, %v625_v18 }
 0x1dc   :  { %v686_v6 = vpack.c.bf16 %v662_v45, %v661_v4  ;;  %v626_v50 = vmul.f32 %v3083_v28, %v588_v35  ;;  %2255 = vrsqrt.f32 %v531_v3  ;;  %v501_v11 = vmul.f32 0.03125, %v459_v26 }
 0x1dd   :  { %v2246_v19 = vpop.eup %2245  ;;  %v532_v57 = vadd.f32 1e-06, %v500_v49  ;;  %v787_v32 = vld [vmem:[#allocation2 + $0x28] sm:$0xff]  ;;  %v627_v61 = vmul.f32 %v3083_v28, %v589_v53 }
 0x1de   :  { %v2248_v44 = vpop.eup %2247  ;;  %702 = vst.msk [vmem:[#allocation2 + $0x38] sm:$0xff] %vm185_vm0, %v686_v6  ;;  %v664_v33 = vadd.f32 %v3087_v48, %v626_v50  ;;  %v590_v1 = vmul.f32 %v2246_v19, %v3000_v54  ;;  %v533_v58 = vadd.f32 1e-06, %v501_v11  ;;  %v462_v46 = vpop.xlane.xlu1 %461  ;;  %2100 = vmatmul.mubr.msk.bf16.gmra.mrb[8].mxu0 %vm185_vm0, %v787_v32 }
 0x1df   :  { %v465_v55 = vpop.xlane.xlu0 %464  ;;  %v591_v2 = vmul.f32 %v2248_v44, %v3009_v62  ;;  %2257 = vrsqrt.f32 %v532_v57  ;;  %v502_v7 = vmul.f32 0.03125, %v462_v46  ;;  %v665_v14 = vadd.f32 %v3087_v48, %v627_v61 }
 0x1e0   :  { %v687_v27 = vpack.c.bf16 %v664_v33, %v663_v52  ;;  %v628_v8 = vmul.f32 %v3083_v28, %v590_v1  ;;  %2259 = vrsqrt.f32 %v533_v58  ;;  %v503_v24 = vmul.f32 0.03125, %v465_v55 }
 0x1e1   :  { %v2250_v12 = vpop.eup %2249  ;;  %v629_v10 = vmul.f32 %v3083_v28, %v591_v2  ;;  %v534_v38 = vadd.f32 1e-06, %v502_v7  ;;  %v788_v23 = vld [vmem:[#allocation2 + $0x30] sm:$0xff] }
 0x1e2   :  { %v2252_v54 = vpop.eup %2251  ;;  %703 = vst.msk [vmem:[#allocation2 + $0x40] sm:$0xff] %vm185_vm0, %v687_v27  ;;  %v666_v34 = vadd.f32 %v3087_v48, %v628_v8  ;;  %v592_v62 = vmul.f32 %v2250_v12, %v3012_v56  ;;  %v535_v59 = vadd.f32 1e-06, %v503_v24  ;;  %v468_v16 = vpop.xlane.xlu1 %467  ;;  %2103 = vmatprep.mubr.msk.bf16.mxu0 %vm185_vm0, %v788_v23 }
 0x1e3   :  { %v471_v13 = vpop.xlane.xlu0 %470  ;;  %v593_v21 = vmul.f32 %v2252_v54, %v3021_v15  ;;  %2261 = vrsqrt.f32 %v534_v38  ;;  %v504_v22 = vmul.f32 0.03125, %v468_v16  ;;  %v667_v40 = vadd.f32 %v3087_v48, %v629_v10 }
 0x1e4   :  { %v688_v47 = vpack.c.bf16 %v666_v34, %v665_v14  ;;  %v630_v30 = vmul.f32 %v3083_v28, %v592_v62  ;;  %2263 = vrsqrt.f32 %v535_v59  ;;  %v505_v5 = vmul.f32 0.03125, %v471_v13 }
 0x1e5   :  { %v2254_v43 = vpop.eup %2253  ;;  %v536_v63 = vadd.f32 1e-06, %v504_v22  ;;  %v789_v42 = vld [vmem:[#allocation2 + $0x38] sm:$0xff]  ;;  %v631_v36 = vmul.f32 %v3083_v28, %v593_v21 }
 0x1e6   :  { %v2256_v56 = vpop.eup %2255  ;;  %704 = vst.msk [vmem:[#allocation2 + $0x48] sm:$0xff] %vm185_vm0, %v688_v47  ;;  %v668_v18 = vadd.f32 %v3087_v48, %v630_v30  ;;  %v594_v15 = vmul.f32 %v2254_v43, %v3024_v60  ;;  %v537_v37 = vadd.f32 1e-06, %v505_v5  ;;  %v474_v39 = vpop.xlane.xlu1 %473  ;;  %2104 = vmatmul.mubr.msk.bf16.gmra.mrb[12].mxu0 %vm185_vm0, %v789_v42  ;;  %v2201_v30 = vld [vmem:[#allocation13 + $0x10] sm:$0xff]   ;;  %v2202_v5 = vld [vmem:[#allocation13 + $0x18] sm:$0xff]   ;;  %v2203_v43 = vld [vmem:[#allocation13 + $0x20] sm:$0xff]  }
 0x1e7   :  { %v595_v4 = vmul.f32 %v2256_v56, %v3033_v41  ;;  %2265 = vrsqrt.f32 %v536_v63  ;;  %v506_v45 = vmul.f32 0.03125, %v474_v39  ;;  %v669_v60 = vadd.f32 %v3087_v48, %v631_v36  ;;  %v2205_v63 = vld [vmem:[#allocation13 + $0x30] sm:$0xff]   ;;  %v2206_v42 = vld [vmem:[#allocation13 + $0x38] sm:$0xff]  }
 0x1e8   :  { %v689_v35 = vpack.c.bf16 %v668_v18, %v667_v40  ;;  %v632_v3 = vmul.f32 %v3083_v28, %v594_v15  ;;  %2267 = vrsqrt.f32 %v537_v37  ;;  %v2204_v40 = vld [vmem:[#allocation13 + $0x28] sm:$0xff]   ;;  %v3214_v56 = vld [vmem:[#allocation12] ss:$0 sm:$0xff] }
 0x1e9   :  { %v2258_v31 = vpop.eup %2257  ;;  %v538_v26 = vadd.f32 1e-06, %v506_v45  ;;  %v790_v53 = vld [vmem:[#allocation2 + $0x40] sm:$0xff]  ;;  %v633_v50 = vmul.f32 %v3083_v28, %v595_v4 }
 0x1ea   :  { %v2260_v49 = vpop.eup %2259  ;;  %705 = vst.msk [vmem:[#allocation2 + $0x50] sm:$0xff] %vm185_vm0, %v689_v35  ;;  %v670_v6 = vadd.f32 %v3087_v48, %v632_v3  ;;  %v596_v41 = vmul.f32 %v2258_v31, %v3036_v0  ;;  %2107 = vmatprep.mubr.msk.bf16.mxu0 %vm185_vm0, %v790_v53 }
 0x1eb   :  { %v597_v11 = vmul.f32 %v2260_v49, %v3045_v20  ;;  %2269 = vrsqrt.f32 %v538_v26  ;;  %v671_v33 = vadd.f32 %v3087_v48, %v633_v50 }
 0x1ec   :  { %v690_v19 = vpack.c.bf16 %v670_v6, %v669_v60  ;;  %v634_v52 = vmul.f32 %v3083_v28, %v596_v41 }
 0x1ed   :  { %v2262_v57 = vpop.eup %2261  ;;  %v791_v32 = vld [vmem:[#allocation2 + $0x48] sm:$0xff]  ;;  %v635_v1 = vmul.f32 %v3083_v28, %v597_v11 }
 0x1ee   :  { %v2264_v44 = vpop.eup %2263  ;;  %706 = vst.msk [vmem:[#allocation2 + $0x58] sm:$0xff] %vm185_vm0, %v690_v19  ;;  %v672_v61 = vadd.f32 %v3087_v48, %v634_v52  ;;  %v598_v0 = vmul.f32 %v2262_v57, %v3048_v51  ;;  %2108 = vmatmul.mubr.msk.bf16.gmra.mrb[16].mxu0 %vm185_vm0, %v791_v32 }
 0x1ef   :  { %v599_v20 = vmul.f32 %v2264_v44, %v3057_v25  ;;  %v673_v27 = vadd.f32 %v3087_v48, %v635_v1 }
 0x1f0   :  { %v691_v58 = vpack.c.bf16 %v672_v61, %v671_v33  ;;  %v636_v46 = vmul.f32 %v3083_v28, %v598_v0 }
 0x1f1   :  { %v2266_v55 = vpop.eup %2265  ;;  %v792_v2 = vld [vmem:[#allocation2 + $0x50] sm:$0xff]  ;;  %v637_v24 = vmul.f32 %v3083_v28, %v599_v20 }
 0x1f2   :  { %v2268_v7 = vpop.eup %2267  ;;  %707 = vst.msk [vmem:[#allocation2 + $0x60] sm:$0xff] %vm185_vm0, %v691_v58  ;;  %v674_v8 = vadd.f32 %v3087_v48, %v636_v46  ;;  %v600_v51 = vmul.f32 %v2266_v55, %v3060_v9  ;;  %2111 = vmatprep.mubr.msk.bf16.mxu0 %vm185_vm0, %v792_v2 }
 0x1f3   :  { %v601_v25 = vmul.f32 %v2268_v7, %v3069_v29  ;;  %v675_v54 = vadd.f32 %v3087_v48, %v637_v24 }
 0x1f4   :  { %v692_v12 = vpack.c.bf16 %v674_v8, %v673_v27  ;;  %v638_v10 = vmul.f32 %v3083_v28, %v600_v51 }
 0x1f5   :  { %v2270_v38 = vpop.eup %2269  ;;  %v793_v23 = vld [vmem:[#allocation2 + $0x58] sm:$0xff]  ;;  %v639_v34 = vmul.f32 %v3083_v28, %v601_v25 }
 0x1f6   :  { %708 = vst.msk [vmem:[#allocation2 + $0x68] sm:$0xff] %vm185_vm0, %v692_v12  ;;  %v676_v14 = vadd.f32 %v3087_v48, %v638_v10  ;;  %v602_v62 = vmul.f32 %v2270_v38, %v3072_v17  ;;  %2112 = vmatmul.mubr.msk.bf16.gmra.mrb[20].mxu0 %vm185_vm0, %v793_v23 }
 0x1f7   :  { %v677_v16 = vadd.f32 %v3087_v48, %v639_v34 }
 0x1f8   :  { %v693_v9 = vpack.c.bf16 %v676_v14, %v675_v54  ;;  %v640_v29 = vmul.f32 %v3083_v28, %v602_v62  ;;  %v2199_v28 = vld [vmem:[#allocation13] sm:$0xff]  }
 0x1f9   :  { %v794_v59 = vld [vmem:[#allocation2 + $0x60] sm:$0xff]  ;;  %2123 = vmatprep.subr.bf16.mxu0 %v2199_v28  ;;  %2171 = vmatprep.subr.bf16.mxu1 %v2199_v28 }
 0x1fa   :  { %709 = vst.msk [vmem:[#allocation2 + $0x70] sm:$0xff] %vm185_vm0, %v693_v9  ;;  %v678_v13 = vadd.f32 %v3087_v48, %v640_v29  ;;  %2115 = vmatprep.mubr.msk.bf16.mxu0 %vm185_vm0, %v794_v59  ;;  %2124 = vmatpush3.bf16.msra.mxu0 %v2199_v28  ;;  %v2200_v48 = vld [vmem:[#allocation13 + $0x8] sm:$0xff]  }
 0x1fb   :  { %2179 = vmatpush3.bf16.msra.mxu1 %v2199_v28  ;;  %2125 = vmatprep.subr.bf16.mxu0 %v2200_v48 }
 0x1fc   :  { %v694_v21 = vpack.c.bf16 %v678_v13, %v677_v16  ;;  %2172 = vmatprep.subr.bf16.mxu1 %v2200_v48 }
 0x1fd   :  { %v795_v22 = vld [vmem:[#allocation2 + $0x68] sm:$0xff] }
 0x1fe   :  { %710 = vst.msk [vmem:[#allocation2 + $0x78] sm:$0xff] %vm185_vm0, %v694_v21  ;;  %2116 = vmatmul.mubr.msk.bf16.gmra.mrb[24].mxu0 %vm185_vm0, %v795_v22 }
 0x1ff   :  { %2126 = vmatpush3.bf16.msra.mxu0 %v2200_v48  ;;  %2180 = vmatpush3.bf16.msra.mxu1 %v2200_v48 }
 0x200   :  { %2127 = vmatprep.subr.bf16.mxu0 %v2201_v30  ;;  %2173 = vmatprep.subr.bf16.mxu1 %v2201_v30 }
 0x201   :  { %v796_v17 = vld [vmem:[#allocation2 + $0x70] sm:$0xff] }
 0x202   :  { %2119 = vmatprep.mubr.msk.bf16.mxu0 %vm185_vm0, %v796_v17 }
 0x203   :  { %2128 = vmatpush3.bf16.msra.mxu0 %v2201_v30  ;;  %2181 = vmatpush3.bf16.msra.mxu1 %v2201_v30 }
 0x204   :  { %2129 = vmatprep.subr.bf16.mxu0 %v2202_v5  ;;  %2174 = vmatprep.subr.bf16.mxu1 %v2202_v5 }
 0x205   :  { %v797_v47 = vld [vmem:[#allocation2 + $0x78] sm:$0xff] }
 0x206   :  { %2120 = vmatmul.mubr.msk.bf16.gmra.mrb[28].mxu0 %vm185_vm0, %v797_v47 }
 0x207   :  { %2130 = vmatpush3.bf16.msra.mxu0 %v2202_v5  ;;  %2182 = vmatpush3.bf16.msra.mxu1 %v2202_v5 }
 0x208   :  { %2131 = vmatprep.subr.bf16.mxu0 %v2203_v43  ;;  %2175 = vmatprep.subr.bf16.mxu1 %v2203_v43 }
 0x20b   :  { %2132 = vmatpush3.bf16.msra.mxu0 %v2203_v43  ;;  %2183 = vmatpush3.bf16.msra.mxu1 %v2203_v43 }
 0x20c   :  { %2133 = vmatprep.subr.bf16.mxu0 %v2204_v40  ;;  %2176 = vmatprep.subr.bf16.mxu1 %v2204_v40 }
 0x20f   :  { %2134 = vmatpush3.bf16.msra.mxu0 %v2204_v40  ;;  %2184 = vmatpush3.bf16.msra.mxu1 %v2204_v40 }
 0x210   :  { %2135 = vmatprep.subr.bf16.mxu0 %v2205_v63  ;;  %2177 = vmatprep.subr.bf16.mxu1 %v2205_v63 }
 0x213   :  { %2136 = vmatpush3.bf16.msra.mxu0 %v2205_v63  ;;  %2185 = vmatpush3.bf16.msra.mxu1 %v2205_v63 }
 0x214   :  { %2137 = vmatprep.subr.bf16.mxu0 %v2206_v42  ;;  %2178 = vmatprep.subr.bf16.mxu1 %v2206_v42 }
 0x217   :  { %2138 = vmatpush3.bf16.msra.mxu0 %v2206_v42  ;;  %2186 = vmatpush3.bf16.msra.mxu1 %v2206_v42 }
 0x2a1   :  { %v2093_v18 = vpop.f32.mrb[0].mxu0 }
 0x2a2   :  { %v3217_v36 = vadd.f32 %v2093_v18, %v3214_v56  ;;  %v904_v15 = vpop.f32.mrb[1].mxu0 }
 0x2a3   :  { %v3220_v37 = vadd.f32 %v3214_v56, %v904_v15  ;;  %v2094_v39 = vpop.f32.mrb[2].mxu0 }
 0x2a4   :  { %v1065_v4 = vmul.f32 0.044715, %v3217_v36  ;;  %v3224_v45 = vadd.f32 %v2094_v39, %v3214_v56  ;;  %v907_v35 = vpop.f32.mrb[3].mxu0 }
 0x2a5   :  { %v1063_v3 = vmul.f32 0.044715, %v3220_v37  ;;  %v3228_v31 = vadd.f32 %v3214_v56, %v907_v35 }
 0x2a6   :  { %v1097_v26 = vmul.f32 %v1065_v4, %v3217_v36  ;;  %v1066_v53 = vmul.f32 0.044715, %v3224_v45 }
 0x2a7   :  { %v1095_v49 = vmul.f32 %v1063_v3, %v3220_v37  ;;  %v1064_v60 = vmul.f32 0.044715, %v3228_v31  ;;  %v1033_v3 = vmul.f32 0.5, %v3217_v36 }
 0x2a8   :  { %v1129_v6 = vmul.f32 %v1097_v26, %v3217_v36  ;;  %v1098_v50 = vmul.f32 %v1066_v53, %v3224_v45  ;;  %v1031_v26 = vmul.f32 0.5, %v3220_v37 }
 0x2a9   :  { %v1127_v41 = vmul.f32 %v1095_v49, %v3220_v37  ;;  %v1096_v11 = vmul.f32 %v1064_v60, %v3228_v31  ;;  %v2097_v19 = vpop.f32.mrb[4].mxu0 }
 0x2aa   :  { %v1161_v52 = vadd.f32 %v1129_v6, %v3217_v36  ;;  %v1130_v57 = vmul.f32 %v1098_v50, %v3224_v45  ;;  %v3241_v32 = vadd.f32 %v2097_v19, %v3214_v56  ;;  %v920_v44 = vpop.f32.mrb[5].mxu0 }
 0x2ab   :  { %v1128_v33 = vmul.f32 %v1096_v11, %v3228_v31  ;;  %v3245_v61 = vadd.f32 %v3214_v56, %v920_v44  ;;  %v2098_v1 = vpop.f32.mrb[6].mxu0  ;;  %v1159_v0 = vadd.f32 %v1127_v41, %v3220_v37  ;;  %v1034_v11 = vmul.f32 0.5, %v3224_v45 }
 0x2ac   :  { %v1193_v20 = vmul.f32 0.7978846, %v1161_v52  ;;  %v1162_v58 = vadd.f32 %v1130_v57, %v3224_v45  ;;  %v1069_v46 = vmul.f32 0.044715, %v3241_v32  ;;  %v3251_v55 = vadd.f32 %v2098_v1, %v3214_v56  ;;  %v923_v2 = vpop.f32.mrb[7].mxu0 }
 0x2ad   :  { %v1067_v7 = vmul.f32 0.044715, %v3245_v61  ;;  %v3255_v27 = vadd.f32 %v3214_v56, %v923_v2  ;;  %v1160_v8 = vadd.f32 %v1128_v33, %v3228_v31  ;;  %v1191_v24 = vmul.f32 0.7978846, %v1159_v0 }
 0x2ae   :  { %2271 = vtanh.f32 %v1193_v20  ;;  %v1194_v51 = vmul.f32 0.7978846, %v1162_v58  ;;  %v1101_v25 = vmul.f32 %v1069_v46, %v3241_v32  ;;  %v1070_v12 = vmul.f32 0.044715, %v3251_v55 }
 0x2af   :  { %v1068_v10 = vmul.f32 0.044715, %v3255_v27  ;;  %v1192_v38 = vmul.f32 0.7978846, %v1160_v8  ;;  %2273 = vtanh.f32 %v1191_v24  ;;  %v1099_v34 = vmul.f32 %v1067_v7, %v3245_v61 }
 0x2b0   :  { %2275 = vtanh.f32 %v1194_v51  ;;  %v1133_v23 = vmul.f32 %v1101_v25, %v3241_v32  ;;  %v1102_v54 = vmul.f32 %v1070_v12, %v3251_v55  ;;  %v1032_v45 = vmul.f32 0.5, %v3228_v31 }
 0x2b1   :  { %v2101_v14 = vpop.f32.mrb[8].mxu0  ;;  %2277 = vtanh.f32 %v1192_v38  ;;  %v1100_v62 = vmul.f32 %v1068_v10, %v3255_v27  ;;  %v1131_v21 = vmul.f32 %v1099_v34, %v3245_v61  ;;  %v1035_v2 = vmul.f32 0.5, %v3245_v61 }
 0x2b2   :  { %v1134_v9 = vmul.f32 %v1102_v54, %v3251_v55  ;;  %v936_v29 = vpop.f32.mrb[9].mxu0  ;;  %v1165_v59 = vadd.f32 %v1133_v23, %v3241_v32  ;;  %v3273_v17 = vadd.f32 %v2101_v14, %v3214_v56 }
 0x2b3   :  { %v3268_v16 = vadd.f32 %v3214_v56, %v936_v29  ;;  %v2102_v13 = vpop.f32.mrb[10].mxu0  ;;  %v1132_v22 = vmul.f32 %v1100_v62, %v3255_v27  ;;  %v1163_v43 = vadd.f32 %v1131_v21, %v3245_v61  ;;  %v1037_v21 = vmul.f32 0.5, %v3241_v32 }
 0x2b4   :  { %v939_v47 = vpop.f32.mrb[11].mxu0  ;;  %v1166_v28 = vadd.f32 %v1134_v9, %v3251_v55  ;;  %v1197_v48 = vmul.f32 0.7978846, %v1165_v59  ;;  %v3283_v63 = vadd.f32 %v2102_v13, %v3214_v56  ;;  %v1073_v49 = vmul.f32 0.044715, %v3273_v17 }
 0x2b5   :  { %v1071_v30 = vmul.f32 0.044715, %v3268_v16  ;;  %v3278_v5 = vadd.f32 %v3214_v56, %v939_v47  ;;  %v1164_v40 = vadd.f32 %v1132_v22, %v3255_v27  ;;  %v1195_v39 = vmul.f32 0.7978846, %v1163_v43 }
 0x2b6   :  { %v1198_v42 = vmul.f32 0.7978846, %v1166_v28  ;;  %2279 = vtanh.f32 %v1197_v48  ;;  %v1074_v37 = vmul.f32 0.044715, %v3283_v63  ;;  %v1105_v7 = vmul.f32 %v1073_v49, %v3273_v17 }
 0x2b7   :  { %v1103_v18 = vmul.f32 %v1071_v30, %v3268_v16  ;;  %v1072_v15 = vmul.f32 0.044715, %v3278_v5  ;;  %v1196_v4 = vmul.f32 0.7978846, %v1164_v40  ;;  %v1036_v9 = vmul.f32 0.5, %v3255_v27 }
 0x2b8   :  { %v2272_v35 = vpop.eup %2271  ;;  %2281 = vtanh.f32 %v1198_v42  ;;  %v1106_v23 = vmul.f32 %v1074_v37, %v3283_v63  ;;  %v1137_v42 = vmul.f32 %v1105_v7, %v3273_v17  ;;  %v1038_v32 = vmul.f32 0.5, %v3251_v55 }
 0x2b9   :  { %v2274_v53 = vpop.eup %2273  ;;  %v1104_v60 = vmul.f32 %v1072_v15, %v3278_v5  ;;  %v2105_v6 = vpop.f32.mrb[12].mxu0  ;;  %v1257_v50 = vadd.f32 1.0, %v2272_v35  ;;  %2283 = vtanh.f32 %v1195_v39  ;;  %v1135_v19 = vmul.f32 %v1103_v18, %v3268_v16 }
 0x2ba   :  { %v2276_v41 = vpop.eup %2275  ;;  %v952_v52 = vpop.f32.mrb[13].mxu0  ;;  %v1255_v57 = vadd.f32 1.0, %v2274_v53  ;;  %2285 = vtanh.f32 %v1196_v4  ;;  %v3299_v20 = vadd.f32 %v2105_v6, %v3214_v56  ;;  %v1138_v18 = vmul.f32 %v1106_v23, %v3283_v63 }
 0x2bb   :  { %v2278_v36 = vpop.eup %2277  ;;  %v1136_v44 = vmul.f32 %v1104_v60, %v3278_v5  ;;  %v3296_v33 = vadd.f32 %v3214_v56, %v952_v52  ;;  %v2106_v1 = vpop.f32.mrb[14].mxu0  ;;  %v1258_v0 = vadd.f32 1.0, %v2276_v41  ;;  %v1289_v24 = vmul.f32 %v1257_v50, %v1033_v3 }
 0x2bc   :  { %v955_v58 = vpop.f32.mrb[15].mxu0  ;;  %v1256_v46 = vadd.f32 1.0, %v2278_v36  ;;  %v1287_v12 = vmul.f32 %v1255_v57, %v1031_v26  ;;  %v1167_v38 = vadd.f32 %v1135_v19, %v3268_v16  ;;  %v1077_v34 = vmul.f32 0.044715, %v3299_v20 }
 0x2bd   :  { %v3305_v8 = vadd.f32 %v3214_v56, %v955_v58  ;;  %v1290_v51 = vmul.f32 %v1258_v0, %v1034_v11  ;;  %v1075_v25 = vmul.f32 0.044715, %v3296_v33  ;;  %v1168_v61 = vadd.f32 %v1136_v44, %v3278_v5 }
 0x2be   :  { %v1288_v10 = vmul.f32 %v1256_v46, %v1032_v45  ;;  %v1199_v29 = vmul.f32 0.7978846, %v1167_v38  ;;  %v3315_v59 = vadd.f32 %v2106_v1, %v3214_v56  ;;  %v1109_v35 = vmul.f32 %v1077_v34, %v3299_v20 }
 0x2bf   :  { %v1076_v31 = vmul.f32 0.044715, %v3305_v8  ;;  %v1352_v54 = vpack.c.bf16 %v1290_v51, %v1289_v24  ;;  %v1200_v47 = vmul.f32 0.7978846, %v1168_v61  ;;  %v1107_v48 = vmul.f32 %v1075_v25, %v3296_v33 }
 0x2c0   :  { %v2280_v14 = vpop.eup %2279  ;;  %v1351_v62 = vpack.c.bf16 %v1288_v10, %v1287_v12  ;;  %2287 = vtanh.f32 %v1199_v29  ;;  %v1078_v49 = vmul.f32 0.044715, %v3315_v59  ;;  %v1039_v19 = vmul.f32 0.5, %v3268_v16 }
 0x2c1   :  { %v2109_v13 = vpop.f32.mrb[16].mxu0  ;;  %v1261_v22 = vadd.f32 1.0, %v2280_v14  ;;  %v1108_v30 = vmul.f32 %v1076_v31, %v3305_v8  ;;  %2289 = vtanh.f32 %v1200_v47  ;;  %v1139_v41 = vmul.f32 %v1107_v48, %v3296_v33 }
 0x2c2   :  { %v2282_v28 = vpop.eup %2281  ;;  %v3321_v43 = vadd.f32 %v2109_v13, %v3214_v56  ;;  %v968_v40 = vpop.f32.mrb[17].mxu0  ;;  %2139 = vmatprep.mubr.bf16.mxu0 %v1351_v62  ;;  %v1169_v0 = vadd.f32 %v1137_v42, %v3273_v17  ;;  %v1170_v58 = vadd.f32 %v1138_v18, %v3283_v63  ;;  %v1141_v45 = vmul.f32 %v1109_v35, %v3299_v20 }
 0x2c3   :  { %v2284_v27 = vpop.eup %2283  ;;  %v2110_v15 = vpop.f32.mrb[18].mxu0  ;;  %2140 = vmatmul.mubr.bf16.vlgmr.msra.gmra.mrb[32].mxu0 %v1352_v54  ;;  %v1262_v39 = vadd.f32 1.0, %v2282_v28  ;;  %v3328_v3 = vadd.f32 %v3214_v56, %v968_v40  ;;  %v1293_v6 = vmul.f32 %v1261_v22, %v1037_v21  ;;  %v1140_v11 = vmul.f32 %v1108_v30, %v3305_v8 }
 0x2c4   :  { %v2286_v4 = vpop.eup %2285  ;;  %v971_v26 = vpop.f32.mrb[19].mxu0  ;;  %v1259_v53 = vadd.f32 1.0, %v2284_v27  ;;  %v1081_v55 = vmul.f32 0.044715, %v3321_v43  ;;  %v3340_v1 = vadd.f32 %v2110_v15, %v3214_v56  ;;  %v1110_v46 = vmul.f32 %v1078_v49, %v3315_v59 }
 0x2c5   :  { %v1260_v60 = vadd.f32 1.0, %v2286_v4  ;;  %v1294_v50 = vmul.f32 %v1262_v39, %v1038_v32  ;;  %v3336_v52 = vadd.f32 %v3214_v56, %v971_v26  ;;  %v1079_v44 = vmul.f32 0.044715, %v3328_v3 }
 0x2c6   :  { %v1291_v57 = vmul.f32 %v1259_v53, %v1035_v2  ;;  %v1040_v24 = vmul.f32 0.5, %v3278_v5  ;;  %v3351_v25 = vmul.f32 0.5, %v3273_v17  ;;  %v1201_v12 = vmul.f32 0.7978846, %v1169_v0 }
 0x2c7   :  { %v1292_v36 = vmul.f32 %v1260_v60, %v1036_v9  ;;  %v1354_v37 = vpack.c.bf16 %v1294_v50, %v1293_v6  ;;  %v1202_v10 = vmul.f32 0.7978846, %v1170_v58  ;;  %v1113_v38 = vmul.f32 %v1081_v55, %v3321_v43 }
 0x2c8   :  { %v1080_v23 = vmul.f32 0.044715, %v3336_v52  ;;  %v1171_v5 = vadd.f32 %v1139_v41, %v3296_v33  ;;  %v1111_v14 = vmul.f32 %v1079_v44, %v3328_v3  ;;  %v1082_v34 = vmul.f32 0.044715, %v3340_v1 }
 0x2c9   :  { %v2113_v16 = vpop.f32.mrb[20].mxu0  ;;  %v1353_v7 = vpack.c.bf16 %v1292_v36, %v1291_v57  ;;  %2291 = vtanh.f32 %v1201_v12  ;;  %v1172_v62 = vadd.f32 %v1140_v11, %v3305_v8  ;;  %v1042_v13 = vmul.f32 0.5, %v3283_v63 }
 0x2ca   :  { %v3348_v2 = vadd.f32 %v2113_v16, %v3214_v56  ;;  %v984_v51 = vpop.f32.mrb[21].mxu0  ;;  %v2288_v61 = vpop.eup %2287  ;;  %2293 = vtanh.f32 %v1202_v10  ;;  %v1142_v22 = vmul.f32 %v1110_v46, %v3315_v59  ;;  %v1203_v28 = vmul.f32 0.7978846, %v1171_v5 }
 0x2cb   :  { %v3356_v31 = vadd.f32 %v3214_v56, %v984_v51  ;;  %2143 = vmatprep.mubr.bf16.mxu1 %v1353_v7  ;;  %v2114_v54 = vpop.f32.mrb[22].mxu0  ;;  %v1263_v29 = vadd.f32 1.0, %v2288_v61  ;;  %v2290_v21 = vpop.eup %2289  ;;  %v1204_v48 = vmul.f32 0.7978846, %v1172_v62  ;;  %v3369_v30 = vmul.f32 %v1113_v38, %v3321_v43 }
 0x2cc   :  { %2144 = vmatmul.mubr.bf16.vlgmr.msra.gmra.mrb[0].mxu1 %v1354_v37  ;;  %v987_v17 = vpop.f32.mrb[23].mxu0  ;;  %v3363_v9 = vadd.f32 %v2114_v54, %v3214_v56  ;;  %v1085_v47 = vmul.f32 0.044715, %v3348_v2  ;;  %v1112_v40 = vmul.f32 %v1080_v23, %v3336_v52  ;;  %v1264_v42 = vadd.f32 1.0, %v2290_v21 }
 0x2cd   :  { %v1083_v27 = vmul.f32 0.044715, %v3356_v31  ;;  %v1143_v18 = vmul.f32 %v1111_v14, %v3328_v3  ;;  %v1114_v63 = vmul.f32 %v1082_v34, %v3340_v1  ;;  %v3376_v15 = vadd.f32 %v3214_v56, %v987_v17 }
 0x2ce   :  { %2295 = vtanh.f32 %v1203_v28  ;;  %v1086_v32 = vmul.f32 0.044715, %v3363_v9  ;;  %v1295_v4 = vmul.f32 %v1263_v29, %v1039_v19  ;;  %v1296_v35 = vmul.f32 %v1264_v42, %v1040_v24 }
 0x2cf   :  { %2297 = vtanh.f32 %v1204_v48  ;;  %v1117_v26 = vmul.f32 %v1085_v47, %v3348_v2  ;;  %v1043_v60 = vmul.f32 0.5, %v3296_v33  ;;  %v1173_v6 = vadd.f32 %v1141_v45, %v3299_v20 }
 0x2d0   :  { %v1144_v50 = vmul.f32 %v1112_v40, %v3336_v52  ;;  %v1115_v41 = vmul.f32 %v1083_v27, %v3356_v31  ;;  %v1355_v11 = vpack.c.bf16 %v1296_v35, %v1295_v4  ;;  %v1174_v19 = vadd.f32 %v1142_v22, %v3315_v59 }
 0x2d1   :  { %v2117_v39 = vpop.f32.mrb[24].mxu0  ;;  %v1084_v57 = vmul.f32 0.044715, %v3376_v15  ;;  %v1205_v33 = vmul.f32 0.7978846, %v1173_v6  ;;  %v1146_v0 = vmul.f32 %v1114_v63, %v3340_v1  ;;  %v1118_v58 = vmul.f32 %v1086_v32, %v3363_v9 }
 0x2d2   :  { %v3381_v53 = vadd.f32 %v2117_v39, %v3214_v56  ;;  %v1000_v49 = vpop.f32.mrb[25].mxu0  ;;  %2147 = vmatprep.mubr.bf16.mxu1 %v1355_v11  ;;  %v1044_v45 = vmul.f32 0.5, %v3305_v8  ;;  %v1206_v46 = vmul.f32 0.7978846, %v1174_v19  ;;  %v3399_v7 = vmul.f32 %v1117_v26, %v3348_v2 }
 0x2d3   :  { %v2118_v55 = vpop.f32.mrb[26].mxu0  ;;  %v3390_v36 = vadd.f32 %v3214_v56, %v1000_v49  ;;  %v2292_v16 = vpop.eup %2291  ;;  %v3402_v24 = vmul.f32 0.5, %v3299_v20  ;;  %2299 = vtanh.f32 %v1205_v33  ;;  %v1175_v51 = vadd.f32 %v1143_v18, %v3328_v3 }
 0x2d4   :  { %v3393_v37 = vadd.f32 %v2118_v55, %v3214_v56  ;;  %v1003_v44 = vpop.f32.mrb[27].mxu0  ;;  %v2294_v12 = vpop.eup %2293  ;;  %v3406_v10 = vmul.f32 %v1115_v41, %v3356_v31  ;;  %v1089_v38 = vmul.f32 0.044715, %v3381_v53  ;;  %v1265_v23 = vadd.f32 1.0, %v2292_v16 }
 0x2d5   :  { %2301 = vtanh.f32 %v1206_v46  ;;  %v1116_v8 = vmul.f32 %v1084_v57, %v3376_v15  ;;  %v1087_v54 = vmul.f32 0.044715, %v3390_v36  ;;  %v1266_v5 = vadd.f32 1.0, %v2294_v12 }
 0x2d6   :  { %v1176_v61 = vadd.f32 %v1144_v50, %v3336_v52  ;;  %v1150_v20 = vmul.f32 %v1118_v58, %v3363_v9  ;;  %v1090_v14 = vmul.f32 0.044715, %v3393_v37  ;;  %v3415_v34 = vadd.f32 %v3214_v56, %v1003_v44 }
 0x2d7   :  { %v1207_v62 = vmul.f32 0.7978846, %v1175_v51  ;;  %v1297_v21 = vmul.f32 %v1265_v23, %v3351_v25  ;;  %v1298_v22 = vmul.f32 %v1266_v5, %v1042_v13  ;;  %v1121_v27 = vmul.f32 %v1089_v38, %v3381_v53 }
 0x2d8   :  { %v2296_v29 = vpop.eup %2295  ;;  %v1208_v48 = vmul.f32 0.7978846, %v1176_v61  ;;  %v1119_v32 = vmul.f32 %v1087_v54, %v3390_v36  ;;  %v1088_v35 = vmul.f32 0.044715, %v3415_v34  ;;  %v1046_v26 = vmul.f32 0.5, %v3315_v59 }
 0x2d9   :  { %v2121_v17 = vpop.f32.mrb[28].mxu0  ;;  %v2298_v40 = vpop.eup %2297  ;;  %v1267_v18 = vadd.f32 1.0, %v2296_v29  ;;  %2303 = vtanh.f32 %v1207_v62  ;;  %v1356_v39 = vpack.c.bf16 %v1298_v22, %v1297_v21  ;;  %v1148_v6 = vmul.f32 %v1116_v8, %v3376_v15 }
 0x2da   :  { %v3419_v47 = vadd.f32 %v2121_v17, %v3214_v56  ;;  %v1016_v28 = vpop.f32.mrb[29].mxu0  ;;  %v1268_v4 = vadd.f32 1.0, %v2298_v40  ;;  %2305 = vtanh.f32 %v1208_v48  ;;  %v1122_v50 = vmul.f32 %v1090_v14, %v3393_v37 }
 0x2db   :  { %v3423_v42 = vadd.f32 %v3214_v56, %v1016_v28  ;;  %v2122_v63 = vpop.f32.mrb[30].mxu0  ;;  %2148 = vmatmul.mubr.bf16.gmra.mrb[4].mxu1 %v1356_v39  ;;  %v1299_v41 = vmul.f32 %v1267_v18, %v1043_v60  ;;  %v1047_v19 = vmul.f32 0.5, %v3328_v3  ;;  %v1048_v57 = vmul.f32 0.5, %v3336_v52 }
 0x2dc   :  { %v3427_v25 = vadd.f32 %v2122_v63, %v3214_v56  ;;  %v1019_v13 = vpop.f32.mrb[31].mxu0  ;;  %v1300_v11 = vmul.f32 %v1268_v4, %v1044_v45  ;;  %v1177_v59 = vadd.f32 %v3369_v30, %v3321_v43  ;;  %v1151_v33 = vmul.f32 %v1119_v32, %v3390_v36 }
 0x2dd   :  { %v3432_v49 = vadd.f32 %v3214_v56, %v1019_v13  ;;  %v1091_v55 = vmul.f32 0.044715, %v3423_v42  ;;  %v2300_v44 = vpop.eup %2299  ;;  %v1153_v56 = vmul.f32 %v1121_v27, %v3381_v53  ;;  %v1178_v46 = vadd.f32 %v1146_v0, %v3340_v1 }
 0x2de   :  { %v1357_v58 = vpack.c.bf16 %v1300_v11, %v1299_v41  ;;  %v1120_v60 = vmul.f32 %v1088_v35, %v3415_v34  ;;  %v1269_v45 = vadd.f32 1.0, %v2300_v44  ;;  %v1209_v3 = vmul.f32 0.7978846, %v1177_v59 }
 0x2df   :  { %v2302_v16 = vpop.eup %2301  ;;  %v1092_v51 = vmul.f32 0.044715, %v3432_v49  ;;  %v1154_v52 = vmul.f32 %v1122_v50, %v3393_v37  ;;  %v1093_v12 = vmul.f32 0.044715, %v3419_v47  ;;  %v1210_v38 = vmul.f32 0.7978846, %v1178_v46 }
 0x2e0   :  { %2151 = vmatprep.mubr.bf16.mxu1 %v1357_v58  ;;  %v1270_v30 = vadd.f32 1.0, %v2302_v16  ;;  %v1123_v23 = vmul.f32 %v1091_v55, %v3423_v42  ;;  %v1094_v8 = vmul.f32 0.044715, %v3427_v25  ;;  %v1301_v0 = vmul.f32 %v1269_v45, %v3402_v24 }
 0x2e1   :  { %2307 = vtanh.f32 %v1209_v3  ;;  %v1179_v5 = vadd.f32 %v3406_v10, %v3356_v31  ;;  %v1180_v61 = vadd.f32 %v1148_v6, %v3376_v15  ;;  %v1152_v17 = vmul.f32 %v1120_v60, %v3415_v34 }
 0x2e2   :  { %v1302_v54 = vmul.f32 %v1270_v30, %v1046_v26  ;;  %2309 = vtanh.f32 %v1210_v38  ;;  %v1124_v62 = vmul.f32 %v1092_v51, %v3432_v49  ;;  %v1181_v29 = vadd.f32 %v3399_v7, %v3348_v2 }
 0x2e3   :  { %v2304_v14 = vpop.eup %2303  ;;  %v1182_v21 = vadd.f32 %v1150_v20, %v3363_v9  ;;  %v1211_v28 = vmul.f32 0.7978846, %v1179_v5  ;;  %v1212_v48 = vmul.f32 0.7978846, %v1180_v61  ;;  %v1125_v27 = vmul.f32 %v1093_v12, %v3419_v47 }
 0x2e4   :  { %v1358_v22 = vpack.c.bf16 %v1302_v54, %v1301_v0  ;;  %v1271_v24 = vadd.f32 1.0, %v2304_v14  ;;  %v2306_v40 = vpop.eup %2305  ;;  %v1126_v10 = vmul.f32 %v1094_v8, %v3427_v25  ;;  %v1213_v18 = vmul.f32 0.7978846, %v1181_v29 }
 0x2e5   :  { %v1214_v63 = vmul.f32 0.7978846, %v1182_v21  ;;  %v1155_v32 = vmul.f32 %v1123_v23, %v3423_v42  ;;  %v1272_v39 = vadd.f32 1.0, %v2306_v40  ;;  %2311 = vtanh.f32 %v1211_v28 }
 0x2e6   :  { %2152 = vmatmul.mubr.bf16.gmra.mrb[8].mxu1 %v1358_v22  ;;  %v1183_v7 = vadd.f32 %v1151_v33, %v3390_v36  ;;  %v1156_v20 = vmul.f32 %v1124_v62, %v3432_v49  ;;  %v1303_v4 = vmul.f32 %v1271_v24, %v1047_v19  ;;  %2313 = vtanh.f32 %v1212_v48 }
 0x2e7   :  { %v1184_v13 = vadd.f32 %v1152_v17, %v3415_v34  ;;  %v1304_v35 = vmul.f32 %v1272_v39, %v1048_v57  ;;  %2315 = vtanh.f32 %v1213_v18  ;;  %v1185_v6 = vadd.f32 %v1153_v56, %v3381_v53 }
 0x2e8   :  { %v1215_v26 = vmul.f32 0.7978846, %v1183_v7  ;;  %v1157_v50 = vmul.f32 %v1125_v27, %v3419_v47  ;;  %2317 = vtanh.f32 %v1214_v63  ;;  %v1186_v11 = vadd.f32 %v1154_v52, %v3393_v37 }
 0x2e9   :  { %v1216_v41 = vmul.f32 0.7978846, %v1184_v13  ;;  %v1158_v55 = vmul.f32 %v1126_v10, %v3427_v25  ;;  %v1359_v59 = vpack.c.bf16 %v1304_v35, %v1303_v4  ;;  %v1217_v44 = vmul.f32 0.7978846, %v1185_v6 }
 0x2ea   :  { %2319 = vtanh.f32 %v1215_v26  ;;  %v1218_v33 = vmul.f32 0.7978846, %v1186_v11  ;;  %v1187_v57 = vadd.f32 %v1155_v32, %v3423_v42  ;;  %v1188_v58 = vadd.f32 %v1156_v20, %v3432_v49 }
 0x2eb   :  { %v2308_v19 = vpop.eup %2307  ;;  %2321 = vtanh.f32 %v1216_v41  ;;  %2155 = vmatprep.mubr.bf16.mxu1 %v1359_v59  ;;  %v1049_v56 = vmul.f32 0.5, %v3321_v43  ;;  %v1050_v16 = vmul.f32 0.5, %v3340_v1  ;;  %v1189_v52 = vadd.f32 %v1157_v50, %v3419_v47 }
 0x2ec   :  { %v2310_v46 = vpop.eup %2309  ;;  %v1273_v60 = vadd.f32 1.0, %v2308_v19  ;;  %2323 = vtanh.f32 %v1217_v44  ;;  %v1219_v51 = vmul.f32 0.7978846, %v1187_v57  ;;  %v1220_v3 = vmul.f32 0.7978846, %v1188_v58 }
 0x2ed   :  { %v1274_v45 = vadd.f32 1.0, %v2310_v46  ;;  %2325 = vtanh.f32 %v1218_v33  ;;  %v1190_v12 = vadd.f32 %v1158_v55, %v3427_v25  ;;  %v1221_v8 = vmul.f32 0.7978846, %v1189_v52 }
 0x2ee   :  { %v1305_v30 = vmul.f32 %v1273_v60, %v1049_v56  ;;  %2327 = vtanh.f32 %v1219_v51  ;;  %v1051_v61 = vmul.f32 0.5, %v3356_v31  ;;  %v1052_v14 = vmul.f32 0.5, %v3376_v15 }
 0x2ef   :  { %v1306_v38 = vmul.f32 %v1274_v45, %v1050_v16  ;;  %v2312_v23 = vpop.eup %2311  ;;  %2329 = vtanh.f32 %v1220_v3  ;;  %v1222_v0 = vmul.f32 0.7978846, %v1190_v12  ;;  %v1053_v29 = vmul.f32 0.5, %v3348_v2 }
 0x2f0   :  { %v2314_v43 = vpop.eup %2313  ;;  %v1275_v1 = vadd.f32 1.0, %v2312_v23  ;;  %2331 = vtanh.f32 %v1221_v8  ;;  %v1054_v48 = vmul.f32 0.5, %v3363_v9  ;;  %v1055_v10 = vmul.f32 0.5, %v3390_v36  ;;  %v1320_v8 = vld [vmem:[#allocation3 + $0x8] sm:$0xff] }
 0x2f1   :  { %v1360_v54 = vpack.c.bf16 %v1306_v38, %v1305_v30  ;;  %v2316_v5 = vpop.eup %2315  ;;  %v1276_v17 = vadd.f32 1.0, %v2314_v43  ;;  %2333 = vtanh.f32 %v1222_v0  ;;  %v1056_v31 = vmul.f32 0.5, %v3415_v34  ;;  %v1322_v30 = vld [vmem:[#allocation3 + $0x18] sm:$0xff] }
 0x2f2   :  { %v2318_v62 = vpop.eup %2317  ;;  %v1277_v21 = vadd.f32 1.0, %v2316_v5  ;;  %v1307_v24 = vmul.f32 %v1275_v1, %v1051_v61  ;;  %v1057_v20 = vmul.f32 0.5, %v3381_v53  ;;  %v1058_v4 = vmul.f32 0.5, %v3393_v37  ;;  %v1325_v1 = vld [vmem:[#allocation3 + $0x30] sm:$0xff]  ;;  %v1323_v5 = vld [vmem:[#allocation3 + $0x20] sm:$0xff] }
 0x2f3   :  { %2156 = vmatmul.mubr.bf16.gmra.mrb[12].mxu1 %v1360_v54  ;;  %v1308_v28 = vmul.f32 %v1276_v17, %v1052_v14  ;;  %v1278_v40 = vadd.f32 1.0, %v2318_v62  ;;  %v1059_v59 = vmul.f32 0.5, %v3423_v42  ;;  %v1060_v44 = vmul.f32 0.5, %v3432_v49  ;;  %v1321_v42 = vld [vmem:[#allocation3 + $0x10] sm:$0xff]  ;;  %v1319_v49 = vld [vmem:[#allocation3] sm:$0xff]  ;;  %v1326_v14 = vld [vmem:[#allocation3 + $0x38] sm:$0xff] }
 0x2f4   :  { %v2320_v22 = vpop.eup %2319  ;;  %v1309_v32 = vmul.f32 %v1277_v21, %v1053_v29  ;;  %v1061_v56 = vmul.f32 0.5, %v3419_v47  ;;  %v1062_v16 = vmul.f32 0.5, %v3427_v25  ;;  %v1324_v21 = vld [vmem:[#allocation3 + $0x28] sm:$0xff] }
 0x2f5   :  { %v2322_v27 = vpop.eup %2321  ;;  %v1279_v15 = vadd.f32 1.0, %v2320_v22  ;;  %v1361_v63 = vpack.c.bf16 %v1308_v28, %v1307_v24  ;;  %v1310_v39 = vmul.f32 %v1278_v40, %v1054_v48 }
 0x2f6   :  { %v2324_v18 = vpop.eup %2323  ;;  %v1280_v7 = vadd.f32 1.0, %v2322_v27 }
 0x2f7   :  { %v2326_v2 = vpop.eup %2325  ;;  %v1281_v13 = vadd.f32 1.0, %v2324_v18  ;;  %2159 = vmatprep.mubr.bf16.mxu1 %v1361_v63  ;;  %v1362_v9 = vpack.c.bf16 %v1310_v39, %v1309_v32  ;;  %v1311_v35 = vmul.f32 %v1279_v15, %v1055_v10 }
 0x2f8   :  { %v1312_v26 = vmul.f32 %v1280_v7, %v1056_v31  ;;  %v1282_v6 = vadd.f32 1.0, %v2326_v2  ;;  %v2328_v36 = vpop.eup %2327 }
 0x2f9   :  { %v2330_v50 = vpop.eup %2329  ;;  %v1313_v41 = vmul.f32 %v1281_v13, %v1057_v20  ;;  %v1283_v55 = vadd.f32 1.0, %v2328_v36 }
 0x2fa   :  { %v1363_v34 = vpack.c.bf16 %v1312_v26, %v1311_v35  ;;  %v1314_v11 = vmul.f32 %v1282_v6, %v1058_v4  ;;  %v1284_v53 = vadd.f32 1.0, %v2330_v50  ;;  %v2332_v19 = vpop.eup %2331  ;;  %v1329_v26 = vld [vmem:[#allocation3 + $0x50] sm:$0xff]  ;;  %v1327_v6 = vld [vmem:[#allocation3 + $0x40] sm:$0xff]  ;;  %v1330_v50 = vld [vmem:[#allocation3 + $0x58] sm:$0xff] }
 0x2fb   :  { %2160 = vmatmul.mubr.bf16.gmra.mrb[16].mxu1 %v1362_v9  ;;  %v2334_v33 = vpop.eup %2333  ;;  %v1315_v57 = vmul.f32 %v1283_v55, %v1059_v59  ;;  %v1285_v46 = vadd.f32 1.0, %v2332_v19 }
 0x2fc   :  { %2163 = vmatprep.mubr.bf16.mxu1 %v1363_v34  ;;  %v1364_v37 = vpack.c.bf16 %v1314_v11, %v1313_v41  ;;  %v1316_v58 = vmul.f32 %v1284_v53, %v1060_v44  ;;  %v1286_v60 = vadd.f32 1.0, %v2334_v33  ;;  %v1328_v11 = vld [vmem:[#allocation3 + $0x48] sm:$0xff]  ;;  %v1331_v33 = vld [vmem:[#allocation3 + $0x60] sm:$0xff] }
 0x2fd   :  { %v1317_v51 = vmul.f32 %v1285_v46, %v1061_v56  ;;  %v1334_v46 = vld [vmem:[#allocation3 + $0x78] sm:$0xff] }
 0x2fe   :  { %v1365_v45 = vpack.c.bf16 %v1316_v58, %v1315_v57  ;;  %v1318_v3 = vmul.f32 %v1286_v60, %v1062_v16 }
 0x300   :  { %v1366_v52 = vpack.c.bf16 %v1318_v3, %v1317_v51  ;;  %v1332_v51 = vld [vmem:[#allocation3 + $0x68] sm:$0xff] }
 0x303   :  { %2164 = vmatmul.mubr.bf16.gmra.mrb[20].mxu1 %v1364_v37  ;;  %v1333_v37 = vld [vmem:[#allocation3 + $0x70] sm:$0xff] }
 0x304   :  { %2167 = vmatprep.mubr.bf16.mxu1 %v1365_v45 }
 0x30b   :  { %2168 = vmatmul.mubr.bf16.gmra.mrb[24].mxu1 %v1366_v52 }
 0x396   :  { %v2141_v12 = vpop.f32.mrb[32].mxu0 }
 0x397   :  { %v1594_v38 = vadd.f32 %v2141_v12, %v1321_v42  ;;  %v1465_v23 = vpop.f32.mrb[33].mxu0 }
 0x398   :  { %v1592_v0 = vadd.f32 %v1465_v23, %v1319_v49  ;;  %v2142_v43 = vpop.f32.mrb[34].mxu0 }
 0x399   :  { %1626 = vst.msk [vmem:[#allocation3 + $0x10] sm:$0xff] %vm185_vm0, %v1594_v38  ;;  %v1595_v47 = vadd.f32 %v2142_v43, %v1322_v30  ;;  %v1468_v25 = vpop.f32.mrb[35].mxu0 }
 0x39a   :  { %1624 = vst.msk [vmem:[#allocation3] sm:$0xff] %vm185_vm0, %v1592_v0  ;;  %v1593_v54 = vadd.f32 %v1468_v25, %v1320_v8 }
 0x39b   :  { %1627 = vst.msk [vmem:[#allocation3 + $0x18] sm:$0xff] %vm185_vm0, %v1595_v47 }
 0x39c   :  { %1625 = vst.msk [vmem:[#allocation3 + $0x8] sm:$0xff] %vm185_vm0, %v1593_v54  ;;  %v1337_v54 = vld [vmem:[#allocation3 + $0x90] sm:$0xff] }
 0x39f   :  { %v2145_v61 = vpop.f32.mrb[0].mxu1 }
 0x3a0   :  { %v1661_v17 = vld [vmem:[#allocation3 + $0x10] sm:$0xff]  ;;  %v1598_v62 = vadd.f32 %v2145_v61, %v1325_v1  ;;  %v1481_v29 = vpop.f32.mrb[1].mxu1  ;;  %v1335_v61 = vld [vmem:[#allocation3 + $0x80] sm:$0xff] }
 0x3a1   :  { %v1936_v22 = vpack.c.bf16 %v1661_v17, %v1661_v17  ;;  %v1659_v24 = vld [vmem:[#allocation3] sm:$0xff]  ;;  %v1596_v28 = vadd.f32 %v1481_v29, %v1323_v5  ;;  %v2146_v48 = vpop.f32.mrb[2].mxu1  ;;  %v1338_v29 = vld [vmem:[#allocation3 + $0x98] sm:$0xff] }
 0x3a2   :  { %v1934_v40 = vpack.c.bf16 %v1659_v24, %v1659_v24  ;;  %v1662_v27 = vld [vmem:[#allocation3 + $0x18] sm:$0xff]  ;;  %1630 = vst.msk [vmem:[#allocation3 + $0x30] sm:$0xff] %vm185_vm0, %v1598_v62  ;;  %v1599_v10 = vadd.f32 %v2146_v48, %v1326_v14  ;;  %v1484_v31 = vpop.f32.mrb[3].mxu1 }
 0x3a3   :  { %1822 = vst.msk [vmem:[#allocation16 + $0x8] sm:$0xf] %vm1819_vm1, %v1936_v22  ;;  %v1937_v15 = vpack.c.bf16 %v1662_v27, %v1662_v27  ;;  %v1660_v18 = vld [vmem:[#allocation3 + $0x8] sm:$0xff]  ;;  %v1597_v63 = vadd.f32 %v1484_v31, %v1324_v21 }
 0x3a4   :  { %1628 = vst.msk [vmem:[#allocation3 + $0x20] sm:$0xff] %vm185_vm0, %v1596_v28  ;;  %v1935_v32 = vpack.c.bf16 %v1660_v18, %v1660_v18  ;;  %1631 = vst.msk [vmem:[#allocation3 + $0x38] sm:$0xff] %vm185_vm0, %v1599_v10  ;;  %v1336_v28 = vld [vmem:[#allocation3 + $0x88] sm:$0xff]  ;;  %v1339_v18 = vld [vmem:[#allocation3 + $0xa0] sm:$0xff] }
 0x3a5   :  { %1820 = vst.msk [vmem:[#allocation16] sm:$0xf] %vm1819_vm1, %v1934_v40  ;;  %1823 = vst.msk [vmem:[#allocation16 + $0xc] sm:$0xf] %vm1819_vm1, %v1937_v15  ;;  %v1341_v15 = vld [vmem:[#allocation3 + $0xb0] sm:$0xff] }
 0x3a6   :  { %1629 = vst.msk [vmem:[#allocation3 + $0x28] sm:$0xff] %vm185_vm0, %v1597_v63 }
 0x3a7   :  { %1821 = vst.msk [vmem:[#allocation16 + $0x4] sm:$0xf] %vm1819_vm1, %v1935_v32  ;;  %v1342_v32 = vld [vmem:[#allocation3 + $0xb8] sm:$0xff] }
 0x3a9   :  { %v1665_v39 = vld [vmem:[#allocation3 + $0x30] sm:$0xff] }
 0x3aa   :  { %v1940_v7 = vpack.c.bf16 %v1665_v39, %v1665_v39 }
 0x3ab   :  { %v1663_v2 = vld [vmem:[#allocation3 + $0x20] sm:$0xff]  ;;  %v1666_v4 = vld [vmem:[#allocation3 + $0x38] sm:$0xff] }
 0x3ac   :  { %v1938_v20 = vpack.c.bf16 %v1663_v2, %v1663_v2  ;;  %1826 = vst.msk [vmem:[#allocation16 + $0x18] sm:$0xf] %vm1819_vm1, %v1940_v7  ;;  %v1941_v13 = vpack.c.bf16 %v1666_v4, %v1666_v4  ;;  %v1340_v2 = vld [vmem:[#allocation3 + $0xa8] sm:$0xff] }
 0x3ad   :  { %v1664_v9 = vld [vmem:[#allocation3 + $0x28] sm:$0xff] }
 0x3ae   :  { %1824 = vst.msk [vmem:[#allocation16 + $0x10] sm:$0xf] %vm1819_vm1, %v1938_v20  ;;  %v1939_v35 = vpack.c.bf16 %v1664_v9, %v1664_v9  ;;  %1827 = vst.msk [vmem:[#allocation16 + $0x1c] sm:$0xf] %vm1819_vm1, %v1941_v13  ;;  %v2149_v36 = vpop.f32.mrb[4].mxu1 }
 0x3af   :  { %v1602_v34 = vadd.f32 %v2149_v36, %v1329_v26  ;;  %v1497_v41 = vpop.f32.mrb[5].mxu1 }
 0x3b0   :  { %1825 = vst.msk [vmem:[#allocation16 + $0x14] sm:$0xf] %vm1819_vm1, %v1939_v35  ;;  %v1600_v55 = vadd.f32 %v1497_v41, %v1327_v6  ;;  %v2150_v59 = vpop.f32.mrb[6].mxu1 }
 0x3b1   :  { %1634 = vst.msk [vmem:[#allocation3 + $0x50] sm:$0xff] %vm185_vm0, %v1602_v34  ;;  %v1603_v44 = vadd.f32 %v2150_v59, %v1330_v50  ;;  %v1500_v53 = vpop.f32.mrb[7].mxu1  ;;  %v1345_v59 = vld [vmem:[#allocation3 + $0xd0] sm:$0xff] }
 0x3b2   :  { %1632 = vst.msk [vmem:[#allocation3 + $0x40] sm:$0xff] %vm185_vm0, %v1600_v55  ;;  %v1601_v19 = vadd.f32 %v1500_v53, %v1328_v11 }
 0x3b3   :  { %1635 = vst.msk [vmem:[#allocation3 + $0x58] sm:$0xff] %vm185_vm0, %v1603_v44  ;;  %v1343_v44 = vld [vmem:[#allocation3 + $0xc0] sm:$0xff] }
 0x3b4   :  { %1633 = vst.msk [vmem:[#allocation3 + $0x48] sm:$0xff] %vm185_vm0, %v1601_v19  ;;  %v1346_v19 = vld [vmem:[#allocation3 + $0xd8] sm:$0xff] }
 0x3b8   :  { %v1669_v57 = vld [vmem:[#allocation3 + $0x50] sm:$0xff] }
 0x3b9   :  { %v2153_v58 = vpop.f32.mrb[8].mxu1  ;;  %v1944_v56 = vpack.c.bf16 %v1669_v57, %v1669_v57  ;;  %v1667_v16 = vld [vmem:[#allocation3 + $0x40] sm:$0xff]  ;;  %v1344_v57 = vld [vmem:[#allocation3 + $0xc8] sm:$0xff] }
 0x3ba   :  { %v1606_v60 = vadd.f32 %v2153_v58, %v1333_v37  ;;  %v1513_v45 = vpop.f32.mrb[9].mxu1  ;;  %v1942_v3 = vpack.c.bf16 %v1667_v16, %v1667_v16  ;;  %v1670_v52 = vld [vmem:[#allocation3 + $0x58] sm:$0xff] }
 0x3bb   :  { %v1604_v42 = vadd.f32 %v1513_v45, %v1331_v33  ;;  %v2154_v49 = vpop.f32.mrb[10].mxu1  ;;  %1830 = vst.msk [vmem:[#allocation16 + $0x28] sm:$0xf] %vm1819_vm1, %v1944_v56  ;;  %v1945_v12 = vpack.c.bf16 %v1670_v52, %v1670_v52  ;;  %v1668_v30 = vld [vmem:[#allocation3 + $0x48] sm:$0xff] }
 0x3bc   :  { %1638 = vst.msk [vmem:[#allocation3 + $0x70] sm:$0xff] %vm185_vm0, %v1606_v60  ;;  %v1607_v38 = vadd.f32 %v2154_v49, %v1334_v46  ;;  %v1516_v23 = vpop.f32.mrb[11].mxu1  ;;  %v1943_v8 = vpack.c.bf16 %v1668_v30, %v1668_v30 }
 0x3bd   :  { %1828 = vst.msk [vmem:[#allocation16 + $0x20] sm:$0xf] %vm1819_vm1, %v1942_v3  ;;  %v1605_v0 = vadd.f32 %v1516_v23, %v1332_v51  ;;  %1831 = vst.msk [vmem:[#allocation16 + $0x2c] sm:$0xf] %vm1819_vm1, %v1945_v12  ;;  %v1347_v23 = vld [vmem:[#allocation3 + $0xe0] sm:$0xff] }
 0x3be   :  { %1636 = vst.msk [vmem:[#allocation3 + $0x60] sm:$0xff] %vm185_vm0, %v1604_v42  ;;  %1639 = vst.msk [vmem:[#allocation3 + $0x78] sm:$0xff] %vm185_vm0, %v1607_v38  ;;  %v1349_v38 = vld [vmem:[#allocation3 + $0xf0] sm:$0xff] }
 0x3bf   :  { %1829 = vst.msk [vmem:[#allocation16 + $0x24] sm:$0xf] %vm1819_vm1, %v1943_v8 }
 0x3c0   :  { %1637 = vst.msk [vmem:[#allocation3 + $0x68] sm:$0xff] %vm185_vm0, %v1605_v0  ;;  %v1350_v0 = vld [vmem:[#allocation3 + $0xf8] sm:$0xff] }
 0x3c3   :  { %v1673_v43 = vld [vmem:[#allocation3 + $0x70] sm:$0xff] }
 0x3c4   :  { %v1948_v47 = vpack.c.bf16 %v1673_v43, %v1673_v43 }
 0x3c5   :  { %v1671_v25 = vld [vmem:[#allocation3 + $0x60] sm:$0xff]  ;;  %v1674_v5 = vld [vmem:[#allocation3 + $0x78] sm:$0xff] }
 0x3c6   :  { %v1946_v1 = vpack.c.bf16 %v1671_v25, %v1671_v25  ;;  %1834 = vst.msk [vmem:[#allocation16 + $0x38] sm:$0xf] %vm1819_vm1, %v1948_v47  ;;  %v1949_v14 = vpack.c.bf16 %v1674_v5, %v1674_v5  ;;  %v2157_v62 = vpop.f32.mrb[12].mxu1  ;;  %v1348_v25 = vld [vmem:[#allocation3 + $0xe8] sm:$0xff] }
 0x3c7   :  { %v1672_v17 = vld [vmem:[#allocation3 + $0x68] sm:$0xff]  ;;  %v1610_v22 = vadd.f32 %v2157_v62, %v1337_v54  ;;  %v1529_v24 = vpop.f32.mrb[13].mxu1 }
 0x3c8   :  { %1832 = vst.msk [vmem:[#allocation16 + $0x30] sm:$0xf] %vm1819_vm1, %v1946_v1  ;;  %v1947_v21 = vpack.c.bf16 %v1672_v17, %v1672_v17  ;;  %1835 = vst.msk [vmem:[#allocation16 + $0x3c] sm:$0xf] %vm1819_vm1, %v1949_v14  ;;  %v1608_v48 = vadd.f32 %v1529_v24, %v1335_v61  ;;  %v2158_v40 = vpop.f32.mrb[14].mxu1 }
 0x3c9   :  { %1642 = vst.msk [vmem:[#allocation3 + $0x90] sm:$0xff] %vm185_vm0, %v1610_v22  ;;  %v1611_v27 = vadd.f32 %v2158_v40, %v1338_v29  ;;  %v1532_v10 = vpop.f32.mrb[15].mxu1 }
 0x3ca   :  { %1833 = vst.msk [vmem:[#allocation16 + $0x34] sm:$0xf] %vm1819_vm1, %v1947_v21  ;;  %v1609_v31 = vadd.f32 %v1532_v10, %v1336_v28 }
 0x3cb   :  { %1640 = vst.msk [vmem:[#allocation3 + $0x80] sm:$0xff] %vm185_vm0, %v1608_v48  ;;  %1643 = vst.msk [vmem:[#allocation3 + $0x98] sm:$0xff] %vm185_vm0, %v1611_v27 }
 0x3cc   :  { %1641 = vst.msk [vmem:[#allocation3 + $0x88] sm:$0xff] %vm185_vm0, %v1609_v31 }
 0x3ce   :  { %v2161_v63 = vpop.f32.mrb[16].mxu1 }
 0x3cf   :  { %v1614_v39 = vadd.f32 %v2161_v63, %v1341_v15  ;;  %v1545_v7 = vpop.f32.mrb[17].mxu1 }
 0x3d0   :  { %v1677_v20 = vld [vmem:[#allocation3 + $0x90] sm:$0xff]  ;;  %v1612_v4 = vadd.f32 %v1545_v7, %v1339_v18  ;;  %v2162_v13 = vpop.f32.mrb[18].mxu1 }
 0x3d1   :  { %v1952_v9 = vpack.c.bf16 %v1677_v20, %v1677_v20  ;;  %1646 = vst.msk [vmem:[#allocation3 + $0xb0] sm:$0xff] %vm185_vm0, %v1614_v39  ;;  %v1615_v26 = vadd.f32 %v2162_v13, %v1342_v32  ;;  %v1548_v6 = vpop.f32.mrb[19].mxu1 }
 0x3d2   :  { %v1675_v35 = vld [vmem:[#allocation3 + $0x80] sm:$0xff]  ;;  %v1678_v50 = vld [vmem:[#allocation3 + $0x98] sm:$0xff]  ;;  %1644 = vst.msk [vmem:[#allocation3 + $0xa0] sm:$0xff] %vm185_vm0, %v1612_v4  ;;  %v1613_v34 = vadd.f32 %v1548_v6, %v1340_v2 }
 0x3d3   :  { %v1950_v36 = vpack.c.bf16 %v1675_v35, %v1675_v35  ;;  %1838 = vst.msk [vmem:[#allocation16 + $0x48] sm:$0xf] %vm1819_vm1, %v1952_v9  ;;  %v1953_v41 = vpack.c.bf16 %v1678_v50, %v1678_v50  ;;  %v1676_v11 = vld [vmem:[#allocation3 + $0x88] sm:$0xff] }
 0x3d4   :  { %1647 = vst.msk [vmem:[#allocation3 + $0xb8] sm:$0xff] %vm185_vm0, %v1615_v26  ;;  %v1951_v55 = vpack.c.bf16 %v1676_v11, %v1676_v11  ;;  %1645 = vst.msk [vmem:[#allocation3 + $0xa8] sm:$0xff] %vm185_vm0, %v1613_v34 }
 0x3d5   :  { %1836 = vst.msk [vmem:[#allocation16 + $0x40] sm:$0xf] %vm1819_vm1, %v1950_v36  ;;  %1839 = vst.msk [vmem:[#allocation16 + $0x4c] sm:$0xf] %vm1819_vm1, %v1953_v41 }
 0x3d6   :  { %1837 = vst.msk [vmem:[#allocation16 + $0x44] sm:$0xf] %vm1819_vm1, %v1951_v55  ;;  %v2165_v53 = vpop.f32.mrb[20].mxu1 }
 0x3d7   :  { %v1618_v37 = vadd.f32 %v2165_v53, %v1345_v59  ;;  %v1561_v33 = vpop.f32.mrb[21].mxu1 }
 0x3d8   :  { %v1681_v58 = vld [vmem:[#allocation3 + $0xb0] sm:$0xff]  ;;  %v1616_v46 = vadd.f32 %v1561_v33, %v1343_v44  ;;  %v2166_v56 = vpop.f32.mrb[22].mxu1 }
 0x3d9   :  { %v1956_v16 = vpack.c.bf16 %v1681_v58, %v1681_v58  ;;  %v1679_v60 = vld [vmem:[#allocation3 + $0xa0] sm:$0xff]  ;;  %1650 = vst.msk [vmem:[#allocation3 + $0xd0] sm:$0xff] %vm185_vm0, %v1618_v37  ;;  %v1619_v45 = vadd.f32 %v2166_v56, %v1346_v19  ;;  %v1564_v51 = vpop.f32.mrb[23].mxu1 }
 0x3da   :  { %v1954_v3 = vpack.c.bf16 %v1679_v60, %v1679_v60  ;;  %1648 = vst.msk [vmem:[#allocation3 + $0xc0] sm:$0xff] %vm185_vm0, %v1616_v46  ;;  %v1617_v42 = vadd.f32 %v1564_v51, %v1344_v57 }
 0x3db   :  { %v1682_v52 = vld [vmem:[#allocation3 + $0xb8] sm:$0xff]  ;;  %1842 = vst.msk [vmem:[#allocation16 + $0x58] sm:$0xf] %vm1819_vm1, %v1956_v16  ;;  %v1680_v12 = vld [vmem:[#allocation3 + $0xa8] sm:$0xff] }
 0x3dc   :  { %v1957_v49 = vpack.c.bf16 %v1682_v52, %v1682_v52  ;;  %1651 = vst.msk [vmem:[#allocation3 + $0xd8] sm:$0xff] %vm185_vm0, %v1619_v45  ;;  %v1955_v30 = vpack.c.bf16 %v1680_v12, %v1680_v12  ;;  %1649 = vst.msk [vmem:[#allocation3 + $0xc8] sm:$0xff] %vm185_vm0, %v1617_v42 }
 0x3dd   :  { %1840 = vst.msk [vmem:[#allocation16 + $0x50] sm:$0xf] %vm1819_vm1, %v1954_v3 }
 0x3de   :  { %1843 = vst.msk [vmem:[#allocation16 + $0x5c] sm:$0xf] %vm1819_vm1, %v1957_v49  ;;  %1841 = vst.msk [vmem:[#allocation16 + $0x54] sm:$0xf] %vm1819_vm1, %v1955_v30  ;;  %v2169_v8 = vpop.f32.mrb[24].mxu1 }
 0x3df   :  { %v1622_v43 = vadd.f32 %v2169_v8, %v1349_v38  ;;  %v1577_v47 = vpop.f32.mrb[25].mxu1 }
 0x3e0   :  { %v1685_v54 = vld [vmem:[#allocation3 + $0xd0] sm:$0xff]  ;;  %v1620_v1 = vadd.f32 %v1577_v47, %v1347_v23  ;;  %v2170_v5 = vpop.f32.mrb[26].mxu1 }
 0x3e1   :  { %v1960_v61 = vpack.c.bf16 %v1685_v54, %v1685_v54  ;;  %v1683_v14 = vld [vmem:[#allocation3 + $0xc0] sm:$0xff]  ;;  %1654 = vst.msk [vmem:[#allocation3 + $0xf0] sm:$0xff] %vm185_vm0, %v1622_v43  ;;  %v1623_v17 = vadd.f32 %v2170_v5, %v1350_v0  ;;  %v1580_v62 = vpop.f32.mrb[27].mxu1 }
 0x3e2   :  { %v1958_v29 = vpack.c.bf16 %v1683_v14, %v1683_v14  ;;  %1652 = vst.msk [vmem:[#allocation3 + $0xe0] sm:$0xff] %vm185_vm0, %v1620_v1  ;;  %v1621_v22 = vadd.f32 %v1580_v62, %v1348_v25 }
 0x3e3   :  { %v1686_v21 = vld [vmem:[#allocation3 + $0xd8] sm:$0xff]  ;;  %1846 = vst.msk [vmem:[#allocation16 + $0x68] sm:$0xf] %vm1819_vm1, %v1960_v61  ;;  %v1684_v28 = vld [vmem:[#allocation3 + $0xc8] sm:$0xff] }
 0x3e4   :  { %v1961_v24 = vpack.c.bf16 %v1686_v21, %v1686_v21  ;;  %1655 = vst.msk [vmem:[#allocation3 + $0xf8] sm:$0xff] %vm185_vm0, %v1623_v17  ;;  %v1959_v48 = vpack.c.bf16 %v1684_v28, %v1684_v28  ;;  %1653 = vst.msk [vmem:[#allocation3 + $0xe8] sm:$0xff] %vm185_vm0, %v1621_v22 }
 0x3e5   :  { %1844 = vst.msk [vmem:[#allocation16 + $0x60] sm:$0xf] %vm1819_vm1, %v1958_v29 }
 0x3e6   :  { %1847 = vst.msk [vmem:[#allocation16 + $0x6c] sm:$0xf] %vm1819_vm1, %v1961_v24  ;;  %1845 = vst.msk [vmem:[#allocation16 + $0x64] sm:$0xf] %vm1819_vm1, %v1959_v48 }
 0x3e8   :  { %v1689_v40 = vld [vmem:[#allocation3 + $0xf0] sm:$0xff] }
 0x3e9   :  { %v1964_v27 = vpack.c.bf16 %v1689_v40, %v1689_v40  ;;  %v1687_v10 = vld [vmem:[#allocation3 + $0xe0] sm:$0xff] }
 0x3ea   :  { %v1962_v31 = vpack.c.bf16 %v1687_v10, %v1687_v10 }
 0x3eb   :  { %v1690_v15 = vld [vmem:[#allocation3 + $0xf8] sm:$0xff]  ;;  %1850 = vst.msk [vmem:[#allocation16 + $0x78] sm:$0xf] %vm1819_vm1, %v1964_v27  ;;  %v1688_v63 = vld [vmem:[#allocation3 + $0xe8] sm:$0xff] }
 0x3ec   :  { %v1965_v18 = vpack.c.bf16 %v1690_v15, %v1690_v15  ;;  %1848 = vst.msk [vmem:[#allocation16 + $0x70] sm:$0xf] %vm1819_vm1, %v1962_v31  ;;  %v1963_v32 = vpack.c.bf16 %v1688_v63, %v1688_v63 }
 0x3ee   :  { %1851 = vst.msk [vmem:[#allocation16 + $0x7c] sm:$0xf] %vm1819_vm1, %v1965_v18  ;;  %1849 = vst.msk [vmem:[#allocation16 + $0x74] sm:$0xf] %vm1819_vm1, %v1963_v32 }
 0x3ef   :  { %2500 = shalt.err (!%p2497_p4)
}
 0x3f0   :  { %s2501_s20 = scalar_lea.hbm %s3573_s7, 2048 }
 0x3f1   :  { %p2502_p5 = scmp.ne.s32.totalorder %s3573_s7, %s2501_s20  ;;  %p2505_p6 = scmp.lt.u32.totalorder %s2501_s20, %s3573_s7 }
 0x3f3   :  { %p2507_p7 = pnand %p2505_p6, %p2502_p5 }
 0x3f5   :  { %2510 = shalt.err (!%p2507_p7)
}
 0x3f6   :  { %1863 = dma.vmem_to_hbm [thread:$0]  %s1858_s14, 2048, %s3573_s7, [#allocation6], %s2524_s25, %s2524_s25, %s2525_s26  }
 0x3f7   :  { %2519 = dma.done.wait [#allocation6], 2048  }
 0x3f8   :  { %2520 = vsyncadd [#allocation6], 4294965248 }
 0x3f9   :  { %1867 = vsyncpa [#allocation5], 1 }
 0x3fa   :  { %1868 = vsyncpa [#allocation8], 1 }
 0x3fb   :  { %1869 = vsyncpa [#allocation11], 1 }
 0x3fc   :  { %1870 = vsyncpa [#allocation14], 1 }
 0x3fd   :  { %1871 = vsyncpa [#allocation6], 1 }

</bundles_post_ra>
